<compile_context>
chip_gen: v6e
topology: v6e:2x2x1
jax: 0.10.0
libtpu: 0.0.40
codegen_flags: <defaults>
</compile_context>

<pallas_src>
import math

import jax
import jax.numpy as jnp
from jax import lax
from jax.experimental import pallas as pl
from jax.experimental.pallas import tpu as pltpu

EMBED = 768
NUM_HEADS = 8
HEAD_DIM = EMBED // NUM_HEADS        # 96 (true head dim -> softmax scale)
HEAD_PAD = 128                       # padded head dim -> 128-lane aligned slices
QKV_PAD = NUM_HEADS * HEAD_PAD       # 1024
FF_HIDDEN = 256
IMP_HIDDEN = 256
N_CLASSES = 2
LN_EPS = 1e-5
BN_EPS = 1e-5
NORM_EPS = 1e-12


def _layernorm(x, g, b):
    mu = jnp.mean(x, axis=-1, keepdims=True)
    xc = x - mu
    var = jnp.mean(xc * xc, axis=-1, keepdims=True)
    return xc * lax.rsqrt(var + LN_EPS) * g + b


def llm_semantics_kernel(
    # features
    thesis_ref, llm_ref, lm_ref,
    # importance head (eval-BN folded into w1/b1); weights bf16, biases f32
    imp_w1_ref, imp_b1_ref, imp_w2_ref, imp_b2_ref,
    # SelfAttention_Module params (head-padded 96->128, weights bf16)
    in_w_ref, in_b_ref, out_w_ref, out_b_ref,
    ln1_g_ref, ln1_b_ref, ffn_w1_ref, ffn_b1_ref, ffn_w2_ref, ffn_b2_ref,
    ln2_g_ref, ln2_b_ref,
    # outputs
    out_ref, pred_ref,
):
    f32 = jnp.float32
    bf16 = jnp.bfloat16

    thesis = thesis_ref[...]                       # (B, 768) f32
    llm = llm_ref[...] * lm_ref[...]               # (B, 768) * (1, 768)
    llm_bf = llm.astype(bf16)

    # ---- LLM_analysis_importance: Linear(+folded BN) -> ReLU -> Linear -> Sigmoid
    h = jnp.dot(llm_bf, imp_w1_ref[...], preferred_element_type=f32) + imp_b1_ref[...]
    h = jnp.maximum(h, 0.0)
    logits = (jnp.dot(h.astype(bf16), imp_w2_ref[...], preferred_element_type=f32)
              + imp_b2_ref[...])
    pred_ref[...] = pl.reciprocal(1.0 + jnp.exp(-logits), approx=True)

    # ---- SelfAttention_Module (unbatched MHA: the B rows are the sequence)
    x = llm
    qkv = (jnp.dot(llm_bf, in_w_ref[...], preferred_element_type=f32)
           + in_b_ref[...])                                           # (B, 3*1024)
    q = qkv[:, 0:QKV_PAD]
    k = qkv[:, QKV_PAD:2 * QKV_PAD]
    v = qkv[:, 2 * QKV_PAD:3 * QKV_PAD]
    scale = 1.0 / math.sqrt(HEAD_DIM)              # true head dim (96), not the padded 128
    head_outs = []
    for hd in range(NUM_HEADS):
        lo = hd * HEAD_PAD                          # 128-lane aligned slice starts
        hi = lo + HEAD_PAD
        qh = q[:, lo:hi]
        kh = k[:, lo:hi]
        vh = v[:, lo:hi]
        s = jnp.dot(qh, kh.T, preferred_element_type=f32) * scale     # (B, B); pad lanes are 0
        e = jnp.exp(s - jnp.max(s, axis=-1, keepdims=True))
        a = e / jnp.sum(e, axis=-1, keepdims=True)                    # attn dropout = identity (eval)
        head_outs.append(jnp.dot(a, vh, preferred_element_type=f32))  # (B, 128); last 32 cols 0
    attn = jnp.concatenate(head_outs, axis=-1)                        # (B, 1024), lane-aligned
    attn = (jnp.dot(attn.astype(bf16), out_w_ref[...], preferred_element_type=f32)
            + out_b_ref[...])

    x = x + attn                                                      # dropout = identity (eval)
    x = _layernorm(x, ln1_g_ref[...], ln1_b_ref[...])
    ff = (jnp.dot(x.astype(bf16), ffn_w1_ref[...], preferred_element_type=f32)
          + ffn_b1_ref[...])
    ff = jnp.maximum(ff, 0.0)
    ff = (jnp.dot(ff.astype(bf16), ffn_w2_ref[...], preferred_element_type=f32)
          + ffn_b2_ref[...])
    x = x + ff                                                        # dropout = identity (eval)
    x = _layernorm(x, ln2_g_ref[...], ln2_b_ref[...])

    # ---- Dissimilarity_Attention_Module
    tn = jnp.maximum(jnp.sqrt(jnp.sum(thesis * thesis, axis=1, keepdims=True)), NORM_EPS)
    q_norm = thesis / tn
    xn = jnp.maximum(jnp.sqrt(jnp.sum(x * x, axis=1, keepdims=True)), NORM_EPS)
    k_norm = x / xn
    scores = q_norm * k_norm
    out_ref[...] = jnp.exp(-1.0 * scores) * x


def make_params(key):
    """Deterministic synthetic parameters matching the module's shapes.

    PyTorch Linear weights are (out, in); here they are stored pre-transposed
    as (in, out) so the kernel computes x @ W + b directly.
    """
    ks = jax.random.split(key, 16)
    s = 0.02
    return dict(
        learnable_matrix=jax.random.uniform(ks[0], (1, EMBED), jnp.float32),
        # importance head
        imp_w1=s * jax.random.normal(ks[1], (EMBED, IMP_HIDDEN), jnp.float32),
        imp_b1=jnp.zeros((1, IMP_HIDDEN), jnp.float32),
        bn_gamma=jnp.ones((1, IMP_HIDDEN), jnp.float32),
        bn_beta=jnp.zeros((1, IMP_HIDDEN), jnp.float32),
        bn_mean=jnp.zeros((1, IMP_HIDDEN), jnp.float32),
        bn_var=jnp.ones((1, IMP_HIDDEN), jnp.float32),
        imp_w2=s * jax.random.normal(ks[2], (IMP_HIDDEN, N_CLASSES), jnp.float32),
        imp_b2=jnp.zeros((1, N_CLASSES), jnp.float32),
        # self-attention block
        in_proj_w=s * jax.random.normal(ks[3], (EMBED, 3 * EMBED), jnp.float32),
        in_proj_b=jnp.zeros((1, 3 * EMBED), jnp.float32),
        out_proj_w=s * jax.random.normal(ks[4], (EMBED, EMBED), jnp.float32),
        out_proj_b=jnp.zeros((1, EMBED), jnp.float32),
        ln1_g=jnp.ones((1, EMBED), jnp.float32),
        ln1_b=jnp.zeros((1, EMBED), jnp.float32),
        ffn_w1=s * jax.random.normal(ks[5], (EMBED, FF_HIDDEN), jnp.float32),
        ffn_b1=jnp.zeros((1, FF_HIDDEN), jnp.float32),
        ffn_w2=s * jax.random.normal(ks[6], (FF_HIDDEN, EMBED), jnp.float32),
        ffn_b2=jnp.zeros((1, EMBED), jnp.float32),
        ln2_g=jnp.ones((1, EMBED), jnp.float32),
        ln2_b=jnp.zeros((1, EMBED), jnp.float32),
        # SciBERT stand-in embedding tables (TODO(synk): full SciBERT not reproduced)
        emb_thesis=jax.random.normal(ks[7], (64, EMBED), jnp.float32),
        emb_llm=jax.random.normal(ks[8], (64, EMBED), jnp.float32),
    )


def _pad_head_cols(w):
    """(in, NUM_HEADS*96) -> (in, NUM_HEADS*128), zero-padded per head."""
    d_in = w.shape[0]
    w = w.reshape(d_in, NUM_HEADS, HEAD_DIM)
    w = jnp.pad(w, ((0, 0), (0, 0), (0, HEAD_PAD - HEAD_DIM)))
    return w.reshape(d_in, QKV_PAD)


def _pad_head_rows(w):
    """(NUM_HEADS*96, out) -> (NUM_HEADS*128, out), zero-padded per head."""
    d_out = w.shape[1]
    w = w.reshape(NUM_HEADS, HEAD_DIM, d_out)
    w = jnp.pad(w, ((0, 0), (0, HEAD_PAD - HEAD_DIM), (0, 0)))
    return w.reshape(QKV_PAD, d_out)


def _pad_head_bias(b):
    """(1, NUM_HEADS*96) -> (1, NUM_HEADS*128), zero-padded per head."""
    b = b.reshape(1, NUM_HEADS, HEAD_DIM)
    b = jnp.pad(b, ((0, 0), (0, 0), (0, HEAD_PAD - HEAD_DIM)))
    return b.reshape(1, QKV_PAD)


def prepare_kernel_params(p):
    """One-time parameter prep: fold eval-BN, pad heads 96->128, cast big weights to bf16."""
    bf16 = jnp.bfloat16
    f32 = jnp.float32
    # Fold eval-mode BatchNorm1d into the first Linear of the importance head.
    scale = p["bn_gamma"] * lax.rsqrt(p["bn_var"] + BN_EPS)           # (1, 256)
    shift = p["bn_beta"] - p["bn_mean"] * scale
    imp_w1 = (p["imp_w1"] * scale).astype(bf16)
    imp_b1 = (p["imp_b1"] * scale + shift).astype(f32)
    # Pad every attention head so per-head q/k/v slices start at multiples of 128 lanes.
    qw, kw, vw = jnp.split(p["in_proj_w"], 3, axis=1)                 # each (768, 768)
    qb, kb, vb = jnp.split(p["in_proj_b"], 3, axis=1)                 # each (1, 768)
    in_w = jnp.concatenate(
        [_pad_head_cols(qw), _pad_head_cols(kw), _pad_head_cols(vw)], axis=1).astype(bf16)
    in_b = jnp.concatenate(
        [_pad_head_bias(qb), _pad_head_bias(kb), _pad_head_bias(vb)], axis=1).astype(f32)
    out_w = _pad_head_rows(p["out_proj_w"]).astype(bf16)
    return dict(
        learnable_matrix=p["learnable_matrix"],
        imp_w1=imp_w1, imp_b1=imp_b1,
        imp_w2=p["imp_w2"].astype(bf16), imp_b2=p["imp_b2"],
        in_w=in_w, in_b=in_b,
        out_w=out_w, out_b=p["out_proj_b"],
        ln1_g=p["ln1_g"], ln1_b=p["ln1_b"],
        ffn_w1=p["ffn_w1"].astype(bf16), ffn_b1=p["ffn_b1"],
        ffn_w2=p["ffn_w2"].astype(bf16), ffn_b2=p["ffn_b2"],
        ln2_g=p["ln2_g"], ln2_b=p["ln2_b"],
        emb_thesis=p["emb_thesis"], emb_llm=p["emb_llm"],
    )


def llm_semantics_analysis(kparams,
                           thesis_input_ids, thesis_token_type_ids, thesis_attention_mask,
                           llm_input_ids, llm_token_type_ids, llm_attention_mask):
    del thesis_token_type_ids, thesis_attention_mask, llm_token_type_ids, llm_attention_mask
    # TODO(synk): deterministic stand-in for the two frozen SciBERT encoders —
    #             take the [CLS]-position token embedding as the (B, 768) feature.
    thesis_feature = kparams["emb_thesis"][thesis_input_ids[:, 0]]
    llm_feature = kparams["emb_llm"][llm_input_ids[:, 0]]
    B = thesis_feature.shape[0]

    args = (
        thesis_feature, llm_feature, kparams["learnable_matrix"],
        kparams["imp_w1"], kparams["imp_b1"], kparams["imp_w2"], kparams["imp_b2"],
        kparams["in_w"], kparams["in_b"], kparams["out_w"], kparams["out_b"],
        kparams["ln1_g"], kparams["ln1_b"],
        kparams["ffn_w1"], kparams["ffn_b1"], kparams["ffn_w2"], kparams["ffn_b2"],
        kparams["ln2_g"], kparams["ln2_b"],
    )

    vmem_spec = pl.BlockSpec(memory_space=pltpu.MemorySpace.VMEM)
    out, pred = pl.pallas_call(
        llm_semantics_kernel,
        out_shape=(
            jax.ShapeDtypeStruct((B, EMBED), jnp.float32),
            jax.ShapeDtypeStruct((B, N_CLASSES), jnp.float32),
        ),
        in_specs=[vmem_spec] * len(args),
        out_specs=(vmem_spec, vmem_spec),
        # ~8 MB actual residency (bf16 weights + tiny activations); 32 MiB fits
        # comfortably under v7x's 64 MiB physical VMEM and v5e/v6e's 128 MiB.
        compiler_params=pltpu.CompilerParams(vmem_limit_bytes=32 * 1024 * 1024),
    )(*args)
    return out, pred


if __name__ == "__main__":
    B, SEQ, VOCAB = 8, 16, 64
    key = jax.random.PRNGKey(0)
    k_params, k1, k2 = jax.random.split(key, 3)
    params = make_params(k_params)
    kparams = prepare_kernel_params(params)   # one-time: BN fold, head padding, bf16 cast

    thesis_input_ids = jax.random.randint(k1, (B, SEQ), 0, VOCAB, dtype=jnp.int32)
    llm_input_ids = jax.random.randint(k2, (B, SEQ), 0, VOCAB, dtype=jnp.int32)
    token_type_ids = jnp.zeros((B, SEQ), jnp.int32)
    attention_mask = jnp.ones((B, SEQ), jnp.int32)

    out, pred = jax.jit(llm_semantics_analysis)(
        kparams,
        thesis_input_ids, token_type_ids, attention_mask,
        llm_input_ids, token_type_ids, attention_mask,
    )
    jax.block_until_ready((out, pred))
    assert out.shape == (B, EMBED) and pred.shape == (B, N_CLASSES)
    assert bool(jnp.all(jnp.isfinite(out))) and bool(jnp.all(jnp.isfinite(pred)))
    print("KERNEL_OK")
</pallas_src>

<mosaic_0001>
module attributes {stable_mosaic.version = 11 : i64} {
  func.func @llm_semantics_kernel(%arg0: memref<8x768xf32, #tpu.memory_space<vmem>>, %arg1: memref<8x768xf32, #tpu.memory_space<vmem>>, %arg2: memref<1x768xf32, #tpu.memory_space<vmem>>, %arg3: memref<768x256xbf16, #tpu.memory_space<vmem>>, %arg4: memref<1x256xf32, #tpu.memory_space<vmem>>, %arg5: memref<256x2xbf16, #tpu.memory_space<vmem>>, %arg6: memref<1x2xf32, #tpu.memory_space<vmem>>, %arg7: memref<768x3072xbf16, #tpu.memory_space<vmem>>, %arg8: memref<1x3072xf32, #tpu.memory_space<vmem>>, %arg9: memref<1024x768xbf16, #tpu.memory_space<vmem>>, %arg10: memref<1x768xf32, #tpu.memory_space<vmem>>, %arg11: memref<1x768xf32, #tpu.memory_space<vmem>>, %arg12: memref<1x768xf32, #tpu.memory_space<vmem>>, %arg13: memref<768x256xbf16, #tpu.memory_space<vmem>>, %arg14: memref<1x256xf32, #tpu.memory_space<vmem>>, %arg15: memref<256x768xbf16, #tpu.memory_space<vmem>>, %arg16: memref<1x768xf32, #tpu.memory_space<vmem>>, %arg17: memref<1x768xf32, #tpu.memory_space<vmem>>, %arg18: memref<1x768xf32, #tpu.memory_space<vmem>>, %arg19: memref<8x768xf32, #tpu.memory_space<vmem>>, %arg20: memref<8x2xf32, #tpu.memory_space<vmem>>) attributes {dimension_semantics = [], scalar_prefetch = 0 : i64, scratch_operands = 0 : i64, tpu.core_type = #tpu.core_type<tc>} {
    %c0 = arith.constant 0 : index
    %c0_0 = arith.constant 0 : index
    %0 = vector.load %arg0[%c0, %c0_0] : memref<8x768xf32, #tpu.memory_space<vmem>>, vector<8x768xf32>
    %c0_1 = arith.constant 0 : index
    %c0_2 = arith.constant 0 : index
    %1 = vector.load %arg1[%c0_1, %c0_2] : memref<8x768xf32, #tpu.memory_space<vmem>>, vector<8x768xf32>
    %c0_3 = arith.constant 0 : index
    %c0_4 = arith.constant 0 : index
    %2 = vector.load %arg2[%c0_3, %c0_4] : memref<1x768xf32, #tpu.memory_space<vmem>>, vector<1x768xf32>
    %3 = vector.broadcast %2 : vector<1x768xf32> to vector<8x768xf32>
    %4 = arith.mulf %1, %3 : vector<8x768xf32>
    %5 = arith.truncf %4 : vector<8x768xf32> to vector<8x768xbf16>
    %c0_5 = arith.constant 0 : index
    %c0_6 = arith.constant 0 : index
    %6 = vector.load %arg3[%c0_5, %c0_6] : memref<768x256xbf16, #tpu.memory_space<vmem>>, vector<768x256xbf16>
    %cst = arith.constant dense<0.000000e+00> : vector<8x256xf32>
    %7 = tpu.matmul %5, %6, %cst {dimension_numbers = #tpu.dot_dimension_numbers<[1], [0], [0], [1], [0, 0, 1, 1], [], []>} : vector<8x768xbf16>, vector<768x256xbf16>, vector<8x256xf32> -> vector<8x256xf32>
    %c0_7 = arith.constant 0 : index
    %c0_8 = arith.constant 0 : index
    %8 = vector.load %arg4[%c0_7, %c0_8] : memref<1x256xf32, #tpu.memory_space<vmem>>, vector<1x256xf32>
    %9 = vector.broadcast %8 : vector<1x256xf32> to vector<8x256xf32>
    %10 = arith.addf %7, %9 : vector<8x256xf32>
    %cst_9 = arith.constant 0.000000e+00 : f32
    %11 = vector.broadcast %cst_9 : f32 to vector<8x256xf32>
    %12 = arith.maximumf %10, %11 : vector<8x256xf32>
    %13 = arith.truncf %12 : vector<8x256xf32> to vector<8x256xbf16>
    %c0_10 = arith.constant 0 : index
    %c0_11 = arith.constant 0 : index
    %14 = vector.load %arg5[%c0_10, %c0_11] : memref<256x2xbf16, #tpu.memory_space<vmem>>, vector<256x2xbf16>
    %cst_12 = arith.constant dense<0.000000e+00> : vector<8x2xf32>
    %15 = tpu.matmul %13, %14, %cst_12 {dimension_numbers = #tpu.dot_dimension_numbers<[1], [0], [0], [1], [0, 0, 1, 1], [], []>} : vector<8x256xbf16>, vector<256x2xbf16>, vector<8x2xf32> -> vector<8x2xf32>
    %c0_13 = arith.constant 0 : index
    %c0_14 = arith.constant 0 : index
    %16 = vector.load %arg6[%c0_13, %c0_14] : memref<1x2xf32, #tpu.memory_space<vmem>>, vector<1x2xf32>
    %17 = vector.broadcast %16 : vector<1x2xf32> to vector<8x2xf32>
    %18 = arith.addf %15, %17 : vector<8x2xf32>
    %cst_15 = arith.constant 0.000000e+00 : f32
    %19 = vector.broadcast %cst_15 : f32 to vector<8x2xf32>
    %20 = arith.subf %19, %18 : vector<8x2xf32>
    %21 = math.exp %20 : vector<8x2xf32>
    %cst_16 = arith.constant 1.000000e+00 : f32
    %22 = vector.broadcast %cst_16 : f32 to vector<8x2xf32>
    %23 = arith.addf %22, %21 : vector<8x2xf32>
    %24 = tpu.reciprocal %23 {approx = true} : vector<8x2xf32> -> vector<8x2xf32>
    %c0_17 = arith.constant 0 : index
    %c0_18 = arith.constant 0 : index
    %25 = vector.load %arg20[%c0_17, %c0_18] : memref<8x2xf32, #tpu.memory_space<vmem>>, vector<8x2xf32>
    tpu.vector_store %arg20[%c0_17, %c0_18], %24 {strides = array<i32>} : memref<8x2xf32, #tpu.memory_space<vmem>>, vector<8x2xf32>,
    %c0_19 = arith.constant 0 : index
    %c0_20 = arith.constant 0 : index
    %26 = vector.load %arg7[%c0_19, %c0_20] : memref<768x3072xbf16, #tpu.memory_space<vmem>>, vector<768x3072xbf16>
    %cst_21 = arith.constant dense<0.000000e+00> : vector<8x3072xf32>
    %27 = tpu.matmul %5, %26, %cst_21 {dimension_numbers = #tpu.dot_dimension_numbers<[1], [0], [0], [1], [0, 0, 1, 1], [], []>} : vector<8x768xbf16>, vector<768x3072xbf16>, vector<8x3072xf32> -> vector<8x3072xf32>
    %c0_22 = arith.constant 0 : index
    %c0_23 = arith.constant 0 : index
    %28 = vector.load %arg8[%c0_22, %c0_23] : memref<1x3072xf32, #tpu.memory_space<vmem>>, vector<1x3072xf32>
    %29 = vector.broadcast %28 : vector<1x3072xf32> to vector<8x3072xf32>
    %30 = arith.addf %27, %29 : vector<8x3072xf32>
    %31 = vector.extract_strided_slice %30 {offsets = [0, 0], sizes = [8, 1024], strides = [1, 1]} : vector<8x3072xf32> to vector<8x1024xf32>
    %32 = vector.extract_strided_slice %30 {offsets = [0, 1024], sizes = [8, 1024], strides = [1, 1]} : vector<8x3072xf32> to vector<8x1024xf32>
    %33 = vector.extract_strided_slice %30 {offsets = [0, 2048], sizes = [8, 1024], strides = [1, 1]} : vector<8x3072xf32> to vector<8x1024xf32>
    %34 = vector.extract_strided_slice %31 {offsets = [0, 0], sizes = [8, 128], strides = [1, 1]} : vector<8x1024xf32> to vector<8x128xf32>
    %35 = vector.extract_strided_slice %32 {offsets = [0, 0], sizes = [8, 128], strides = [1, 1]} : vector<8x1024xf32> to vector<8x128xf32>
    %36 = vector.extract_strided_slice %33 {offsets = [0, 0], sizes = [8, 128], strides = [1, 1]} : vector<8x1024xf32> to vector<8x128xf32>
    %37 = tpu.transpose %35, [1, 0] : vector<8x128xf32> -> vector<128x8xf32>
    %cst_24 = arith.constant dense<0.000000e+00> : vector<8x8xf32>
    %38 = tpu.matmul %34, %37, %cst_24 {dimension_numbers = #tpu.dot_dimension_numbers<[1], [0], [0], [1], [0, 0, 1, 1], [], []>} : vector<8x128xf32>, vector<128x8xf32>, vector<8x8xf32> -> vector<8x8xf32>
    %cst_25 = arith.constant 0.102062076 : f32
    %39 = vector.broadcast %cst_25 : f32 to vector<8x8xf32>
    %40 = arith.mulf %38, %39 : vector<8x8xf32>
    %cst_26 = arith.constant dense<0xFF800000> : vector<8xf32>
    %41 = vector.multi_reduction <maximumf>, %40, %cst_26 [1] : vector<8x8xf32> to vector<8xf32>
    %42 = vector.shape_cast %41 : vector<8xf32> to vector<8x1xf32>
    %43 = vector.broadcast %42 : vector<8x1xf32> to vector<8x8xf32>
    %44 = arith.subf %40, %43 : vector<8x8xf32>
    %45 = math.exp %44 : vector<8x8xf32>
    %cst_27 = arith.constant dense<0.000000e+00> : vector<8xf32>
    %46 = vector.multi_reduction <add>, %45, %cst_27 [1] : vector<8x8xf32> to vector<8xf32>
    %47 = vector.shape_cast %46 : vector<8xf32> to vector<8x1xf32>
    %48 = vector.broadcast %47 : vector<8x1xf32> to vector<8x8xf32>
    %49 = arith.divf %45, %48 : vector<8x8xf32>
    %cst_28 = arith.constant dense<0.000000e+00> : vector<8x128xf32>
    %50 = tpu.matmul %49, %36, %cst_28 {dimension_numbers = #tpu.dot_dimension_numbers<[1], [0], [0], [1], [0, 0, 1, 1], [], []>} : vector<8x8xf32>, vector<8x128xf32>, vector<8x128xf32> -> vector<8x128xf32>
    %51 = vector.extract_strided_slice %31 {offsets = [0, 128], sizes = [8, 128], strides = [1, 1]} : vector<8x1024xf32> to vector<8x128xf32>
    %52 = vector.extract_strided_slice %32 {offsets = [0, 128], sizes = [8, 128], strides = [1, 1]} : vector<8x1024xf32> to vector<8x128xf32>
    %53 = vector.extract_strided_slice %33 {offsets = [0, 128], sizes = [8, 128], strides = [1, 1]} : vector<8x1024xf32> to vector<8x128xf32>
    %54 = tpu.transpose %52, [1, 0] : vector<8x128xf32> -> vector<128x8xf32>
    %cst_29 = arith.constant dense<0.000000e+00> : vector<8x8xf32>
    %55 = tpu.matmul %51, %54, %cst_29 {dimension_numbers = #tpu.dot_dimension_numbers<[1], [0], [0], [1], [0, 0, 1, 1], [], []>} : vector<8x128xf32>, vector<128x8xf32>, vector<8x8xf32> -> vector<8x8xf32>
    %cst_30 = arith.constant 0.102062076 : f32
    %56 = vector.broadcast %cst_30 : f32 to vector<8x8xf32>
    %57 = arith.mulf %55, %56 : vector<8x8xf32>
    %cst_31 = arith.constant dense<0xFF800000> : vector<8xf32>
    %58 = vector.multi_reduction <maximumf>, %57, %cst_31 [1] : vector<8x8xf32> to vector<8xf32>
    %59 = vector.shape_cast %58 : vector<8xf32> to vector<8x1xf32>
    %60 = vector.broadcast %59 : vector<8x1xf32> to vector<8x8xf32>
    %61 = arith.subf %57, %60 : vector<8x8xf32>
    %62 = math.exp %61 : vector<8x8xf32>
    %cst_32 = arith.constant dense<0.000000e+00> : vector<8xf32>
    %63 = vector.multi_reduction <add>, %62, %cst_32 [1] : vector<8x8xf32> to vector<8xf32>
    %64 = vector.shape_cast %63 : vector<8xf32> to vector<8x1xf32>
    %65 = vector.broadcast %64 : vector<8x1xf32> to vector<8x8xf32>
    %66 = arith.divf %62, %65 : vector<8x8xf32>
    %cst_33 = arith.constant dense<0.000000e+00> : vector<8x128xf32>
    %67 = tpu.matmul %66, %53, %cst_33 {dimension_numbers = #tpu.dot_dimension_numbers<[1], [0], [0], [1], [0, 0, 1, 1], [], []>} : vector<8x8xf32>, vector<8x128xf32>, vector<8x128xf32> -> vector<8x128xf32>
    %68 = vector.extract_strided_slice %31 {offsets = [0, 256], sizes = [8, 128], strides = [1, 1]} : vector<8x1024xf32> to vector<8x128xf32>
    %69 = vector.extract_strided_slice %32 {offsets = [0, 256], sizes = [8, 128], strides = [1, 1]} : vector<8x1024xf32> to vector<8x128xf32>
    %70 = vector.extract_strided_slice %33 {offsets = [0, 256], sizes = [8, 128], strides = [1, 1]} : vector<8x1024xf32> to vector<8x128xf32>
    %71 = tpu.transpose %69, [1, 0] : vector<8x128xf32> -> vector<128x8xf32>
    %cst_34 = arith.constant dense<0.000000e+00> : vector<8x8xf32>
    %72 = tpu.matmul %68, %71, %cst_34 {dimension_numbers = #tpu.dot_dimension_numbers<[1], [0], [0], [1], [0, 0, 1, 1], [], []>} : vector<8x128xf32>, vector<128x8xf32>, vector<8x8xf32> -> vector<8x8xf32>
    %cst_35 = arith.constant 0.102062076 : f32
    %73 = vector.broadcast %cst_35 : f32 to vector<8x8xf32>
    %74 = arith.mulf %72, %73 : vector<8x8xf32>
    %cst_36 = arith.constant dense<0xFF800000> : vector<8xf32>
    %75 = vector.multi_reduction <maximumf>, %74, %cst_36 [1] : vector<8x8xf32> to vector<8xf32>
    %76 = vector.shape_cast %75 : vector<8xf32> to vector<8x1xf32>
    %77 = vector.broadcast %76 : vector<8x1xf32> to vector<8x8xf32>
    %78 = arith.subf %74, %77 : vector<8x8xf32>
    %79 = math.exp %78 : vector<8x8xf32>
    %cst_37 = arith.constant dense<0.000000e+00> : vector<8xf32>
    %80 = vector.multi_reduction <add>, %79, %cst_37 [1] : vector<8x8xf32> to vector<8xf32>
    %81 = vector.shape_cast %80 : vector<8xf32> to vector<8x1xf32>
    %82 = vector.broadcast %81 : vector<8x1xf32> to vector<8x8xf32>
    %83 = arith.divf %79, %82 : vector<8x8xf32>
    %cst_38 = arith.constant dense<0.000000e+00> : vector<8x128xf32>
    %84 = tpu.matmul %83, %70, %cst_38 {dimension_numbers = #tpu.dot_dimension_numbers<[1], [0], [0], [1], [0, 0, 1, 1], [], []>} : vector<8x8xf32>, vector<8x128xf32>, vector<8x128xf32> -> vector<8x128xf32>
    %85 = vector.extract_strided_slice %31 {offsets = [0, 384], sizes = [8, 128], strides = [1, 1]} : vector<8x1024xf32> to vector<8x128xf32>
    %86 = vector.extract_strided_slice %32 {offsets = [0, 384], sizes = [8, 128], strides = [1, 1]} : vector<8x1024xf32> to vector<8x128xf32>
    %87 = vector.extract_strided_slice %33 {offsets = [0, 384], sizes = [8, 128], strides = [1, 1]} : vector<8x1024xf32> to vector<8x128xf32>
    %88 = tpu.transpose %86, [1, 0] : vector<8x128xf32> -> vector<128x8xf32>
    %cst_39 = arith.constant dense<0.000000e+00> : vector<8x8xf32>
    %89 = tpu.matmul %85, %88, %cst_39 {dimension_numbers = #tpu.dot_dimension_numbers<[1], [0], [0], [1], [0, 0, 1, 1], [], []>} : vector<8x128xf32>, vector<128x8xf32>, vector<8x8xf32> -> vector<8x8xf32>
    %cst_40 = arith.constant 0.102062076 : f32
    %90 = vector.broadcast %cst_40 : f32 to vector<8x8xf32>
    %91 = arith.mulf %89, %90 : vector<8x8xf32>
    %cst_41 = arith.constant dense<0xFF800000> : vector<8xf32>
    %92 = vector.multi_reduction <maximumf>, %91, %cst_41 [1] : vector<8x8xf32> to vector<8xf32>
    %93 = vector.shape_cast %92 : vector<8xf32> to vector<8x1xf32>
    %94 = vector.broadcast %93 : vector<8x1xf32> to vector<8x8xf32>
    %95 = arith.subf %91, %94 : vector<8x8xf32>
    %96 = math.exp %95 : vector<8x8xf32>
    %cst_42 = arith.constant dense<0.000000e+00> : vector<8xf32>
    %97 = vector.multi_reduction <add>, %96, %cst_42 [1] : vector<8x8xf32> to vector<8xf32>
    %98 = vector.shape_cast %97 : vector<8xf32> to vector<8x1xf32>
    %99 = vector.broadcast %98 : vector<8x1xf32> to vector<8x8xf32>
    %100 = arith.divf %96, %99 : vector<8x8xf32>
    %cst_43 = arith.constant dense<0.000000e+00> : vector<8x128xf32>
    %101 = tpu.matmul %100, %87, %cst_43 {dimension_numbers = #tpu.dot_dimension_numbers<[1], [0], [0], [1], [0, 0, 1, 1], [], []>} : vector<8x8xf32>, vector<8x128xf32>, vector<8x128xf32> -> vector<8x128xf32>
    %102 = vector.extract_strided_slice %31 {offsets = [0, 512], sizes = [8, 128], strides = [1, 1]} : vector<8x1024xf32> to vector<8x128xf32>
    %103 = vector.extract_strided_slice %32 {offsets = [0, 512], sizes = [8, 128], strides = [1, 1]} : vector<8x1024xf32> to vector<8x128xf32>
    %104 = vector.extract_strided_slice %33 {offsets = [0, 512], sizes = [8, 128], strides = [1, 1]} : vector<8x1024xf32> to vector<8x128xf32>
    %105 = tpu.transpose %103, [1, 0] : vector<8x128xf32> -> vector<128x8xf32>
    %cst_44 = arith.constant dense<0.000000e+00> : vector<8x8xf32>
    %106 = tpu.matmul %102, %105, %cst_44 {dimension_numbers = #tpu.dot_dimension_numbers<[1], [0], [0], [1], [0, 0, 1, 1], [], []>} : vector<8x128xf32>, vector<128x8xf32>, vector<8x8xf32> -> vector<8x8xf32>
    %cst_45 = arith.constant 0.102062076 : f32
    %107 = vector.broadcast %cst_45 : f32 to vector<8x8xf32>
    %108 = arith.mulf %106, %107 : vector<8x8xf32>
    %cst_46 = arith.constant dense<0xFF800000> : vector<8xf32>
    %109 = vector.multi_reduction <maximumf>, %108, %cst_46 [1] : vector<8x8xf32> to vector<8xf32>
    %110 = vector.shape_cast %109 : vector<8xf32> to vector<8x1xf32>
    %111 = vector.broadcast %110 : vector<8x1xf32> to vector<8x8xf32>
    %112 = arith.subf %108, %111 : vector<8x8xf32>
    %113 = math.exp %112 : vector<8x8xf32>
    %cst_47 = arith.constant dense<0.000000e+00> : vector<8xf32>
    %114 = vector.multi_reduction <add>, %113, %cst_47 [1] : vector<8x8xf32> to vector<8xf32>
    %115 = vector.shape_cast %114 : vector<8xf32> to vector<8x1xf32>
    %116 = vector.broadcast %115 : vector<8x1xf32> to vector<8x8xf32>
    %117 = arith.divf %113, %116 : vector<8x8xf32>
    %cst_48 = arith.constant dense<0.000000e+00> : vector<8x128xf32>
    %118 = tpu.matmul %117, %104, %cst_48 {dimension_numbers = #tpu.dot_dimension_numbers<[1], [0], [0], [1], [0, 0, 1, 1], [], []>} : vector<8x8xf32>, vector<8x128xf32>, vector<8x128xf32> -> vector<8x128xf32>
    %119 = vector.extract_strided_slice %31 {offsets = [0, 640], sizes = [8, 128], strides = [1, 1]} : vector<8x1024xf32> to vector<8x128xf32>
    %120 = vector.extract_strided_slice %32 {offsets = [0, 640], sizes = [8, 128], strides = [1, 1]} : vector<8x1024xf32> to vector<8x128xf32>
    %121 = vector.extract_strided_slice %33 {offsets = [0, 640], sizes = [8, 128], strides = [1, 1]} : vector<8x1024xf32> to vector<8x128xf32>
    %122 = tpu.transpose %120, [1, 0] : vector<8x128xf32> -> vector<128x8xf32>
    %cst_49 = arith.constant dense<0.000000e+00> : vector<8x8xf32>
    %123 = tpu.matmul %119, %122, %cst_49 {dimension_numbers = #tpu.dot_dimension_numbers<[1], [0], [0], [1], [0, 0, 1, 1], [], []>} : vector<8x128xf32>, vector<128x8xf32>, vector<8x8xf32> -> vector<8x8xf32>
    %cst_50 = arith.constant 0.102062076 : f32
    %124 = vector.broadcast %cst_50 : f32 to vector<8x8xf32>
    %125 = arith.mulf %123, %124 : vector<8x8xf32>
    %cst_51 = arith.constant dense<0xFF800000> : vector<8xf32>
    %126 = vector.multi_reduction <maximumf>, %125, %cst_51 [1] : vector<8x8xf32> to vector<8xf32>
    %127 = vector.shape_cast %126 : vector<8xf32> to vector<8x1xf32>
    %128 = vector.broadcast %127 : vector<8x1xf32> to vector<8x8xf32>
    %129 = arith.subf %125, %128 : vector<8x8xf32>
    %130 = math.exp %129 : vector<8x8xf32>
    %cst_52 = arith.constant dense<0.000000e+00> : vector<8xf32>
    %131 = vector.multi_reduction <add>, %130, %cst_52 [1] : vector<8x8xf32> to vector<8xf32>
    %132 = vector.shape_cast %131 : vector<8xf32> to vector<8x1xf32>
    %133 = vector.broadcast %132 : vector<8x1xf32> to vector<8x8xf32>
    %134 = arith.divf %130, %133 : vector<8x8xf32>
    %cst_53 = arith.constant dense<0.000000e+00> : vector<8x128xf32>
    %135 = tpu.matmul %134, %121, %cst_53 {dimension_numbers = #tpu.dot_dimension_numbers<[1], [0], [0], [1], [0, 0, 1, 1], [], []>} : vector<8x8xf32>, vector<8x128xf32>, vector<8x128xf32> -> vector<8x128xf32>
    %136 = vector.extract_strided_slice %31 {offsets = [0, 768], sizes = [8, 128], strides = [1, 1]} : vector<8x1024xf32> to vector<8x128xf32>
    %137 = vector.extract_strided_slice %32 {offsets = [0, 768], sizes = [8, 128], strides = [1, 1]} : vector<8x1024xf32> to vector<8x128xf32>
    %138 = vector.extract_strided_slice %33 {offsets = [0, 768], sizes = [8, 128], strides = [1, 1]} : vector<8x1024xf32> to vector<8x128xf32>
    %139 = tpu.transpose %137, [1, 0] : vector<8x128xf32> -> vector<128x8xf32>
    %cst_54 = arith.constant dense<0.000000e+00> : vector<8x8xf32>
    %140 = tpu.matmul %136, %139, %cst_54 {dimension_numbers = #tpu.dot_dimension_numbers<[1], [0], [0], [1], [0, 0, 1, 1], [], []>} : vector<8x128xf32>, vector<128x8xf32>, vector<8x8xf32> -> vector<8x8xf32>
    %cst_55 = arith.constant 0.102062076 : f32
    %141 = vector.broadcast %cst_55 : f32 to vector<8x8xf32>
    %142 = arith.mulf %140, %141 : vector<8x8xf32>
    %cst_56 = arith.constant dense<0xFF800000> : vector<8xf32>
    %143 = vector.multi_reduction <maximumf>, %142, %cst_56 [1] : vector<8x8xf32> to vector<8xf32>
    %144 = vector.shape_cast %143 : vector<8xf32> to vector<8x1xf32>
    %145 = vector.broadcast %144 : vector<8x1xf32> to vector<8x8xf32>
    %146 = arith.subf %142, %145 : vector<8x8xf32>
    %147 = math.exp %146 : vector<8x8xf32>
    %cst_57 = arith.constant dense<0.000000e+00> : vector<8xf32>
    %148 = vector.multi_reduction <add>, %147, %cst_57 [1] : vector<8x8xf32> to vector<8xf32>
    %149 = vector.shape_cast %148 : vector<8xf32> to vector<8x1xf32>
    %150 = vector.broadcast %149 : vector<8x1xf32> to vector<8x8xf32>
    %151 = arith.divf %147, %150 : vector<8x8xf32>
    %cst_58 = arith.constant dense<0.000000e+00> : vector<8x128xf32>
    %152 = tpu.matmul %151, %138, %cst_58 {dimension_numbers = #tpu.dot_dimension_numbers<[1], [0], [0], [1], [0, 0, 1, 1], [], []>} : vector<8x8xf32>, vector<8x128xf32>, vector<8x128xf32> -> vector<8x128xf32>
    %153 = vector.extract_strided_slice %31 {offsets = [0, 896], sizes = [8, 128], strides = [1, 1]} : vector<8x1024xf32> to vector<8x128xf32>
    %154 = vector.extract_strided_slice %32 {offsets = [0, 896], sizes = [8, 128], strides = [1, 1]} : vector<8x1024xf32> to vector<8x128xf32>
    %155 = vector.extract_strided_slice %33 {offsets = [0, 896], sizes = [8, 128], strides = [1, 1]} : vector<8x1024xf32> to vector<8x128xf32>
    %156 = tpu.transpose %154, [1, 0] : vector<8x128xf32> -> vector<128x8xf32>
    %cst_59 = arith.constant dense<0.000000e+00> : vector<8x8xf32>
    %157 = tpu.matmul %153, %156, %cst_59 {dimension_numbers = #tpu.dot_dimension_numbers<[1], [0], [0], [1], [0, 0, 1, 1], [], []>} : vector<8x128xf32>, vector<128x8xf32>, vector<8x8xf32> -> vector<8x8xf32>
    %cst_60 = arith.constant 0.102062076 : f32
    %158 = vector.broadcast %cst_60 : f32 to vector<8x8xf32>
    %159 = arith.mulf %157, %158 : vector<8x8xf32>
    %cst_61 = arith.constant dense<0xFF800000> : vector<8xf32>
    %160 = vector.multi_reduction <maximumf>, %159, %cst_61 [1] : vector<8x8xf32> to vector<8xf32>
    %161 = vector.shape_cast %160 : vector<8xf32> to vector<8x1xf32>
    %162 = vector.broadcast %161 : vector<8x1xf32> to vector<8x8xf32>
    %163 = arith.subf %159, %162 : vector<8x8xf32>
    %164 = math.exp %163 : vector<8x8xf32>
    %cst_62 = arith.constant dense<0.000000e+00> : vector<8xf32>
    %165 = vector.multi_reduction <add>, %164, %cst_62 [1] : vector<8x8xf32> to vector<8xf32>
    %166 = vector.shape_cast %165 : vector<8xf32> to vector<8x1xf32>
    %167 = vector.broadcast %166 : vector<8x1xf32> to vector<8x8xf32>
    %168 = arith.divf %164, %167 : vector<8x8xf32>
    %cst_63 = arith.constant dense<0.000000e+00> : vector<8x128xf32>
    %169 = tpu.matmul %168, %155, %cst_63 {dimension_numbers = #tpu.dot_dimension_numbers<[1], [0], [0], [1], [0, 0, 1, 1], [], []>} : vector<8x8xf32>, vector<8x128xf32>, vector<8x128xf32> -> vector<8x128xf32>
    %170 = tpu.concatenate %50, %67, %84, %101, %118, %135, %152, %169 in 1 : vector<8x128xf32>, vector<8x128xf32>, vector<8x128xf32>, vector<8x128xf32>, vector<8x128xf32>, vector<8x128xf32>, vector<8x128xf32>, vector<8x128xf32> -> vector<8x1024xf32>
    %171 = arith.truncf %170 : vector<8x1024xf32> to vector<8x1024xbf16>
    %c0_64 = arith.constant 0 : index
    %c0_65 = arith.constant 0 : index
    %172 = vector.load %arg9[%c0_64, %c0_65] : memref<1024x768xbf16, #tpu.memory_space<vmem>>, vector<1024x768xbf16>
    %cst_66 = arith.constant dense<0.000000e+00> : vector<8x768xf32>
    %173 = tpu.matmul %171, %172, %cst_66 {dimension_numbers = #tpu.dot_dimension_numbers<[1], [0], [0], [1], [0, 0, 1, 1], [], []>} : vector<8x1024xbf16>, vector<1024x768xbf16>, vector<8x768xf32> -> vector<8x768xf32>
    %c0_67 = arith.constant 0 : index
    %c0_68 = arith.constant 0 : index
    %174 = vector.load %arg10[%c0_67, %c0_68] : memref<1x768xf32, #tpu.memory_space<vmem>>, vector<1x768xf32>
    %175 = vector.broadcast %174 : vector<1x768xf32> to vector<8x768xf32>
    %176 = arith.addf %173, %175 : vector<8x768xf32>
    %177 = arith.addf %4, %176 : vector<8x768xf32>
    %c0_69 = arith.constant 0 : index
    %c0_70 = arith.constant 0 : index
    %178 = vector.load %arg11[%c0_69, %c0_70] : memref<1x768xf32, #tpu.memory_space<vmem>>, vector<1x768xf32>
    %c0_71 = arith.constant 0 : index
    %c0_72 = arith.constant 0 : index
    %179 = vector.load %arg12[%c0_71, %c0_72] : memref<1x768xf32, #tpu.memory_space<vmem>>, vector<1x768xf32>
    %cst_73 = arith.constant dense<0.000000e+00> : vector<8xf32>
    %180 = vector.multi_reduction <add>, %177, %cst_73 [1] : vector<8x768xf32> to vector<8xf32>
    %181 = vector.shape_cast %180 : vector<8xf32> to vector<8x1xf32>
    %cst_74 = arith.constant 7.680000e+02 : f32
    %182 = vector.broadcast %cst_74 : f32 to vector<8x1xf32>
    %183 = arith.divf %181, %182 : vector<8x1xf32>
    %184 = vector.broadcast %183 : vector<8x1xf32> to vector<8x768xf32>
    %185 = arith.subf %177, %184 : vector<8x768xf32>
    %186 = arith.mulf %185, %185 : vector<8x768xf32>
    %cst_75 = arith.constant dense<0.000000e+00> : vector<8xf32>
    %187 = vector.multi_reduction <add>, %186, %cst_75 [1] : vector<8x768xf32> to vector<8xf32>
    %188 = vector.shape_cast %187 : vector<8xf32> to vector<8x1xf32>
    %cst_76 = arith.constant 7.680000e+02 : f32
    %189 = vector.broadcast %cst_76 : f32 to vector<8x1xf32>
    %190 = arith.divf %188, %189 : vector<8x1xf32>
    %cst_77 = arith.constant 9.99999974E-6 : f32
    %191 = vector.broadcast %cst_77 : f32 to vector<8x1xf32>
    %192 = arith.addf %190, %191 : vector<8x1xf32>
    %193 = math.rsqrt %192 : vector<8x1xf32>
    %194 = vector.broadcast %193 : vector<8x1xf32> to vector<8x768xf32>
    %195 = arith.mulf %185, %194 : vector<8x768xf32>
    %196 = vector.broadcast %178 : vector<1x768xf32> to vector<8x768xf32>
    %197 = arith.mulf %195, %196 : vector<8x768xf32>
    %198 = vector.broadcast %179 : vector<1x768xf32> to vector<8x768xf32>
    %199 = arith.addf %197, %198 : vector<8x768xf32>
    %200 = arith.truncf %199 : vector<8x768xf32> to vector<8x768xbf16>
    %c0_78 = arith.constant 0 : index
    %c0_79 = arith.constant 0 : index
    %201 = vector.load %arg13[%c0_78, %c0_79] : memref<768x256xbf16, #tpu.memory_space<vmem>>, vector<768x256xbf16>
    %cst_80 = arith.constant dense<0.000000e+00> : vector<8x256xf32>
    %202 = tpu.matmul %200, %201, %cst_80 {dimension_numbers = #tpu.dot_dimension_numbers<[1], [0], [0], [1], [0, 0, 1, 1], [], []>} : vector<8x768xbf16>, vector<768x256xbf16>, vector<8x256xf32> -> vector<8x256xf32>
    %c0_81 = arith.constant 0 : index
    %c0_82 = arith.constant 0 : index
    %203 = vector.load %arg14[%c0_81, %c0_82] : memref<1x256xf32, #tpu.memory_space<vmem>>, vector<1x256xf32>
    %204 = vector.broadcast %203 : vector<1x256xf32> to vector<8x256xf32>
    %205 = arith.addf %202, %204 : vector<8x256xf32>
    %cst_83 = arith.constant 0.000000e+00 : f32
    %206 = vector.broadcast %cst_83 : f32 to vector<8x256xf32>
    %207 = arith.maximumf %205, %206 : vector<8x256xf32>
    %208 = arith.truncf %207 : vector<8x256xf32> to vector<8x256xbf16>
    %c0_84 = arith.constant 0 : index
    %c0_85 = arith.constant 0 : index
    %209 = vector.load %arg15[%c0_84, %c0_85] : memref<256x768xbf16, #tpu.memory_space<vmem>>, vector<256x768xbf16>
    %cst_86 = arith.constant dense<0.000000e+00> : vector<8x768xf32>
    %210 = tpu.matmul %208, %209, %cst_86 {dimension_numbers = #tpu.dot_dimension_numbers<[1], [0], [0], [1], [0, 0, 1, 1], [], []>} : vector<8x256xbf16>, vector<256x768xbf16>, vector<8x768xf32> -> vector<8x768xf32>
    %c0_87 = arith.constant 0 : index
    %c0_88 = arith.constant 0 : index
    %211 = vector.load %arg16[%c0_87, %c0_88] : memref<1x768xf32, #tpu.memory_space<vmem>>, vector<1x768xf32>
    %212 = vector.broadcast %211 : vector<1x768xf32> to vector<8x768xf32>
    %213 = arith.addf %210, %212 : vector<8x768xf32>
    %214 = arith.addf %199, %213 : vector<8x768xf32>
    %c0_89 = arith.constant 0 : index
    %c0_90 = arith.constant 0 : index
    %215 = vector.load %arg17[%c0_89, %c0_90] : memref<1x768xf32, #tpu.memory_space<vmem>>, vector<1x768xf32>
    %c0_91 = arith.constant 0 : index
    %c0_92 = arith.constant 0 : index
    %216 = vector.load %arg18[%c0_91, %c0_92] : memref<1x768xf32, #tpu.memory_space<vmem>>, vector<1x768xf32>
    %cst_93 = arith.constant dense<0.000000e+00> : vector<8xf32>
    %217 = vector.multi_reduction <add>, %214, %cst_93 [1] : vector<8x768xf32> to vector<8xf32>
    %218 = vector.shape_cast %217 : vector<8xf32> to vector<8x1xf32>
    %cst_94 = arith.constant 7.680000e+02 : f32
    %219 = vector.broadcast %cst_94 : f32 to vector<8x1xf32>
    %220 = arith.divf %218, %219 : vector<8x1xf32>
    %221 = vector.broadcast %220 : vector<8x1xf32> to vector<8x768xf32>
    %222 = arith.subf %214, %221 : vector<8x768xf32>
    %223 = arith.mulf %222, %222 : vector<8x768xf32>
    %cst_95 = arith.constant dense<0.000000e+00> : vector<8xf32>
    %224 = vector.multi_reduction <add>, %223, %cst_95 [1] : vector<8x768xf32> to vector<8xf32>
    %225 = vector.shape_cast %224 : vector<8xf32> to vector<8x1xf32>
    %cst_96 = arith.constant 7.680000e+02 : f32
    %226 = vector.broadcast %cst_96 : f32 to vector<8x1xf32>
    %227 = arith.divf %225, %226 : vector<8x1xf32>
    %cst_97 = arith.constant 9.99999974E-6 : f32
    %228 = vector.broadcast %cst_97 : f32 to vector<8x1xf32>
    %229 = arith.addf %227, %228 : vector<8x1xf32>
    %230 = math.rsqrt %229 : vector<8x1xf32>
    %231 = vector.broadcast %230 : vector<8x1xf32> to vector<8x768xf32>
    %232 = arith.mulf %222, %231 : vector<8x768xf32>
    %233 = vector.broadcast %215 : vector<1x768xf32> to vector<8x768xf32>
    %234 = arith.mulf %232, %233 : vector<8x768xf32>
    %235 = vector.broadcast %216 : vector<1x768xf32> to vector<8x768xf32>
    %236 = arith.addf %234, %235 : vector<8x768xf32>
    %237 = arith.mulf %0, %0 : vector<8x768xf32>
    %cst_98 = arith.constant dense<0.000000e+00> : vector<8xf32>
    %238 = vector.multi_reduction <add>, %237, %cst_98 [1] : vector<8x768xf32> to vector<8xf32>
    %239 = vector.shape_cast %238 : vector<8xf32> to vector<8x1xf32>
    %240 = math.sqrt %239 : vector<8x1xf32>
    %cst_99 = arith.constant 9.99999996E-13 : f32
    %241 = vector.broadcast %cst_99 : f32 to vector<8x1xf32>
    %242 = arith.maximumf %240, %241 : vector<8x1xf32>
    %243 = vector.broadcast %242 : vector<8x1xf32> to vector<8x768xf32>
    %244 = arith.divf %0, %243 : vector<8x768xf32>
    %245 = arith.mulf %236, %236 : vector<8x768xf32>
    %cst_100 = arith.constant dense<0.000000e+00> : vector<8xf32>
    %246 = vector.multi_reduction <add>, %245, %cst_100 [1] : vector<8x768xf32> to vector<8xf32>
    %247 = vector.shape_cast %246 : vector<8xf32> to vector<8x1xf32>
    %248 = math.sqrt %247 : vector<8x1xf32>
    %cst_101 = arith.constant 9.99999996E-13 : f32
    %249 = vector.broadcast %cst_101 : f32 to vector<8x1xf32>
    %250 = arith.maximumf %248, %249 : vector<8x1xf32>
    %251 = vector.broadcast %250 : vector<8x1xf32> to vector<8x768xf32>
    %252 = arith.divf %236, %251 : vector<8x768xf32>
    %253 = arith.mulf %244, %252 : vector<8x768xf32>
    %cst_102 = arith.constant -1.000000e+00 : f32
    %254 = vector.broadcast %cst_102 : f32 to vector<8x768xf32>
    %255 = arith.mulf %254, %253 : vector<8x768xf32>
    %256 = math.exp %255 : vector<8x768xf32>
    %257 = arith.mulf %256, %236 : vector<8x768xf32>
    %c0_103 = arith.constant 0 : index
    %c0_104 = arith.constant 0 : index
    %258 = vector.load %arg19[%c0_103, %c0_104] : memref<8x768xf32, #tpu.memory_space<vmem>>, vector<8x768xf32>
    tpu.vector_store %arg19[%c0_103, %c0_104], %257 {strides = array<i32>} : memref<8x768xf32, #tpu.memory_space<vmem>>, vector<8x768xf32>,
    return
  }
}

</mosaic_0001>

<bundles_post_ra>
// kernel: llm_semantics_analysis.1
= control target key start
LH: loop header
LB: loop body
LE: loop exit
PB: predicated region body
PF: predicated region fallthrough
CT: control target
= control target key end

     0   :  { %s20167_s0 = inlined_call_operand.vmem [shape: f32[8,768], index: 0, kind: input, shape index: {}]   ;;  %s20168_s1 = inlined_call_operand.vmem [shape: f32[8,768], index: 1, kind: input, shape index: {}]   ;;  %s20169_s2 = inlined_call_operand.hbm [shape: f32[1,768], index: 2, kind: input, shape index: {}]   ;;  %s20170_s3 = inlined_call_operand.hbm [shape: bf16[768,256], index: 3, kind: input, shape index: {}]   ;;  %s20171_s4 = inlined_call_operand.hbm [shape: f32[1,256], index: 4, kind: input, shape index: {}]   ;;  %s20172_s5 = inlined_call_operand.vmem [shape: bf16[256,2], index: 5, kind: input, shape index: {}]   ;;  %s20173_s6 = inlined_call_operand.hbm [shape: f32[1,2], index: 6, kind: input, shape index: {}]   ;;  %s20174_s7 = inlined_call_operand.hbm [shape: bf16[768,3072], index: 7, kind: input, shape index: {}]   ;;  %s20175_s8 = inlined_call_operand.hbm [shape: f32[1,3072], index: 8, kind: input, shape index: {}]   ;;  %s20176_s9 = inlined_call_operand.hbm [shape: bf16[1024,768], index: 9, kind: input, shape index: {}]   ;;  %s20177_s10 = inlined_call_operand.hbm [shape: f32[1,768], index: 10, kind: input, shape index: {}]   ;;  %s20178_s11 = inlined_call_operand.hbm [shape: f32[1,768], index: 11, kind: input, shape index: {}]   ;;  %s20179_s12 = inlined_call_operand.hbm [shape: f32[1,768], index: 12, kind: input, shape index: {}]   ;;  %s20180_s13 = inlined_call_operand.hbm [shape: bf16[768,256], index: 13, kind: input, shape index: {}]   ;;  %s20181_s14 = inlined_call_operand.hbm [shape: f32[1,256], index: 14, kind: input, shape index: {}]   ;;  %s20182_s15 = inlined_call_operand.hbm [shape: bf16[256,768], index: 15, kind: input, shape index: {}]   ;;  %s20183_s16 = inlined_call_operand.hbm [shape: f32[1,768], index: 16, kind: input, shape index: {}]   ;;  %s20184_s17 = inlined_call_operand.hbm [shape: f32[1,768], index: 17, kind: input, shape index: {}]   ;;  %s20185_s18 = inlined_call_operand.hbm [shape: f32[1,768], index: 18, kind: input, shape index: {}]   ;;  %s20186_s19 = inlined_call_operand.hbm [shape: f32[8,768], index: 19, kind: output, shape index: {0}]   ;;  %s20187_s20 = inlined_call_operand.vmem [shape: f32[8,2], index: 20, kind: output, shape index: {1}]  }
   0x1   :  { %20196 = sst [smem:[#allocation49_spill]] %s20167_s0 }
   0x2   :  { %20197 = sst [smem:[#allocation50_spill]] %s20168_s1 }
   0x3   :  { %20198 = sst [smem:[#allocation51_spill]] %s20169_s2 }
   0x4   :  { %20199 = sst [smem:[#allocation52_spill]] %s20170_s3 }
   0x5   :  { %20200 = sst [smem:[#allocation53_spill]] %s20171_s4 }
   0x6   :  { %26 = vsyncpa [#allocation3], 0 }
   0x7   :  { %27 = vsyncpa [#allocation6], 0 }
   0x8   :  { %28 = vsyncpa [#allocation9], 0 }
   0x9   :  { %29 = vsyncpa [#allocation12], 0 }
   0xa   :  { %30 = vsyncpa [#allocation15], 0 }
   0xb   :  { %31 = vsyncpa [#allocation18], 0 }
   0xc   :  { %32 = vsyncpa [#allocation21], 0 }
   0xd   :  { %33 = vsyncpa [#allocation24], 0 }
   0xe   :  { %34 = vsyncpa [#allocation27], 0 }
   0xf   :  { %35 = vsyncpa [#allocation4], 0  ;;  %s19067_s1 = smov [#allocation5]  }
  0x10   :  { %s55_s22 = sshll.u32 %s19067_s1, 4  ;;  %s56_s22 = int_to_ptr.vmem [resolvable:$true] %s55_s22 }
  0x11   :  { %s18715_s23 = scalar_lea.vmem %s56_s22, 12288  ;;  %p18720_p1 = scmp.lt.s32.totalorder %s56_s22, %s56_s22 }
  0x12   :  { %p18716_p0 = scmp.ne.s32.totalorder %s56_s22, %s18715_s23  ;;  %p18721_p2 = scmp.lt.s32.totalorder %s18715_s23, %s18715_s23 }
  0x14   :  { %p18722_p3 = por %p18721_p2, %p18720_p1 }
  0x16   :  { %p18723_p4 = pnand %p18722_p3, %p18716_p0 }
  0x18   :  { %18726 = shalt.err (!%p18723_p4)
}
  0x19   :  { %s19068_s24 = smov 128   ;;  %s19069_s2 = smov 8  }
  0x1a   :  { %s20201_s26 = sld [smem:[#allocation52_spill]]  ;;  %s19070_s27 = smov [#allocation8]  }
  0x1b   :  { %s80_s28 = sshll.u32 %s19070_s27, 4  ;;  %s19071_s4 = smov [#allocation11]   ;;  %s81_s28 = int_to_ptr.vmem [resolvable:$true] %s80_s28 }
  0x1c   :  { %s102_s29 = sshll.u32 %s19071_s4, 4  ;;  %s18735_s30 = scalar_lea.vmem %s81_s28, 16  ;;  %s103_s29 = int_to_ptr.vmem [resolvable:$true] %s102_s29 }
  0x1d   :  { %p18736_p5 = scmp.ne.s32.totalorder %s81_s28, %s18735_s30  ;;  %s18739_s0 = scalar_lea.vmem %s81_s28, 32 }
  0x1e   :  { %p18740_p6 = scmp.lt.s32.totalorder %s81_s28, %s81_s28  ;;  %p18741_p7 = scmp.lt.s32.totalorder %s18739_s0, %s18735_s30 }
  0x20   :  { %61 = dma.hbm_to_vmem [thread:$0]  %s20201_s26, 12288, %s56_s22, [#allocation6], %s19068_s24, %s19068_s24, %s19069_s2  }
  0x21   :  { %p18742_p8 = por %p18741_p7, %p18740_p6 }
  0x23   :  { %p18743_p9 = pnand %p18742_p8, %p18736_p5 }
  0x25   :  { %18746 = shalt.err (!%p18743_p9)
}
  0x26   :  { %83 = dma.hbm_to_vmem [thread:$0]  %s20173_s6, 16, %s81_s28, [#allocation9]  }
  0x27   :  { %s18755_s23 = scalar_lea.vmem %s103_s29, 384  ;;  %p18760_p11 = scmp.lt.s32.totalorder %s103_s29, %s103_s29 }
  0x28   :  { %p18756_p10 = scmp.ne.s32.totalorder %s103_s29, %s18755_s23  ;;  %p18761_p12 = scmp.lt.s32.totalorder %s18755_s23, %s18755_s23 }
  0x2a   :  { %p18762_p13 = por %p18761_p12, %p18760_p11 }
  0x2c   :  { %p18763_p0 = pnand %p18762_p13, %p18756_p10 }
  0x2e   :  { %18766 = shalt.err (!%p18763_p0)
}
  0x2f   :  { %105 = dma.hbm_to_vmem [thread:$0]  %s20175_s8, 384, %s103_s29, [#allocation12]  }
  0x30   :  { %s19072_s3 = smov [#allocation14]   ;;  %s19073_s27 = smov [#allocation17]  }
  0x31   :  { %s124_s26 = sshll.u32 %s19072_s3, 4  ;;  %s144_s4 = sshll.u32 %s19073_s27, 4  ;;  %s125_s26 = int_to_ptr.vmem [resolvable:$true] %s124_s26  ;;  %s145_s4 = int_to_ptr.vmem [resolvable:$true] %s144_s4 }
  0x32   :  { %s18775_s30 = scalar_lea.vmem %s125_s26, 96  ;;  %p18780_p2 = scmp.lt.s32.totalorder %s125_s26, %s125_s26 }
  0x33   :  { %p18776_p1 = scmp.ne.s32.totalorder %s125_s26, %s18775_s30  ;;  %p18781_p3 = scmp.lt.s32.totalorder %s18775_s30, %s18775_s30 }
  0x35   :  { %p18782_p4 = por %p18781_p3, %p18780_p2 }
  0x37   :  { %p18783_p5 = pnand %p18782_p4, %p18776_p1 }
  0x39   :  { %18786 = shalt.err (!%p18783_p5)
}
  0x3a   :  { %127 = dma.hbm_to_vmem [thread:$0]  %s20177_s10, 96, %s125_s26, [#allocation15]  }
  0x3b   :  { %s18795_s0 = scalar_lea.vmem %s145_s4, 96  ;;  %p18800_p7 = scmp.lt.s32.totalorder %s145_s4, %s145_s4 }
  0x3c   :  { %p18796_p6 = scmp.ne.s32.totalorder %s145_s4, %s18795_s0  ;;  %p18801_p8 = scmp.lt.s32.totalorder %s18795_s0, %s18795_s0 }
  0x3e   :  { %p18802_p9 = por %p18801_p8, %p18800_p7 }
  0x40   :  { %p18803_p10 = pnand %p18802_p9, %p18796_p6 }
  0x42   :  { %18806 = shalt.err (!%p18803_p10)
}
  0x43   :  { %147 = dma.hbm_to_vmem [thread:$0]  %s20179_s12, 96, %s145_s4, [#allocation18]  }
  0x44   :  { %s19074_s21 = smov [#allocation20]   ;;  %s19075_s23 = smov [#allocation23]  }
  0x45   :  { %s166_s1 = sshll.u32 %s19074_s21, 4  ;;  %s188_s22 = sshll.u32 %s19075_s23, 4  ;;  %s167_s1 = int_to_ptr.vmem [resolvable:$true] %s166_s1  ;;  %s189_s22 = int_to_ptr.vmem [resolvable:$true] %s188_s22 }
  0x46   :  { %s18815_s25 = scalar_lea.vmem %s167_s1, 32  ;;  %p18820_p12 = scmp.lt.s32.totalorder %s167_s1, %s167_s1 }
  0x47   :  { %p18816_p11 = scmp.ne.s32.totalorder %s167_s1, %s18815_s25  ;;  %p18821_p13 = scmp.lt.s32.totalorder %s18815_s25, %s18815_s25 }
  0x49   :  { %p18822_p0 = por %p18821_p13, %p18820_p12 }
  0x4b   :  { %p18823_p1 = pnand %p18822_p0, %p18816_p11 }
  0x4d   :  { %18826 = shalt.err (!%p18823_p1)
}
  0x4e   :  { %169 = dma.hbm_to_vmem [thread:$0]  %s20181_s14, 32, %s167_s1, [#allocation21]  }
  0x4f   :  { %s18835_s26 = scalar_lea.vmem %s189_s22, 96  ;;  %p18840_p3 = scmp.lt.s32.totalorder %s189_s22, %s189_s22 }
  0x50   :  { %p18836_p2 = scmp.ne.s32.totalorder %s189_s22, %s18835_s26  ;;  %p18841_p4 = scmp.lt.s32.totalorder %s18835_s26, %s18835_s26 }
  0x52   :  { %p18842_p5 = por %p18841_p4, %p18840_p3 }
  0x54   :  { %p18843_p6 = pnand %p18842_p5, %p18836_p2 }
  0x56   :  { %18846 = shalt.err (!%p18843_p6)
}
  0x57   :  { %191 = dma.hbm_to_vmem [thread:$0]  %s20183_s16, 96, %s189_s22, [#allocation24]  }
  0x58   :  { %s19076_s4 = smov [#allocation2]   ;;  %s19077_s6 = smov [#allocation7]  }
  0x59   :  { %s46_s30 = sshll.u32 %s19076_s4, 4  ;;  %s68_s28 = sshll.u32 %s19077_s6, 4  ;;  %s47_s30 = int_to_ptr.vmem [resolvable:$true] %s46_s30  ;;  %s69_s28 = int_to_ptr.vmem [resolvable:$true] %s68_s28 }
  0x5a   :  { %s18855_s0 = scalar_lea.vmem %s47_s30, 96  ;;  %p18860_p8 = scmp.lt.s32.totalorder %s47_s30, %s47_s30 }
  0x5b   :  { %p18856_p7 = scmp.ne.s32.totalorder %s47_s30, %s18855_s0  ;;  %p18861_p9 = scmp.lt.s32.totalorder %s18855_s0, %s18855_s0 }
  0x5d   :  { %p18862_p10 = por %p18861_p9, %p18860_p8 }
  0x5f   :  { %p18863_p11 = pnand %p18862_p10, %p18856_p7 }
  0x61   :  { %18866 = shalt.err (!%p18863_p11)
}
  0x62   :  { %s20202_s29 = sld [smem:[#allocation51_spill]]  ;;  %s18875_s21 = scalar_lea.vmem %s69_s28, 32 }
  0x63   :  { %p18876_p12 = scmp.ne.s32.totalorder %s69_s28, %s18875_s21  ;;  %p18880_p13 = scmp.lt.s32.totalorder %s69_s28, %s69_s28 }
  0x64   :  { %p18881_p0 = scmp.lt.s32.totalorder %s18875_s21, %s18875_s21 }
  0x66   :  { %p18882_p1 = por %p18881_p0, %p18880_p13 }
  0x68   :  { %49 = dma.hbm_to_vmem [thread:$0]  %s20202_s29, 96, %s47_s30, [#allocation3]  }
  0x69   :  { %p18883_p2 = pnand %p18882_p1, %p18876_p12 }
  0x6b   :  { %18886 = shalt.err (!%p18883_p2)
}
  0x6c   :  { %s20203_s23 = sld [smem:[#allocation53_spill]]  ;;  %s19078_s22 = smov [#allocation10]  }
  0x6d   :  { %s89_s25 = sshll.u32 %s19078_s22, 4  ;;  %s90_s25 = int_to_ptr.vmem [resolvable:$true] %s89_s25 }
  0x6e   :  { %s18895_s10 = scalar_lea.vmem %s90_s25, 147456  ;;  %p18900_p4 = scmp.lt.s32.totalorder %s90_s25, %s90_s25 }
  0x6f   :  { %p18896_p3 = scmp.ne.s32.totalorder %s90_s25, %s18895_s10  ;;  %p18901_p5 = scmp.lt.s32.totalorder %s18895_s10, %s18895_s10 }
  0x71   :  { %p18902_p6 = por %p18901_p5, %p18900_p4 }
  0x72   :  { %71 = dma.hbm_to_vmem [thread:$0]  %s20203_s23, 32, %s69_s28, [#allocation6]  }
  0x73   :  { %p18903_p7 = pnand %p18902_p6, %p18896_p3 }
  0x75   :  { %18906 = shalt.err (!%p18903_p7)
}
  0x76   :  { %s19079_s3 = smov 1536   ;;  %s19080_s26 = smov 96  }
  0x77   :  { %95 = dma.hbm_to_vmem [thread:$0]  %s20174_s7, 147456, %s90_s25, [#allocation9], %s19079_s3, %s19079_s3, %s19080_s26  }
  0x78   :  { %s19081_s4 = smov [#allocation13]  }
  0x79   :  { %s111_s30 = sshll.u32 %s19081_s4, 4  ;;  %s112_s30 = int_to_ptr.vmem [resolvable:$true] %s111_s30 }
  0x7a   :  { %s18915_s6 = scalar_lea.vmem %s112_s30, 49152  ;;  %p18920_p9 = scmp.lt.s32.totalorder %s112_s30, %s112_s30 }
  0x7b   :  { %p18916_p8 = scmp.ne.s32.totalorder %s112_s30, %s18915_s6  ;;  %p18921_p10 = scmp.lt.s32.totalorder %s18915_s6, %s18915_s6 }
  0x7d   :  { %p18922_p11 = por %p18921_p10, %p18920_p9 }
  0x7f   :  { %p18923_p12 = pnand %p18922_p11, %p18916_p8 }
  0x81   :  { %18926 = shalt.err (!%p18923_p12)
}
  0x82   :  { %s19082_s28 = smov 384   ;;  %s19083_s0 = smov 24  }
  0x83   :  { %117 = dma.hbm_to_vmem [thread:$0]  %s20176_s9, 49152, %s112_s30, [#allocation12], %s19082_s28, %s19082_s28, %s19083_s0  }
  0x84   :  { %s19084_s7 = smov [#allocation16]   ;;  %s19085_s21 = smov [#allocation19]  }
  0x85   :  { %s134_s29 = sshll.u32 %s19084_s7, 4  ;;  %s153_s16 = sshll.u32 %s19085_s21, 4  ;;  %s135_s29 = int_to_ptr.vmem [resolvable:$true] %s134_s29  ;;  %s154_s16 = int_to_ptr.vmem [resolvable:$true] %s153_s16 }
  0x86   :  { %s18935_s1 = scalar_lea.vmem %s135_s29, 96  ;;  %p18940_p0 = scmp.lt.s32.totalorder %s135_s29, %s135_s29 }
  0x87   :  { %p18936_p13 = scmp.ne.s32.totalorder %s135_s29, %s18935_s1  ;;  %p18941_p1 = scmp.lt.s32.totalorder %s18935_s1, %s18935_s1 }
  0x89   :  { %p18942_p2 = por %p18941_p1, %p18940_p0 }
  0x8b   :  { %p18943_p3 = pnand %p18942_p2, %p18936_p13 }
  0x8d   :  { %18946 = shalt.err (!%p18943_p3)
}
  0x8e   :  { %137 = dma.hbm_to_vmem [thread:$0]  %s20178_s11, 96, %s135_s29, [#allocation15]  }
  0x8f   :  { %s18955_s25 = scalar_lea.vmem %s154_s16, 12288  ;;  %p18960_p5 = scmp.lt.s32.totalorder %s154_s16, %s154_s16 }
  0x90   :  { %p18956_p4 = scmp.ne.s32.totalorder %s154_s16, %s18955_s25  ;;  %p18961_p6 = scmp.lt.s32.totalorder %s18955_s25, %s18955_s25 }
  0x92   :  { %p18962_p7 = por %p18961_p6, %p18960_p5 }
  0x94   :  { %p18963_p8 = pnand %p18962_p7, %p18956_p4 }
  0x96   :  { %18966 = shalt.err (!%p18963_p8)
}
  0x97   :  { %159 = dma.hbm_to_vmem [thread:$0]  %s20180_s13, 12288, %s154_s16, [#allocation18], %s19068_s24, %s19068_s24, %s19069_s2  }
  0x98   :  { %s19086_s3 = smov [#allocation22]   ;;  %s19087_s12 = smov [#allocation25]  }
  0x99   :  { %s175_s26 = sshll.u32 %s19086_s3, 4  ;;  %s198_s11 = sshll.u32 %s19087_s12, 4  ;;  %s176_s26 = int_to_ptr.vmem [resolvable:$true] %s175_s26  ;;  %s199_s11 = int_to_ptr.vmem [resolvable:$true] %s198_s11 }
  0x9a   :  { %s18975_s27 = scalar_lea.vmem %s176_s26, 12288  ;;  %p18980_p10 = scmp.lt.s32.totalorder %s176_s26, %s176_s26 }
  0x9b   :  { %p18976_p9 = scmp.ne.s32.totalorder %s176_s26, %s18975_s27  ;;  %p18981_p11 = scmp.lt.s32.totalorder %s18975_s27, %s18975_s27 }
  0x9d   :  { %p18982_p12 = por %p18981_p11, %p18980_p10 }
  0x9f   :  { %p18983_p13 = pnand %p18982_p12, %p18976_p9 }
  0xa1   :  { %18986 = shalt.err (!%p18983_p13)
}
  0xa2   :  { %181 = dma.hbm_to_vmem [thread:$0]  %s20182_s15, 12288, %s176_s26, [#allocation21], %s19082_s28, %s19082_s28, %s19083_s0  }
  0xa3   :  { %s18995_s13 = scalar_lea.vmem %s199_s11, 96  ;;  %p19000_p1 = scmp.lt.s32.totalorder %s199_s11, %s199_s11 }
  0xa4   :  { %p18996_p0 = scmp.ne.s32.totalorder %s199_s11, %s18995_s13  ;;  %p19001_p2 = scmp.lt.s32.totalorder %s18995_s13, %s18995_s13 }
  0xa6   :  { %p19002_p3 = por %p19001_p2, %p19000_p1 }
  0xa8   :  { %p19003_p4 = pnand %p19002_p3, %p18996_p0 }
  0xaa   :  { %19006 = shalt.err (!%p19003_p4)
}
  0xab   :  { %201 = dma.hbm_to_vmem [thread:$0]  %s20184_s17, 96, %s199_s11, [#allocation24]  }
  0xac   :  { %s19088_s6 = smov [#allocation26]  }
  0xad   :  { %s208_s14 = sshll.u32 %s19088_s6, 4  ;;  %s209_s14 = int_to_ptr.vmem [resolvable:$true] %s208_s14 }
  0xae   :  { %s19015_s8 = scalar_lea.vmem %s209_s14, 96  ;;  %p19020_p6 = scmp.lt.s32.totalorder %s209_s14, %s209_s14 }
  0xaf   :  { %p19016_p5 = scmp.ne.s32.totalorder %s209_s14, %s19015_s8  ;;  %p19021_p7 = scmp.lt.s32.totalorder %s19015_s8, %s19015_s8 }
  0xb1   :  { %p19022_p8 = por %p19021_p7, %p19020_p6 }
  0xb3   :  { %p19023_p9 = pnand %p19022_p8, %p19016_p5 }
  0xb5   :  { %19026 = shalt.err (!%p19023_p9)
}
  0xb6   :  { %211 = dma.hbm_to_vmem [thread:$0]  %s20185_s18, 96, %s209_s14, [#allocation27]  }
  0xb7   :  { %19047 = dma.done.wait [#allocation3], 96  }
  0xb8   :  { %19048 = vsyncadd [#allocation3], 4294967200 }
  0xb9   :  { %19049 = dma.done.wait [#allocation6], 12320  }
  0xba   :  { %19050 = vsyncadd [#allocation6], 4294954976 }
  0xbb   :  { %19051 = dma.done.wait [#allocation9], 147472  }
  0xbc   :  { %19052 = vsyncadd [#allocation9], 4294819824 }
  0xbd   :  { %19053 = dma.done.wait [#allocation12], 49536  }
  0xbe   :  { %19054 = vsyncadd [#allocation12], 4294917760 }
  0xbf   :  { %19055 = dma.done.wait [#allocation15], 192  }
  0xc0   :  { %19056 = vsyncadd [#allocation15], 4294967104 }
  0xc1   :  { %19057 = dma.done.wait [#allocation18], 12384  }
  0xc2   :  { %19058 = vsyncadd [#allocation18], 4294954912 }
  0xc3   :  { %19059 = dma.done.wait [#allocation21], 12320  }
  0xc4   :  { %19060 = vsyncadd [#allocation21], 4294954976 }
  0xc5   :  { %19061 = dma.done.wait [#allocation24], 192  }
  0xc6   :  { %19062 = vsyncadd [#allocation24], 4294967104 }
  0xc7   :  { %19063 = dma.done.wait [#allocation27], 96  }
  0xc8   :  { %19064 = vsyncadd [#allocation27], 4294967200  ;;  %v17621_v0 = vld [vmem:[#allocation5 + $0x74] ss:$8 sps:$4 sm:$0xff]   ;;  %v17623_v1 = vld [vmem:[#allocation5 + $0x70] ss:$8 sps:$4 sm:$0xff]   ;;  %v275_v35 = vlaneseq }
  0xc9   :  { %905 = vmatprep.subr.bf16.mxu0 %v17621_v0  ;;  %v17624_v2 = vld [vmem:[#allocation5 + $0x174] ss:$8 sps:$4 sm:$0xff]   ;;  %v17626_v3 = vld [vmem:[#allocation5 + $0x170] ss:$8 sps:$4 sm:$0xff]   ;;  %v17627_v4 = vld [vmem:[#allocation5 + $0x64] ss:$8 sps:$4 sm:$0xff]  }
  0xca   :  { %906 = vmatpush1.bf16.msra.mxu0 %v17623_v1  ;;  %v17629_v5 = vld [vmem:[#allocation5 + $0x60] ss:$8 sps:$4 sm:$0xff]   ;;  %946 = vmatprep.subr.bf16.mxu1 %v17624_v2  ;;  %v17630_v6 = vld [vmem:[#allocation5 + $0x164] ss:$8 sps:$4 sm:$0xff]   ;;  %v17633_v8 = vld [vmem:[#allocation5 + $0x54] ss:$8 sps:$4 sm:$0xff]  }
  0xcb   :  { %947 = vmatpush1.bf16.msra.mxu1 %v17626_v3  ;;  %907 = vmatprep.subr.bf16.mxu0 %v17627_v4  ;;  %v17632_v7 = vld [vmem:[#allocation5 + $0x160] ss:$8 sps:$4 sm:$0xff]   ;;  %v17635_v9 = vld [vmem:[#allocation5 + $0x50] ss:$8 sps:$4 sm:$0xff]   ;;  %v17636_v10 = vld [vmem:[#allocation5 + $0x154] ss:$8 sps:$4 sm:$0xff]  }
  0xcc   :  { %948 = vmatprep.subr.bf16.mxu1 %v17630_v6  ;;  %v17639_v11 = vld [vmem:[#allocation5 + $0x44] ss:$8 sps:$4 sm:$0xff]   ;;  %v17638_v12 = vld [vmem:[#allocation5 + $0x150] ss:$8 sps:$4 sm:$0xff]   ;;  %v17641_v14 = vld [vmem:[#allocation5 + $0x40] ss:$8 sps:$4 sm:$0xff]  }
  0xcd   :  { %v17642_v13 = vld [vmem:[#allocation5 + $0x144] ss:$8 sps:$4 sm:$0xff]   ;;  %v17645_v15 = vld [vmem:[#allocation5 + $0x34] ss:$8 sps:$4 sm:$0xff]   ;;  %v17644_v16 = vld [vmem:[#allocation5 + $0x140] ss:$8 sps:$4 sm:$0xff]  }
  0xce   :  { %908 = vmatpush1.bf16.msra.mxu0 %v17629_v5  ;;  %v17648_v17 = vld [vmem:[#allocation5 + $0x134] ss:$8 sps:$4 sm:$0xff]   ;;  %v17647_v18 = vld [vmem:[#allocation5 + $0x30] ss:$8 sps:$4 sm:$0xff]   ;;  %v17651_v19 = vld [vmem:[#allocation5 + $0x24] ss:$8 sps:$4 sm:$0xff]  }
  0xcf   :  { %909 = vmatprep.subr.bf16.mxu0 %v17633_v8  ;;  %949 = vmatpush1.bf16.msra.mxu1 %v17632_v7  ;;  %v17650_v20 = vld [vmem:[#allocation5 + $0x130] ss:$8 sps:$4 sm:$0xff]   ;;  %v17654_v21 = vld [vmem:[#allocation5 + $0x124] ss:$8 sps:$4 sm:$0xff]   ;;  %v17653_v22 = vld [vmem:[#allocation5 + $0x20] ss:$8 sps:$4 sm:$0xff]  }
  0xd0   :  { %950 = vmatprep.subr.bf16.mxu1 %v17636_v10  ;;  %v17657_v23 = vld [vmem:[#allocation5 + $0x14] ss:$8 sps:$4 sm:$0xff]   ;;  %v17656_v24 = vld [vmem:[#allocation5 + $0x120] ss:$8 sps:$4 sm:$0xff]   ;;  %v17659_v26 = vld [vmem:[#allocation5 + $0x10] ss:$8 sps:$4 sm:$0xff]  }
  0xd1   :  { %v17660_v25 = vld [vmem:[#allocation5 + $0x114] ss:$8 sps:$4 sm:$0xff]   ;;  %v17663_v27 = vld [vmem:[#allocation5 + $0x4] ss:$8 sps:$4 sm:$0xff]   ;;  %v17662_v28 = vld [vmem:[#allocation5 + $0x110] ss:$8 sps:$4 sm:$0xff]  }
  0xd2   :  { %910 = vmatpush1.bf16.msra.mxu0 %v17635_v9  ;;  %v17666_v29 = vld [vmem:[#allocation5 + $0x104] ss:$8 sps:$4 sm:$0xff]   ;;  %v17665_v30 = vld [vmem:[#allocation5] ss:$8 sps:$4 sm:$0xff]   ;;  %v17669_v31 = vld [vmem:[#allocation5 + $0xf4] ss:$8 sps:$4 sm:$0xff]  }
  0xd3   :  { %911 = vmatprep.subr.bf16.mxu0 %v17639_v11  ;;  %951 = vmatpush1.bf16.msra.mxu1 %v17638_v12  ;;  %v17668_v32 = vld [vmem:[#allocation5 + $0x100] ss:$8 sps:$4 sm:$0xff]   ;;  %v17672_v33 = vld [vmem:[#allocation5 + $0x1f4] ss:$8 sps:$4 sm:$0xff]   ;;  %v17671_v34 = vld [vmem:[#allocation5 + $0xf0] ss:$8 sps:$4 sm:$0xff]  }
  0xd4   :  { %952 = vmatprep.subr.bf16.mxu1 %v17642_v13  ;;  %v17675_v36 = vld [vmem:[#allocation5 + $0xe4] ss:$8 sps:$4 sm:$0xff]   ;;  %v17674_v37 = vld [vmem:[#allocation5 + $0x1f0] ss:$8 sps:$4 sm:$0xff]   ;;  %v17677_v39 = vld [vmem:[#allocation5 + $0xe0] ss:$8 sps:$4 sm:$0xff]  }
  0xd5   :  { %v17678_v38 = vld [vmem:[#allocation5 + $0x1e4] ss:$8 sps:$4 sm:$0xff]   ;;  %v19257_v40 = vshrl.u32 %v275_v35, 7  ;;  %v17681_v41 = vld [vmem:[#allocation5 + $0xd4] ss:$8 sps:$4 sm:$0xff]   ;;  %s20204_s0 = sld [smem:[#allocation50_spill]] }
  0xd6   :  { %912 = vmatpush1.bf16.msra.mxu0 %v17641_v14  ;;  %v17680_v42 = vld [vmem:[#allocation5 + $0x1e0] ss:$8 sps:$4 sm:$0xff]   ;;  %v17684_v43 = vld [vmem:[#allocation5 + $0x1d4] ss:$8 sps:$4 sm:$0xff]   ;;  %v17683_v44 = vld [vmem:[#allocation5 + $0xd0] ss:$8 sps:$4 sm:$0xff]  }
  0xd7   :  { %913 = vmatprep.subr.bf16.mxu0 %v17645_v15  ;;  %953 = vmatpush1.bf16.msra.mxu1 %v17644_v16  ;;  %v19260_v45 = vsub.s32 1, %v19257_v40  ;;  %v19263_v46 = vsub.s32 3, %v19257_v40  ;;  %v17687_v47 = vld [vmem:[#allocation5 + $0xc4] ss:$8 sps:$4 sm:$0xff]   ;;  %v17686_v48 = vld [vmem:[#allocation5 + $0x1d0] ss:$8 sps:$4 sm:$0xff]  }
  0xd8   :  { %954 = vmatprep.subr.bf16.mxu1 %v17648_v17  ;;  %v17690_v49 = vld [vmem:[#allocation5 + $0x1c4] ss:$8 sps:$4 sm:$0xff]   ;;  %v19268_v51 = vld [vmem:[#allocation2] sm:$0x3f]  ;;  %v17689_v52 = vld [vmem:[#allocation5 + $0xc0] ss:$8 sps:$4 sm:$0xff]  }
  0xd9   :  { %v282_v53 = vrot.slane %v19268_v51, %v19260_v45  ;;  %v290_v54 = vrot.slane %v19268_v51, %v19263_v46  ;;  %v17693_v55 = vld [vmem:[#allocation5 + $0xb4] ss:$8 sps:$4 sm:$0xff]   ;;  %v17692_v56 = vld [vmem:[#allocation5 + $0x1c0] ss:$8 sps:$4 sm:$0xff]   ;;  %v17695_v61 = vld [vmem:[#allocation5 + $0xb0] ss:$8 sps:$4 sm:$0xff]  }
  0xda   :  { %914 = vmatpush1.bf16.msra.mxu0 %v17647_v18  ;;  %v17696_v59 = vld [vmem:[#allocation5 + $0x1b4] ss:$8 sps:$4 sm:$0xff]   ;;  %v17699_v63 = vld [vmem:[#allocation5 + $0xa4] ss:$8 sps:$4 sm:$0xff]   ;;  %v17698_v1 = vld [vmem:[#allocation5 + $0x1b0] ss:$8 sps:$4 sm:$0xff]  }
  0xdb   :  { %915 = vmatprep.subr.bf16.mxu0 %v17651_v19  ;;  %955 = vmatpush1.bf16.msra.mxu1 %v17650_v20  ;;  %v268_v50 = vld [vmem:[%s20204_s0 + $0x8] sm:$0xff]  ;;  %v270_v58 = vld [vmem:[%s20204_s0 + $0x18] sm:$0xff]  ;;  %v19291_v3 = vsub.s32 0, %v19257_v40  ;;  %v19295_v6 = vsub.s32 2, %v19257_v40  ;;  %v267_v11 = vld [vmem:[%s20204_s0] sm:$0xff]  ;;  %v19310_v18 = vsub.s32 5, %v19257_v40 }
  0xdc   :  { %956 = vmatprep.subr.bf16.mxu1 %v17654_v21  ;;  %v19274_v57 = vmul.f32 %v282_v53, %v268_v50  ;;  %v19279_v60 = vmul.f32 %v290_v54, %v270_v58  ;;  %v17702_v2 = vld [vmem:[#allocation5 + $0x1a4] ss:$8 sps:$4 sm:$0xff]   ;;  %v17701_v4 = vld [vmem:[#allocation5 + $0xa0] ss:$8 sps:$4 sm:$0xff]   ;;  %v17705_v5 = vld [vmem:[#allocation5 + $0x94] ss:$8 sps:$4 sm:$0xff]  }
  0xdd   :  { %v17704_v7 = vld [vmem:[#allocation5 + $0x1a0] ss:$8 sps:$4 sm:$0xff]   ;;  %v17707_v8 = vld [vmem:[#allocation5 + $0x90] ss:$8 sps:$4 sm:$0xff]   ;;  %v17708_v9 = vld [vmem:[#allocation5 + $0x194] ss:$8 sps:$4 sm:$0xff]   ;;  %v278_v10 = vrot.slane %v19268_v51, %v19291_v3  ;;  %v286_v13 = vrot.slane %v19268_v51, %v19295_v6 }
  0xde   :  { %916 = vmatpush1.bf16.msra.mxu0 %v17653_v22  ;;  %20205 = vst [vmem:[#allocation39_spill] sm:$0xff] %v19274_v57  ;;  %20206 = vst [vmem:[#allocation40_spill] sm:$0xff] %v19279_v60  ;;  %v19283_v62 = vpack.c.bf16 %v19274_v57, %v19274_v57  ;;  %v19287_v0 = vpack.c.bf16 %v19279_v60, %v19279_v60  ;;  %v17711_v12 = vld [vmem:[#allocation5 + $0x84] ss:$8 sps:$4 sm:$0xff]   ;;  %v17710_v14 = vld [vmem:[#allocation5 + $0x190] ss:$8 sps:$4 sm:$0xff]  }
  0xdf   :  { %917 = vmatprep.subr.bf16.mxu0 %v17657_v23  ;;  %957 = vmatpush1.bf16.msra.mxu1 %v17656_v24  ;;  %v269_v15 = vld [vmem:[%s20204_s0 + $0x10] sm:$0xff]  ;;  %v19307_v17 = vmul.f32 %v278_v10, %v267_v11  ;;  %v17719_v20 = vld [vmem:[#allocation5 + $0x274] ss:$8 sps:$4 sm:$0xff]   ;;  %v298_v24 = vrot.slane %v19268_v51, %v19310_v18  ;;  %vm1212_vm0 = vcmask 15360   ;;  %vm19090_vm1 = vmmov 0   ;;  %s20225_s30 = sld [smem:[#allocation49_spill]] }
  0xe0   :  { %958 = vmatprep.subr.bf16.mxu1 %v17660_v25  ;;  %937 = vmatprep.mubr.bf16.mxu0 %v19283_v62  ;;  %v17714_v16 = vld [vmem:[#allocation5 + $0x184] ss:$8 sps:$4 sm:$0xff]   ;;  %v17713_v19 = vld [vmem:[#allocation5 + $0x80] ss:$8 sps:$4 sm:$0xff]   ;;  %v19312_v21 = vmul.f32 %v286_v13, %v269_v15  ;;  %v17717_v25 = vld [vmem:[#allocation5 + $0x270] ss:$8 sps:$4 sm:$0xff]  }
  0xe1   :  { %978 = vmatprep.mubr.bf16.mxu1 %v19287_v0  ;;  %20207 = vst [vmem:[#allocation41_spill] sm:$0xff] %v19307_v17  ;;  %v17716_v22 = vld [vmem:[#allocation5 + $0x180] ss:$8 sps:$4 sm:$0xff]   ;;  %v19316_v23 = vpack.c.bf16 %v19307_v17, %v19307_v17  ;;  %v17747_v53 = vld [vmem:[#allocation5 + $0x2d0] ss:$8 sps:$4 sm:$0xff]   ;;  %vm9799_vm2 = vcmask 64512  }
  0xe2   :  { %918 = vmatpush1.bf16.msra.mxu0 %v17659_v26  ;;  %20208 = vst [vmem:[#allocation42_spill] sm:$0xff] %v19312_v21  ;;  %v19322_v26 = vpack.c.bf16 %v19312_v21, %v19312_v21  ;;  %v17726_v35 = vld [vmem:[#allocation5 + $0x240] ss:$8 sps:$4 sm:$0xff]   ;;  %v17752_v54 = vld [vmem:[#allocation5 + $0x2c4] ss:$8 sps:$4 sm:$0xff]  }
  0xe3   :  { %919 = vmatprep.subr.bf16.mxu0 %v17663_v27  ;;  %959 = vmatpush1.bf16.msra.mxu1 %v17662_v28  ;;  %v17722_v27 = vld [vmem:[#allocation5 + $0x264] ss:$8 sps:$4 sm:$0xff]   ;;  %v17744_v50 = vld [vmem:[#allocation5 + $0x2e0] ss:$8 sps:$4 sm:$0xff]   ;;  %v17753_v58 = vld [vmem:[#allocation5 + $0x2b0] ss:$8 sps:$4 sm:$0xff]  }
  0xe4   :  { %960 = vmatprep.subr.bf16.mxu1 %v17666_v29  ;;  %v272_v28 = vld [vmem:[%s20204_s0 + $0x28] sm:$0xff] }
  0xe5   :  { %v19328_v29 = vmul.f32 %v298_v24, %v272_v28  ;;  %v17762_v10 = vld [vmem:[#allocation5 + $0x280] ss:$8 sps:$4 sm:$0xff]  }
  0xe6   :  { %920 = vmatpush1.bf16.msra.mxu0 %v17665_v30  ;;  %v17720_v30 = vld [vmem:[#allocation5 + $0x260] ss:$8 sps:$4 sm:$0xff]  }
  0xe7   :  { %921 = vmatprep.subr.bf16.mxu0 %v17669_v31  ;;  %961 = vmatpush1.bf16.msra.mxu1 %v17668_v32  ;;  %20209 = vst [vmem:[#allocation43_spill] sm:$0xff] %v19328_v29  ;;  %v17725_v31 = vld [vmem:[#allocation5 + $0x254] ss:$8 sps:$4 sm:$0xff]   ;;  %v19333_v32 = vpack.c.bf16 %v19328_v29, %v19328_v29  ;;  %v1754_v13 = vld [vmem:[#allocation10 + $0x10e0] sm:$0xff]  ;;  %v2063_v29 = vld [vmem:[#allocation10 + $0x1a88] sm:$0xff] }
  0xe8   :  { %962 = vmatprep.subr.bf16.mxu1 %v17672_v33  ;;  %v17723_v33 = vld [vmem:[#allocation5 + $0x250] ss:$8 sps:$4 sm:$0xff]   ;;  %v1694_v24 = vld [vmem:[#allocation10 + $0xf00] sm:$0xff]  ;;  %v1237_v57 = vld [vmem:[#allocation10 + $0xb8] sm:$0xff] }
  0xe9   :  { %v2062_v17 = vld [vmem:[#allocation10 + $0x1a80] sm:$0xff] }
  0xea   :  { %922 = vmatpush2.bf16.msra.mxu0 %v17671_v34  ;;  %v17728_v34 = vld [vmem:[#allocation5 + $0x244] ss:$8 sps:$4 sm:$0xff]  }
  0xeb   :  { %923 = vmatprep.subr.bf16.mxu0 %v17675_v36  ;;  %963 = vmatpush2.bf16.msra.mxu1 %v17674_v37  ;;  %v17731_v36 = vld [vmem:[#allocation5 + $0x234] ss:$8 sps:$4 sm:$0xff]   ;;  %v17729_v37 = vld [vmem:[#allocation5 + $0x230] ss:$8 sps:$4 sm:$0xff]  }
  0xec   :  { %964 = vmatprep.subr.bf16.mxu1 %v17678_v38  ;;  %v17734_v38 = vld [vmem:[#allocation5 + $0x224] ss:$8 sps:$4 sm:$0xff]  }
  0xee   :  { %924 = vmatpush2.bf16.msra.mxu0 %v17677_v39  ;;  %v17732_v39 = vld [vmem:[#allocation5 + $0x220] ss:$8 sps:$4 sm:$0xff]  }
  0xef   :  { %925 = vmatprep.subr.bf16.mxu0 %v17681_v41  ;;  %965 = vmatpush2.bf16.msra.mxu1 %v17680_v42  ;;  %v17737_v41 = vld [vmem:[#allocation5 + $0x214] ss:$8 sps:$4 sm:$0xff]   ;;  %v17735_v42 = vld [vmem:[#allocation5 + $0x210] ss:$8 sps:$4 sm:$0xff]  }
  0xf0   :  { %966 = vmatprep.subr.bf16.mxu1 %v17684_v43  ;;  %v17740_v43 = vld [vmem:[#allocation5 + $0x204] ss:$8 sps:$4 sm:$0xff]  }
  0xf2   :  { %926 = vmatpush2.bf16.msra.mxu0 %v17683_v44  ;;  %v17738_v44 = vld [vmem:[#allocation5 + $0x200] ss:$8 sps:$4 sm:$0xff]  }
  0xf3   :  { %927 = vmatprep.subr.bf16.mxu0 %v17687_v47  ;;  %967 = vmatpush2.bf16.msra.mxu1 %v17686_v48  ;;  %v17743_v47 = vld [vmem:[#allocation5 + $0x2f4] ss:$8 sps:$4 sm:$0xff]   ;;  %v17741_v48 = vld [vmem:[#allocation5 + $0x2f0] ss:$8 sps:$4 sm:$0xff]  }
  0xf4   :  { %968 = vmatprep.subr.bf16.mxu1 %v17690_v49  ;;  %v17746_v49 = vld [vmem:[#allocation5 + $0x2e4] ss:$8 sps:$4 sm:$0xff]  }
  0xf6   :  { %928 = vmatpush2.bf16.msra.mxu0 %v17689_v52  ;;  %v17749_v52 = vld [vmem:[#allocation5 + $0x2d4] ss:$8 sps:$4 sm:$0xff]  }
  0xf7   :  { %929 = vmatprep.subr.bf16.mxu0 %v17693_v55  ;;  %969 = vmatpush2.bf16.msra.mxu1 %v17692_v56  ;;  %v17750_v55 = vld [vmem:[#allocation5 + $0x2c0] ss:$8 sps:$4 sm:$0xff]   ;;  %v17755_v56 = vld [vmem:[#allocation5 + $0x2b4] ss:$8 sps:$4 sm:$0xff]  }
  0xf8   :  { %970 = vmatprep.subr.bf16.mxu1 %v17696_v59  ;;  %v17758_v59 = vld [vmem:[#allocation5 + $0x2a4] ss:$8 sps:$4 sm:$0xff]  }
  0xfa   :  { %930 = vmatpush2.bf16.msra.mxu0 %v17695_v61  ;;  %v19337_v61 = vsub.s32 4, %v19257_v40 }
  0xfb   :  { %931 = vmatprep.subr.bf16.mxu0 %v17699_v63  ;;  %971 = vmatpush2.bf16.msra.mxu1 %v17698_v1  ;;  %v17756_v63 = vld [vmem:[#allocation5 + $0x2a0] ss:$8 sps:$4 sm:$0xff]   ;;  %v17761_v1 = vld [vmem:[#allocation5 + $0x294] ss:$8 sps:$4 sm:$0xff]  }
  0xfc   :  { %972 = vmatprep.subr.bf16.mxu1 %v17702_v2  ;;  %v17759_v2 = vld [vmem:[#allocation5 + $0x290] ss:$8 sps:$4 sm:$0xff]  }
  0xfe   :  { %932 = vmatpush2.bf16.msra.mxu0 %v17701_v4  ;;  %v271_v4 = vld [vmem:[%s20204_s0 + $0x20] sm:$0xff]  ;;  %s19091_s0 = smov [#allocation28]  }
  0xff   :  { %933 = vmatprep.subr.bf16.mxu0 %v17705_v5  ;;  %973 = vmatpush2.bf16.msra.mxu1 %v17704_v7  ;;  %v17764_v5 = vld [vmem:[#allocation5 + $0x284] ss:$8 sps:$4 sm:$0xff]   ;;  %v294_v7 = vrot.slane %v19268_v51, %v19337_v61  ;;  %s15592_s7 = sshll.u32 %s19091_s0, 4  ;;  %s15593_s7 = int_to_ptr.vmem [resolvable:$true] %s15592_s7 }
 0x100   :  { %974 = vmatprep.subr.bf16.mxu1 %v17708_v9  ;;  %v1778_v9 = vld [vmem:[#allocation10 + $0x11a0] sm:$0xff]  ;;  %s19027_s29 = scalar_lea.vmem %s15593_s7, 768  ;;  %p19032_p11 = scmp.lt.s32.totalorder %s15593_s7, %s15593_s7 }
 0x101   :  { %v19344_v11 = vmul.f32 %v294_v7, %v271_v4  ;;  %v1730_v51 = vld [vmem:[#allocation10 + $0x1020] sm:$0xff]  ;;  %p19028_p10 = scmp.ne.s32.totalorder %s15593_s7, %s19027_s29  ;;  %p19033_p12 = scmp.lt.s32.totalorder %s19027_s29, %s19027_s29 }
 0x102   :  { %934 = vmatpush2.bf16.msra.mxu0 %v17707_v8  ;;  %v1766_v8 = vld [vmem:[#allocation10 + $0x1140] sm:$0xff] }
 0x103   :  { %935 = vmatprep.subr.bf16.mxu0 %v17711_v12  ;;  %975 = vmatpush2.bf16.msra.mxu1 %v17710_v14  ;;  %20210 = vst [vmem:[#allocation44_spill] sm:$0xff] %v19344_v11  ;;  %v1742_v12 = vld [vmem:[#allocation10 + $0x1080] sm:$0xff]  ;;  %v16279_v14 = vcombine.high %v1766_v8, %v1778_v9  ;;  %v19348_v15 = vpack.c.bf16 %v19344_v11, %v19344_v11  ;;  %v2075_v11 = vld [vmem:[#allocation10 + $0x1ae8] sm:$0xff]  ;;  %p19034_p13 = por %p19033_p12, %p19032_p11 }
 0x104   :  { %976 = vmatprep.subr.bf16.mxu1 %v17714_v16  ;;  %v16278_v16 = vcombine.low %v1766_v8, %v1778_v9  ;;  %v1898_v7 = vld [vmem:[#allocation10 + $0x1560] sm:$0xff] }
 0x105   :  { %p19035_p0 = pnand %p19034_p13, %p19028_p10 }
 0x106   :  { %936 = vmatpush2.bf16.msra.mxu0 %v17713_v19  ;;  %v1718_v19 = vld [vmem:[#allocation10 + $0xfc0] sm:$0xff] }
 0x107   :  { %987 = vmatprep.subr.bf16.mxu0 %v17719_v20  ;;  %977 = vmatpush2.bf16.msra.mxu1 %v17716_v22  ;;  %v16255_v20 = vcombine.high %v1742_v12, %v1754_v13  ;;  %v16254_v22 = vcombine.low %v1742_v12, %v1754_v13  ;;  %v16230_v28 = vcombine.low %v1718_v19, %v1730_v51  ;;  %v1874_v12 = vld [vmem:[#allocation10 + $0x14a0] sm:$0xff] }
 0x109   :  { %938 = vmatmul.mubr.bf16.vlgmr.msra.gmra.mxu0 %v19316_v23 }
 0x10a   :  { %988 = vmatpush1.bf16.msra.mxu0 %v17717_v25  ;;  %979 = vmatmul.mubr.bf16.vlgmr.msra.gmra.mxu1 %v19322_v26  ;;  %v1706_v25 = vld [vmem:[#allocation10 + $0xf60] sm:$0xff] }
 0x10b   :  { %989 = vmatprep.subr.bf16.mxu0 %v17722_v27  ;;  %1019 = vmatprep.mubr.bf16.mxu0 %v19333_v32  ;;  %v16231_v27 = vcombine.high %v1718_v19, %v1730_v51  ;;  %v1838_v51 = vld [vmem:[#allocation10 + $0x1380] sm:$0xff] }
 0x10e   :  { %990 = vmatpush1.bf16.msra.mxu0 %v17720_v30  ;;  %v1670_v30 = vld [vmem:[#allocation10 + $0xe40] sm:$0xff] }
 0x10f   :  { %991 = vmatprep.subr.bf16.mxu0 %v17725_v31  ;;  %v1682_v31 = vld [vmem:[#allocation10 + $0xea0] sm:$0xff] }
 0x112   :  { %992 = vmatpush1.bf16.msra.mxu0 %v17723_v33  ;;  %v16207_v33 = vcombine.high %v1694_v24, %v1706_v25 }
 0x113   :  { %993 = vmatprep.subr.bf16.mxu0 %v17728_v34  ;;  %v16206_v34 = vcombine.low %v1694_v24, %v1706_v25  ;;  %v17767_v24 = vld [vmem:[%s20172_s5 + $0x70] sm:$0xff]  }
 0x114   :  { %v17768_v25 = vld [vmem:[%s20172_s5 + $0x30] sm:$0xff]  }
 0x116   :  { %994 = vmatpush1.bf16.msra.mxu0 %v17726_v35  ;;  %v1646_v35 = vld [vmem:[#allocation10 + $0xd80] sm:$0xff] }
 0x117   :  { %995 = vmatprep.subr.bf16.mxu0 %v17731_v36  ;;  %v1658_v36 = vld [vmem:[#allocation10 + $0xde0] sm:$0xff] }
 0x11a   :  { %996 = vmatpush1.bf16.msra.mxu0 %v17729_v37  ;;  %v16183_v37 = vcombine.high %v1670_v30, %v1682_v31 }
 0x11b   :  { %997 = vmatprep.subr.bf16.mxu0 %v17734_v38  ;;  %v16182_v38 = vcombine.low %v1670_v30, %v1682_v31  ;;  %v1826_v30 = vld [vmem:[#allocation10 + $0x1320] sm:$0xff] }
 0x11e   :  { %998 = vmatpush1.bf16.msra.mxu0 %v17732_v39  ;;  %v1622_v39 = vld [vmem:[#allocation10 + $0xcc0] sm:$0xff] }
 0x11f   :  { %999 = vmatprep.subr.bf16.mxu0 %v17737_v41  ;;  %v1634_v41 = vld [vmem:[#allocation10 + $0xd20] sm:$0xff] }
 0x122   :  { %1000 = vmatpush1.bf16.msra.mxu0 %v17735_v42  ;;  %v16159_v42 = vcombine.high %v1646_v35, %v1658_v36 }
 0x123   :  { %1001 = vmatprep.subr.bf16.mxu0 %v17740_v43  ;;  %v16158_v43 = vcombine.low %v1646_v35, %v1658_v36  ;;  %v1790_v36 = vld [vmem:[#allocation10 + $0x1200] sm:$0xff] }
 0x126   :  { %1002 = vmatpush1.bf16.msra.mxu0 %v17738_v44  ;;  %v1598_v44 = vld [vmem:[#allocation10 + $0xc00] sm:$0xff] }
 0x127   :  { %1003 = vmatprep.subr.bf16.mxu0 %v17743_v47  ;;  %v1610_v47 = vld [vmem:[#allocation10 + $0xc60] sm:$0xff] }
 0x12a   :  { %1004 = vmatpush2.bf16.msra.mxu0 %v17741_v48  ;;  %v16135_v48 = vcombine.high %v1622_v39, %v1634_v41 }
 0x12b   :  { %1005 = vmatprep.subr.bf16.mxu0 %v17746_v49  ;;  %v16134_v49 = vcombine.low %v1622_v39, %v1634_v41  ;;  %v17771_v39 = vld [vmem:[%s20172_s5 + $0x60] sm:$0xff]  }
 0x12c   :  { %v17772_v41 = vld [vmem:[%s20172_s5 + $0x20] sm:$0xff]  }
 0x12e   :  { %1006 = vmatpush2.bf16.msra.mxu0 %v17744_v50  ;;  %v1958_v50 = vld [vmem:[#allocation10 + $0x1740] sm:$0xff] }
 0x12f   :  { %1007 = vmatprep.subr.bf16.mxu0 %v17749_v52  ;;  %v1970_v52 = vld [vmem:[#allocation10 + $0x17a0] sm:$0xff] }
 0x132   :  { %1008 = vmatpush2.bf16.msra.mxu0 %v17747_v53  ;;  %v16111_v53 = vcombine.high %v1598_v44, %v1610_v47 }
 0x133   :  { %1009 = vmatprep.subr.bf16.mxu0 %v17752_v54  ;;  %v16110_v54 = vcombine.low %v1598_v44, %v1610_v47  ;;  %v1395_v44 = vld [vmem:[#allocation10 + $0x5a8] sm:$0xff] }
 0x136   :  { %1010 = vmatpush2.bf16.msra.mxu0 %v17750_v55  ;;  %v1934_v55 = vld [vmem:[#allocation10 + $0x1680] sm:$0xff] }
 0x137   :  { %1011 = vmatprep.subr.bf16.mxu0 %v17755_v56  ;;  %v1946_v56 = vld [vmem:[#allocation10 + $0x16e0] sm:$0xff] }
 0x138   :  { %v16446_v4 = vcombine.low %v1934_v55, %v1946_v56 }
 0x13a   :  { %1012 = vmatpush2.bf16.msra.mxu0 %v17753_v58  ;;  %v16471_v58 = vcombine.high %v1958_v50, %v1970_v52 }
 0x13b   :  { %1013 = vmatprep.subr.bf16.mxu0 %v17758_v59  ;;  %v16470_v59 = vcombine.low %v1958_v50, %v1970_v52  ;;  %v1359_v52 = vld [vmem:[#allocation10 + $0x488] sm:$0xff] }
 0x13e   :  { %1014 = vmatpush2.bf16.msra.mxu0 %v17756_v63  ;;  %v1910_v63 = vld [vmem:[#allocation10 + $0x15c0] sm:$0xff] }
 0x13f   :  { %1015 = vmatprep.subr.bf16.mxu0 %v17761_v1  ;;  %v1922_v1 = vld [vmem:[#allocation10 + $0x1620] sm:$0xff] }
 0x140   :  { %v16423_v8 = vcombine.high %v1910_v63, %v1922_v1  ;;  %v16422_v9 = vcombine.low %v1910_v63, %v1922_v1  ;;  %v1347_v63 = vld [vmem:[#allocation10 + $0x428] sm:$0xff] }
 0x142   :  { %1016 = vmatpush2.bf16.msra.mxu0 %v17759_v2  ;;  %v16447_v2 = vcombine.high %v1934_v55, %v1946_v56  ;;  %v17775_v55 = vld [vmem:[%s20172_s5 + $0x50] sm:$0xff]  }
 0x143   :  { %1017 = vmatprep.subr.bf16.mxu0 %v17764_v5  ;;  %v1886_v5 = vld [vmem:[#allocation10 + $0x1500] sm:$0xff] }
 0x144   :  { %v16399_v13 = vcombine.high %v1886_v5, %v1898_v7  ;;  %v16398_v19 = vcombine.low %v1886_v5, %v1898_v7  ;;  %v17776_v56 = vld [vmem:[%s20172_s5 + $0x10] sm:$0xff]  }
 0x145   :  { %v1311_v7 = vld [vmem:[#allocation10 + $0x308] sm:$0xff] }
 0x146   :  { %1018 = vmatpush2.bf16.msra.mxu0 %v17762_v10  ;;  %v1862_v10 = vld [vmem:[#allocation10 + $0x1440] sm:$0xff] }
 0x147   :  { %8293 = vmatprep.subr.bf16.mxu0 %v16279_v14  ;;  %v17765_v14 = vld [vmem:[%s20172_s5 + $0x78] sm:$0xff]  }
 0x148   :  { %17462 = vmatprep.subr.bf16.mxu1 %v17765_v14  ;;  %v1287_v14 = vld [vmem:[#allocation10 + $0x248] sm:$0xff] }
 0x149   :  { %1020 = vmatmul.mubr.bf16.vlgmr.msra.gmra.mxu0 %v19348_v15 }
 0x14a   :  { %8294 = vmatpush1.bf16.msra.mxu0 %v16278_v16  ;;  %8325 = vmatprep.mubr.bf16.mxu0 %v19287_v0  ;;  %v17766_v16 = vld [vmem:[%s20172_s5 + $0x38] sm:$0xff]  }
 0x14b   :  { %8295 = vmatprep.subr.bf16.mxu0 %v16255_v20  ;;  %v1850_v20 = vld [vmem:[#allocation10 + $0x13e0] sm:$0xff]  ;;  %17463 = vmatpush3.bf16.msra.mxu1 %v17766_v16  ;;  %v1299_v16 = vld [vmem:[#allocation10 + $0x2a8] sm:$0xff] }
 0x14c   :  { %17464 = vmatprep.subr.bf16.mxu1 %v17767_v24  ;;  %v16351_v31 = vcombine.high %v1838_v51, %v1850_v20  ;;  %v16350_v35 = vcombine.low %v1838_v51, %v1850_v20  ;;  %v19402_v51 = vld [vmem:[#allocation10 + $0x540] sm:$0xff] }
 0x14d   :  { %v19404_v20 = vld [vmem:[#allocation10 + $0x5a0] sm:$0xff] }
 0x14e   :  { %8296 = vmatpush1.bf16.msra.mxu0 %v16254_v22  ;;  %v16375_v22 = vcombine.high %v1862_v10, %v1874_v12  ;;  %v15894_v24 = vcombine.low %v19402_v51, %v19404_v20 }
 0x14f   :  { %8297 = vmatprep.subr.bf16.mxu0 %v16231_v27  ;;  %v16374_v27 = vcombine.low %v1862_v10, %v1874_v12  ;;  %17465 = vmatpush3.bf16.msra.mxu1 %v17768_v25  ;;  %v17779_v10 = vld [vmem:[%s20172_s5 + $0x40] sm:$0xff]  }
 0x150   :  { %v17780_v12 = vld [vmem:[%s20172_s5] sm:$0xff]  }
 0x152   :  { %8298 = vmatpush1.bf16.msra.mxu0 %v16230_v28  ;;  %v1814_v28 = vld [vmem:[#allocation10 + $0x12c0] sm:$0xff] }
 0x153   :  { %8299 = vmatprep.subr.bf16.mxu0 %v16207_v33  ;;  %v17769_v33 = vld [vmem:[%s20172_s5 + $0x68] sm:$0xff]  }
 0x154   :  { %17466 = vmatprep.subr.bf16.mxu1 %v17769_v33 }
 0x156   :  { %8300 = vmatpush1.bf16.msra.mxu0 %v16206_v34  ;;  %v17770_v34 = vld [vmem:[%s20172_s5 + $0x28] sm:$0xff]  }
 0x157   :  { %8301 = vmatprep.subr.bf16.mxu0 %v16183_v37  ;;  %v1802_v37 = vld [vmem:[#allocation10 + $0x1260] sm:$0xff]  ;;  %17467 = vmatpush3.bf16.msra.mxu1 %v17770_v34  ;;  %v1239_v34 = vld [vmem:[#allocation10 + $0xc8] sm:$0xff] }
 0x158   :  { %17468 = vmatprep.subr.bf16.mxu1 %v17771_v39  ;;  %v16303_v47 = vcombine.high %v1790_v36, %v1802_v37  ;;  %v16302_v50 = vcombine.low %v1790_v36, %v1802_v37  ;;  %v1227_v39 = vld [vmem:[#allocation10 + $0x68] sm:$0xff] }
 0x15a   :  { %8302 = vmatpush1.bf16.msra.mxu0 %v16182_v38  ;;  %v16327_v38 = vcombine.high %v1814_v28, %v1826_v30 }
 0x15b   :  { %8303 = vmatprep.subr.bf16.mxu0 %v16159_v42  ;;  %v16326_v42 = vcombine.low %v1814_v28, %v1826_v30  ;;  %17469 = vmatpush3.bf16.msra.mxu1 %v17772_v41  ;;  %v1263_v28 = vld [vmem:[#allocation10 + $0x188] sm:$0xff] }
 0x15c   :  { %v1275_v30 = vld [vmem:[#allocation10 + $0x1e8] sm:$0xff] }
 0x15d   :  { %v15777_v33 = vcombine.high %v1263_v28, %v1275_v30  ;;  %v15776_v36 = vcombine.low %v1263_v28, %v1275_v30 }
 0x15e   :  { %8304 = vmatpush1.bf16.msra.mxu0 %v16158_v43  ;;  %v1383_v43 = vld [vmem:[#allocation10 + $0x548] sm:$0xff] }
 0x15f   :  { %8305 = vmatprep.subr.bf16.mxu0 %v16135_v48  ;;  %v17773_v48 = vld [vmem:[%s20172_s5 + $0x58] sm:$0xff]  }
 0x160   :  { %17470 = vmatprep.subr.bf16.mxu1 %v17773_v48 }
 0x162   :  { %8306 = vmatpush1.bf16.msra.mxu0 %v16134_v49  ;;  %v17774_v49 = vld [vmem:[%s20172_s5 + $0x18] sm:$0xff]  }
 0x163   :  { %8307 = vmatprep.subr.bf16.mxu0 %v16111_v53  ;;  %v1371_v53 = vld [vmem:[#allocation10 + $0x4e8] sm:$0xff]  ;;  %17471 = vmatpush3.bf16.msra.mxu1 %v17774_v49 }
 0x164   :  { %17472 = vmatprep.subr.bf16.mxu1 %v17775_v55  ;;  %v15873_v1 = vcombine.high %v1359_v52, %v1371_v53  ;;  %v15872_v5 = vcombine.low %v1359_v52, %v1371_v53  ;;  %v1551_v49 = vld [vmem:[#allocation10 + $0xa88] sm:$0xff] }
 0x165   :  { %v1539_v55 = vld [vmem:[#allocation10 + $0xa28] sm:$0xff] }
 0x166   :  { %8308 = vmatpush1.bf16.msra.mxu0 %v16110_v54  ;;  %v15897_v54 = vcombine.high %v1383_v43, %v1395_v44 }
 0x167   :  { %8309 = vmatprep.subr.bf16.mxu0 %v16471_v58  ;;  %v15896_v58 = vcombine.low %v1383_v43, %v1395_v44  ;;  %17473 = vmatpush3.bf16.msra.mxu1 %v17776_v56  ;;  %v1575_v43 = vld [vmem:[#allocation10 + $0xb48] sm:$0xff] }
 0x168   :  { %v1587_v44 = vld [vmem:[#allocation10 + $0xba8] sm:$0xff] }
 0x169   :  { %v16089_v48 = vcombine.high %v1575_v43, %v1587_v44  ;;  %v16088_v52 = vcombine.low %v1575_v43, %v1587_v44 }
 0x16a   :  { %8310 = vmatpush2.bf16.msra.mxu0 %v16470_v59  ;;  %v1335_v59 = vld [vmem:[#allocation10 + $0x3c8] sm:$0xff] }
 0x16b   :  { %8311 = vmatprep.subr.bf16.mxu0 %v16447_v2  ;;  %v17777_v2 = vld [vmem:[%s20172_s5 + $0x48] sm:$0xff]  }
 0x16c   :  { %17474 = vmatprep.subr.bf16.mxu1 %v17777_v2 }
 0x16e   :  { %8312 = vmatpush2.bf16.msra.mxu0 %v16446_v4  ;;  %v17778_v4 = vld [vmem:[%s20172_s5 + $0x8] sm:$0xff]  }
 0x16f   :  { %8313 = vmatprep.subr.bf16.mxu0 %v16423_v8  ;;  %v1323_v8 = vld [vmem:[#allocation10 + $0x368] sm:$0xff]  ;;  %17475 = vmatpush3.bf16.msra.mxu1 %v17778_v4 }
 0x170   :  { %17476 = vmatprep.subr.bf16.mxu1 %v17779_v10  ;;  %v15824_v25 = vcombine.low %v1311_v7, %v1323_v8  ;;  %v1479_v4 = vld [vmem:[#allocation10 + $0x848] sm:$0xff] }
 0x171   :  { %v1467_v10 = vld [vmem:[#allocation10 + $0x7e8] sm:$0xff] }
 0x172   :  { %8314 = vmatpush2.bf16.msra.mxu0 %v16422_v9  ;;  %v15849_v9 = vcombine.high %v1335_v59, %v1347_v63 }
 0x173   :  { %8315 = vmatprep.subr.bf16.mxu0 %v16399_v13  ;;  %v15848_v13 = vcombine.low %v1335_v59, %v1347_v63  ;;  %17477 = vmatpush3.bf16.msra.mxu1 %v17780_v12  ;;  %v1503_v59 = vld [vmem:[#allocation10 + $0x908] sm:$0xff] }
 0x174   :  { %v1515_v63 = vld [vmem:[#allocation10 + $0x968] sm:$0xff] }
 0x175   :  { %v16017_v2 = vcombine.high %v1503_v59, %v1515_v63 }
 0x176   :  { %8316 = vmatpush2.bf16.msra.mxu0 %v16398_v19  ;;  %v15825_v19 = vcombine.high %v1311_v7, %v1323_v8  ;;  %v16016_v7 = vcombine.low %v1503_v59, %v1515_v63  ;;  %v2055_v63 = vld [vmem:[#allocation10 + $0x1a48] sm:$0xff] }
 0x177   :  { %8317 = vmatprep.subr.bf16.mxu0 %v16375_v22  ;;  %v15895_v22 = vcombine.high %v19402_v51, %v19404_v20 }
 0x179   :  { %8252 = vmatprep.subr.bf16.mxu1 %v15895_v22 }
 0x17a   :  { %8318 = vmatpush2.bf16.msra.mxu0 %v16374_v27  ;;  %v15801_v27 = vcombine.high %v1287_v14, %v1299_v16 }
 0x17b   :  { %8319 = vmatprep.subr.bf16.mxu0 %v16351_v31  ;;  %v15800_v31 = vcombine.low %v1287_v14, %v1299_v16  ;;  %v1431_v14 = vld [vmem:[#allocation10 + $0x6c8] sm:$0xff] }
 0x17c   :  { %v1443_v16 = vld [vmem:[#allocation10 + $0x728] sm:$0xff] }
 0x17d   :  { %v15945_v22 = vcombine.high %v1431_v14, %v1443_v16  ;;  %v15944_v28 = vcombine.low %v1431_v14, %v1443_v16 }
 0x17e   :  { %8320 = vmatpush2.bf16.msra.mxu0 %v16350_v35  ;;  %v1251_v35 = vld [vmem:[#allocation10 + $0x128] sm:$0xff] }
 0x17f   :  { %8321 = vmatprep.subr.bf16.mxu0 %v16327_v38  ;;  %v15753_v37 = vcombine.high %v1239_v34, %v1251_v35  ;;  %v1215_v38 = vld [vmem:[#allocation10 + $0x8] sm:$0xff]  ;;  %v15752_v41 = vcombine.low %v1239_v34, %v1251_v35 }
 0x182   :  { %8322 = vmatpush2.bf16.msra.mxu0 %v16326_v42  ;;  %v15729_v42 = vcombine.high %v1215_v38, %v1227_v39 }
 0x183   :  { %8323 = vmatprep.subr.bf16.mxu0 %v16303_v47  ;;  %v15728_v47 = vcombine.low %v1215_v38, %v1227_v39 }
 0x186   :  { %8324 = vmatpush2.bf16.msra.mxu0 %v16302_v50  ;;  %v1563_v50 = vld [vmem:[#allocation10 + $0xae8] sm:$0xff] }
 0x187   :  { %8375 = vmatprep.subr.bf16.mxu0 %v15897_v54  ;;  %v16065_v53 = vcombine.high %v1551_v49, %v1563_v50  ;;  %v1527_v54 = vld [vmem:[#allocation10 + $0x9c8] sm:$0xff]  ;;  %v16064_v56 = vcombine.low %v1551_v49, %v1563_v50 }
 0x188   :  { %v2079_v50 = vld [vmem:[#allocation10 + $0x1b08] sm:$0xff] }
 0x189   :  { %8326 = vmatmul.mubr.bf16.vlgmr.msra.gmra.mxu0 %v19322_v26 }
 0x18a   :  { %8376 = vmatpush1.bf16.msra.mxu0 %v15896_v58  ;;  %8407 = vmatprep.mubr.bf16.mxu0 %v19283_v62  ;;  %v16041_v58 = vcombine.high %v1527_v54, %v1539_v55 }
 0x18b   :  { %8377 = vmatprep.subr.bf16.mxu0 %v15873_v1  ;;  %v16040_v1 = vcombine.low %v1527_v54, %v1539_v55 }
 0x18e   :  { %8378 = vmatpush1.bf16.msra.mxu0 %v15872_v5  ;;  %v1491_v5 = vld [vmem:[#allocation10 + $0x8a8] sm:$0xff] }
 0x18f   :  { %8379 = vmatprep.subr.bf16.mxu0 %v15849_v9  ;;  %v15993_v8 = vcombine.high %v1479_v4, %v1491_v5  ;;  %v1455_v9 = vld [vmem:[#allocation10 + $0x788] sm:$0xff]  ;;  %v15992_v12 = vcombine.low %v1479_v4, %v1491_v5 }
 0x192   :  { %8380 = vmatpush1.bf16.msra.mxu0 %v15848_v13  ;;  %v15969_v13 = vcombine.high %v1455_v9, %v1467_v10 }
 0x193   :  { %8381 = vmatprep.subr.bf16.mxu0 %v15825_v19  ;;  %v15968_v19 = vcombine.low %v1455_v9, %v1467_v10 }
 0x196   :  { %8382 = vmatpush1.bf16.msra.mxu0 %v15824_v25  ;;  %v1407_v25 = vld [vmem:[#allocation10 + $0x608] sm:$0xff] }
 0x197   :  { %8383 = vmatprep.subr.bf16.mxu0 %v15801_v27  ;;  %v1419_v27 = vld [vmem:[#allocation10 + $0x668] sm:$0xff] }
 0x198   :  { %v15921_v30 = vcombine.high %v1407_v25, %v1419_v27  ;;  %v15920_v34 = vcombine.low %v1407_v25, %v1419_v27 }
 0x19a   :  { %8384 = vmatpush1.bf16.msra.mxu0 %v15800_v31  ;;  %v2151_v31 = vld [vmem:[#allocation10 + $0x1d48] sm:$0xff] }
 0x19b   :  { %8385 = vmatprep.subr.bf16.mxu0 %v15777_v33  ;;  %v2163_v33 = vld [vmem:[#allocation10 + $0x1da8] sm:$0xff] }
 0x19c   :  { %v16665_v35 = vcombine.high %v2151_v31, %v2163_v33  ;;  %v16664_v38 = vcombine.low %v2151_v31, %v2163_v33 }
 0x19e   :  { %8386 = vmatpush1.bf16.msra.mxu0 %v15776_v36  ;;  %v2127_v36 = vld [vmem:[#allocation10 + $0x1c88] sm:$0xff] }
 0x19f   :  { %8387 = vmatprep.subr.bf16.mxu0 %v15753_v37  ;;  %v2139_v37 = vld [vmem:[#allocation10 + $0x1ce8] sm:$0xff] }
 0x1a0   :  { %v16641_v39 = vcombine.high %v2127_v36, %v2139_v37  ;;  %v16640_v44 = vcombine.low %v2127_v36, %v2139_v37 }
 0x1a2   :  { %8388 = vmatpush1.bf16.msra.mxu0 %v15752_v41  ;;  %v2103_v41 = vld [vmem:[#allocation10 + $0x1bc8] sm:$0xff] }
 0x1a3   :  { %8389 = vmatprep.subr.bf16.mxu0 %v15729_v42  ;;  %v2115_v42 = vld [vmem:[#allocation10 + $0x1c28] sm:$0xff] }
 0x1a4   :  { %v16617_v49 = vcombine.high %v2103_v41, %v2115_v42  ;;  %v16616_v55 = vcombine.low %v2103_v41, %v2115_v42 }
 0x1a6   :  { %8390 = vmatpush1.bf16.msra.mxu0 %v15728_v47 }
 0x1a7   :  { %8391 = vmatprep.subr.bf16.mxu0 %v16089_v48 }
 0x1aa   :  { %8392 = vmatpush2.bf16.msra.mxu0 %v16088_v52  ;;  %v2091_v52 = vld [vmem:[#allocation10 + $0x1b68] sm:$0xff] }
 0x1ab   :  { %8393 = vmatprep.subr.bf16.mxu0 %v16065_v53  ;;  %v16592_v4 = vcombine.low %v2079_v50, %v2091_v52 }
 0x1ae   :  { %8394 = vmatpush2.bf16.msra.mxu0 %v16064_v56 }
 0x1af   :  { %8395 = vmatprep.subr.bf16.mxu0 %v16041_v58  ;;  %v16593_v58 = vcombine.high %v2079_v50, %v2091_v52 }
 0x1b2   :  { %8396 = vmatpush2.bf16.msra.mxu0 %v16040_v1  ;;  %v2067_v1 = vld [vmem:[#allocation10 + $0x1aa8] sm:$0xff] }
 0x1b3   :  { %8397 = vmatprep.subr.bf16.mxu0 %v16017_v2  ;;  %v16569_v5 = vcombine.high %v2055_v63, %v2067_v1  ;;  %v16568_v9 = vcombine.low %v2055_v63, %v2067_v1  ;;  %v2235_v63 = vld [vmem:[#allocation10 + $0x1fe8] sm:$0xff] }
 0x1b6   :  { %8398 = vmatpush2.bf16.msra.mxu0 %v16016_v7  ;;  %v2031_v7 = vld [vmem:[#allocation10 + $0x1988] sm:$0xff] }
 0x1b7   :  { %8399 = vmatprep.subr.bf16.mxu0 %v15993_v8  ;;  %v2043_v8 = vld [vmem:[#allocation10 + $0x19e8] sm:$0xff] }
 0x1b8   :  { %v16545_v10 = vcombine.high %v2031_v7, %v2043_v8  ;;  %v16544_v14 = vcombine.low %v2031_v7, %v2043_v8  ;;  %v413_v8 = vld [vmem:[#allocation7] sm:$0x3] }
 0x1ba   :  { %8400 = vmatpush2.bf16.msra.mxu0 %v15992_v12  ;;  %v2007_v12 = vld [vmem:[#allocation10 + $0x18c8] sm:$0xff] }
 0x1bb   :  { %8401 = vmatprep.subr.bf16.mxu0 %v15969_v13  ;;  %v2019_v13 = vld [vmem:[#allocation10 + $0x1928] sm:$0xff] }
 0x1bc   :  { %v16521_v16 = vcombine.high %v2007_v12, %v2019_v13  ;;  %v16520_v25 = vcombine.low %v2007_v12, %v2019_v13  ;;  %v2187_v12 = vld [vmem:[#allocation10 + $0x1e68] sm:$0xff] }
 0x1be   :  { %8402 = vmatpush2.bf16.msra.mxu0 %v15968_v19  ;;  %v1983_v19 = vld [vmem:[#allocation10 + $0x1808] sm:$0xff] }
 0x1bf   :  { %8403 = vmatprep.subr.bf16.mxu0 %v15945_v22  ;;  %v1995_v22 = vld [vmem:[#allocation10 + $0x1868] sm:$0xff] }
 0x1c0   :  { %v16497_v27 = vcombine.high %v1983_v19, %v1995_v22  ;;  %v16496_v31 = vcombine.low %v1983_v19, %v1995_v22  ;;  %v1768_v19 = vld [vmem:[#allocation10 + $0x1150] sm:$0xff] }
 0x1c1   :  { %v1780_v22 = vld [vmem:[#allocation10 + $0x11b0] sm:$0xff] }
 0x1c2   :  { %8404 = vmatpush2.bf16.msra.mxu0 %v15944_v28  ;;  %v2343_v28 = vld [vmem:[#allocation10 + $0x2348] sm:$0xff] }
 0x1c3   :  { %8405 = vmatprep.subr.bf16.mxu0 %v15921_v30  ;;  %v2355_v30 = vld [vmem:[#allocation10 + $0x23a8] sm:$0xff] }
 0x1c4   :  { %v16857_v33 = vcombine.high %v2343_v28, %v2355_v30  ;;  %v16856_v36 = vcombine.low %v2343_v28, %v2355_v30  ;;  %v16283_v28 = vcombine.high %v1768_v19, %v1780_v22 }
 0x1c6   :  { %8406 = vmatpush2.bf16.msra.mxu0 %v15920_v34  ;;  %v2319_v34 = vld [vmem:[#allocation10 + $0x2288] sm:$0xff] }
 0x1c7   :  { %8457 = vmatprep.subr.bf16.mxu0 %v16665_v35  ;;  %v2331_v35 = vld [vmem:[#allocation10 + $0x22e8] sm:$0xff] }
 0x1c8   :  { %v16833_v37 = vcombine.high %v2319_v34, %v2331_v35  ;;  %v16832_v41 = vcombine.low %v2319_v34, %v2331_v35  ;;  %v16282_v35 = vcombine.low %v1768_v19, %v1780_v22  ;;  %v1310_v22 = vld [vmem:[#allocation10 + $0x300] sm:$0xff] }
 0x1c9   :  { %v19410_v43 = vpop.f32.mrf.mxu0  ;;  %8408 = vmatmul.mubr.bf16.vlgmr.msra.gmra.mxu0 %v19316_v23 }
 0x1ca   :  { %8458 = vmatpush1.bf16.msra.mxu0 %v16664_v38  ;;  %8489 = vmatprep.mubr.bf16.mxu0 %v19333_v32  ;;  %v19416_v48 = vpop.f32.mrf.mxu1  ;;  %v2295_v38 = vld [vmem:[#allocation10 + $0x21c8] sm:$0xff] }
 0x1cb   :  { %v19414_v47 = vpop.f32.mrf.mxu0  ;;  %8459 = vmatprep.subr.bf16.mxu0 %v16641_v39  ;;  %v2307_v39 = vld [vmem:[#allocation10 + $0x2228] sm:$0xff] }
 0x1cc   :  { %v19418_v54 = vpop.f32.mrf.mxu1  ;;  %v16809_v42 = vcombine.high %v2295_v38, %v2307_v39  ;;  %v16808_v50 = vcombine.low %v2295_v38, %v2307_v39  ;;  %v1720_v38 = vld [vmem:[#allocation10 + $0xfd0] sm:$0xff] }
 0x1cd   :  { %v943_v53 = vpop.f32.mrf.mxu0  ;;  %v1732_v39 = vld [vmem:[#allocation10 + $0x1030] sm:$0xff] }
 0x1ce   :  { %8460 = vmatpush1.bf16.msra.mxu0 %v16640_v44  ;;  %v984_v59 = vpop.f32.mrf.mxu1  ;;  %v2271_v44 = vld [vmem:[#allocation10 + $0x2108] sm:$0xff] }
 0x1cf   :  { %v944_v56 = vpop.f32.mrf.mxu0  ;;  %8461 = vmatprep.subr.bf16.mxu0 %v16617_v49  ;;  %v2283_v49 = vld [vmem:[#allocation10 + $0x2168] sm:$0xff] }
 0x1d0   :  { %v985_v2 = vpop.f32.mrf.mxu1  ;;  %v16785_v52 = vcombine.high %v2271_v44, %v2283_v49  ;;  %v2247_v53 = vld [vmem:[#allocation10 + $0x2048] sm:$0xff]  ;;  %v16784_v56 = vcombine.low %v2271_v44, %v2283_v49 }
 0x1d1   :  { %v2223_v59 = vld [vmem:[#allocation10 + $0x1f88] sm:$0xff] }
 0x1d2   :  { %8462 = vmatpush1.bf16.msra.mxu0 %v16616_v55  ;;  %v2259_v55 = vld [vmem:[#allocation10 + $0x20a8] sm:$0xff]  ;;  %v16737_v2 = vcombine.high %v2223_v59, %v2235_v63  ;;  %v16736_v7 = vcombine.low %v2223_v59, %v2235_v63  ;;  %v16234_v63 = vcombine.low %v1720_v38, %v1732_v39 }
 0x1d3   :  { %8463 = vmatprep.subr.bf16.mxu0 %v16593_v58  ;;  %v16761_v58 = vcombine.high %v2247_v53, %v2259_v55  ;;  %v16760_v1 = vcombine.low %v2247_v53, %v2259_v55  ;;  %v1358_v55 = vld [vmem:[#allocation10 + $0x480] sm:$0xff] }
 0x1d6   :  { %8464 = vmatpush1.bf16.msra.mxu0 %v16592_v4  ;;  %v2199_v4 = vld [vmem:[#allocation10 + $0x1ec8] sm:$0xff] }
 0x1d7   :  { %8465 = vmatprep.subr.bf16.mxu0 %v16569_v5  ;;  %v2211_v5 = vld [vmem:[#allocation10 + $0x1f28] sm:$0xff] }
 0x1d8   :  { %v16712_v13 = vcombine.low %v2199_v4, %v2211_v5 }
 0x1da   :  { %8466 = vmatpush1.bf16.msra.mxu0 %v16568_v9  ;;  %v16713_v9 = vcombine.high %v2199_v4, %v2211_v5  ;;  %v1684_v4 = vld [vmem:[#allocation10 + $0xeb0] sm:$0xff] }
 0x1db   :  { %8467 = vmatprep.subr.bf16.mxu0 %v16545_v10  ;;  %v2175_v10 = vld [vmem:[#allocation10 + $0x1e08] sm:$0xff] }
 0x1de   :  { %8468 = vmatpush1.bf16.msra.mxu0 %v16544_v14  ;;  %v16689_v14 = vcombine.high %v2175_v10, %v2187_v12 }
 0x1df   :  { %8469 = vmatprep.subr.bf16.mxu0 %v16521_v16  ;;  %v418_v16 = vrot.slane %v413_v8, %v19291_v3 }
 0x1e1   :  { %v940_v30 = vadd.f32 %v19410_v43, %v418_v16  ;;  %v1660_v16 = vld [vmem:[#allocation10 + $0xdf0] sm:$0xff] }
 0x1e2   :  { %8470 = vmatpush1.bf16.msra.mxu0 %v16520_v25  ;;  %v422_v25 = vrot.slane %v413_v8, %v19260_v45  ;;  %v1346_v8 = vld [vmem:[#allocation10 + $0x420] sm:$0xff] }
 0x1e3   :  { %8471 = vmatprep.subr.bf16.mxu0 %v16497_v27  ;;  %v16688_v27 = vcombine.low %v2175_v10, %v2187_v12 }
 0x1e4   :  { %v942_v34 = vadd.f32 %v19414_v47, %v422_v25  ;;  %v16235_v47 = vcombine.high %v1720_v38, %v1732_v39  ;;  %v1322_v25 = vld [vmem:[#allocation10 + $0x360] sm:$0xff]  ;;  %v1612_v38 = vld [vmem:[#allocation10 + $0xc70] sm:$0xff] }
 0x1e5   :  { %v15823_v51 = vcombine.high %v1310_v22, %v1322_v25  ;;  %v15822_v39 = vcombine.low %v1310_v22, %v1322_v25  ;;  %v1888_v22 = vld [vmem:[#allocation10 + $0x1510] sm:$0xff] }
 0x1e6   :  { %8472 = vmatpush1.bf16.msra.mxu0 %v16496_v31  ;;  %v1744_v31 = vld [vmem:[#allocation10 + $0x1090] sm:$0xff] }
 0x1e7   :  { %8473 = vmatprep.subr.bf16.mxu0 %v16857_v33  ;;  %v1756_v33 = vld [vmem:[#allocation10 + $0x10f0] sm:$0xff] }
 0x1e8   :  { %v16258_v43 = vcombine.low %v1744_v31, %v1756_v33  ;;  %v1900_v25 = vld [vmem:[#allocation10 + $0x1570] sm:$0xff] }
 0x1ea   :  { %8474 = vmatpush2.bf16.msra.mxu0 %v16856_v36  ;;  %v16259_v36 = vcombine.high %v1744_v31, %v1756_v33  ;;  %v1624_v31 = vld [vmem:[#allocation10 + $0xcd0] sm:$0xff] }
 0x1eb   :  { %8475 = vmatprep.subr.bf16.mxu0 %v16833_v37  ;;  %v981_v37 = vadd.f32 %v19416_v48, %v940_v30  ;;  %v1370_v48 = vld [vmem:[#allocation10 + $0x4e0] sm:$0xff]  ;;  %v1636_v33 = vld [vmem:[#allocation10 + $0xd30] sm:$0xff] }
 0x1ec   :  { %v15871_v10 = vcombine.high %v1358_v55, %v1370_v48  ;;  %v15870_v19 = vcombine.low %v1358_v55, %v1370_v48  ;;  %v1250_v55 = vld [vmem:[#allocation10 + $0x120] sm:$0xff] }
 0x1ee   :  { %8476 = vmatpush2.bf16.msra.mxu0 %v16832_v41 }
 0x1ef   :  { %8477 = vmatprep.subr.bf16.mxu0 %v16809_v42  ;;  %v983_v42 = vadd.f32 %v19418_v54, %v942_v34 }
 0x1f2   :  { %8478 = vmatpush2.bf16.msra.mxu0 %v16808_v50  ;;  %v1696_v50 = vld [vmem:[#allocation10 + $0xf10] sm:$0xff] }
 0x1f3   :  { %8479 = vmatprep.subr.bf16.mxu0 %v16785_v52  ;;  %v1708_v52 = vld [vmem:[#allocation10 + $0xf70] sm:$0xff] }
 0x1f4   :  { %v16211_v54 = vcombine.high %v1696_v50, %v1708_v52  ;;  %v16210_v12 = vcombine.low %v1696_v50, %v1708_v52  ;;  %v1972_v50 = vld [vmem:[#allocation10 + $0x17b0] sm:$0xff] }
 0x1f6   :  { %8480 = vmatpush2.bf16.msra.mxu0 %v16784_v56 }
 0x1f7   :  { %8481 = vmatprep.subr.bf16.mxu0 %v16761_v58 }
 0x1fa   :  { %8482 = vmatpush2.bf16.msra.mxu0 %v16760_v1 }
 0x1fb   :  { %8483 = vmatprep.subr.bf16.mxu0 %v16737_v2  ;;  %v1672_v2 = vld [vmem:[#allocation10 + $0xe50] sm:$0xff] }
 0x1fe   :  { %8484 = vmatpush2.bf16.msra.mxu0 %v16736_v7  ;;  %v1334_v7 = vld [vmem:[#allocation10 + $0x3c0] sm:$0xff] }
 0x1ff   :  { %8485 = vmatprep.subr.bf16.mxu0 %v16713_v9  ;;  %v15846_v34 = vcombine.low %v1334_v7, %v1346_v8 }
 0x202   :  { %8486 = vmatpush2.bf16.msra.mxu0 %v16712_v13  ;;  %v16187_v13 = vcombine.high %v1672_v2, %v1684_v4 }
 0x203   :  { %8487 = vmatprep.subr.bf16.mxu0 %v16689_v14  ;;  %v1648_v14 = vld [vmem:[#allocation10 + $0xd90] sm:$0xff] }
 0x204   :  { %v16163_v30 = vcombine.high %v1648_v14, %v1660_v16  ;;  %v16162_v20 = vcombine.low %v1648_v14, %v1660_v16 }
 0x206   :  { %8488 = vmatpush2.bf16.msra.mxu0 %v16688_v27  ;;  %v15847_v27 = vcombine.high %v1334_v7, %v1346_v8  ;;  %v1912_v8 = vld [vmem:[#allocation10 + $0x15d0] sm:$0xff] }
 0x207   :  { %8539 = vmatprep.subr.bf16.mxu0 %v16283_v28  ;;  %v16186_v28 = vcombine.low %v1672_v2, %v1684_v4  ;;  %v1226_v2 = vld [vmem:[#allocation10 + $0x60] sm:$0xff] }
 0x209   :  { %v1021_v41 = vpop.f32.mrf.mxu0  ;;  %8490 = vmatmul.mubr.bf16.vlgmr.msra.gmra.mxu0 %v19348_v15 }
 0x20a   :  { %v1022_v44 = vadd.f32 %v1021_v41, %v981_v37  ;;  %8540 = vmatpush1.bf16.msra.mxu0 %v16282_v35  ;;  %8571 = vmatprep.mubr.bf16.mxu0 %v19287_v0  ;;  %v1286_v35 = vld [vmem:[#allocation10 + $0x240] sm:$0xff]  ;;  %v1600_v37 = vld [vmem:[#allocation10 + $0xc10] sm:$0xff] }
 0x20b   :  { %v1023_v49 = vpop.f32.mrf.mxu0  ;;  %8541 = vmatprep.subr.bf16.mxu0 %v16259_v36  ;;  %v1298_v36 = vld [vmem:[#allocation10 + $0x2a0] sm:$0xff] }
 0x20c   :  { %v1024_v53 = vadd.f32 %v1023_v49, %v983_v42  ;;  %v1028_v56 = vmax.f32 %v1022_v44, 0.0  ;;  %v1262_v41 = vld [vmem:[#allocation10 + $0x180] sm:$0xff]  ;;  %v15799_v44 = vcombine.high %v1286_v35, %v1298_v36  ;;  %v16115_v49 = vcombine.high %v1600_v37, %v1612_v38 }
 0x20d   :  { %v1025_v58 = vpop.f32.mrf.mxu0  ;;  %v1274_v42 = vld [vmem:[#allocation10 + $0x1e0] sm:$0xff]  ;;  %v15798_v52 = vcombine.low %v1286_v35, %v1298_v36  ;;  %v1864_v36 = vld [vmem:[#allocation10 + $0x1450] sm:$0xff] }
 0x20e   :  { %v1029_v59 = vmax.f32 %v1024_v53, 0.0  ;;  %8542 = vmatpush1.bf16.msra.mxu0 %v16258_v43  ;;  %v1030_v9 = vpack.c.bf16 %v1028_v56, %v1028_v56  ;;  %v16138_v43 = vcombine.low %v1624_v31, %v1636_v33  ;;  %v1238_v53 = vld [vmem:[#allocation10 + $0xc0] sm:$0xff]  ;;  %v15775_v48 = vcombine.high %v1262_v41, %v1274_v42 }
 0x20f   :  { %v1026_v1 = vpop.f32.mrf.mxu0  ;;  %8543 = vmatprep.subr.bf16.mxu0 %v16235_v47  ;;  %v1960_v47 = vld [vmem:[#allocation10 + $0x1750] sm:$0xff]  ;;  %v16114_v56 = vcombine.low %v1600_v37, %v1612_v38  ;;  %v15751_v4 = vcombine.high %v1238_v53, %v1250_v55  ;;  %v1526_v37 = vld [vmem:[#allocation10 + $0x9c0] sm:$0xff] }
 0x210   :  { %v1031_v5 = vpack.c.bf16 %v1029_v59, %v1029_v59  ;;  %v16475_v58 = vcombine.high %v1960_v47, %v1972_v50  ;;  %v1936_v59 = vld [vmem:[#allocation10 + $0x1690] sm:$0xff]  ;;  %v15774_v1 = vcombine.low %v1262_v41, %v1274_v42  ;;  %v1538_v38 = vld [vmem:[#allocation10 + $0xa20] sm:$0xff] }
 0x211   :  { %v1840_v42 = vld [vmem:[#allocation10 + $0x1390] sm:$0xff] }
 0x212   :  { %1199 = vmatprep.mubr.bf16.mxu1 %v1031_v5  ;;  %8544 = vmatpush1.bf16.msra.mxu0 %v16234_v63  ;;  %v1948_v63 = vld [vmem:[#allocation10 + $0x16f0] sm:$0xff]  ;;  %v16474_v5 = vcombine.low %v1960_v47, %v1972_v50  ;;  %v1502_v47 = vld [vmem:[#allocation10 + $0x900] sm:$0xff] }
 0x213   :  { %1200 = vmatmul.mubr.bf16.vlgmr.msra.gmra.mxu1 %v1030_v9  ;;  %8545 = vmatprep.subr.bf16.mxu0 %v16211_v54  ;;  %v1214_v54 = vld [vmem:[#allocation10] sm:$0xff]  ;;  %v16451_v7 = vcombine.high %v1936_v59, %v1948_v63  ;;  %v1924_v9 = vld [vmem:[#allocation10 + $0x1630] sm:$0xff]  ;;  %v16450_v16 = vcombine.low %v1936_v59, %v1948_v63 }
 0x214   :  { %8253 = vmatpush1.bf16.msra.mxu1 %v15894_v24  ;;  %8284 = vmatprep.mubr.bf16.mxu1 %v19283_v62  ;;  %v16139_v24 = vcombine.high %v1624_v31, %v1636_v33  ;;  %v15727_v14 = vcombine.high %v1214_v54, %v1226_v2  ;;  %v16426_v33 = vcombine.low %v1912_v8, %v1924_v9  ;;  %v1514_v50 = vld [vmem:[#allocation10 + $0x960] sm:$0xff] }
 0x215   :  { %8254 = vmatprep.subr.bf16.mxu1 %v15871_v10  ;;  %v15750_v10 = vcombine.low %v1238_v53, %v1250_v55  ;;  %v16038_v53 = vcombine.low %v1526_v37, %v1538_v38  ;;  %v1816_v55 = vld [vmem:[#allocation10 + $0x12d0] sm:$0xff]  ;;  %v1478_v59 = vld [vmem:[#allocation10 + $0x840] sm:$0xff] }
 0x216   :  { %8546 = vmatpush1.bf16.msra.mxu0 %v16210_v12  ;;  %v1574_v12 = vld [vmem:[#allocation10 + $0xb40] sm:$0xff] }
 0x217   :  { %8547 = vmatprep.subr.bf16.mxu0 %v16187_v13  ;;  %v1586_v13 = vld [vmem:[#allocation10 + $0xba0] sm:$0xff] }
 0x218   :  { %8255 = vmatpush1.bf16.msra.mxu1 %v15870_v19  ;;  %v16427_v19 = vcombine.high %v1912_v8, %v1924_v9  ;;  %v16087_v31 = vcombine.high %v1574_v12, %v1586_v13  ;;  %v16086_v35 = vcombine.low %v1574_v12, %v1586_v13  ;;  %v1490_v63 = vld [vmem:[#allocation10 + $0x8a0] sm:$0xff]  ;;  %v1385_v13 = vld [vmem:[#allocation10 + $0x558] sm:$0xff] }
 0x219   :  { %8256 = vmatprep.subr.bf16.mxu1 %v15847_v27  ;;  %v15726_v27 = vcombine.low %v1214_v54, %v1226_v2  ;;  %v16014_v54 = vcombine.low %v1502_v47, %v1514_v50  ;;  %v1792_v2 = vld [vmem:[#allocation10 + $0x1210] sm:$0xff]  ;;  %v1454_v8 = vld [vmem:[#allocation10 + $0x780] sm:$0xff]  ;;  %v15990_v12 = vcombine.low %v1478_v59, %v1490_v63 }
 0x21a   :  { %8548 = vmatpush1.bf16.msra.mxu0 %v16186_v28  ;;  %v1550_v28 = vld [vmem:[#allocation10 + $0xa80] sm:$0xff] }
 0x21b   :  { %8549 = vmatprep.subr.bf16.mxu0 %v16163_v30  ;;  %v1562_v30 = vld [vmem:[#allocation10 + $0xae0] sm:$0xff] }
 0x21c   :  { %8257 = vmatpush1.bf16.msra.mxu1 %v15846_v34  ;;  %v16403_v34 = vcombine.high %v1888_v22, %v1900_v25  ;;  %v16062_v41 = vcombine.low %v1550_v28, %v1562_v30  ;;  %v1466_v9 = vld [vmem:[#allocation10 + $0x7e0] sm:$0xff] }
 0x21d   :  { %8258 = vmatprep.subr.bf16.mxu1 %v15823_v51  ;;  %v1876_v51 = vld [vmem:[#allocation10 + $0x14b0] sm:$0xff] }
 0x21e   :  { %8550 = vmatpush1.bf16.msra.mxu0 %v16162_v20  ;;  %v16063_v20 = vcombine.high %v1550_v28, %v1562_v30  ;;  %v15966_v28 = vcombine.low %v1454_v8, %v1466_v9  ;;  %v1361_v30 = vld [vmem:[#allocation10 + $0x498] sm:$0xff] }
 0x21f   :  { %8551 = vmatprep.subr.bf16.mxu0 %v16139_v24  ;;  %v16402_v24 = vcombine.low %v1888_v22, %v1900_v25  ;;  %v1430_v22 = vld [vmem:[#allocation10 + $0x6c0] sm:$0xff] }
 0x220   :  { %8259 = vmatpush1.bf16.msra.mxu1 %v15822_v39  ;;  %v16379_v39 = vcombine.high %v1864_v36, %v1876_v51  ;;  %v1442_v25 = vld [vmem:[#allocation10 + $0x720] sm:$0xff] }
 0x221   :  { %8260 = vmatprep.subr.bf16.mxu1 %v15799_v44  ;;  %v1852_v44 = vld [vmem:[#allocation10 + $0x13f0] sm:$0xff] }
 0x222   :  { %8552 = vmatpush1.bf16.msra.mxu0 %v16138_v43  ;;  %v16039_v43 = vcombine.high %v1526_v37, %v1538_v38  ;;  %v1349_v37 = vld [vmem:[#allocation10 + $0x438] sm:$0xff] }
 0x223   :  { %8553 = vmatprep.subr.bf16.mxu0 %v16115_v49  ;;  %v16378_v49 = vcombine.low %v1864_v36, %v1876_v51  ;;  %v1418_v36 = vld [vmem:[#allocation10 + $0x660] sm:$0xff] }
 0x224   :  { %8261 = vmatpush1.bf16.msra.mxu1 %v15798_v52  ;;  %v16355_v52 = vcombine.high %v1840_v42, %v1852_v44 }
 0x225   :  { %8262 = vmatprep.subr.bf16.mxu1 %v15775_v48  ;;  %v1828_v48 = vld [vmem:[#allocation10 + $0x1330] sm:$0xff] }
 0x226   :  { %8554 = vmatpush1.bf16.msra.mxu0 %v16114_v56  ;;  %v16015_v56 = vcombine.high %v1502_v47, %v1514_v50  ;;  %v1325_v47 = vld [vmem:[#allocation10 + $0x378] sm:$0xff] }
 0x227   :  { %8555 = vmatprep.subr.bf16.mxu0 %v16475_v58  ;;  %v16354_v58 = vcombine.low %v1840_v42, %v1852_v44  ;;  %v2162_v42 = vld [vmem:[#allocation10 + $0x1da0] sm:$0xff] }
 0x228   :  { %8263 = vmatpush1.bf16.msra.mxu1 %v15774_v1  ;;  %v16331_v1 = vcombine.high %v1816_v55, %v1828_v48 }
 0x229   :  { %8264 = vmatprep.subr.bf16.mxu1 %v15751_v4  ;;  %v1804_v4 = vld [vmem:[#allocation10 + $0x1270] sm:$0xff] }
 0x22a   :  { %8556 = vmatpush2.bf16.msra.mxu0 %v16474_v5  ;;  %v15991_v5 = vcombine.high %v1478_v59, %v1490_v63  ;;  %v1301_v59 = vld [vmem:[#allocation10 + $0x2b8] sm:$0xff] }
 0x22b   :  { %8557 = vmatprep.subr.bf16.mxu0 %v16451_v7  ;;  %v16330_v7 = vcombine.low %v1816_v55, %v1828_v48  ;;  %v2138_v55 = vld [vmem:[#allocation10 + $0x1ce0] sm:$0xff] }
 0x22c   :  { %8265 = vmatpush1.bf16.msra.mxu1 %v15750_v10  ;;  %v16307_v10 = vcombine.high %v1792_v2, %v1804_v4 }
 0x22d   :  { %8266 = vmatprep.subr.bf16.mxu1 %v15727_v14  ;;  %v1397_v14 = vld [vmem:[#allocation10 + $0x5b8] sm:$0xff] }
 0x22e   :  { %8558 = vmatpush2.bf16.msra.mxu0 %v16450_v16  ;;  %v15967_v16 = vcombine.high %v1454_v8, %v1466_v9  ;;  %v1277_v8 = vld [vmem:[#allocation10 + $0x1f8] sm:$0xff] }
 0x22f   :  { %8559 = vmatprep.subr.bf16.mxu0 %v16427_v19  ;;  %v16306_v19 = vcombine.low %v1792_v2, %v1804_v4  ;;  %v2114_v2 = vld [vmem:[#allocation10 + $0x1c20] sm:$0xff] }
 0x230   :  { %8267 = vmatpush1.bf16.msra.mxu1 %v15726_v27  ;;  %v15901_v27 = vcombine.high %v1385_v13, %v1397_v14 }
 0x231   :  { %8268 = vmatprep.subr.bf16.mxu1 %v16087_v31  ;;  %v1373_v31 = vld [vmem:[#allocation10 + $0x4f8] sm:$0xff] }
 0x232   :  { %8560 = vmatpush2.bf16.msra.mxu0 %v16426_v33  ;;  %v15943_v33 = vcombine.high %v1430_v22, %v1442_v25  ;;  %v15877_v51 = vcombine.high %v1361_v30, %v1373_v31 }
 0x233   :  { %8561 = vmatprep.subr.bf16.mxu0 %v16403_v34  ;;  %v15900_v34 = vcombine.low %v1385_v13, %v1397_v14  ;;  %v2090_v13 = vld [vmem:[#allocation10 + $0x1b60] sm:$0xff] }
 0x234   :  { %8269 = vmatpush2.bf16.msra.mxu1 %v16086_v35  ;;  %v1406_v35 = vld [vmem:[#allocation10 + $0x600] sm:$0xff] }
 0x235   :  { %8270 = vmatprep.subr.bf16.mxu1 %v16063_v20  ;;  %v15942_v20 = vcombine.low %v1430_v22, %v1442_v25  ;;  %v15919_v38 = vcombine.high %v1406_v35, %v1418_v36  ;;  %v1253_v22 = vld [vmem:[#allocation10 + $0x138] sm:$0xff] }
 0x236   :  { %8562 = vmatpush2.bf16.msra.mxu0 %v16402_v24  ;;  %v1337_v24 = vld [vmem:[#allocation10 + $0x3d8] sm:$0xff] }
 0x237   :  { %8563 = vmatprep.subr.bf16.mxu0 %v16379_v39  ;;  %v15876_v39 = vcombine.low %v1361_v30, %v1373_v31  ;;  %v15853_v44 = vcombine.high %v1337_v24, %v1349_v37  ;;  %v2066_v30 = vld [vmem:[#allocation10 + $0x1aa0] sm:$0xff] }
 0x238   :  { %8271 = vmatpush2.bf16.msra.mxu1 %v16062_v41  ;;  %v2150_v41 = vld [vmem:[#allocation10 + $0x1d40] sm:$0xff] }
 0x239   :  { %8272 = vmatprep.subr.bf16.mxu1 %v16039_v43  ;;  %v15918_v43 = vcombine.low %v1406_v35, %v1418_v36  ;;  %v16663_v50 = vcombine.high %v2150_v41, %v2162_v42  ;;  %v1229_v35 = vld [vmem:[#allocation10 + $0x78] sm:$0xff] }
 0x23a   :  { %8564 = vmatpush2.bf16.msra.mxu0 %v16378_v49  ;;  %v1313_v49 = vld [vmem:[#allocation10 + $0x318] sm:$0xff] }
 0x23b   :  { %8565 = vmatprep.subr.bf16.mxu0 %v16355_v52  ;;  %v15852_v52 = vcombine.low %v1337_v24, %v1349_v37  ;;  %v15829_v48 = vcombine.high %v1313_v49, %v1325_v47  ;;  %v2042_v24 = vld [vmem:[#allocation10 + $0x19e0] sm:$0xff] }
 0x23c   :  { %8273 = vmatpush2.bf16.msra.mxu1 %v16038_v53  ;;  %v2126_v53 = vld [vmem:[#allocation10 + $0x1c80] sm:$0xff] }
 0x23d   :  { %8274 = vmatprep.subr.bf16.mxu1 %v16015_v56  ;;  %v16662_v56 = vcombine.low %v2150_v41, %v2162_v42  ;;  %v16639_v63 = vcombine.high %v2126_v53, %v2138_v55  ;;  %v1589_v41 = vld [vmem:[#allocation10 + $0xbb8] sm:$0xff] }
 0x23e   :  { %8566 = vmatpush2.bf16.msra.mxu0 %v16354_v58  ;;  %v1289_v58 = vld [vmem:[#allocation10 + $0x258] sm:$0xff] }
 0x23f   :  { %8567 = vmatprep.subr.bf16.mxu0 %v16331_v1  ;;  %v15828_v1 = vcombine.low %v1313_v49, %v1325_v47  ;;  %v15805_v4 = vcombine.high %v1289_v58, %v1301_v59  ;;  %v2018_v49 = vld [vmem:[#allocation10 + $0x1920] sm:$0xff] }
 0x240   :  { %8275 = vmatpush2.bf16.msra.mxu1 %v16014_v54  ;;  %v2102_v54 = vld [vmem:[#allocation10 + $0x1bc0] sm:$0xff] }
 0x241   :  { %8276 = vmatprep.subr.bf16.mxu1 %v15991_v5  ;;  %v16638_v5 = vcombine.low %v2126_v53, %v2138_v55  ;;  %v16615_v9 = vcombine.high %v2102_v54, %v2114_v2  ;;  %v1565_v53 = vld [vmem:[#allocation10 + $0xaf8] sm:$0xff] }
 0x242   :  { %8568 = vmatpush2.bf16.msra.mxu0 %v16330_v7  ;;  %v1265_v7 = vld [vmem:[#allocation10 + $0x198] sm:$0xff] }
 0x243   :  { %8569 = vmatprep.subr.bf16.mxu0 %v16307_v10  ;;  %v15804_v10 = vcombine.low %v1289_v58, %v1301_v59  ;;  %v15781_v14 = vcombine.high %v1265_v7, %v1277_v8  ;;  %v1994_v58 = vld [vmem:[#allocation10 + $0x1860] sm:$0xff] }
 0x244   :  { %8277 = vmatpush2.bf16.msra.mxu1 %v15990_v12  ;;  %v2078_v12 = vld [vmem:[#allocation10 + $0x1b00] sm:$0xff] }
 0x245   :  { %8278 = vmatprep.subr.bf16.mxu1 %v15967_v16  ;;  %v16614_v16 = vcombine.low %v2102_v54, %v2114_v2  ;;  %v16591_v25 = vcombine.high %v2078_v12, %v2090_v13  ;;  %v1541_v54 = vld [vmem:[#allocation10 + $0xa38] sm:$0xff] }
 0x246   :  { %8570 = vmatpush2.bf16.msra.mxu0 %v16306_v19  ;;  %v1241_v19 = vld [vmem:[#allocation10 + $0xd8] sm:$0xff] }
 0x247   :  { %8621 = vmatprep.subr.bf16.mxu0 %v15901_v27  ;;  %v15780_v27 = vcombine.low %v1265_v7, %v1277_v8  ;;  %v15757_v31 = vcombine.high %v1241_v19, %v1253_v22  ;;  %v2354_v7 = vld [vmem:[#allocation10 + $0x23a0] sm:$0xff] }
 0x248   :  { %8279 = vmatpush2.bf16.msra.mxu1 %v15966_v28  ;;  %v2054_v28 = vld [vmem:[#allocation10 + $0x1a40] sm:$0xff] }
 0x249   :  { %8280 = vmatprep.subr.bf16.mxu1 %v15943_v33  ;;  %8572 = vmatmul.mubr.bf16.vlgmr.msra.gmra.mxu0 %v19322_v26  ;;  %v16590_v33 = vcombine.low %v2078_v12, %v2090_v13  ;;  %v16567_v36 = vcombine.high %v2054_v28, %v2066_v30  ;;  %v1517_v12 = vld [vmem:[#allocation10 + $0x978] sm:$0xff] }
 0x24a   :  { %8622 = vmatpush1.bf16.msra.mxu0 %v15900_v34  ;;  %8653 = vmatprep.mubr.bf16.mxu0 %v19283_v62  ;;  %v1217_v34 = vld [vmem:[#allocation10 + $0x18] sm:$0xff] }
 0x24b   :  { %8623 = vmatprep.subr.bf16.mxu0 %v15877_v51  ;;  %v15756_v51 = vcombine.low %v1241_v19, %v1253_v22  ;;  %v15733_v37 = vcombine.high %v1217_v34, %v1229_v35  ;;  %v2330_v19 = vld [vmem:[#allocation10 + $0x22e0] sm:$0xff] }
 0x24c   :  { %8281 = vmatpush2.bf16.msra.mxu1 %v15942_v20  ;;  %v2030_v20 = vld [vmem:[#allocation10 + $0x1980] sm:$0xff] }
 0x24d   :  { %8282 = vmatprep.subr.bf16.mxu1 %v15919_v38  ;;  %v16566_v38 = vcombine.low %v2054_v28, %v2066_v30  ;;  %v16543_v42 = vcombine.high %v2030_v20, %v2042_v24  ;;  %v1493_v28 = vld [vmem:[#allocation10 + $0x8b8] sm:$0xff] }
 0x24e   :  { %8624 = vmatpush1.bf16.msra.mxu0 %v15876_v39  ;;  %v1577_v39 = vld [vmem:[#allocation10 + $0xb58] sm:$0xff] }
 0x24f   :  { %8625 = vmatprep.subr.bf16.mxu0 %v15853_v44  ;;  %v15732_v44 = vcombine.low %v1217_v34, %v1229_v35  ;;  %v16093_v47 = vcombine.high %v1577_v39, %v1589_v41  ;;  %v2306_v34 = vld [vmem:[#allocation10 + $0x2220] sm:$0xff] }
 0x250   :  { %8283 = vmatpush2.bf16.msra.mxu1 %v15918_v43  ;;  %v2006_v43 = vld [vmem:[#allocation10 + $0x18c0] sm:$0xff] }
 0x251   :  { %8334 = vmatprep.subr.bf16.mxu1 %v16663_v50  ;;  %v16542_v50 = vcombine.low %v2030_v20, %v2042_v24  ;;  %v16519_v55 = vcombine.high %v2006_v43, %v2018_v49  ;;  %v1469_v20 = vld [vmem:[#allocation10 + $0x7f8] sm:$0xff] }
 0x252   :  { %8626 = vmatpush1.bf16.msra.mxu0 %v15852_v52  ;;  %v1553_v52 = vld [vmem:[#allocation10 + $0xa98] sm:$0xff] }
 0x253   :  { %8285 = vmatmul.mubr.bf16.vlgmr.msra.gmra.mxu1 %v19316_v23  ;;  %8627 = vmatprep.subr.bf16.mxu0 %v15829_v48  ;;  %v16092_v48 = vcombine.low %v1577_v39, %v1589_v41  ;;  %v16069_v59 = vcombine.high %v1553_v52, %v1565_v53  ;;  %v2282_v39 = vld [vmem:[#allocation10 + $0x2160] sm:$0xff] }
 0x254   :  { %8335 = vmatpush1.bf16.msra.mxu1 %v16662_v56  ;;  %8366 = vmatprep.mubr.bf16.mxu1 %v19333_v32  ;;  %v1982_v56 = vld [vmem:[#allocation10 + $0x1800] sm:$0xff] }
 0x255   :  { %8336 = vmatprep.subr.bf16.mxu1 %v16639_v63  ;;  %v16518_v63 = vcombine.low %v2006_v43, %v2018_v49  ;;  %v16495_v2 = vcombine.high %v1982_v56, %v1994_v58  ;;  %v1445_v43 = vld [vmem:[#allocation10 + $0x738] sm:$0xff] }
 0x256   :  { %8628 = vmatpush1.bf16.msra.mxu0 %v15828_v1  ;;  %v1529_v1 = vld [vmem:[#allocation10 + $0x9d8] sm:$0xff] }
 0x257   :  { %8629 = vmatprep.subr.bf16.mxu0 %v15805_v4  ;;  %v16068_v4 = vcombine.low %v1553_v52, %v1565_v53  ;;  %v16045_v8 = vcombine.high %v1529_v1, %v1541_v54  ;;  %v2258_v52 = vld [vmem:[#allocation10 + $0x20a0] sm:$0xff] }
 0x258   :  { %8337 = vmatpush1.bf16.msra.mxu1 %v16638_v5  ;;  %v2342_v5 = vld [vmem:[#allocation10 + $0x2340] sm:$0xff] }
 0x259   :  { %8338 = vmatprep.subr.bf16.mxu1 %v16615_v9  ;;  %v16494_v9 = vcombine.low %v1982_v56, %v1994_v58  ;;  %v16855_v13 = vcombine.high %v2342_v5, %v2354_v7  ;;  %v1421_v56 = vld [vmem:[#allocation10 + $0x678] sm:$0xff] }
 0x25a   :  { %8630 = vmatpush1.bf16.msra.mxu0 %v15804_v10  ;;  %v1505_v10 = vld [vmem:[#allocation10 + $0x918] sm:$0xff] }
 0x25b   :  { %8631 = vmatprep.subr.bf16.mxu0 %v15781_v14  ;;  %v16044_v14 = vcombine.low %v1529_v1, %v1541_v54  ;;  %v16021_v22 = vcombine.high %v1505_v10, %v1517_v12  ;;  %v2234_v1 = vld [vmem:[#allocation10 + $0x1fe0] sm:$0xff] }
 0x25c   :  { %8339 = vmatpush1.bf16.msra.mxu1 %v16614_v16  ;;  %v2318_v16 = vld [vmem:[#allocation10 + $0x2280] sm:$0xff] }
 0x25d   :  { %8340 = vmatprep.subr.bf16.mxu1 %v16591_v25  ;;  %v16854_v25 = vcombine.low %v2342_v5, %v2354_v7  ;;  %v16831_v30 = vcombine.high %v2318_v16, %v2330_v19  ;;  %v2165_v5 = vld [vmem:[#allocation10 + $0x1db8] sm:$0xff] }
 0x25e   :  { %8632 = vmatpush1.bf16.msra.mxu0 %v15780_v27  ;;  %v1481_v27 = vld [vmem:[#allocation10 + $0x858] sm:$0xff] }
 0x25f   :  { %8633 = vmatprep.subr.bf16.mxu0 %v15757_v31  ;;  %v16020_v31 = vcombine.low %v1505_v10, %v1517_v12  ;;  %v15997_v35 = vcombine.high %v1481_v27, %v1493_v28  ;;  %v2210_v10 = vld [vmem:[#allocation10 + $0x1f20] sm:$0xff] }
 0x260   :  { %8341 = vmatpush1.bf16.msra.mxu1 %v16590_v33  ;;  %v2294_v33 = vld [vmem:[#allocation10 + $0x21c0] sm:$0xff] }
 0x261   :  { %8342 = vmatprep.subr.bf16.mxu1 %v16567_v36  ;;  %v16830_v36 = vcombine.low %v2318_v16, %v2330_v19  ;;  %v16807_v24 = vcombine.high %v2294_v33, %v2306_v34  ;;  %v2141_v16 = vld [vmem:[#allocation10 + $0x1cf8] sm:$0xff] }
 0x262   :  { %8634 = vmatpush1.bf16.msra.mxu0 %v15756_v51  ;;  %v1457_v51 = vld [vmem:[#allocation10 + $0x798] sm:$0xff] }
 0x263   :  { %8635 = vmatprep.subr.bf16.mxu0 %v15733_v37  ;;  %v15996_v37 = vcombine.low %v1481_v27, %v1493_v28  ;;  %v15973_v41 = vcombine.high %v1457_v51, %v1469_v20  ;;  %v2186_v27 = vld [vmem:[#allocation10 + $0x1e60] sm:$0xff] }
 0x264   :  { %8343 = vmatpush1.bf16.msra.mxu1 %v16566_v38  ;;  %v2270_v38 = vld [vmem:[#allocation10 + $0x2100] sm:$0xff] }
 0x265   :  { %8344 = vmatprep.subr.bf16.mxu1 %v16543_v42  ;;  %v16806_v42 = vcombine.low %v2294_v33, %v2306_v34  ;;  %v16783_v49 = vcombine.high %v2270_v38, %v2282_v39  ;;  %v2117_v33 = vld [vmem:[#allocation10 + $0x1c38] sm:$0xff] }
 0x266   :  { %8636 = vmatpush1.bf16.msra.mxu0 %v15732_v44  ;;  %v1433_v44 = vld [vmem:[#allocation10 + $0x6d8] sm:$0xff] }
 0x267   :  { %8637 = vmatprep.subr.bf16.mxu0 %v16093_v47  ;;  %v15972_v47 = vcombine.low %v1457_v51, %v1469_v20  ;;  %v15949_v53 = vcombine.high %v1433_v44, %v1445_v43  ;;  %v1779_v51 = vld [vmem:[#allocation10 + $0x11a8] sm:$0xff] }
 0x268   :  { %8345 = vmatpush1.bf16.msra.mxu1 %v16542_v50  ;;  %v2246_v50 = vld [vmem:[#allocation10 + $0x2040] sm:$0xff] }
 0x269   :  { %8346 = vmatprep.subr.bf16.mxu1 %v16519_v55  ;;  %v16782_v55 = vcombine.low %v2270_v38, %v2282_v39  ;;  %v16759_v58 = vcombine.high %v2246_v50, %v2258_v52  ;;  %v2093_v38 = vld [vmem:[#allocation10 + $0x1b78] sm:$0xff] }
 0x26a   :  { %8638 = vmatpush2.bf16.msra.mxu0 %v16092_v48  ;;  %v1409_v48 = vld [vmem:[#allocation10 + $0x618] sm:$0xff] }
 0x26b   :  { %8639 = vmatprep.subr.bf16.mxu0 %v16069_v59  ;;  %v15948_v59 = vcombine.low %v1433_v44, %v1445_v43  ;;  %v15925_v54 = vcombine.high %v1409_v48, %v1421_v56  ;;  %v1755_v44 = vld [vmem:[#allocation10 + $0x10e8] sm:$0xff] }
 0x26c   :  { %8347 = vmatpush1.bf16.msra.mxu1 %v16518_v63  ;;  %v2222_v63 = vld [vmem:[#allocation10 + $0x1f80] sm:$0xff] }
 0x26d   :  { %8348 = vmatprep.subr.bf16.mxu1 %v16495_v2  ;;  %v16758_v2 = vcombine.low %v2246_v50, %v2258_v52  ;;  %v16735_v7 = vcombine.high %v2222_v63, %v2234_v1  ;;  %v2069_v50 = vld [vmem:[#allocation10 + $0x1ab8] sm:$0xff] }
 0x26e   :  { %8640 = vmatpush2.bf16.msra.mxu0 %v16068_v4  ;;  %v2153_v4 = vld [vmem:[#allocation10 + $0x1d58] sm:$0xff] }
 0x26f   :  { %8641 = vmatprep.subr.bf16.mxu0 %v16045_v8  ;;  %v15924_v8 = vcombine.low %v1409_v48, %v1421_v56  ;;  %v16669_v12 = vcombine.high %v2153_v4, %v2165_v5  ;;  %v1731_v48 = vld [vmem:[#allocation10 + $0x1028] sm:$0xff] }
 0x270   :  { %8349 = vmatpush1.bf16.msra.mxu1 %v16494_v9  ;;  %v2198_v9 = vld [vmem:[#allocation10 + $0x1ec0] sm:$0xff] }
 0x271   :  { %8350 = vmatprep.subr.bf16.mxu1 %v16855_v13  ;;  %v16734_v13 = vcombine.low %v2222_v63, %v2234_v1  ;;  %v16711_v19 = vcombine.high %v2198_v9, %v2210_v10  ;;  %v2045_v63 = vld [vmem:[#allocation10 + $0x19f8] sm:$0xff] }
 0x272   :  { %8642 = vmatpush2.bf16.msra.mxu0 %v16044_v14  ;;  %v2129_v14 = vld [vmem:[#allocation10 + $0x1c98] sm:$0xff] }
 0x273   :  { %8643 = vmatprep.subr.bf16.mxu0 %v16021_v22  ;;  %v16668_v22 = vcombine.low %v2153_v4, %v2165_v5  ;;  %v16645_v28 = vcombine.high %v2129_v14, %v2141_v16  ;;  %v1695_v4 = vld [vmem:[#allocation10 + $0xf08] sm:$0xff] }
 0x274   :  { %8351 = vmatpush2.bf16.msra.mxu1 %v16854_v25  ;;  %v2174_v25 = vld [vmem:[#allocation10 + $0x1e00] sm:$0xff]  ;;  %v1707_v5 = vld [vmem:[#allocation10 + $0xf68] sm:$0xff] }
 0x275   :  { %8352 = vmatprep.subr.bf16.mxu1 %v16831_v30  ;;  %v16710_v30 = vcombine.low %v2198_v9, %v2210_v10  ;;  %v16687_v34 = vcombine.high %v2174_v25, %v2186_v27  ;;  %v2009_v10 = vld [vmem:[#allocation10 + $0x18d8] sm:$0xff] }
 0x276   :  { %8644 = vmatpush2.bf16.msra.mxu0 %v16020_v31  ;;  %v2105_v31 = vld [vmem:[#allocation10 + $0x1bd8] sm:$0xff] }
 0x277   :  { %8645 = vmatprep.subr.bf16.mxu0 %v15997_v35  ;;  %v16644_v35 = vcombine.low %v2129_v14, %v2141_v16  ;;  %v16621_v20 = vcombine.high %v2105_v31, %v2117_v33 }
 0x278   :  { %8353 = vmatpush2.bf16.msra.mxu1 %v16830_v36  ;;  %v1767_v36 = vld [vmem:[#allocation10 + $0x1148] sm:$0xff] }
 0x279   :  { %8354 = vmatprep.subr.bf16.mxu1 %v16807_v24  ;;  %v16686_v24 = vcombine.low %v2174_v25, %v2186_v27  ;;  %v16281_v39 = vcombine.high %v1767_v36, %v1779_v51 }
 0x27a   :  { %8646 = vmatpush2.bf16.msra.mxu0 %v15996_v37  ;;  %v2081_v37 = vld [vmem:[#allocation10 + $0x1b18] sm:$0xff] }
 0x27b   :  { %8647 = vmatprep.subr.bf16.mxu0 %v15973_v41  ;;  %v16620_v41 = vcombine.low %v2105_v31, %v2117_v33  ;;  %v16597_v43 = vcombine.high %v2081_v37, %v2093_v38  ;;  %v1997_v31 = vld [vmem:[#allocation10 + $0x1878] sm:$0xff] }
 0x27c   :  { %8355 = vmatpush2.bf16.msra.mxu1 %v16806_v42  ;;  %v1743_v42 = vld [vmem:[#allocation10 + $0x1088] sm:$0xff] }
 0x27d   :  { %8356 = vmatprep.subr.bf16.mxu1 %v16783_v49  ;;  %v16280_v49 = vcombine.low %v1767_v36, %v1779_v51  ;;  %v16257_v52 = vcombine.high %v1743_v42, %v1755_v44  ;;  %v1659_v36 = vld [vmem:[#allocation10 + $0xde8] sm:$0xff] }
 0x27e   :  { %8648 = vmatpush2.bf16.msra.mxu0 %v15972_v47  ;;  %v2057_v47 = vld [vmem:[#allocation10 + $0x1a58] sm:$0xff] }
 0x27f   :  { %8649 = vmatprep.subr.bf16.mxu0 %v15949_v53  ;;  %v16596_v53 = vcombine.low %v2081_v37, %v2093_v38  ;;  %v16573_v56 = vcombine.high %v2057_v47, %v2069_v50  ;;  %v2357_v37 = vld [vmem:[#allocation10 + $0x23b8] sm:$0xff] }
 0x280   :  { %8357 = vmatpush2.bf16.msra.mxu1 %v16782_v55  ;;  %v1719_v55 = vld [vmem:[#allocation10 + $0xfc8] sm:$0xff] }
 0x281   :  { %8358 = vmatprep.subr.bf16.mxu1 %v16759_v58  ;;  %v16256_v58 = vcombine.low %v1743_v42, %v1755_v44  ;;  %v16233_v1 = vcombine.high %v1719_v55, %v1731_v48  ;;  %v16232_v9 = vcombine.low %v1719_v55, %v1731_v48  ;;  %v1635_v42 = vld [vmem:[#allocation10 + $0xd28] sm:$0xff] }
 0x282   :  { %8650 = vmatpush2.bf16.msra.mxu0 %v15948_v59  ;;  %v2033_v59 = vld [vmem:[#allocation10 + $0x1998] sm:$0xff]  ;;  %v1611_v55 = vld [vmem:[#allocation10 + $0xc68] sm:$0xff] }
 0x283   :  { %8651 = vmatprep.subr.bf16.mxu0 %v15925_v54  ;;  %v19440_v54 = vpop.f32.mrf.mxu0  ;;  %v16548_v16 = vcombine.low %v2033_v59, %v2045_v63 }
 0x284   :  { %8359 = vmatpush2.bf16.msra.mxu1 %v16758_v2  ;;  %v16572_v2 = vcombine.low %v2057_v47, %v2069_v50  ;;  %v2333_v47 = vld [vmem:[#allocation10 + $0x22f8] sm:$0xff] }
 0x285   :  { %8360 = vmatprep.subr.bf16.mxu1 %v16735_v7  ;;  %v16549_v7 = vcombine.high %v2033_v59, %v2045_v63  ;;  %v2309_v59 = vld [vmem:[#allocation10 + $0x2238] sm:$0xff] }
 0x286   :  { %8652 = vmatpush2.bf16.msra.mxu0 %v15924_v8  ;;  %v19442_v8 = vpop.f32.mrf.mxu0 }
 0x287   :  { %8703 = vmatprep.subr.bf16.mxu0 %v16669_v12  ;;  %v2021_v12 = vld [vmem:[#allocation10 + $0x1938] sm:$0xff] }
 0x288   :  { %8361 = vmatpush2.bf16.msra.mxu1 %v16734_v13  ;;  %v16209_v13 = vcombine.high %v1695_v4, %v1707_v5  ;;  %v8331_v14 = vpop.f32.mrf.mxu0  ;;  %v16525_v25 = vcombine.high %v2009_v10, %v2021_v12 }
 0x289   :  { %8362 = vmatprep.subr.bf16.mxu1 %v16711_v19  ;;  %8654 = vmatmul.mubr.bf16.vlgmr.msra.gmra.mxu0 %v19316_v23  ;;  %v1671_v19 = vld [vmem:[#allocation10 + $0xe48] sm:$0xff] }
 0x28a   :  { %8704 = vmatpush1.bf16.msra.mxu0 %v16668_v22  ;;  %8735 = vmatprep.mubr.bf16.mxu0 %v19333_v32  ;;  %v1683_v22 = vld [vmem:[#allocation10 + $0xea8] sm:$0xff]  ;;  %v8332_v27 = vpop.f32.mrf.mxu0 }
 0x28b   :  { %8705 = vmatprep.subr.bf16.mxu0 %v16645_v28  ;;  %v16208_v28 = vcombine.low %v1695_v4, %v1707_v5  ;;  %v16185_v33 = vcombine.high %v1671_v19, %v1683_v22  ;;  %v1971_v4 = vld [vmem:[#allocation10 + $0x17a8] sm:$0xff]  ;;  %v2261_v27 = vld [vmem:[#allocation10 + $0x20b8] sm:$0xff] }
 0x28c   :  { %8363 = vmatpush2.bf16.msra.mxu1 %v16710_v30  ;;  %v1985_v30 = vld [vmem:[#allocation10 + $0x1818] sm:$0xff]  ;;  %v1935_v14 = vld [vmem:[#allocation10 + $0x1688] sm:$0xff] }
 0x28d   :  { %8364 = vmatprep.subr.bf16.mxu1 %v16687_v34  ;;  %v16524_v34 = vcombine.low %v2009_v10, %v2021_v12  ;;  %v16501_v51 = vcombine.high %v1985_v30, %v1997_v31  ;;  %v2285_v10 = vld [vmem:[#allocation10 + $0x2178] sm:$0xff] }
 0x28e   :  { %8706 = vmatpush1.bf16.msra.mxu0 %v16644_v35  ;;  %v1647_v35 = vld [vmem:[#allocation10 + $0xd88] sm:$0xff] }
 0x28f   :  { %8707 = vmatprep.subr.bf16.mxu0 %v16621_v20  ;;  %v16184_v20 = vcombine.low %v1671_v19, %v1683_v22  ;;  %v16161_v38 = vcombine.high %v1647_v35, %v1659_v36 }
 0x290   :  { %8365 = vmatpush2.bf16.msra.mxu1 %v16686_v24  ;;  %v2345_v24 = vld [vmem:[#allocation10 + $0x2358] sm:$0xff] }
 0x291   :  { %8416 = vmatprep.subr.bf16.mxu1 %v16281_v39  ;;  %v16500_v39 = vcombine.low %v1985_v30, %v1997_v31  ;;  %v16861_v44 = vcombine.high %v2345_v24, %v2357_v37  ;;  %v1911_v31 = vld [vmem:[#allocation10 + $0x15c8] sm:$0xff] }
 0x292   :  { %8708 = vmatpush1.bf16.msra.mxu0 %v16620_v41  ;;  %v1623_v41 = vld [vmem:[#allocation10 + $0xcc8] sm:$0xff] }
 0x293   :  { %8367 = vmatmul.mubr.bf16.vlgmr.msra.gmra.mxu1 %v19348_v15  ;;  %8709 = vmatprep.subr.bf16.mxu0 %v16597_v43  ;;  %v16160_v43 = vcombine.low %v1647_v35, %v1659_v36  ;;  %v16137_v50 = vcombine.high %v1623_v41, %v1635_v42  ;;  %v2225_v36 = vld [vmem:[#allocation10 + $0x1f98] sm:$0xff] }
 0x294   :  { %8417 = vmatpush1.bf16.msra.mxu1 %v16280_v49  ;;  %8448 = vmatprep.mubr.bf16.mxu1 %v19287_v0  ;;  %v2321_v49 = vld [vmem:[#allocation10 + $0x2298] sm:$0xff] }
 0x295   :  { %8418 = vmatprep.subr.bf16.mxu1 %v16257_v52  ;;  %v16860_v52 = vcombine.low %v2345_v24, %v2357_v37  ;;  %v16837_v48 = vcombine.high %v2321_v49, %v2333_v47  ;;  %v1887_v37 = vld [vmem:[#allocation10 + $0x1508] sm:$0xff] }
 0x296   :  { %8710 = vmatpush1.bf16.msra.mxu0 %v16596_v53  ;;  %v1599_v53 = vld [vmem:[#allocation10 + $0xc08] sm:$0xff] }
 0x297   :  { %8711 = vmatprep.subr.bf16.mxu0 %v16573_v56  ;;  %v16136_v56 = vcombine.low %v1623_v41, %v1635_v42  ;;  %v16113_v63 = vcombine.high %v1599_v53, %v1611_v55  ;;  %v2201_v42 = vld [vmem:[#allocation10 + $0x1ed8] sm:$0xff] }
 0x298   :  { %8419 = vmatpush1.bf16.msra.mxu1 %v16256_v58  ;;  %v2297_v58 = vld [vmem:[#allocation10 + $0x21d8] sm:$0xff] }
 0x299   :  { %8420 = vmatprep.subr.bf16.mxu1 %v16233_v1  ;;  %v16836_v1 = vcombine.low %v2321_v49, %v2333_v47  ;;  %v16813_v5 = vcombine.high %v2297_v58, %v2309_v59  ;;  %v1863_v47 = vld [vmem:[#allocation10 + $0x1448] sm:$0xff] }
 0x29a   :  { %8712 = vmatpush1.bf16.msra.mxu0 %v16572_v2  ;;  %v1959_v2 = vld [vmem:[#allocation10 + $0x1748] sm:$0xff] }
 0x29b   :  { %8713 = vmatprep.subr.bf16.mxu0 %v16549_v7  ;;  %v16112_v7 = vcombine.low %v1599_v53, %v1611_v55  ;;  %v16473_v12 = vcombine.high %v1959_v2, %v1971_v4  ;;  %v16472_v22 = vcombine.low %v1959_v2, %v1971_v4  ;;  %v2177_v55 = vld [vmem:[#allocation10 + $0x1e18] sm:$0xff]  ;;  %v1770_v4 = vld [vmem:[#allocation10 + $0x1160] sm:$0xff] }
 0x29c   :  { %8421 = vmatpush1.bf16.msra.mxu1 %v16232_v9  ;;  %v2273_v9 = vld [vmem:[#allocation10 + $0x2118] sm:$0xff] }
 0x29d   :  { %8422 = vmatprep.subr.bf16.mxu1 %v16209_v13  ;;  %v16812_v13 = vcombine.low %v2297_v58, %v2309_v59  ;;  %v16789_v19 = vcombine.high %v2273_v9, %v2285_v10  ;;  %v16788_v30 = vcombine.low %v2273_v9, %v2285_v10  ;;  %v1839_v59 = vld [vmem:[#allocation10 + $0x1388] sm:$0xff] }
 0x29e   :  { %8714 = vmatpush1.bf16.msra.mxu0 %v16548_v16  ;;  %v1947_v16 = vld [vmem:[#allocation10 + $0x16e8] sm:$0xff] }
 0x29f   :  { %8715 = vmatprep.subr.bf16.mxu0 %v16525_v25  ;;  %v2249_v25 = vld [vmem:[#allocation10 + $0x2058] sm:$0xff]  ;;  %v16448_v35 = vcombine.low %v1935_v14, %v1947_v16  ;;  %v1815_v10 = vld [vmem:[#allocation10 + $0x12c8] sm:$0xff] }
 0x2a0   :  { %8423 = vmatpush1.bf16.msra.mxu1 %v16208_v28  ;;  %v16449_v28 = vcombine.high %v1935_v14, %v1947_v16  ;;  %v16764_v24 = vcombine.low %v2249_v25, %v2261_v27  ;;  %v1746_v16 = vld [vmem:[#allocation10 + $0x10a0] sm:$0xff] }
 0x2a1   :  { %8424 = vmatprep.subr.bf16.mxu1 %v16185_v33  ;;  %v1923_v33 = vld [vmem:[#allocation10 + $0x1628] sm:$0xff] }
 0x2a2   :  { %8716 = vmatpush1.bf16.msra.mxu0 %v16524_v34  ;;  %v16765_v34 = vcombine.high %v2249_v25, %v2261_v27  ;;  %v16424_v41 = vcombine.low %v1911_v31, %v1923_v33  ;;  %v1791_v27 = vld [vmem:[#allocation10 + $0x1208] sm:$0xff] }
 0x2a3   :  { %8717 = vmatprep.subr.bf16.mxu0 %v16501_v51  ;;  %v2237_v51 = vld [vmem:[#allocation10 + $0x1ff8] sm:$0xff] }
 0x2a4   :  { %8425 = vmatpush1.bf16.msra.mxu1 %v16184_v20  ;;  %v16425_v20 = vcombine.high %v1911_v31, %v1923_v33  ;;  %v16740_v49 = vcombine.low %v2225_v36, %v2237_v51  ;;  %v1722_v33 = vld [vmem:[#allocation10 + $0xfe0] sm:$0xff] }
 0x2a5   :  { %8426 = vmatprep.subr.bf16.mxu1 %v16161_v38  ;;  %v1899_v38 = vld [vmem:[#allocation10 + $0x1568] sm:$0xff] }
 0x2a6   :  { %8718 = vmatpush1.bf16.msra.mxu0 %v16500_v39  ;;  %v16741_v39 = vcombine.high %v2225_v36, %v2237_v51  ;;  %v16400_v53 = vcombine.low %v1887_v37, %v1899_v38  ;;  %v1384_v51 = vld [vmem:[#allocation10 + $0x550] sm:$0xff] }
 0x2a7   :  { %8719 = vmatprep.subr.bf16.mxu0 %v16861_v44  ;;  %v2213_v44 = vld [vmem:[#allocation10 + $0x1f38] sm:$0xff] }
 0x2a8   :  { %8427 = vmatpush1.bf16.msra.mxu1 %v16160_v43  ;;  %v16401_v43 = vcombine.high %v1887_v37, %v1899_v38  ;;  %v16716_v58 = vcombine.low %v2201_v42, %v2213_v44  ;;  %v1698_v38 = vld [vmem:[#allocation10 + $0xf20] sm:$0xff] }
 0x2a9   :  { %8428 = vmatprep.subr.bf16.mxu1 %v16137_v50  ;;  %v1875_v50 = vld [vmem:[#allocation10 + $0x14a8] sm:$0xff] }
 0x2aa   :  { %8720 = vmatpush2.bf16.msra.mxu0 %v16860_v52  ;;  %v16717_v52 = vcombine.high %v2201_v42, %v2213_v44  ;;  %v16376_v2 = vcombine.low %v1863_v47, %v1875_v50  ;;  %v1360_v44 = vld [vmem:[#allocation10 + $0x490] sm:$0xff] }
 0x2ab   :  { %8721 = vmatprep.subr.bf16.mxu0 %v16837_v48  ;;  %v2189_v48 = vld [vmem:[#allocation10 + $0x1e78] sm:$0xff] }
 0x2ac   :  { %8429 = vmatpush1.bf16.msra.mxu1 %v16136_v56  ;;  %v16377_v56 = vcombine.high %v1863_v47, %v1875_v50  ;;  %v16692_v9 = vcombine.low %v2177_v55, %v2189_v48  ;;  %v1674_v50 = vld [vmem:[#allocation10 + $0xe60] sm:$0xff] }
 0x2ad   :  { %8430 = vmatprep.subr.bf16.mxu1 %v16113_v63  ;;  %v1851_v63 = vld [vmem:[#allocation10 + $0x13e8] sm:$0xff] }
 0x2ae   :  { %8722 = vmatpush2.bf16.msra.mxu0 %v16836_v1  ;;  %v16693_v1 = vcombine.high %v2177_v55, %v2189_v48  ;;  %v16352_v14 = vcombine.low %v1839_v59, %v1851_v63  ;;  %v1336_v48 = vld [vmem:[#allocation10 + $0x3d0] sm:$0xff] }
 0x2af   :  { %8723 = vmatprep.subr.bf16.mxu0 %v16813_v5  ;;  %v1782_v5 = vld [vmem:[#allocation10 + $0x11c0] sm:$0xff] }
 0x2b0   :  { %8431 = vmatpush1.bf16.msra.mxu1 %v16112_v7  ;;  %v16353_v7 = vcombine.high %v1839_v59, %v1851_v63  ;;  %v16286_v25 = vcombine.low %v1770_v4, %v1782_v5 }
 0x2b1   :  { %8432 = vmatprep.subr.bf16.mxu1 %v16473_v12  ;;  %v1827_v12 = vld [vmem:[#allocation10 + $0x1328] sm:$0xff] }
 0x2b2   :  { %8724 = vmatpush2.bf16.msra.mxu0 %v16812_v13  ;;  %v16287_v13 = vcombine.high %v1770_v4, %v1782_v5  ;;  %v16328_v31 = vcombine.low %v1815_v10, %v1827_v12  ;;  %v15709_v4 = vld [vmem:[#allocation8] ss:$0 sm:$0xff] }
 0x2b3   :  { %8725 = vmatprep.subr.bf16.mxu0 %v16789_v19  ;;  %v1758_v19 = vld [vmem:[#allocation10 + $0x1100] sm:$0xff] }
 0x2b4   :  { %8433 = vmatpush2.bf16.msra.mxu1 %v16472_v22  ;;  %v16329_v22 = vcombine.high %v1815_v10, %v1827_v12  ;;  %v16262_v36 = vcombine.low %v1746_v16, %v1758_v19  ;;  %v1312_v12 = vld [vmem:[#allocation10 + $0x310] sm:$0xff] }
 0x2b5   :  { %8434 = vmatprep.subr.bf16.mxu1 %v16449_v28  ;;  %v1803_v28 = vld [vmem:[#allocation10 + $0x1268] sm:$0xff] }
 0x2b6   :  { %8726 = vmatpush2.bf16.msra.mxu0 %v16788_v30  ;;  %v16263_v30 = vcombine.high %v1746_v16, %v1758_v19  ;;  %v16304_v37 = vcombine.low %v1791_v27, %v1803_v28 }
 0x2b7   :  { %8727 = vmatprep.subr.bf16.mxu0 %v16765_v34  ;;  %v1734_v34 = vld [vmem:[#allocation10 + $0x1040] sm:$0xff] }
 0x2b8   :  { %8435 = vmatpush2.bf16.msra.mxu1 %v16448_v35  ;;  %v16305_v35 = vcombine.high %v1791_v27, %v1803_v28  ;;  %v16238_v42 = vcombine.low %v1722_v33, %v1734_v34  ;;  %v1638_v27 = vld [vmem:[#allocation10 + $0xd40] sm:$0xff] }
 0x2b9   :  { %8436 = vmatprep.subr.bf16.mxu1 %v16425_v20  ;;  %v1396_v20 = vld [vmem:[#allocation10 + $0x5b0] sm:$0xff] }
 0x2ba   :  { %8728 = vmatpush2.bf16.msra.mxu0 %v16764_v24  ;;  %v16239_v24 = vcombine.high %v1722_v33, %v1734_v34  ;;  %v15898_v47 = vcombine.low %v1384_v51, %v1396_v20  ;;  %v1288_v34 = vld [vmem:[#allocation10 + $0x250] sm:$0xff] }
 0x2bb   :  { %8729 = vmatprep.subr.bf16.mxu0 %v16741_v39  ;;  %v1710_v39 = vld [vmem:[#allocation10 + $0xf80] sm:$0xff] }
 0x2bc   :  { %8437 = vmatpush2.bf16.msra.mxu1 %v16424_v41  ;;  %v15899_v41 = vcombine.high %v1384_v51, %v1396_v20  ;;  %v16214_v55 = vcombine.low %v1698_v38, %v1710_v39 }
 0x2bd   :  { %8438 = vmatprep.subr.bf16.mxu1 %v16401_v43  ;;  %v1372_v43 = vld [vmem:[#allocation10 + $0x4f0] sm:$0xff] }
 0x2be   :  { %8730 = vmatpush2.bf16.msra.mxu0 %v16740_v49  ;;  %v16215_v49 = vcombine.high %v1698_v38, %v1710_v39  ;;  %v15874_v63 = vcombine.low %v1360_v44, %v1372_v43 }
 0x2bf   :  { %8731 = vmatprep.subr.bf16.mxu0 %v16717_v52  ;;  %v1686_v52 = vld [vmem:[#allocation10 + $0xec0] sm:$0xff] }
 0x2c0   :  { %8439 = vmatpush2.bf16.msra.mxu1 %v16400_v53  ;;  %v15875_v53 = vcombine.high %v1360_v44, %v1372_v43  ;;  %v16191_v59 = vcombine.high %v1674_v50, %v1686_v52  ;;  %v16190_v10 = vcombine.low %v1674_v50, %v1686_v52 }
 0x2c1   :  { %8440 = vmatprep.subr.bf16.mxu1 %v16377_v56  ;;  %v1348_v56 = vld [vmem:[#allocation10 + $0x430] sm:$0xff] }
 0x2c2   :  { %8732 = vmatpush2.bf16.msra.mxu0 %v16716_v58 }
 0x2c3   :  { %8733 = vmatprep.subr.bf16.mxu0 %v16693_v1  ;;  %v1650_v1 = vld [vmem:[#allocation10 + $0xda0] sm:$0xff] }
 0x2c4   :  { %8441 = vmatpush2.bf16.msra.mxu1 %v16376_v2  ;;  %v1662_v2 = vld [vmem:[#allocation10 + $0xe00] sm:$0xff] }
 0x2c5   :  { %8442 = vmatprep.subr.bf16.mxu1 %v16353_v7  ;;  %v15851_v7 = vcombine.high %v1336_v48, %v1348_v56  ;;  %v16167_v16 = vcombine.high %v1650_v1, %v1662_v2  ;;  %v16166_v33 = vcombine.low %v1650_v1, %v1662_v2  ;;  %v1216_v2 = vld [vmem:[#allocation10 + $0x10] sm:$0xff] }
 0x2c6   :  { %8734 = vmatpush2.bf16.msra.mxu0 %v16692_v9 }
 0x2c7   :  { %8785 = vmatprep.subr.bf16.mxu0 %v16287_v13  ;;  %v1324_v13 = vld [vmem:[#allocation10 + $0x370] sm:$0xff] }
 0x2c8   :  { %8443 = vmatpush2.bf16.msra.mxu1 %v16352_v14  ;;  %v15826_v20 = vcombine.low %v1312_v12, %v1324_v13 }
 0x2c9   :  { %8444 = vmatprep.subr.bf16.mxu1 %v16329_v22  ;;  %8736 = vmatmul.mubr.bf16.vlgmr.msra.gmra.mxu0 %v19348_v15  ;;  %v15850_v22 = vcombine.low %v1336_v48, %v1348_v56 }
 0x2ca   :  { %8786 = vmatpush1.bf16.msra.mxu0 %v16286_v25  ;;  %8817 = vmatprep.mubr.bf16.mxu0 %v19287_v0  ;;  %v1626_v25 = vld [vmem:[#allocation10 + $0xce0] sm:$0xff] }
 0x2cb   :  { %8787 = vmatprep.subr.bf16.mxu0 %v16263_v30  ;;  %v15827_v30 = vcombine.high %v1312_v12, %v1324_v13  ;;  %v16142_v39 = vcombine.low %v1626_v25, %v1638_v27 }
 0x2cc   :  { %8445 = vmatpush2.bf16.msra.mxu1 %v16328_v31 }
 0x2cd   :  { %8446 = vmatprep.subr.bf16.mxu1 %v16305_v35  ;;  %v1300_v35 = vld [vmem:[#allocation10 + $0x2b0] sm:$0xff] }
 0x2ce   :  { %8788 = vmatpush1.bf16.msra.mxu0 %v16262_v36  ;;  %v16143_v36 = vcombine.high %v1626_v25, %v1638_v27  ;;  %v15803_v38 = vcombine.high %v1288_v34, %v1300_v35  ;;  %v15802_v43 = vcombine.low %v1288_v34, %v1300_v35  ;;  %v1552_v34 = vld [vmem:[#allocation10 + $0xa90] sm:$0xff] }
 0x2cf   :  { %8789 = vmatprep.subr.bf16.mxu0 %v16239_v24  ;;  %v1602_v24 = vld [vmem:[#allocation10 + $0xc20] sm:$0xff]  ;;  %v1564_v35 = vld [vmem:[#allocation10 + $0xaf0] sm:$0xff] }
 0x2d0   :  { %8447 = vmatpush2.bf16.msra.mxu1 %v16304_v37  ;;  %v1614_v37 = vld [vmem:[#allocation10 + $0xc80] sm:$0xff] }
 0x2d1   :  { %8498 = vmatprep.subr.bf16.mxu1 %v15899_v41  ;;  %v1264_v41 = vld [vmem:[#allocation10 + $0x190] sm:$0xff]  ;;  %v16119_v44 = vcombine.high %v1602_v24, %v1614_v37  ;;  %v16118_v52 = vcombine.low %v1602_v24, %v1614_v37  ;;  %v1878_v24 = vld [vmem:[#allocation10 + $0x14c0] sm:$0xff]  ;;  %v16067_v37 = vcombine.high %v1552_v34, %v1564_v35 }
 0x2d2   :  { %8790 = vmatpush1.bf16.msra.mxu0 %v16238_v42  ;;  %v1276_v42 = vld [vmem:[#allocation10 + $0x1f0] sm:$0xff] }
 0x2d3   :  { %8449 = vmatmul.mubr.bf16.vlgmr.msra.gmra.mxu1 %v19322_v26  ;;  %v17478_v58 = vpop.f32.mrf.mxu1  ;;  %8791 = vmatprep.subr.bf16.mxu0 %v16215_v49  ;;  %v1962_v49 = vld [vmem:[#allocation10 + $0x1760] sm:$0xff]  ;;  %v15779_v50 = vcombine.high %v1264_v41, %v1276_v42  ;;  %v15778_v56 = vcombine.low %v1264_v41, %v1276_v42  ;;  %v1540_v41 = vld [vmem:[#allocation10 + $0xa30] sm:$0xff] }
 0x2d4   :  { %8499 = vmatpush1.bf16.msra.mxu1 %v15898_v47  ;;  %8530 = vmatprep.mubr.bf16.mxu1 %v19283_v62  ;;  %v1974_v47 = vld [vmem:[#allocation10 + $0x17c0] sm:$0xff] }
 0x2d5   :  { %v17479_v5 = vpop.f32.mrf.mxu1  ;;  %8500 = vmatprep.subr.bf16.mxu1 %v15875_v53  ;;  %v1240_v53 = vld [vmem:[#allocation10 + $0xd0] sm:$0xff]  ;;  %v16479_v48 = vcombine.high %v1962_v49, %v1974_v47  ;;  %v16478_v1 = vcombine.low %v1962_v49, %v1974_v47  ;;  %v1854_v49 = vld [vmem:[#allocation10 + $0x1400] sm:$0xff] }
 0x2d6   :  { %v17480_v9 = vadd.f32 %v17479_v5, %v17478_v58  ;;  %8792 = vmatpush1.bf16.msra.mxu0 %v16214_v55  ;;  %v1252_v55 = vld [vmem:[#allocation10 + $0x130] sm:$0xff]  ;;  %v1938_v58 = vld [vmem:[#allocation10 + $0x16a0] sm:$0xff] }
 0x2d7   :  { %v17481_v14 = vpop.f32.mrf.mxu1  ;;  %8793 = vmatprep.subr.bf16.mxu0 %v16191_v59  ;;  %v1950_v59 = vld [vmem:[#allocation10 + $0x1700] sm:$0xff] }
 0x2d8   :  { %v1202_v19 = vadd.f32 %v17480_v9, %v15709_v4  ;;  %8501 = vmatpush1.bf16.msra.mxu1 %v15874_v63  ;;  %v15755_v63 = vcombine.high %v1240_v53, %v1252_v55  ;;  %v1228_v4 = vld [vmem:[#allocation10 + $0x70] sm:$0xff]  ;;  %v16455_v5 = vcombine.high %v1938_v58, %v1950_v59  ;;  %v1914_v9 = vld [vmem:[#allocation10 + $0x15e0] sm:$0xff]  ;;  %v16454_v13 = vcombine.low %v1938_v58, %v1950_v59 }
 0x2d9   :  { %v17482_v28 = vpop.f32.mrf.mxu1  ;;  %8502 = vmatprep.subr.bf16.mxu1 %v15851_v7  ;;  %v15754_v7 = vcombine.low %v1240_v53, %v1252_v55  ;;  %v15731_v12 = vcombine.high %v1216_v2, %v1228_v4  ;;  %v1576_v14 = vld [vmem:[#allocation10 + $0xb50] sm:$0xff]  ;;  %v15730_v27 = vcombine.low %v1216_v2, %v1228_v4  ;;  %v1830_v58 = vld [vmem:[#allocation10 + $0x1340] sm:$0xff] }
 0x2da   :  { %v1207_v31 = vsub.f32 0.0, %v1202_v19  ;;  %8794 = vmatpush1.bf16.msra.mxu0 %v16190_v10  ;;  %v1926_v10 = vld [vmem:[#allocation10 + $0x1640] sm:$0xff]  ;;  %v1516_v53 = vld [vmem:[#allocation10 + $0x970] sm:$0xff] }
 0x2db   :  { %8795 = vmatprep.subr.bf16.mxu0 %v16167_v16  ;;  %v1588_v16 = vld [vmem:[#allocation10 + $0xbb0] sm:$0xff]  ;;  %v1890_v28 = vld [vmem:[#allocation10 + $0x1520] sm:$0xff] }
 0x2dc   :  { %v1208_v51 = vmul.f32 1.442695, %v1207_v31  ;;  %8503 = vmatpush1.bf16.msra.mxu1 %v15850_v22  ;;  %v16431_v22 = vcombine.high %v1914_v9, %v1926_v10  ;;  %v16091_v31 = vcombine.high %v1576_v14, %v1588_v16  ;;  %v1492_v2 = vld [vmem:[#allocation10 + $0x8b0] sm:$0xff] }
 0x2dd   :  { %8504 = vmatprep.subr.bf16.mxu1 %v15827_v30  ;;  %v1902_v30 = vld [vmem:[#allocation10 + $0x1580] sm:$0xff] }
 0x2de   :  { %18645 = vpow2.f32 %v1208_v51  ;;  %8796 = vmatpush1.bf16.msra.mxu0 %v16166_v33  ;;  %v16430_v33 = vcombine.low %v1914_v9, %v1926_v10  ;;  %v16090_v51 = vcombine.low %v1576_v14, %v1588_v16  ;;  %v1794_v9 = vld [vmem:[#allocation10 + $0x1220] sm:$0xff]  ;;  %v1456_v14 = vld [vmem:[#allocation10 + $0x790] sm:$0xff] }
 0x2df   :  { %8797 = vmatprep.subr.bf16.mxu0 %v16143_v36  ;;  %v16407_v36 = vcombine.high %v1890_v28, %v1902_v30  ;;  %v1806_v10 = vld [vmem:[#allocation10 + $0x1280] sm:$0xff]  ;;  %v1468_v16 = vld [vmem:[#allocation10 + $0x7f0] sm:$0xff] }
 0x2e0   :  { %8505 = vmatpush1.bf16.msra.mxu1 %v15826_v20  ;;  %v1866_v20 = vld [vmem:[#allocation10 + $0x1460] sm:$0xff] }
 0x2e1   :  { %8506 = vmatprep.subr.bf16.mxu1 %v15803_v38  ;;  %v16406_v38 = vcombine.low %v1890_v28, %v1902_v30  ;;  %v16383_v42 = vcombine.high %v1866_v20, %v1878_v24  ;;  %v15971_v28 = vcombine.high %v1456_v14, %v1468_v16  ;;  %v16310_v30 = vcombine.low %v1794_v9, %v1806_v10 }
 0x2e2   :  { %8798 = vmatpush1.bf16.msra.mxu0 %v16142_v39  ;;  %v1528_v39 = vld [vmem:[#allocation10 + $0x9d0] sm:$0xff] }
 0x2e3   :  { %8799 = vmatprep.subr.bf16.mxu0 %v16119_v44  ;;  %v16066_v44 = vcombine.low %v1552_v34, %v1564_v35  ;;  %v16043_v47 = vcombine.high %v1528_v39, %v1540_v41  ;;  %v15970_v35 = vcombine.low %v1456_v14, %v1468_v16  ;;  %v2104_v14 = vld [vmem:[#allocation10 + $0x1bd0] sm:$0xff] }
 0x2e4   :  { %8507 = vmatpush1.bf16.msra.mxu1 %v15802_v43  ;;  %v1842_v43 = vld [vmem:[#allocation10 + $0x13a0] sm:$0xff]  ;;  %v2116_v16 = vld [vmem:[#allocation10 + $0x1c30] sm:$0xff] }
 0x2e5   :  { %8508 = vmatprep.subr.bf16.mxu1 %v15779_v50  ;;  %v16382_v50 = vcombine.low %v1866_v20, %v1878_v24  ;;  %v16359_v55 = vcombine.high %v1842_v43, %v1854_v49 }
 0x2e6   :  { %8800 = vmatpush1.bf16.msra.mxu0 %v16118_v52  ;;  %v1504_v52 = vld [vmem:[#allocation10 + $0x910] sm:$0xff] }
 0x2e7   :  { %8801 = vmatprep.subr.bf16.mxu0 %v16479_v48  ;;  %v16042_v48 = vcombine.low %v1528_v39, %v1540_v41  ;;  %v16019_v59 = vcombine.high %v1504_v52, %v1516_v53 }
 0x2e8   :  { %8509 = vmatpush1.bf16.msra.mxu1 %v15778_v56  ;;  %v1818_v56 = vld [vmem:[#allocation10 + $0x12e0] sm:$0xff] }
 0x2e9   :  { %8510 = vmatprep.subr.bf16.mxu1 %v15755_v63  ;;  %v16358_v63 = vcombine.low %v1842_v43, %v1854_v49 }
 0x2ea   :  { %8802 = vmatpush2.bf16.msra.mxu0 %v16478_v1  ;;  %v1480_v1 = vld [vmem:[#allocation10 + $0x850] sm:$0xff] }
 0x2eb   :  { %v18646_v19 = vpop.eup %18645  ;;  %8803 = vmatprep.subr.bf16.mxu0 %v16455_v5  ;;  %v16335_v5 = vcombine.high %v1818_v56, %v1830_v58 }
 0x2ec   :  { %v1210_v25 = vadd.f32 1.0, %v18646_v19  ;;  %8511 = vmatpush1.bf16.msra.mxu1 %v15754_v7  ;;  %v16018_v7 = vcombine.low %v1504_v52, %v1516_v53  ;;  %v16311_v19 = vcombine.high %v1794_v9, %v1806_v10  ;;  %v1303_v9 = vld [vmem:[#allocation10 + $0x2c8] sm:$0xff] }
 0x2ed   :  { %8512 = vmatprep.subr.bf16.mxu1 %v15731_v12  ;;  %v15995_v12 = vcombine.high %v1480_v1, %v1492_v2 }
 0x2ee   :  { %18647 = vrcp.f32 %v1210_v25  ;;  %8804 = vmatpush2.bf16.msra.mxu0 %v16454_v13  ;;  %v16334_v13 = vcombine.low %v1818_v56, %v1830_v58  ;;  %v1387_v25 = vld [vmem:[#allocation10 + $0x568] sm:$0xff]  ;;  %v19453_v56 = vpop.f32.mrf.mxu0 }
 0x2ef   :  { %8805 = vmatprep.subr.bf16.mxu0 %v16431_v22  ;;  %v15994_v22 = vcombine.low %v1480_v1, %v1492_v2  ;;  %v2140_v1 = vld [vmem:[#allocation10 + $0x1cf0] sm:$0xff] }
 0x2f0   :  { %8513 = vmatpush1.bf16.msra.mxu1 %v15730_v27  ;;  %v1399_v27 = vld [vmem:[#allocation10 + $0x5c8] sm:$0xff]  ;;  %v19455_v2 = vpop.f32.mrf.mxu0 }
 0x2f1   :  { %8514 = vmatprep.subr.bf16.mxu1 %v16091_v31  ;;  %v1432_v31 = vld [vmem:[#allocation10 + $0x6d0] sm:$0xff]  ;;  %v15905_v34 = vcombine.high %v1387_v25, %v1399_v27  ;;  %v15904_v24 = vcombine.low %v1387_v25, %v1399_v27 }
 0x2f2   :  { %8806 = vmatpush2.bf16.msra.mxu0 %v16430_v33  ;;  %v1444_v33 = vld [vmem:[#allocation10 + $0x730] sm:$0xff]  ;;  %v8413_v10 = vpop.f32.mrf.mxu0 }
 0x2f3   :  { %8807 = vmatprep.subr.bf16.mxu0 %v16407_v36  ;;  %v1363_v36 = vld [vmem:[#allocation10 + $0x4a8] sm:$0xff]  ;;  %v15947_v20 = vcombine.high %v1432_v31, %v1444_v33  ;;  %v15946_v41 = vcombine.low %v1432_v31, %v1444_v33  ;;  %v16619_v33 = vcombine.high %v2104_v14, %v2116_v16 }
 0x2f4   :  { %8515 = vmatpush2.bf16.msra.mxu1 %v16090_v51  ;;  %v1375_v51 = vld [vmem:[#allocation10 + $0x508] sm:$0xff] }
 0x2f5   :  { %8516 = vmatprep.subr.bf16.mxu1 %v16067_v37  ;;  %v1408_v37 = vld [vmem:[#allocation10 + $0x610] sm:$0xff]  ;;  %v15881_v39 = vcombine.high %v1363_v36, %v1375_v51  ;;  %v15880_v49 = vcombine.low %v1363_v36, %v1375_v51  ;;  %v1591_v10 = vld [vmem:[#allocation10 + $0xbc8] sm:$0xff] }
 0x2f6   :  { %8808 = vmatpush2.bf16.msra.mxu0 %v16406_v38  ;;  %v1420_v38 = vld [vmem:[#allocation10 + $0x670] sm:$0xff] }
 0x2f7   :  { %8809 = vmatprep.subr.bf16.mxu0 %v16383_v42  ;;  %v1339_v42 = vld [vmem:[#allocation10 + $0x3e8] sm:$0xff]  ;;  %v15923_v43 = vcombine.high %v1408_v37, %v1420_v38  ;;  %v15922_v53 = vcombine.low %v1408_v37, %v1420_v38  ;;  %v2080_v36 = vld [vmem:[#allocation10 + $0x1b10] sm:$0xff]  ;;  %v16618_v38 = vcombine.low %v2104_v14, %v2116_v16 }
 0x2f8   :  { %8517 = vmatpush2.bf16.msra.mxu1 %v16066_v44  ;;  %v1351_v44 = vld [vmem:[#allocation10 + $0x448] sm:$0xff]  ;;  %v2092_v51 = vld [vmem:[#allocation10 + $0x1b70] sm:$0xff] }
 0x2f9   :  { %8518 = vmatprep.subr.bf16.mxu1 %v16043_v47  ;;  %v2152_v47 = vld [vmem:[#allocation10 + $0x1d50] sm:$0xff]  ;;  %v15857_v52 = vcombine.high %v1339_v42, %v1351_v44 }
 0x2fa   :  { %8810 = vmatpush2.bf16.msra.mxu0 %v16382_v50  ;;  %v2164_v50 = vld [vmem:[#allocation10 + $0x1db0] sm:$0xff] }
 0x2fb   :  { %v18648_v4 = vpop.eup %18647  ;;  %8811 = vmatprep.subr.bf16.mxu0 %v16359_v55  ;;  %v1315_v55 = vld [vmem:[#allocation10 + $0x328] sm:$0xff]  ;;  %v16667_v58 = vcombine.high %v2152_v47, %v2164_v50  ;;  %v2008_v14 = vld [vmem:[#allocation10 + $0x18d0] sm:$0xff] }
 0x2fc   :  { %1213 = vst.msk [vmem:[%s20187_s20] sm:$0xff] %vm1212_vm0, %v18648_v4  ;;  %8519 = vmatpush2.bf16.msra.mxu1 %v16042_v48  ;;  %v1327_v48 = vld [vmem:[#allocation10 + $0x388] sm:$0xff]  ;;  %v2020_v16 = vld [vmem:[#allocation10 + $0x1930] sm:$0xff] }
 0x2fd   :  { %8520 = vmatprep.subr.bf16.mxu1 %v16019_v59  ;;  %v15856_v59 = vcombine.low %v1339_v42, %v1351_v44  ;;  %v15833_v4 = vcombine.high %v1315_v55, %v1327_v48  ;;  %v16595_v44 = vcombine.high %v2080_v36, %v2092_v51 }
 0x2fe   :  { %8812 = vmatpush2.bf16.msra.mxu0 %v16358_v63  ;;  %v2128_v63 = vld [vmem:[#allocation10 + $0x1c90] sm:$0xff] }
 0x2ff   :  { %8813 = vmatprep.subr.bf16.mxu0 %v16335_v5  ;;  %v16666_v5 = vcombine.low %v2152_v47, %v2164_v50  ;;  %v16642_v27 = vcombine.low %v2128_v63, %v2140_v1  ;;  %v2056_v47 = vld [vmem:[#allocation10 + $0x1a50] sm:$0xff] }
 0x300   :  { %8521 = vmatpush2.bf16.msra.mxu1 %v16018_v7  ;;  %v1291_v7 = vld [vmem:[#allocation10 + $0x268] sm:$0xff]  ;;  %v2068_v50 = vld [vmem:[#allocation10 + $0x1ab0] sm:$0xff] }
 0x301   :  { %8522 = vmatprep.subr.bf16.mxu1 %v15995_v12  ;;  %v16643_v12 = vcombine.high %v2128_v63, %v2140_v1  ;;  %v15809_v25 = vcombine.high %v1291_v7, %v1303_v9  ;;  %v2032_v1 = vld [vmem:[#allocation10 + $0x1990] sm:$0xff] }
 0x302   :  { %8814 = vmatpush2.bf16.msra.mxu0 %v16334_v13  ;;  %v15832_v13 = vcombine.low %v1315_v55, %v1327_v48  ;;  %v16594_v55 = vcombine.low %v2080_v36, %v2092_v51  ;;  %v1219_v48 = vld [vmem:[#allocation10 + $0x28] sm:$0xff]  ;;  %v1996_v36 = vld [vmem:[#allocation10 + $0x1870] sm:$0xff] }
 0x303   :  { %8815 = vmatprep.subr.bf16.mxu0 %v16311_v19  ;;  %v8414_v19 = vpop.f32.mrf.mxu0 }
 0x304   :  { %8523 = vmatpush2.bf16.msra.mxu1 %v15994_v22 }
 0x305   :  { %8524 = vmatprep.subr.bf16.mxu1 %v15971_v28  ;;  %v1267_v28 = vld [vmem:[#allocation10 + $0x1a8] sm:$0xff] }
 0x306   :  { %8816 = vmatpush2.bf16.msra.mxu0 %v16310_v30  ;;  %v1279_v30 = vld [vmem:[#allocation10 + $0x208] sm:$0xff] }
 0x307   :  { %8867 = vmatprep.subr.bf16.mxu0 %v15905_v34  ;;  %v19463_v34 = vpop.f32.mrf.mxu0 }
 0x308   :  { %8525 = vmatpush2.bf16.msra.mxu1 %v15970_v35  ;;  %v15808_v35 = vcombine.low %v1291_v7, %v1303_v9  ;;  %v16570_v7 = vcombine.low %v2056_v47, %v2068_v50  ;;  %v1579_v9 = vld [vmem:[#allocation10 + $0xb68] sm:$0xff] }
 0x309   :  { %8526 = vmatprep.subr.bf16.mxu1 %v15947_v20  ;;  %8818 = vmatmul.mubr.bf16.vlgmr.msra.gmra.mxu0 %v19322_v26  ;;  %v19465_v37 = vpop.f32.mrf.mxu0  ;;  %v16097_v19 = vcombine.high %v1579_v9, %v1591_v10 }
 0x30a   :  { %8868 = vmatpush1.bf16.msra.mxu0 %v15904_v24  ;;  %8899 = vmatprep.mubr.bf16.mxu0 %v19283_v62  ;;  %v15785_v24 = vcombine.high %v1267_v28, %v1279_v30  ;;  %20211 = vst [vmem:[#allocation45_spill] sm:$0xff] %v19465_v37 }
 0x30b   :  { %8869 = vmatprep.subr.bf16.mxu0 %v15881_v39  ;;  %v1243_v39 = vld [vmem:[#allocation10 + $0xe8] sm:$0xff] }
 0x30c   :  { %8527 = vmatpush2.bf16.msra.mxu1 %v15946_v41  ;;  %v1255_v41 = vld [vmem:[#allocation10 + $0x148] sm:$0xff] }
 0x30d   :  { %8528 = vmatprep.subr.bf16.mxu1 %v15923_v43  ;;  %v8495_v43 = vpop.f32.mrf.mxu0  ;;  %v15760_v63 = vcombine.low %v1243_v39, %v1255_v41 }
 0x30e   :  { %8870 = vmatpush1.bf16.msra.mxu0 %v15880_v49  ;;  %v15784_v49 = vcombine.low %v1267_v28, %v1279_v30  ;;  %v1567_v28 = vld [vmem:[#allocation10 + $0xb08] sm:$0xff]  ;;  %v16523_v30 = vcombine.high %v2008_v14, %v2020_v16 }
 0x30f   :  { %8871 = vmatprep.subr.bf16.mxu0 %v15857_v52  ;;  %v15761_v52 = vcombine.high %v1243_v39, %v1255_v41 }
 0x310   :  { %8529 = vmatpush2.bf16.msra.mxu1 %v15922_v53  ;;  %v8496_v53 = vpop.f32.mrf.mxu0 }
 0x311   :  { %8580 = vmatprep.subr.bf16.mxu1 %v16667_v58  ;;  %v1231_v58 = vld [vmem:[#allocation10 + $0x88] sm:$0xff] }
 0x312   :  { %8872 = vmatpush1.bf16.msra.mxu0 %v15856_v59  ;;  %v16571_v59 = vcombine.high %v2056_v47, %v2068_v50  ;;  %v1507_v47 = vld [vmem:[#allocation10 + $0x928] sm:$0xff] }
 0x313   :  { %v19457_v22 = vpop.f32.mrf.mxu1  ;;  %8531 = vmatmul.mubr.bf16.vlgmr.msra.gmra.mxu1 %v19316_v23  ;;  %8873 = vmatprep.subr.bf16.mxu0 %v15833_v4  ;;  %v2044_v4 = vld [vmem:[#allocation10 + $0x19f0] sm:$0xff]  ;;  %v1519_v50 = vld [vmem:[#allocation10 + $0x988] sm:$0xff] }
 0x314   :  { %8581 = vmatpush1.bf16.msra.mxu1 %v16666_v5  ;;  %8612 = vmatprep.mubr.bf16.mxu1 %v19333_v32  ;;  %v15737_v5 = vcombine.high %v1219_v48, %v1231_v58 }
 0x315   :  { %v19461_v31 = vpop.f32.mrf.mxu1  ;;  %8582 = vmatprep.subr.bf16.mxu1 %v16643_v12  ;;  %v16547_v12 = vcombine.high %v2032_v1, %v2044_v4 }
 0x316   :  { %8874 = vmatpush1.bf16.msra.mxu0 %v15832_v13  ;;  %v15736_v13 = vcombine.low %v1219_v48, %v1231_v58  ;;  %v2332_v48 = vld [vmem:[#allocation10 + $0x22f0] sm:$0xff]  ;;  %v16025_v58 = vcombine.high %v1507_v47, %v1519_v50 }
 0x317   :  { %v8290_v20 = vpop.f32.mrf.mxu1  ;;  %8875 = vmatprep.subr.bf16.mxu0 %v15809_v25  ;;  %v16546_v25 = vcombine.low %v2032_v1, %v2044_v4  ;;  %v1495_v1 = vld [vmem:[#allocation10 + $0x8c8] sm:$0xff] }
 0x318   :  { %8583 = vmatpush1.bf16.msra.mxu1 %v16642_v27  ;;  %v1555_v27 = vld [vmem:[#allocation10 + $0xaa8] sm:$0xff]  ;;  %v16522_v20 = vcombine.low %v2008_v14, %v2020_v16 }
 0x319   :  { %v8291_v42 = vpop.f32.mrf.mxu1  ;;  %8584 = vmatprep.subr.bf16.mxu1 %v16619_v33  ;;  %v16096_v33 = vcombine.low %v1579_v9, %v1591_v10  ;;  %v16073_v51 = vcombine.high %v1555_v27, %v1567_v28  ;;  %v16072_v41 = vcombine.low %v1555_v27, %v1567_v28  ;;  %v2308_v9 = vld [vmem:[#allocation10 + $0x2230] sm:$0xff]  ;;  %v1471_v14 = vld [vmem:[#allocation10 + $0x808] sm:$0xff] }
 0x31a   :  { %8876 = vmatpush1.bf16.msra.mxu0 %v15808_v35  ;;  %v1984_v35 = vld [vmem:[#allocation10 + $0x1810] sm:$0xff] }
 0x31b   :  { %8877 = vmatprep.subr.bf16.mxu0 %v15785_v24  ;;  %v1531_v24 = vld [vmem:[#allocation10 + $0x9e8] sm:$0xff]  ;;  %v16499_v39 = vcombine.high %v1984_v35, %v1996_v36  ;;  %v2344_v42 = vld [vmem:[#allocation10 + $0x2350] sm:$0xff] }
 0x31c   :  { %8585 = vmatpush1.bf16.msra.mxu1 %v16618_v38  ;;  %v1543_v38 = vld [vmem:[#allocation10 + $0xa48] sm:$0xff]  ;;  %v2284_v27 = vld [vmem:[#allocation10 + $0x2170] sm:$0xff] }
 0x31d   :  { %8586 = vmatprep.subr.bf16.mxu1 %v16595_v44  ;;  %v2356_v44 = vld [vmem:[#allocation10 + $0x23b0] sm:$0xff]  ;;  %v16049_v43 = vcombine.high %v1531_v24, %v1543_v38  ;;  %v16048_v53 = vcombine.low %v1531_v24, %v1543_v38 }
 0x31e   :  { %8878 = vmatpush1.bf16.msra.mxu0 %v15784_v49  ;;  %v16498_v49 = vcombine.low %v1984_v35, %v1996_v36  ;;  %v1447_v35 = vld [vmem:[#allocation10 + $0x748] sm:$0xff]  ;;  %v2260_v24 = vld [vmem:[#allocation10 + $0x20b0] sm:$0xff] }
 0x31f   :  { %8879 = vmatprep.subr.bf16.mxu0 %v15761_v52  ;;  %v16859_v52 = vcombine.high %v2344_v42, %v2356_v44 }
 0x320   :  { %8587 = vmatpush1.bf16.msra.mxu1 %v16594_v55  ;;  %v2320_v55 = vld [vmem:[#allocation10 + $0x2290] sm:$0xff] }
 0x321   :  { %8588 = vmatprep.subr.bf16.mxu1 %v16571_v59  ;;  %v16858_v59 = vcombine.low %v2344_v42, %v2356_v44  ;;  %v16835_v4 = vcombine.high %v2320_v55, %v2332_v48  ;;  %v1423_v42 = vld [vmem:[#allocation10 + $0x688] sm:$0xff] }
 0x322   :  { %8880 = vmatpush1.bf16.msra.mxu0 %v15760_v63  ;;  %v1483_v63 = vld [vmem:[#allocation10 + $0x868] sm:$0xff] }
 0x323   :  { %8881 = vmatprep.subr.bf16.mxu0 %v15737_v5  ;;  %v16024_v5 = vcombine.low %v1507_v47, %v1519_v50  ;;  %v16001_v10 = vcombine.high %v1483_v63, %v1495_v1  ;;  %v2236_v47 = vld [vmem:[#allocation10 + $0x1ff0] sm:$0xff] }
 0x324   :  { %8589 = vmatpush1.bf16.msra.mxu1 %v16570_v7  ;;  %v2296_v7 = vld [vmem:[#allocation10 + $0x21d0] sm:$0xff] }
 0x325   :  { %8590 = vmatprep.subr.bf16.mxu1 %v16547_v12  ;;  %v16834_v12 = vcombine.low %v2320_v55, %v2332_v48  ;;  %v16811_v16 = vcombine.high %v2296_v7, %v2308_v9  ;;  %v2167_v55 = vld [vmem:[#allocation10 + $0x1dc8] sm:$0xff] }
 0x326   :  { %8882 = vmatpush1.bf16.msra.mxu0 %v15736_v13  ;;  %v1459_v13 = vld [vmem:[#allocation10 + $0x7a8] sm:$0xff] }
 0x327   :  { %8883 = vmatprep.subr.bf16.mxu0 %v16097_v19  ;;  %v16000_v19 = vcombine.low %v1483_v63, %v1495_v1  ;;  %v15977_v28 = vcombine.high %v1459_v13, %v1471_v14  ;;  %v2212_v63 = vld [vmem:[#allocation10 + $0x1f30] sm:$0xff] }
 0x328   :  { %8591 = vmatpush1.bf16.msra.mxu1 %v16546_v25  ;;  %v2272_v25 = vld [vmem:[#allocation10 + $0x2110] sm:$0xff] }
 0x329   :  { %8592 = vmatprep.subr.bf16.mxu1 %v16523_v30  ;;  %v16810_v30 = vcombine.low %v2296_v7, %v2308_v9  ;;  %v16787_v36 = vcombine.high %v2272_v25, %v2284_v27  ;;  %v2143_v7 = vld [vmem:[#allocation10 + $0x1d08] sm:$0xff] }
 0x32a   :  { %8884 = vmatpush2.bf16.msra.mxu0 %v16096_v33  ;;  %v1435_v33 = vld [vmem:[#allocation10 + $0x6e8] sm:$0xff] }
 0x32b   :  { %8885 = vmatprep.subr.bf16.mxu0 %v16073_v51  ;;  %v15976_v51 = vcombine.low %v1459_v13, %v1471_v14  ;;  %v15953_v38 = vcombine.high %v1435_v33, %v1447_v35  ;;  %v2188_v13 = vld [vmem:[#allocation10 + $0x1e70] sm:$0xff]  ;;  %v19467_v14 = vld [vmem:[#allocation11] sm:$0xff] }
 0x32c   :  { %8593 = vmatpush1.bf16.msra.mxu1 %v16522_v20  ;;  %v2248_v20 = vld [vmem:[#allocation10 + $0x2050] sm:$0xff] }
 0x32d   :  { %8594 = vmatprep.subr.bf16.mxu1 %v16499_v39  ;;  %v16786_v39 = vcombine.low %v2272_v25, %v2284_v27  ;;  %v16763_v44 = vcombine.high %v2248_v20, %v2260_v24  ;;  %v2107_v25 = vld [vmem:[#allocation10 + $0x1be8] sm:$0xff] }
 0x32e   :  { %8886 = vmatpush2.bf16.msra.mxu0 %v16072_v41  ;;  %v1411_v41 = vld [vmem:[#allocation10 + $0x628] sm:$0xff] }
 0x32f   :  { %8887 = vmatprep.subr.bf16.mxu0 %v16049_v43  ;;  %v15952_v43 = vcombine.low %v1435_v33, %v1447_v35  ;;  %v15929_v50 = vcombine.high %v1411_v41, %v1423_v42  ;;  %v2119_v27 = vld [vmem:[#allocation10 + $0x1c48] sm:$0xff]  ;;  %v1769_v35 = vld [vmem:[#allocation10 + $0x1158] sm:$0xff] }
 0x330   :  { %8595 = vmatpush1.bf16.msra.mxu1 %v16498_v49  ;;  %v2224_v49 = vld [vmem:[#allocation10 + $0x1f90] sm:$0xff] }
 0x331   :  { %8596 = vmatprep.subr.bf16.mxu1 %v16859_v52  ;;  %v16762_v52 = vcombine.low %v2248_v20, %v2260_v24  ;;  %v16739_v48 = vcombine.high %v2224_v49, %v2236_v47  ;;  %v2379_v20 = vrot.slane %v19467_v14, %v19260_v45 }
 0x332   :  { %8888 = vmatpush2.bf16.msra.mxu0 %v16048_v53  ;;  %v2155_v53 = vld [vmem:[#allocation10 + $0x1d68] sm:$0xff] }
 0x333   :  { %8889 = vmatprep.subr.bf16.mxu0 %v16025_v58  ;;  %v15928_v58 = vcombine.low %v1411_v41, %v1423_v42  ;;  %v16673_v1 = vcombine.high %v2155_v53, %v2167_v55 }
 0x334   :  { %8597 = vmatpush2.bf16.msra.mxu1 %v16858_v59  ;;  %v2200_v59 = vld [vmem:[#allocation10 + $0x1ed0] sm:$0xff] }
 0x335   :  { %8598 = vmatprep.subr.bf16.mxu1 %v16835_v4  ;;  %v16738_v4 = vcombine.low %v2224_v49, %v2236_v47  ;;  %v16715_v9 = vcombine.high %v2200_v59, %v2212_v63  ;;  %v1757_v49 = vld [vmem:[#allocation10 + $0x10f8] sm:$0xff] }
 0x336   :  { %8890 = vmatpush2.bf16.msra.mxu0 %v16024_v5  ;;  %v2131_v5 = vld [vmem:[#allocation10 + $0x1ca8] sm:$0xff] }
 0x337   :  { %8891 = vmatprep.subr.bf16.mxu0 %v16001_v10  ;;  %v16672_v10 = vcombine.low %v2155_v53, %v2167_v55  ;;  %v16648_v33 = vcombine.low %v2131_v5, %v2143_v7  ;;  %v2059_v53 = vld [vmem:[#allocation10 + $0x1a68] sm:$0xff] }
 0x338   :  { %8599 = vmatpush2.bf16.msra.mxu1 %v16834_v12  ;;  %v2176_v12 = vld [vmem:[#allocation10 + $0x1e10] sm:$0xff]  ;;  %v2071_v55 = vld [vmem:[#allocation10 + $0x1ac8] sm:$0xff] }
 0x339   :  { %8600 = vmatprep.subr.bf16.mxu1 %v16811_v16  ;;  %v16649_v16 = vcombine.high %v2131_v5, %v2143_v7  ;;  %v16690_v24 = vcombine.low %v2176_v12, %v2188_v13 }
 0x33a   :  { %8892 = vmatpush2.bf16.msra.mxu0 %v16000_v19  ;;  %v16714_v19 = vcombine.low %v2200_v59, %v2212_v63  ;;  %v1721_v63 = vld [vmem:[#allocation10 + $0xfd8] sm:$0xff] }
 0x33b   :  { %8893 = vmatprep.subr.bf16.mxu0 %v15977_v28  ;;  %v16691_v28 = vcombine.high %v2176_v12, %v2188_v13  ;;  %v19483_v13 = vpop.f32.mrf.mxu0 }
 0x33c   :  { %8601 = vmatpush2.bf16.msra.mxu1 %v16810_v30  ;;  %v2375_v30 = vrot.slane %v19467_v14, %v19291_v3 }
 0x33d   :  { %8602 = vmatprep.subr.bf16.mxu1 %v16787_v36  ;;  %v1781_v36 = vld [vmem:[#allocation10 + $0x11b8] sm:$0xff] }
 0x33e   :  { %8894 = vmatpush2.bf16.msra.mxu0 %v15976_v51  ;;  %v16625_v51 = vcombine.high %v2107_v25, %v2119_v27  ;;  %v16285_v41 = vcombine.high %v1769_v35, %v1781_v36  ;;  %v8287_v42 = vadd.f32 %v19457_v22, %v2375_v30  ;;  %v1733_v22 = vld [vmem:[#allocation10 + $0x1038] sm:$0xff]  ;;  %v19487_v30 = vpop.f32.mrf.mxu0 }
 0x33f   :  { %8895 = vmatprep.subr.bf16.mxu0 %v15953_v38  ;;  %v2083_v38 = vld [vmem:[#allocation10 + $0x1b28] sm:$0xff]  ;;  %v16237_v12 = vcombine.high %v1721_v63, %v1733_v22 }
 0x340   :  { %8603 = vmatpush2.bf16.msra.mxu1 %v16786_v39  ;;  %v2095_v39 = vld [vmem:[#allocation10 + $0x1b88] sm:$0xff] }
 0x341   :  { %8604 = vmatprep.subr.bf16.mxu1 %v16763_v44  ;;  %v16624_v44 = vcombine.low %v2107_v25, %v2119_v27  ;;  %v16601_v47 = vcombine.high %v2083_v38, %v2095_v39  ;;  %v16600_v59 = vcombine.low %v2083_v38, %v2095_v39  ;;  %v1697_v25 = vld [vmem:[#allocation10 + $0xf18] sm:$0xff] }
 0x342   :  { %8896 = vmatpush2.bf16.msra.mxu0 %v15952_v43  ;;  %v1745_v43 = vld [vmem:[#allocation10 + $0x1098] sm:$0xff] }
 0x343   :  { %8897 = vmatprep.subr.bf16.mxu0 %v15929_v50  ;;  %v8289_v50 = vadd.f32 %v19461_v31, %v2379_v20  ;;  %v16260_v7 = vcombine.low %v1745_v43, %v1757_v49  ;;  %v1709_v27 = vld [vmem:[#allocation10 + $0xf78] sm:$0xff] }
 0x344   :  { %8605 = vmatpush2.bf16.msra.mxu1 %v16762_v52  ;;  %v16284_v52 = vcombine.low %v1769_v35, %v1781_v36  ;;  %v2011_v35 = vld [vmem:[#allocation10 + $0x18e8] sm:$0xff]  ;;  %v16213_v20 = vcombine.high %v1697_v25, %v1709_v27  ;;  %v1673_v39 = vld [vmem:[#allocation10 + $0xe58] sm:$0xff] }
 0x345   :  { %8606 = vmatprep.subr.bf16.mxu1 %v16739_v48  ;;  %v16261_v48 = vcombine.high %v1745_v43, %v1757_v49  ;;  %v8330_v5 = vadd.f32 %v19442_v8, %v8289_v50  ;;  %v2023_v36 = vld [vmem:[#allocation10 + $0x1948] sm:$0xff]  ;;  %v16212_v43 = vcombine.low %v1697_v25, %v1709_v27  ;;  %v1601_v25 = vld [vmem:[#allocation10 + $0xc18] sm:$0xff] }
 0x346   :  { %8898 = vmatpush2.bf16.msra.mxu0 %v15928_v58  ;;  %v8328_v58 = vadd.f32 %v19440_v54, %v8287_v42  ;;  %v16529_v42 = vcombine.high %v2011_v35, %v2023_v36  ;;  %v1987_v49 = vld [vmem:[#allocation10 + $0x1828] sm:$0xff]  ;;  %v1613_v27 = vld [vmem:[#allocation10 + $0xc78] sm:$0xff] }
 0x347   :  { %8949 = vmatprep.subr.bf16.mxu0 %v16673_v1 }
 0x348   :  { %8607 = vmatpush2.bf16.msra.mxu1 %v16738_v4  ;;  %v16577_v4 = vcombine.high %v2059_v53, %v2071_v55 }
 0x349   :  { %8608 = vmatprep.subr.bf16.mxu1 %v16715_v9  ;;  %8900 = vmatmul.mubr.bf16.vlgmr.msra.gmra.mxu0 %v19316_v23  ;;  %v2035_v9 = vld [vmem:[#allocation10 + $0x19a8] sm:$0xff] }
 0x34a   :  { %8950 = vmatpush1.bf16.msra.mxu0 %v16672_v10  ;;  %8981 = vmatprep.mubr.bf16.mxu0 %v19333_v32  ;;  %v2047_v10 = vld [vmem:[#allocation10 + $0x1a08] sm:$0xff] }
 0x34b   :  { %8951 = vmatprep.subr.bf16.mxu0 %v16649_v16  ;;  %v16552_v38 = vcombine.low %v2035_v9, %v2047_v10 }
 0x34c   :  { %8609 = vmatpush2.bf16.msra.mxu1 %v16714_v19  ;;  %v16576_v19 = vcombine.low %v2059_v53, %v2071_v55  ;;  %v1649_v53 = vld [vmem:[#allocation10 + $0xd98] sm:$0xff] }
 0x34d   :  { %8610 = vmatprep.subr.bf16.mxu1 %v16691_v28  ;;  %v16553_v28 = vcombine.high %v2035_v9, %v2047_v10  ;;  %v1661_v55 = vld [vmem:[#allocation10 + $0xdf8] sm:$0xff]  ;;  %v2323_v10 = vld [vmem:[#allocation10 + $0x22a8] sm:$0xff] }
 0x34e   :  { %8952 = vmatpush1.bf16.msra.mxu0 %v16648_v33  ;;  %v16236_v33 = vcombine.low %v1721_v63, %v1733_v22  ;;  %v2359_v63 = vld [vmem:[#allocation10 + $0x23c8] sm:$0xff]  ;;  %v16165_v22 = vcombine.high %v1649_v53, %v1661_v55  ;;  %v16164_v9 = vcombine.low %v1649_v53, %v1661_v55 }
 0x34f   :  { %8953 = vmatprep.subr.bf16.mxu0 %v16625_v51  ;;  %v2251_v53 = vld [vmem:[#allocation10 + $0x2068] sm:$0xff] }
 0x350   :  { %8611 = vmatpush2.bf16.msra.mxu1 %v16690_v24  ;;  %v8577_v24 = vpop.f32.mrf.mxu0  ;;  %v2263_v55 = vld [vmem:[#allocation10 + $0x20c8] sm:$0xff] }
 0x351   :  { %8662 = vmatprep.subr.bf16.mxu1 %v16285_v41  ;;  %v1685_v41 = vld [vmem:[#allocation10 + $0xeb8] sm:$0xff] }
 0x352   :  { %8954 = vmatpush1.bf16.msra.mxu0 %v16624_v44  ;;  %v8578_v44 = vpop.f32.mrf.mxu0  ;;  %v16189_v50 = vcombine.high %v1673_v39, %v1685_v41  ;;  %v1973_v24 = vld [vmem:[#allocation10 + $0x17b8] sm:$0xff] }
 0x353   :  { %v8368_v1 = vpop.f32.mrf.mxu1  ;;  %8613 = vmatmul.mubr.bf16.vlgmr.msra.gmra.mxu1 %v19348_v15  ;;  %8955 = vmatprep.subr.bf16.mxu0 %v16601_v47  ;;  %v1999_v47 = vld [vmem:[#allocation10 + $0x1888] sm:$0xff] }
 0x354   :  { %v19480_v31 = vadd.f32 %v8368_v1, %v8328_v58  ;;  %8663 = vmatpush1.bf16.msra.mxu1 %v16284_v52  ;;  %8694 = vmatprep.mubr.bf16.mxu1 %v19287_v0  ;;  %v16528_v52 = vcombine.low %v2011_v35, %v2023_v36  ;;  %v16188_v58 = vcombine.low %v1673_v39, %v1685_v41  ;;  %v2311_v35 = vld [vmem:[#allocation10 + $0x2248] sm:$0xff] }
 0x355   :  { %v8370_v54 = vpop.f32.mrf.mxu1  ;;  %8664 = vmatprep.subr.bf16.mxu1 %v16261_v48  ;;  %v16505_v48 = vcombine.high %v1987_v49, %v1999_v47  ;;  %v16504_v1 = vcombine.low %v1987_v49, %v1999_v47  ;;  %v16117_v36 = vcombine.high %v1601_v25, %v1613_v27  ;;  %v16116_v39 = vcombine.low %v1601_v25, %v1613_v27  ;;  %v2275_v41 = vld [vmem:[#allocation10 + $0x2128] sm:$0xff]  ;;  %v1937_v49 = vld [vmem:[#allocation10 + $0x1698] sm:$0xff] }
 0x356   :  { %v19485_v16 = vadd.f32 %v8370_v54, %v8330_v5  ;;  %8956 = vmatpush1.bf16.msra.mxu0 %v16600_v59  ;;  %v2347_v59 = vld [vmem:[#allocation10 + $0x2368] sm:$0xff]  ;;  %v1637_v5 = vld [vmem:[#allocation10 + $0xd38] sm:$0xff] }
 0x357   :  { %v8372_v8 = vpop.f32.mrf.mxu1  ;;  %8957 = vmatprep.subr.bf16.mxu0 %v16577_v4  ;;  %v1625_v4 = vld [vmem:[#allocation10 + $0xcd8] sm:$0xff]  ;;  %v2335_v54 = vld [vmem:[#allocation10 + $0x2308] sm:$0xff] }
 0x358   :  { %8665 = vmatpush1.bf16.msra.mxu1 %v16260_v7  ;;  %v16865_v7 = vcombine.high %v2347_v59, %v2359_v63  ;;  %v16841_v8 = vcombine.high %v2323_v10, %v2335_v54  ;;  %v1949_v47 = vld [vmem:[#allocation10 + $0x16f8] sm:$0xff]  ;;  %v2203_v25 = vld [vmem:[#allocation10 + $0x1ee8] sm:$0xff] }
 0x359   :  { %v8373_v51 = vpop.f32.mrf.mxu1  ;;  %8666 = vmatprep.subr.bf16.mxu1 %v16237_v12  ;;  %v16141_v12 = vcombine.high %v1625_v4, %v1637_v5  ;;  %v2215_v27 = vld [vmem:[#allocation10 + $0x1f48] sm:$0xff] }
 0x35a   :  { %8958 = vmatpush1.bf16.msra.mxu0 %v16576_v19  ;;  %v16864_v19 = vcombine.low %v2347_v59, %v2359_v63  ;;  %v16840_v51 = vcombine.low %v2323_v10, %v2335_v54  ;;  %v1913_v59 = vld [vmem:[#allocation10 + $0x15d8] sm:$0xff] }
 0x35b   :  { %8959 = vmatprep.subr.bf16.mxu0 %v16553_v28  ;;  %v16140_v28 = vcombine.low %v1625_v4, %v1637_v5  ;;  %v1925_v63 = vld [vmem:[#allocation10 + $0x1638] sm:$0xff]  ;;  %v2227_v4 = vld [vmem:[#allocation10 + $0x1fa8] sm:$0xff] }
 0x35c   :  { %8667 = vmatpush1.bf16.msra.mxu1 %v16236_v33  ;;  %v2299_v33 = vld [vmem:[#allocation10 + $0x21e8] sm:$0xff]  ;;  %v1889_v10 = vld [vmem:[#allocation10 + $0x1518] sm:$0xff] }
 0x35d   :  { %8668 = vmatprep.subr.bf16.mxu1 %v16213_v20  ;;  %v1961_v20 = vld [vmem:[#allocation10 + $0x1758] sm:$0xff]  ;;  %v2239_v5 = vld [vmem:[#allocation10 + $0x2008] sm:$0xff] }
 0x35e   :  { %8960 = vmatpush1.bf16.msra.mxu0 %v16552_v38  ;;  %v16817_v38 = vcombine.high %v2299_v33, %v2311_v35  ;;  %v16477_v44 = vcombine.high %v1961_v20, %v1973_v24  ;;  %v1901_v54 = vld [vmem:[#allocation10 + $0x1578] sm:$0xff] }
 0x35f   :  { %8961 = vmatprep.subr.bf16.mxu0 %v16529_v42  ;;  %v2287_v42 = vld [vmem:[#allocation10 + $0x2188] sm:$0xff] }
 0x360   :  { %8669 = vmatpush1.bf16.msra.mxu1 %v16212_v43  ;;  %v16816_v43 = vcombine.low %v2299_v33, %v2311_v35  ;;  %v1865_v33 = vld [vmem:[#allocation10 + $0x1458] sm:$0xff] }
 0x361   :  { %8670 = vmatprep.subr.bf16.mxu1 %v16189_v50  ;;  %v16793_v50 = vcombine.high %v2275_v41, %v2287_v42  ;;  %v1877_v35 = vld [vmem:[#allocation10 + $0x14b8] sm:$0xff] }
 0x362   :  { %8962 = vmatpush1.bf16.msra.mxu0 %v16528_v52  ;;  %v16476_v52 = vcombine.low %v1961_v20, %v1973_v24  ;;  %v2179_v20 = vld [vmem:[#allocation10 + $0x1e28] sm:$0xff] }
 0x363   :  { %8963 = vmatprep.subr.bf16.mxu0 %v16505_v48  ;;  %v16453_v48 = vcombine.high %v1937_v49, %v1949_v47  ;;  %v2191_v24 = vld [vmem:[#allocation10 + $0x1e88] sm:$0xff] }
 0x364   :  { %8671 = vmatpush1.bf16.msra.mxu1 %v16188_v58  ;;  %v16792_v58 = vcombine.low %v2275_v41, %v2287_v42  ;;  %v1841_v41 = vld [vmem:[#allocation10 + $0x1398] sm:$0xff] }
 0x365   :  { %8672 = vmatprep.subr.bf16.mxu1 %v16165_v22  ;;  %v16769_v22 = vcombine.high %v2251_v53, %v2263_v55  ;;  %v1853_v42 = vld [vmem:[#allocation10 + $0x13f8] sm:$0xff] }
 0x366   :  { %8964 = vmatpush1.bf16.msra.mxu0 %v16504_v1  ;;  %v16452_v1 = vcombine.low %v1937_v49, %v1949_v47  ;;  %v1772_v49 = vld [vmem:[#allocation10 + $0x1170] sm:$0xff] }
 0x367   :  { %8965 = vmatprep.subr.bf16.mxu0 %v16865_v7  ;;  %v16429_v7 = vcombine.high %v1913_v59, %v1925_v63  ;;  %v1784_v47 = vld [vmem:[#allocation10 + $0x11d0] sm:$0xff] }
 0x368   :  { %8673 = vmatpush1.bf16.msra.mxu1 %v16164_v9  ;;  %v16768_v9 = vcombine.low %v2251_v53, %v2263_v55  ;;  %v1817_v53 = vld [vmem:[#allocation10 + $0x12d8] sm:$0xff] }
 0x369   :  { %8674 = vmatprep.subr.bf16.mxu1 %v16141_v12  ;;  %v16745_v12 = vcombine.high %v2227_v4, %v2239_v5  ;;  %v1829_v55 = vld [vmem:[#allocation10 + $0x1338] sm:$0xff] }
 0x36a   :  { %8966 = vmatpush2.bf16.msra.mxu0 %v16864_v19  ;;  %v16428_v19 = vcombine.low %v1913_v59, %v1925_v63  ;;  %v1748_v59 = vld [vmem:[#allocation10 + $0x10b0] sm:$0xff] }
 0x36b   :  { %8967 = vmatprep.subr.bf16.mxu0 %v16841_v8  ;;  %v16405_v8 = vcombine.high %v1889_v10, %v1901_v54  ;;  %v1760_v63 = vld [vmem:[#allocation10 + $0x1110] sm:$0xff] }
 0x36c   :  { %8675 = vmatpush1.bf16.msra.mxu1 %v16140_v28  ;;  %v16744_v28 = vcombine.low %v2227_v4, %v2239_v5  ;;  %v1793_v4 = vld [vmem:[#allocation10 + $0x1218] sm:$0xff] }
 0x36d   :  { %8676 = vmatprep.subr.bf16.mxu1 %v16117_v36  ;;  %v16721_v36 = vcombine.high %v2203_v25, %v2215_v27  ;;  %v1805_v5 = vld [vmem:[#allocation10 + $0x1278] sm:$0xff] }
 0x36e   :  { %8968 = vmatpush2.bf16.msra.mxu0 %v16840_v51  ;;  %v16404_v51 = vcombine.low %v1889_v10, %v1901_v54  ;;  %v1724_v10 = vld [vmem:[#allocation10 + $0xff0] sm:$0xff] }
 0x36f   :  { %8969 = vmatprep.subr.bf16.mxu0 %v16817_v38  ;;  %v16381_v38 = vcombine.high %v1865_v33, %v1877_v35  ;;  %v1736_v54 = vld [vmem:[#allocation10 + $0x1050] sm:$0xff] }
 0x370   :  { %8677 = vmatpush1.bf16.msra.mxu1 %v16116_v39  ;;  %v16720_v39 = vcombine.low %v2203_v25, %v2215_v27  ;;  %v1386_v25 = vld [vmem:[#allocation10 + $0x560] sm:$0xff] }
 0x371   :  { %8678 = vmatprep.subr.bf16.mxu1 %v16477_v44  ;;  %v16697_v44 = vcombine.high %v2179_v20, %v2191_v24  ;;  %v1398_v27 = vld [vmem:[#allocation10 + $0x5c0] sm:$0xff] }
 0x372   :  { %8970 = vmatpush2.bf16.msra.mxu0 %v16816_v43  ;;  %v16380_v43 = vcombine.low %v1865_v33, %v1877_v35  ;;  %v16308_v33 = vcombine.low %v1793_v4, %v1805_v5  ;;  %v1700_v35 = vld [vmem:[#allocation10 + $0xf30] sm:$0xff] }
 0x373   :  { %8971 = vmatprep.subr.bf16.mxu0 %v16793_v50  ;;  %v16357_v50 = vcombine.high %v1841_v41, %v1853_v42 }
 0x374   :  { %8679 = vmatpush2.bf16.msra.mxu1 %v16476_v52  ;;  %v16696_v52 = vcombine.low %v2179_v20, %v2191_v24  ;;  %v2387_v20 = vrot.slane %v19467_v14, %v19263_v46  ;;  %v16242_v24 = vcombine.low %v1724_v10, %v1736_v54 }
 0x375   :  { %8680 = vmatprep.subr.bf16.mxu1 %v16453_v48  ;;  %v16291_v48 = vcombine.high %v1772_v49, %v1784_v47 }
 0x376   :  { %8972 = vmatpush2.bf16.msra.mxu0 %v16792_v58  ;;  %v16356_v58 = vcombine.low %v1841_v41, %v1853_v42 }
 0x377   :  { %8973 = vmatprep.subr.bf16.mxu0 %v16769_v22  ;;  %v16333_v22 = vcombine.high %v1817_v53, %v1829_v55 }
 0x378   :  { %8681 = vmatpush2.bf16.msra.mxu1 %v16452_v1  ;;  %v16290_v1 = vcombine.low %v1772_v49, %v1784_v47  ;;  %v1688_v49 = vld [vmem:[#allocation10 + $0xed0] sm:$0xff] }
 0x379   :  { %8682 = vmatprep.subr.bf16.mxu1 %v16429_v7  ;;  %v16267_v7 = vcombine.high %v1748_v59, %v1760_v63 }
 0x37a   :  { %8974 = vmatpush2.bf16.msra.mxu0 %v16768_v9  ;;  %v16332_v9 = vcombine.low %v1817_v53, %v1829_v55  ;;  %v1338_v53 = vld [vmem:[#allocation10 + $0x3e0] sm:$0xff] }
 0x37b   :  { %8975 = vmatprep.subr.bf16.mxu0 %v16745_v12  ;;  %v16309_v12 = vcombine.high %v1793_v4, %v1805_v5  ;;  %v1314_v5 = vld [vmem:[#allocation10 + $0x320] sm:$0xff] }
 0x37c   :  { %8683 = vmatpush2.bf16.msra.mxu1 %v16428_v19  ;;  %v16266_v19 = vcombine.low %v1748_v59, %v1760_v63  ;;  %v1652_v59 = vld [vmem:[#allocation10 + $0xdb0] sm:$0xff] }
 0x37d   :  { %8684 = vmatprep.subr.bf16.mxu1 %v16405_v8  ;;  %v16243_v8 = vcombine.high %v1724_v10, %v1736_v54  ;;  %v1664_v63 = vld [vmem:[#allocation10 + $0xe10] sm:$0xff] }
 0x37e   :  { %8976 = vmatpush2.bf16.msra.mxu0 %v16744_v28  ;;  %v2383_v28 = vrot.slane %v19467_v14, %v19295_v6  ;;  %v1350_v14 = vld [vmem:[#allocation10 + $0x440] sm:$0xff]  ;;  %v16171_v10 = vcombine.high %v1652_v59, %v1664_v63 }
 0x37f   :  { %8977 = vmatprep.subr.bf16.mxu0 %v16721_v36  ;;  %v1712_v36 = vld [vmem:[#allocation10 + $0xf90] sm:$0xff]  ;;  %v15854_v54 = vcombine.low %v1338_v53, %v1350_v14 }
 0x380   :  { %8685 = vmatpush2.bf16.msra.mxu1 %v16404_v51  ;;  %v15903_v51 = vcombine.high %v1386_v25, %v1398_v27  ;;  %v16219_v41 = vcombine.high %v1700_v35, %v1712_v36  ;;  %v8410_v42 = vadd.f32 %v19453_v56, %v2383_v28  ;;  %v1290_v28 = vld [vmem:[#allocation10 + $0x260] sm:$0xff] }
 0x381   :  { %8686 = vmatprep.subr.bf16.mxu1 %v16381_v38  ;;  %v1362_v38 = vld [vmem:[#allocation10 + $0x4a0] sm:$0xff] }
 0x382   :  { %8978 = vmatpush2.bf16.msra.mxu0 %v16720_v39  ;;  %v1374_v39 = vld [vmem:[#allocation10 + $0x500] sm:$0xff] }
 0x383   :  { %8979 = vmatprep.subr.bf16.mxu0 %v16697_v44  ;;  %v15902_v44 = vcombine.low %v1386_v25, %v1398_v27  ;;  %v15879_v47 = vcombine.high %v1362_v38, %v1374_v39  ;;  %v15878_v56 = vcombine.low %v1362_v38, %v1374_v39  ;;  %v1266_v39 = vld [vmem:[#allocation10 + $0x1a0] sm:$0xff] }
 0x384   :  { %8687 = vmatpush2.bf16.msra.mxu1 %v16380_v43  ;;  %v1676_v43 = vld [vmem:[#allocation10 + $0xe70] sm:$0xff] }
 0x385   :  { %8688 = vmatprep.subr.bf16.mxu1 %v16357_v50  ;;  %v8412_v50 = vadd.f32 %v19455_v2, %v2387_v20  ;;  %v15855_v2 = vcombine.high %v1338_v53, %v1350_v14  ;;  %v16194_v4 = vcombine.low %v1676_v43, %v1688_v49  ;;  %v1616_v20 = vld [vmem:[#allocation10 + $0xc90] sm:$0xff]  ;;  %v1254_v53 = vld [vmem:[#allocation10 + $0x140] sm:$0xff] }
 0x386   :  { %8980 = vmatpush2.bf16.msra.mxu0 %v16696_v52  ;;  %v16218_v52 = vcombine.low %v1700_v35, %v1712_v36 }
 0x387   :  { %9031 = vmatprep.subr.bf16.mxu0 %v16291_v48  ;;  %v16195_v48 = vcombine.high %v1676_v43, %v1688_v49  ;;  %v1964_v43 = vld [vmem:[#allocation10 + $0x1770] sm:$0xff] }
 0x388   :  { %8689 = vmatpush2.bf16.msra.mxu1 %v16356_v58  ;;  %v1976_v49 = vld [vmem:[#allocation10 + $0x17d0] sm:$0xff] }
 0x389   :  { %8690 = vmatprep.subr.bf16.mxu1 %v16333_v22  ;;  %8982 = vmatmul.mubr.bf16.vlgmr.msra.gmra.mxu0 %v19348_v15  ;;  %v16483_v14 = vcombine.high %v1964_v43, %v1976_v49 }
 0x38a   :  { %9032 = vmatpush1.bf16.msra.mxu0 %v16290_v1  ;;  %9063 = vmatprep.mubr.bf16.mxu0 %v19287_v0 }
 0x38b   :  { %9033 = vmatprep.subr.bf16.mxu0 %v16267_v7  ;;  %v1326_v7 = vld [vmem:[#allocation10 + $0x380] sm:$0xff] }
 0x38c   :  { %8691 = vmatpush2.bf16.msra.mxu1 %v16332_v9  ;;  %v15831_v27 = vcombine.high %v1314_v5, %v1326_v7  ;;  %v15830_v36 = vcombine.low %v1314_v5, %v1326_v7  ;;  %v1916_v7 = vld [vmem:[#allocation10 + $0x15f0] sm:$0xff] }
 0x38d   :  { %8692 = vmatprep.subr.bf16.mxu1 %v16309_v12  ;;  %v1628_v12 = vld [vmem:[#allocation10 + $0xcf0] sm:$0xff] }
 0x38e   :  { %9034 = vmatpush1.bf16.msra.mxu0 %v16266_v19  ;;  %v1640_v19 = vld [vmem:[#allocation10 + $0xd50] sm:$0xff] }
 0x38f   :  { %9035 = vmatprep.subr.bf16.mxu0 %v16243_v8  ;;  %v16170_v8 = vcombine.low %v1652_v59, %v1664_v63  ;;  %v16147_v35 = vcombine.high %v1628_v12, %v1640_v19  ;;  %v16146_v38 = vcombine.low %v1628_v12, %v1640_v19  ;;  %v16482_v63 = vcombine.low %v1964_v43, %v1976_v49  ;;  %v1578_v12 = vld [vmem:[#allocation10 + $0xb60] sm:$0xff] }
 0x390   :  { %8693 = vmatpush2.bf16.msra.mxu1 %v16308_v33  ;;  %v1302_v33 = vld [vmem:[#allocation10 + $0x2c0] sm:$0xff] }
 0x391   :  { %8744 = vmatprep.subr.bf16.mxu1 %v15903_v51  ;;  %v1604_v51 = vld [vmem:[#allocation10 + $0xc30] sm:$0xff]  ;;  %v1590_v19 = vld [vmem:[#allocation10 + $0xbc0] sm:$0xff] }
 0x392   :  { %9036 = vmatpush1.bf16.msra.mxu0 %v16242_v24  ;;  %v15807_v24 = vcombine.high %v1290_v28, %v1302_v33  ;;  %v1542_v43 = vld [vmem:[#allocation10 + $0xa40] sm:$0xff] }
 0x393   :  { %v8450_v55 = vpop.f32.mrf.mxu1  ;;  %8695 = vmatmul.mubr.bf16.vlgmr.msra.gmra.mxu1 %v19322_v26  ;;  %9037 = vmatprep.subr.bf16.mxu0 %v16219_v41  ;;  %v1278_v41 = vld [vmem:[#allocation10 + $0x200] sm:$0xff] }
 0x394   :  { %v19498_v58 = vadd.f32 %v8450_v55, %v8410_v42  ;;  %8745 = vmatpush1.bf16.msra.mxu1 %v15902_v44  ;;  %8776 = vmatprep.mubr.bf16.mxu1 %v19283_v62  ;;  %v16123_v42 = vcombine.high %v1604_v51, %v1616_v20  ;;  %v15806_v44 = vcombine.low %v1290_v28, %v1302_v33  ;;  %v1904_v28 = vld [vmem:[#allocation10 + $0x1590] sm:$0xff] }
 0x395   :  { %v8452_v22 = vpop.f32.mrf.mxu1  ;;  %8746 = vmatprep.subr.bf16.mxu1 %v15879_v47  ;;  %v15783_v47 = vcombine.high %v1266_v39, %v1278_v41  ;;  %v15782_v55 = vcombine.low %v1266_v39, %v1278_v41  ;;  %v16095_v33 = vcombine.high %v1578_v12, %v1590_v19  ;;  %v1880_v39 = vld [vmem:[#allocation10 + $0x14d0] sm:$0xff] }
 0x396   :  { %v19501_v1 = vadd.f32 %v8452_v22, %v8412_v50  ;;  %9038 = vmatpush1.bf16.msra.mxu0 %v16218_v52  ;;  %v16122_v50 = vcombine.low %v1604_v51, %v1616_v20  ;;  %v1242_v52 = vld [vmem:[#allocation10 + $0xe0] sm:$0xff] }
 0x397   :  { %v8454_v9 = vpop.f32.mrf.mxu1  ;;  %9039 = vmatprep.subr.bf16.mxu0 %v16195_v48  ;;  %v1940_v48 = vld [vmem:[#allocation10 + $0x16b0] sm:$0xff]  ;;  %v15759_v59 = vcombine.high %v1242_v52, %v1254_v53  ;;  %v1218_v22 = vld [vmem:[#allocation10 + $0x20] sm:$0xff]  ;;  %v15758_v5 = vcombine.low %v1242_v52, %v1254_v53 }
 0x398   :  { %20212 = vst [vmem:[#allocation46_spill] sm:$0xff] %v19501_v1  ;;  %8747 = vmatpush1.bf16.msra.mxu1 %v15878_v56  ;;  %v1952_v56 = vld [vmem:[#allocation10 + $0x1710] sm:$0xff]  ;;  %v1566_v51 = vld [vmem:[#allocation10 + $0xb00] sm:$0xff] }
 0x399   :  { %v8455_v25 = vpop.f32.mrf.mxu1  ;;  %8748 = vmatprep.subr.bf16.mxu1 %v15855_v2  ;;  %v1230_v2 = vld [vmem:[#allocation10 + $0x80] sm:$0xff]  ;;  %v1928_v9 = vld [vmem:[#allocation10 + $0x1650] sm:$0xff] }
 0x39a   :  { %9040 = vmatpush1.bf16.msra.mxu0 %v16194_v4  ;;  %v16459_v4 = vcombine.high %v1940_v48, %v1952_v56  ;;  %v16435_v25 = vcombine.high %v1916_v7, %v1928_v9  ;;  %v1856_v52 = vld [vmem:[#allocation10 + $0x1410] sm:$0xff] }
 0x39b   :  { %9041 = vmatprep.subr.bf16.mxu0 %v16171_v10  ;;  %v15735_v10 = vcombine.high %v1218_v22, %v1230_v2 }
 0x39c   :  { %8749 = vmatpush1.bf16.msra.mxu1 %v15854_v54  ;;  %v16458_v54 = vcombine.low %v1940_v48, %v1952_v56  ;;  %v1518_v48 = vld [vmem:[#allocation10 + $0x980] sm:$0xff] }
 0x39d   :  { %8750 = vmatprep.subr.bf16.mxu1 %v15831_v27  ;;  %v15734_v27 = vcombine.low %v1218_v22, %v1230_v2  ;;  %v1832_v22 = vld [vmem:[#allocation10 + $0x1350] sm:$0xff] }
 0x39e   :  { %9042 = vmatpush1.bf16.msra.mxu0 %v16170_v8  ;;  %v1892_v8 = vld [vmem:[#allocation10 + $0x1530] sm:$0xff] }
 0x39f   :  { %9043 = vmatprep.subr.bf16.mxu0 %v16147_v35  ;;  %v16434_v35 = vcombine.low %v1916_v7, %v1928_v9  ;;  %v16411_v20 = vcombine.high %v1892_v8, %v1904_v28  ;;  %v1494_v7 = vld [vmem:[#allocation10 + $0x8c0] sm:$0xff] }
 0x3a0   :  { %8751 = vmatpush1.bf16.msra.mxu1 %v15830_v36  ;;  %v1554_v36 = vld [vmem:[#allocation10 + $0xaa0] sm:$0xff] }
 0x3a1   :  { %8752 = vmatprep.subr.bf16.mxu1 %v15807_v24  ;;  %v16094_v24 = vcombine.low %v1578_v12, %v1590_v19  ;;  %v16071_v41 = vcombine.high %v1554_v36, %v1566_v51  ;;  %v1808_v12 = vld [vmem:[#allocation10 + $0x1290] sm:$0xff] }
 0x3a2   :  { %9044 = vmatpush1.bf16.msra.mxu0 %v16146_v38  ;;  %v1868_v38 = vld [vmem:[#allocation10 + $0x1470] sm:$0xff] }
 0x3a3   :  { %9045 = vmatprep.subr.bf16.mxu0 %v16123_v42  ;;  %v16410_v42 = vcombine.low %v1892_v8, %v1904_v28  ;;  %v16387_v49 = vcombine.high %v1868_v38, %v1880_v39  ;;  %v1470_v8 = vld [vmem:[#allocation10 + $0x800] sm:$0xff] }
 0x3a4   :  { %8753 = vmatpush1.bf16.msra.mxu1 %v15806_v44  ;;  %v1530_v44 = vld [vmem:[#allocation10 + $0x9e0] sm:$0xff] }
 0x3a5   :  { %8754 = vmatprep.subr.bf16.mxu1 %v15783_v47  ;;  %v16070_v47 = vcombine.low %v1554_v36, %v1566_v51  ;;  %v16047_v53 = vcombine.high %v1530_v44, %v1542_v43  ;;  %v1401_v36 = vld [vmem:[#allocation10 + $0x5d8] sm:$0xff] }
 0x3a6   :  { %9046 = vmatpush1.bf16.msra.mxu0 %v16122_v50  ;;  %v1844_v50 = vld [vmem:[#allocation10 + $0x13b0] sm:$0xff] }
 0x3a7   :  { %9047 = vmatprep.subr.bf16.mxu0 %v16483_v14  ;;  %v16386_v14 = vcombine.low %v1868_v38, %v1880_v39  ;;  %v16363_v56 = vcombine.high %v1844_v50, %v1856_v52  ;;  %v1446_v38 = vld [vmem:[#allocation10 + $0x740] sm:$0xff] }
 0x3a8   :  { %8755 = vmatpush1.bf16.msra.mxu1 %v15782_v55  ;;  %v1506_v55 = vld [vmem:[#allocation10 + $0x920] sm:$0xff] }
 0x3a9   :  { %8756 = vmatprep.subr.bf16.mxu1 %v15759_v59  ;;  %v16046_v59 = vcombine.low %v1530_v44, %v1542_v43  ;;  %v16023_v2 = vcombine.high %v1506_v55, %v1518_v48  ;;  %v1377_v44 = vld [vmem:[#allocation10 + $0x518] sm:$0xff] }
 0x3aa   :  { %9048 = vmatpush2.bf16.msra.mxu0 %v16482_v63  ;;  %v1820_v63 = vld [vmem:[#allocation10 + $0x12f0] sm:$0xff] }
 0x3ab   :  { %9049 = vmatprep.subr.bf16.mxu0 %v16459_v4  ;;  %v16362_v4 = vcombine.low %v1844_v50, %v1856_v52  ;;  %v16339_v9 = vcombine.high %v1820_v63, %v1832_v22  ;;  %v1422_v50 = vld [vmem:[#allocation10 + $0x680] sm:$0xff] }
 0x3ac   :  { %8757 = vmatpush1.bf16.msra.mxu1 %v15758_v5  ;;  %v1482_v5 = vld [vmem:[#allocation10 + $0x860] sm:$0xff] }
 0x3ad   :  { %8758 = vmatprep.subr.bf16.mxu1 %v15735_v10  ;;  %v16022_v10 = vcombine.low %v1506_v55, %v1518_v48  ;;  %v15999_v19 = vcombine.high %v1482_v5, %v1494_v7  ;;  %v1353_v55 = vld [vmem:[#allocation10 + $0x458] sm:$0xff] }
 0x3ae   :  { %9050 = vmatpush2.bf16.msra.mxu0 %v16458_v54  ;;  %v1796_v54 = vld [vmem:[#allocation10 + $0x1230] sm:$0xff] }
 0x3af   :  { %9051 = vmatprep.subr.bf16.mxu0 %v16435_v25  ;;  %v16338_v25 = vcombine.low %v1820_v63, %v1832_v22  ;;  %v16315_v28 = vcombine.high %v1796_v54, %v1808_v12  ;;  %v2166_v63 = vld [vmem:[#allocation10 + $0x1dc0] sm:$0xff] }
 0x3b0   :  { %8759 = vmatpush1.bf16.msra.mxu1 %v15734_v27  ;;  %v1458_v27 = vld [vmem:[#allocation10 + $0x7a0] sm:$0xff] }
 0x3b1   :  { %8760 = vmatprep.subr.bf16.mxu1 %v16095_v33  ;;  %v15998_v33 = vcombine.low %v1482_v5, %v1494_v7  ;;  %v15975_v51 = vcombine.high %v1458_v27, %v1470_v8  ;;  %v1329_v5 = vld [vmem:[#allocation10 + $0x398] sm:$0xff]  ;;  %v19505_v7 = vpop.f32.mrf.mxu0 }
 0x3b2   :  { %9052 = vmatpush2.bf16.msra.mxu0 %v16434_v35  ;;  %v1389_v35 = vld [vmem:[#allocation10 + $0x578] sm:$0xff] }
 0x3b3   :  { %9053 = vmatprep.subr.bf16.mxu0 %v16411_v20  ;;  %v16314_v20 = vcombine.low %v1796_v54, %v1808_v12  ;;  %v15909_v39 = vcombine.high %v1389_v35, %v1401_v36  ;;  %v2130_v54 = vld [vmem:[#allocation10 + $0x1ca0] sm:$0xff] }
 0x3b4   :  { %8761 = vmatpush2.bf16.msra.mxu1 %v16094_v24  ;;  %v1434_v24 = vld [vmem:[#allocation10 + $0x6e0] sm:$0xff] }
 0x3b5   :  { %8762 = vmatprep.subr.bf16.mxu1 %v16071_v41  ;;  %v15974_v41 = vcombine.low %v1458_v27, %v1470_v8  ;;  %v15951_v43 = vcombine.high %v1434_v24, %v1446_v38  ;;  %v2142_v12 = vld [vmem:[#allocation10 + $0x1d00] sm:$0xff]  ;;  %v1293_v8 = vld [vmem:[#allocation10 + $0x278] sm:$0xff] }
 0x3b6   :  { %9054 = vmatpush2.bf16.msra.mxu0 %v16410_v42  ;;  %v1365_v42 = vld [vmem:[#allocation10 + $0x4b8] sm:$0xff] }
 0x3b7   :  { %9055 = vmatprep.subr.bf16.mxu0 %v16387_v49  ;;  %v15908_v49 = vcombine.low %v1389_v35, %v1401_v36  ;;  %v15885_v52 = vcombine.high %v1365_v42, %v1377_v44  ;;  %v16647_v35 = vcombine.high %v2130_v54, %v2142_v12 }
 0x3b8   :  { %8763 = vmatpush2.bf16.msra.mxu1 %v16070_v47  ;;  %v1410_v47 = vld [vmem:[#allocation10 + $0x620] sm:$0xff] }
 0x3b9   :  { %8764 = vmatprep.subr.bf16.mxu1 %v16047_v53  ;;  %v15950_v53 = vcombine.low %v1434_v24, %v1446_v38  ;;  %v15927_v48 = vcombine.high %v1410_v47, %v1422_v50 }
 0x3ba   :  { %9056 = vmatpush2.bf16.msra.mxu0 %v16386_v14  ;;  %v1341_v14 = vld [vmem:[#allocation10 + $0x3f8] sm:$0xff] }
 0x3bb   :  { %9057 = vmatprep.subr.bf16.mxu0 %v16363_v56  ;;  %v15884_v56 = vcombine.low %v1365_v42, %v1377_v44  ;;  %v15861_v22 = vcombine.high %v1341_v14, %v1353_v55  ;;  %v1269_v42 = vld [vmem:[#allocation10 + $0x1b8] sm:$0xff] }
 0x3bc   :  { %8765 = vmatpush2.bf16.msra.mxu1 %v16046_v59  ;;  %v2154_v59 = vld [vmem:[#allocation10 + $0x1d60] sm:$0xff]  ;;  %v1281_v44 = vld [vmem:[#allocation10 + $0x218] sm:$0xff] }
 0x3bd   :  { %8766 = vmatprep.subr.bf16.mxu1 %v16023_v2  ;;  %v15926_v2 = vcombine.low %v1410_v47, %v1422_v50  ;;  %v16670_v27 = vcombine.low %v2154_v59, %v2166_v63 }
 0x3be   :  { %9058 = vmatpush2.bf16.msra.mxu0 %v16362_v4  ;;  %v1317_v4 = vld [vmem:[#allocation10 + $0x338] sm:$0xff] }
 0x3bf   :  { %9059 = vmatprep.subr.bf16.mxu0 %v16339_v9  ;;  %v16671_v9 = vcombine.high %v2154_v59, %v2166_v63  ;;  %v15836_v36 = vcombine.low %v1317_v4, %v1329_v5  ;;  %v1245_v59 = vld [vmem:[#allocation10 + $0xf8] sm:$0xff] }
 0x3c0   :  { %8767 = vmatpush2.bf16.msra.mxu1 %v16022_v10  ;;  %v15860_v10 = vcombine.low %v1341_v14, %v1353_v55  ;;  %v15789_v55 = vcombine.high %v1269_v42, %v1281_v44  ;;  %v1257_v63 = vld [vmem:[#allocation10 + $0x158] sm:$0xff] }
 0x3c1   :  { %8768 = vmatprep.subr.bf16.mxu1 %v15999_v19  ;;  %v19507_v19 = vpop.f32.mrf.mxu0 }
 0x3c2   :  { %9060 = vmatpush2.bf16.msra.mxu0 %v16338_v25  ;;  %v15837_v25 = vcombine.high %v1317_v4, %v1329_v5  ;;  %v15788_v5 = vcombine.low %v1269_v42, %v1281_v44  ;;  %v2010_v44 = vld [vmem:[#allocation10 + $0x18e0] sm:$0xff] }
 0x3c3   :  { %9061 = vmatprep.subr.bf16.mxu0 %v16315_v28  ;;  %v1305_v28 = vld [vmem:[#allocation10 + $0x2d8] sm:$0xff] }
 0x3c4   :  { %8769 = vmatpush2.bf16.msra.mxu1 %v15998_v33  ;;  %v8659_v33 = vpop.f32.mrf.mxu0  ;;  %v15812_v50 = vcombine.low %v1293_v8, %v1305_v28 }
 0x3c5   :  { %8770 = vmatprep.subr.bf16.mxu1 %v15975_v51  ;;  %v2106_v51 = vld [vmem:[#allocation10 + $0x1be0] sm:$0xff]  ;;  %v15764_v33 = vcombine.low %v1245_v59, %v1257_v63 }
 0x3c6   :  { %9062 = vmatpush2.bf16.msra.mxu0 %v16314_v20  ;;  %v2118_v20 = vld [vmem:[#allocation10 + $0x1c40] sm:$0xff]  ;;  %v8660_v24 = vpop.f32.mrf.mxu0 }
 0x3c7   :  { %9113 = vmatprep.subr.bf16.mxu0 %v15909_v39  ;;  %v15813_v39 = vcombine.high %v1293_v8, %v1305_v28  ;;  %v1233_v8 = vld [vmem:[#allocation10 + $0x98] sm:$0xff] }
 0x3c8   :  { %8771 = vmatpush2.bf16.msra.mxu1 %v15974_v41  ;;  %v16646_v41 = vcombine.low %v2130_v54, %v2142_v12  ;;  %v19515_v47 = vpop.f32.mrf.mxu0  ;;  %v15765_v54 = vcombine.high %v1245_v59, %v1257_v63  ;;  %v1581_v24 = vld [vmem:[#allocation10 + $0xb78] sm:$0xff]  ;;  %v1986_v59 = vld [vmem:[#allocation10 + $0x1820] sm:$0xff] }
 0x3c9   :  { %8772 = vmatprep.subr.bf16.mxu1 %v15951_v43  ;;  %9064 = vmatmul.mubr.bf16.vlgmr.msra.gmra.mxu0 %v19322_v26  ;;  %v1998_v63 = vld [vmem:[#allocation10 + $0x1880] sm:$0xff] }
 0x3ca   :  { %9114 = vmatpush1.bf16.msra.mxu0 %v15908_v49  ;;  %9145 = vmatprep.mubr.bf16.mxu0 %v19283_v62  ;;  %v16623_v49 = vcombine.high %v2106_v51, %v2118_v20 }
 0x3cb   :  { %9115 = vmatprep.subr.bf16.mxu0 %v15885_v52  ;;  %v2082_v52 = vld [vmem:[#allocation10 + $0x1b20] sm:$0xff] }
 0x3cc   :  { %8773 = vmatpush2.bf16.msra.mxu1 %v15950_v53  ;;  %v2094_v53 = vld [vmem:[#allocation10 + $0x1b80] sm:$0xff] }
 0x3cd   :  { %8774 = vmatprep.subr.bf16.mxu1 %v15927_v48  ;;  %v19517_v48 = vpop.f32.mrf.mxu0 }
 0x3ce   :  { %9116 = vmatpush1.bf16.msra.mxu0 %v15884_v56  ;;  %v16622_v56 = vcombine.low %v2106_v51, %v2118_v20 }
 0x3cf   :  { %9117 = vmatprep.subr.bf16.mxu0 %v15861_v22  ;;  %v8741_v4 = vpop.f32.mrf.mxu0 }
 0x3d0   :  { %8775 = vmatpush2.bf16.msra.mxu1 %v15926_v2  ;;  %v16599_v2 = vcombine.high %v2082_v52, %v2094_v53  ;;  %v1533_v4 = vld [vmem:[#allocation10 + $0x9f8] sm:$0xff] }
 0x3d1   :  { %8826 = vmatprep.subr.bf16.mxu1 %v16671_v9  ;;  %v2058_v9 = vld [vmem:[#allocation10 + $0x1a60] sm:$0xff]  ;;  %v8742_v12 = vpop.f32.mrf.mxu0 }
 0x3d2   :  { %9118 = vmatpush1.bf16.msra.mxu0 %v15860_v10  ;;  %v2070_v10 = vld [vmem:[#allocation10 + $0x1ac0] sm:$0xff] }
 0x3d3   :  { %v19509_v38 = vpop.f32.mrf.mxu1  ;;  %8777 = vmatmul.mubr.bf16.vlgmr.msra.gmra.mxu1 %v19316_v23  ;;  %9119 = vmatprep.subr.bf16.mxu0 %v15837_v25  ;;  %v16598_v25 = vcombine.low %v2082_v52, %v2094_v53  ;;  %v16575_v28 = vcombine.high %v2058_v9, %v2070_v10  ;;  %v16574_v20 = vcombine.low %v2058_v9, %v2070_v10  ;;  %v1557_v53 = vld [vmem:[#allocation10 + $0xab8] sm:$0xff]  ;;  %v2358_v12 = vld [vmem:[#allocation10 + $0x23c0] sm:$0xff] }
 0x3d4   :  { %8827 = vmatpush1.bf16.msra.mxu1 %v16670_v27  ;;  %8858 = vmatprep.mubr.bf16.mxu1 %v19333_v32  ;;  %v1221_v27 = vld [vmem:[#allocation10 + $0x38] sm:$0xff]  ;;  %v16503_v9 = vcombine.high %v1986_v59, %v1998_v63 }
 0x3d5   :  { %v19513_v43 = vpop.f32.mrf.mxu1  ;;  %8828 = vmatprep.subr.bf16.mxu1 %v16647_v35  ;;  %v2034_v35 = vld [vmem:[#allocation10 + $0x19a0] sm:$0xff]  ;;  %v15741_v51 = vcombine.high %v1221_v27, %v1233_v8  ;;  %v15740_v42 = vcombine.low %v1221_v27, %v1233_v8  ;;  %v16502_v27 = vcombine.low %v1986_v59, %v1998_v63  ;;  %v1509_v8 = vld [vmem:[#allocation10 + $0x938] sm:$0xff] }
 0x3d6   :  { %9120 = vmatpush1.bf16.msra.mxu0 %v15836_v36  ;;  %v2046_v36 = vld [vmem:[#allocation10 + $0x1a00] sm:$0xff] }
 0x3d7   :  { %v8536_v14 = vpop.f32.mrf.mxu1  ;;  %9121 = vmatprep.subr.bf16.mxu0 %v15813_v39  ;;  %v1593_v39 = vld [vmem:[#allocation10 + $0xbd8] sm:$0xff]  ;;  %v16550_v52 = vcombine.low %v2034_v35, %v2046_v36  ;;  %v2274_v63 = vld [vmem:[#allocation10 + $0x2120] sm:$0xff] }
 0x3d8   :  { %8829 = vmatpush1.bf16.msra.mxu1 %v16646_v41  ;;  %v16551_v41 = vcombine.high %v2034_v35, %v2046_v36  ;;  %v1569_v14 = vld [vmem:[#allocation10 + $0xb18] sm:$0xff]  ;;  %v2322_v36 = vld [vmem:[#allocation10 + $0x22a0] sm:$0xff] }
 0x3d9   :  { %v8537_v22 = vpop.f32.mrf.mxu1  ;;  %8830 = vmatprep.subr.bf16.mxu1 %v16623_v49  ;;  %v2022_v49 = vld [vmem:[#allocation10 + $0x1940] sm:$0xff]  ;;  %v16076_v10 = vcombine.low %v1557_v53, %v1569_v14 }
 0x3da   :  { %9122 = vmatpush1.bf16.msra.mxu0 %v15812_v50  ;;  %v16101_v50 = vcombine.high %v1581_v24, %v1593_v39  ;;  %v16077_v22 = vcombine.high %v1557_v53, %v1569_v14  ;;  %v1461_v14 = vld [vmem:[#allocation10 + $0x7b8] sm:$0xff] }
 0x3db   :  { %9123 = vmatprep.subr.bf16.mxu0 %v15789_v55  ;;  %v16527_v55 = vcombine.high %v2010_v44, %v2022_v49 }
 0x3dc   :  { %8831 = vmatpush1.bf16.msra.mxu1 %v16622_v56  ;;  %v16100_v56 = vcombine.low %v1581_v24, %v1593_v39  ;;  %v1485_v39 = vld [vmem:[#allocation10 + $0x878] sm:$0xff] }
 0x3dd   :  { %8832 = vmatprep.subr.bf16.mxu1 %v16599_v2  ;;  %v16526_v2 = vcombine.low %v2010_v44, %v2022_v49  ;;  %v2298_v49 = vld [vmem:[#allocation10 + $0x21e0] sm:$0xff] }
 0x3de   :  { %9124 = vmatpush1.bf16.msra.mxu0 %v15788_v5  ;;  %v1545_v5 = vld [vmem:[#allocation10 + $0xa58] sm:$0xff] }
 0x3df   :  { %9125 = vmatprep.subr.bf16.mxu0 %v15765_v54  ;;  %v2346_v54 = vld [vmem:[#allocation10 + $0x2360] sm:$0xff]  ;;  %v16052_v35 = vcombine.low %v1533_v4, %v1545_v5 }
 0x3e0   :  { %8833 = vmatpush1.bf16.msra.mxu1 %v16598_v25  ;;  %v16053_v25 = vcombine.high %v1533_v4, %v1545_v5  ;;  %v16862_v24 = vcombine.low %v2346_v54, %v2358_v12  ;;  %v1437_v5 = vld [vmem:[#allocation10 + $0x6f8] sm:$0xff] }
 0x3e1   :  { %8834 = vmatprep.subr.bf16.mxu1 %v16575_v28  ;;  %v1521_v28 = vld [vmem:[#allocation10 + $0x998] sm:$0xff] }
 0x3e2   :  { %9126 = vmatpush1.bf16.msra.mxu0 %v15764_v33  ;;  %v16863_v33 = vcombine.high %v2346_v54, %v2358_v12  ;;  %v16028_v44 = vcombine.low %v1509_v8, %v1521_v28  ;;  %v2250_v12 = vld [vmem:[#allocation10 + $0x2060] sm:$0xff] }
 0x3e3   :  { %9127 = vmatprep.subr.bf16.mxu0 %v15741_v51  ;;  %v2334_v51 = vld [vmem:[#allocation10 + $0x2300] sm:$0xff] }
 0x3e4   :  { %8835 = vmatpush1.bf16.msra.mxu1 %v16574_v20  ;;  %v16029_v20 = vcombine.high %v1509_v8, %v1521_v28  ;;  %v16838_v53 = vcombine.low %v2322_v36, %v2334_v51  ;;  %v1413_v28 = vld [vmem:[#allocation10 + $0x638] sm:$0xff] }
 0x3e5   :  { %8836 = vmatprep.subr.bf16.mxu1 %v16551_v41  ;;  %v1497_v41 = vld [vmem:[#allocation10 + $0x8d8] sm:$0xff] }
 0x3e6   :  { %9128 = vmatpush1.bf16.msra.mxu0 %v15740_v42  ;;  %v16839_v42 = vcombine.high %v2322_v36, %v2334_v51  ;;  %v16004_v59 = vcombine.low %v1485_v39, %v1497_v41  ;;  %v2226_v51 = vld [vmem:[#allocation10 + $0x1fa0] sm:$0xff] }
 0x3e7   :  { %9129 = vmatprep.subr.bf16.mxu0 %v16101_v50  ;;  %v2310_v50 = vld [vmem:[#allocation10 + $0x2240] sm:$0xff] }
 0x3e8   :  { %8837 = vmatpush1.bf16.msra.mxu1 %v16550_v52  ;;  %v16005_v52 = vcombine.high %v1485_v39, %v1497_v41  ;;  %v16814_v4 = vcombine.low %v2298_v49, %v2310_v50  ;;  %v2157_v41 = vld [vmem:[#allocation10 + $0x1d78] sm:$0xff] }
 0x3e9   :  { %8838 = vmatprep.subr.bf16.mxu1 %v16527_v55  ;;  %v1473_v55 = vld [vmem:[#allocation10 + $0x818] sm:$0xff] }
 0x3ea   :  { %9130 = vmatpush2.bf16.msra.mxu0 %v16100_v56  ;;  %v16815_v56 = vcombine.high %v2298_v49, %v2310_v50  ;;  %v15980_v54 = vcombine.low %v1461_v14, %v1473_v55  ;;  %v2202_v50 = vld [vmem:[#allocation10 + $0x1ee0] sm:$0xff] }
 0x3eb   :  { %9131 = vmatprep.subr.bf16.mxu0 %v16077_v22  ;;  %v2286_v22 = vld [vmem:[#allocation10 + $0x2180] sm:$0xff] }
 0x3ec   :  { %8839 = vmatpush1.bf16.msra.mxu1 %v16526_v2  ;;  %v15981_v2 = vcombine.high %v1461_v14, %v1473_v55  ;;  %v16790_v8 = vcombine.low %v2274_v63, %v2286_v22  ;;  %v2133_v55 = vld [vmem:[#allocation10 + $0x1cb8] sm:$0xff] }
 0x3ed   :  { %8840 = vmatprep.subr.bf16.mxu1 %v16503_v9  ;;  %v1449_v9 = vld [vmem:[#allocation10 + $0x758] sm:$0xff] }
 0x3ee   :  { %9132 = vmatpush2.bf16.msra.mxu0 %v16076_v10  ;;  %v16791_v10 = vcombine.high %v2274_v63, %v2286_v22  ;;  %v15956_v36 = vcombine.low %v1437_v5, %v1449_v9  ;;  %v2178_v22 = vld [vmem:[#allocation10 + $0x1e20] sm:$0xff] }
 0x3ef   :  { %9133 = vmatprep.subr.bf16.mxu0 %v16053_v25  ;;  %v2262_v25 = vld [vmem:[#allocation10 + $0x20c0] sm:$0xff] }
 0x3f0   :  { %8841 = vmatpush1.bf16.msra.mxu1 %v16502_v27  ;;  %v15957_v27 = vcombine.high %v1437_v5, %v1449_v9  ;;  %v16766_v39 = vcombine.low %v2250_v12, %v2262_v25  ;;  %v2109_v9 = vld [vmem:[#allocation10 + $0x1bf8] sm:$0xff] }
 0x3f1   :  { %8842 = vmatprep.subr.bf16.mxu1 %v16863_v33  ;;  %v1425_v33 = vld [vmem:[#allocation10 + $0x698] sm:$0xff] }
 0x3f2   :  { %9134 = vmatpush2.bf16.msra.mxu0 %v16052_v35  ;;  %v16767_v35 = vcombine.high %v2250_v12, %v2262_v25  ;;  %v15932_v49 = vcombine.low %v1413_v28, %v1425_v33  ;;  %v19520_v12 = vld [vmem:[#allocation11] sm:$0xff] }
 0x3f3   :  { %9135 = vmatprep.subr.bf16.mxu0 %v16029_v20  ;;  %v2238_v20 = vld [vmem:[#allocation10 + $0x2000] sm:$0xff]  ;;  %v2391_v25 = vrot.slane %v19520_v12, %v19337_v61 }
 0x3f4   :  { %8843 = vmatpush2.bf16.msra.mxu1 %v16862_v24  ;;  %v15933_v24 = vcombine.high %v1413_v28, %v1425_v33  ;;  %v16742_v14 = vcombine.low %v2226_v51, %v2238_v20  ;;  %v1783_v28 = vld [vmem:[#allocation10 + $0x11c8] sm:$0xff] }
 0x3f5   :  { %8844 = vmatprep.subr.bf16.mxu1 %v16839_v42  ;;  %v2169_v42 = vld [vmem:[#allocation10 + $0x1dd8] sm:$0xff] }
 0x3f6   :  { %9136 = vmatpush2.bf16.msra.mxu0 %v16028_v44  ;;  %v16743_v44 = vcombine.high %v2226_v51, %v2238_v20  ;;  %v16676_v63 = vcombine.low %v2157_v41, %v2169_v42  ;;  %v2085_v51 = vld [vmem:[#allocation10 + $0x1b38] sm:$0xff] }
 0x3f7   :  { %9137 = vmatprep.subr.bf16.mxu0 %v16005_v52  ;;  %v2214_v52 = vld [vmem:[#allocation10 + $0x1f40] sm:$0xff]  ;;  %v2097_v20 = vld [vmem:[#allocation10 + $0x1b98] sm:$0xff] }
 0x3f8   :  { %8845 = vmatpush2.bf16.msra.mxu1 %v16838_v53  ;;  %v16677_v53 = vcombine.high %v2157_v41, %v2169_v42  ;;  %v16718_v5 = vcombine.low %v2202_v50, %v2214_v52  ;;  %v1747_v42 = vld [vmem:[#allocation10 + $0x10a8] sm:$0xff] }
 0x3f9   :  { %8846 = vmatprep.subr.bf16.mxu1 %v16815_v56  ;;  %v2145_v56 = vld [vmem:[#allocation10 + $0x1d18] sm:$0xff] }
 0x3fa   :  { %9138 = vmatpush2.bf16.msra.mxu0 %v16004_v59  ;;  %v16719_v59 = vcombine.high %v2202_v50, %v2214_v52 }
 0x3fb   :  { %9139 = vmatprep.subr.bf16.mxu0 %v15981_v2  ;;  %v2190_v2 = vld [vmem:[#allocation10 + $0x1e80] sm:$0xff] }
 0x3fc   :  { %8847 = vmatpush2.bf16.msra.mxu1 %v16814_v4  ;;  %v16653_v4 = vcombine.high %v2133_v55, %v2145_v56 }
 0x3fd   :  { %8848 = vmatprep.subr.bf16.mxu1 %v16791_v10  ;;  %v2121_v10 = vld [vmem:[#allocation10 + $0x1c58] sm:$0xff] }
 0x3fe   :  { %9140 = vmatpush2.bf16.msra.mxu0 %v15980_v54  ;;  %v16695_v54 = vcombine.high %v2178_v22, %v2190_v2  ;;  %v16629_v33 = vcombine.high %v2109_v9, %v2121_v10  ;;  %v16628_v41 = vcombine.low %v2109_v9, %v2121_v10  ;;  %v2037_v9 = vld [vmem:[#allocation10 + $0x19b8] sm:$0xff] }
 0x3ff   :  { %9141 = vmatprep.subr.bf16.mxu0 %v15957_v27  ;;  %v16652_v27 = vcombine.low %v2133_v55, %v2145_v56  ;;  %v2049_v10 = vld [vmem:[#allocation10 + $0x1a18] sm:$0xff] }
 0x400   :  { %8849 = vmatpush2.bf16.msra.mxu1 %v16790_v8  ;;  %v1771_v8 = vld [vmem:[#allocation10 + $0x1168] sm:$0xff] }
 0x401   :  { %8850 = vmatprep.subr.bf16.mxu1 %v16767_v35  ;;  %v2395_v35 = vrot.slane %v19520_v12, %v19310_v18  ;;  %v16288_v52 = vcombine.low %v1771_v8, %v1783_v28 }
 0x402   :  { %9142 = vmatpush2.bf16.msra.mxu0 %v15956_v36  ;;  %v16694_v36 = vcombine.low %v2178_v22, %v2190_v2 }
 0x403   :  { %9143 = vmatprep.subr.bf16.mxu0 %v15933_v24  ;;  %v16289_v24 = vcombine.high %v1771_v8, %v1783_v28  ;;  %v8535_v50 = vadd.f32 %v19513_v43, %v2395_v35  ;;  %v1699_v28 = vld [vmem:[#allocation10 + $0xf28] sm:$0xff]  ;;  %v16557_v35 = vcombine.high %v2037_v9, %v2049_v10 }
 0x404   :  { %8851 = vmatpush2.bf16.msra.mxu1 %v16766_v39  ;;  %v8533_v39 = vadd.f32 %v19509_v38, %v2391_v25  ;;  %v1735_v38 = vld [vmem:[#allocation10 + $0x1048] sm:$0xff]  ;;  %v19535_v25 = vpop.f32.mrf.mxu0 }
 0x405   :  { %8852 = vmatprep.subr.bf16.mxu1 %v16743_v44  ;;  %v1759_v44 = vld [vmem:[#allocation10 + $0x1108] sm:$0xff] }
 0x406   :  { %9144 = vmatpush2.bf16.msra.mxu0 %v15932_v49  ;;  %v16605_v49 = vcombine.high %v2085_v51, %v2097_v20  ;;  %v16265_v55 = vcombine.high %v1747_v42, %v1759_v44  ;;  %v8574_v56 = vadd.f32 %v19483_v13, %v8533_v39 }
 0x407   :  { %9195 = vmatprep.subr.bf16.mxu0 %v16677_v53  ;;  %v2061_v53 = vld [vmem:[#allocation10 + $0x1a78] sm:$0xff] }
 0x408   :  { %8853 = vmatpush2.bf16.msra.mxu1 %v16742_v14  ;;  %v2073_v14 = vld [vmem:[#allocation10 + $0x1ad8] sm:$0xff] }
 0x409   :  { %8854 = vmatprep.subr.bf16.mxu1 %v16719_v59  ;;  %9146 = vmatmul.mubr.bf16.vlgmr.msra.gmra.mxu0 %v19316_v23  ;;  %v16604_v59 = vcombine.low %v2085_v51, %v2097_v20  ;;  %v16581_v2 = vcombine.high %v2061_v53, %v2073_v14  ;;  %v16580_v8 = vcombine.low %v2061_v53, %v2073_v14  ;;  %v2013_v20 = vld [vmem:[#allocation10 + $0x18f8] sm:$0xff] }
 0x40a   :  { %9196 = vmatpush1.bf16.msra.mxu0 %v16676_v63  ;;  %9227 = vmatprep.mubr.bf16.mxu0 %v19333_v32  ;;  %v1723_v63 = vld [vmem:[#allocation10 + $0xfe8] sm:$0xff] }
 0x40b   :  { %9197 = vmatprep.subr.bf16.mxu0 %v16653_v4  ;;  %v8576_v4 = vadd.f32 %v19487_v30, %v8535_v50  ;;  %v16240_v51 = vcombine.low %v1723_v63, %v1735_v38  ;;  %v1687_v50 = vld [vmem:[#allocation10 + $0xec8] sm:$0xff] }
 0x40c   :  { %8855 = vmatpush2.bf16.msra.mxu1 %v16718_v5  ;;  %v16264_v5 = vcombine.low %v1747_v42, %v1759_v44  ;;  %v16556_v44 = vcombine.low %v2037_v9, %v2049_v10  ;;  %v2361_v9 = vld [vmem:[#allocation10 + $0x23d8] sm:$0xff] }
 0x40d   :  { %8856 = vmatprep.subr.bf16.mxu1 %v16695_v54  ;;  %v16241_v54 = vcombine.high %v1723_v63, %v1735_v38  ;;  %v1651_v38 = vld [vmem:[#allocation10 + $0xda8] sm:$0xff] }
 0x40e   :  { %9198 = vmatpush1.bf16.msra.mxu0 %v16652_v27 }
 0x40f   :  { %9199 = vmatprep.subr.bf16.mxu0 %v16629_v33  ;;  %v1711_v33 = vld [vmem:[#allocation10 + $0xf88] sm:$0xff] }
 0x410   :  { %8857 = vmatpush2.bf16.msra.mxu1 %v16694_v36  ;;  %v19539_v36 = vpop.f32.mrf.mxu0  ;;  %v16216_v14 = vcombine.low %v1699_v28, %v1711_v33 }
 0x411   :  { %8908 = vmatprep.subr.bf16.mxu1 %v16289_v24  ;;  %v2025_v24 = vld [vmem:[#allocation10 + $0x1958] sm:$0xff] }
 0x412   :  { %9200 = vmatpush1.bf16.msra.mxu0 %v16628_v41  ;;  %v16217_v41 = vcombine.high %v1699_v28, %v1711_v33  ;;  %v8823_v42 = vpop.f32.mrf.mxu0  ;;  %v16532_v63 = vcombine.low %v2013_v20, %v2025_v24 }
 0x413   :  { %v8614_v22 = vpop.f32.mrf.mxu1  ;;  %8859 = vmatmul.mubr.bf16.vlgmr.msra.gmra.mxu1 %v19348_v15  ;;  %9201 = vmatprep.subr.bf16.mxu0 %v16605_v49  ;;  %v1675_v49 = vld [vmem:[#allocation10 + $0xe68] sm:$0xff] }
 0x414   :  { %v19532_v43 = vadd.f32 %v8614_v22, %v8574_v56  ;;  %8909 = vmatpush1.bf16.msra.mxu1 %v16288_v52  ;;  %8940 = vmatprep.mubr.bf16.mxu1 %v19287_v0  ;;  %v16533_v52 = vcombine.high %v2013_v20, %v2025_v24  ;;  %v8824_v53 = vpop.f32.mrf.mxu0  ;;  %v2001_v56 = vld [vmem:[#allocation10 + $0x1898] sm:$0xff]  ;;  %v1663_v22 = vld [vmem:[#allocation10 + $0xe08] sm:$0xff] }
 0x415   :  { %v8616_v13 = vpop.f32.mrf.mxu1  ;;  %8910 = vmatprep.subr.bf16.mxu1 %v16265_v55  ;;  %v1989_v55 = vld [vmem:[#allocation10 + $0x1838] sm:$0xff]  ;;  %v16169_v10 = vcombine.high %v1651_v38, %v1663_v22  ;;  %v16168_v33 = vcombine.low %v1651_v38, %v1663_v22  ;;  %v1603_v24 = vld [vmem:[#allocation10 + $0xc28] sm:$0xff] }
 0x416   :  { %v19537_v27 = vadd.f32 %v8616_v13, %v8576_v4  ;;  %9202 = vmatpush1.bf16.msra.mxu0 %v16604_v59  ;;  %v16193_v59 = vcombine.high %v1675_v49, %v1687_v50  ;;  %v16192_v4 = vcombine.low %v1675_v49, %v1687_v50  ;;  %v16508_v13 = vcombine.low %v1989_v55, %v2001_v56  ;;  %v2313_v49 = vld [vmem:[#allocation10 + $0x2258] sm:$0xff]  ;;  %v1963_v53 = vld [vmem:[#allocation10 + $0x1768] sm:$0xff] }
 0x417   :  { %v8618_v30 = vpop.f32.mrf.mxu1  ;;  %9203 = vmatprep.subr.bf16.mxu0 %v16581_v2  ;;  %v16509_v2 = vcombine.high %v1989_v55, %v2001_v56 }
 0x418   :  { %8911 = vmatpush1.bf16.msra.mxu1 %v16264_v5  ;;  %v2349_v5 = vld [vmem:[#allocation10 + $0x2378] sm:$0xff] }
 0x419   :  { %v8619_v39 = vpop.f32.mrf.mxu1  ;;  %8912 = vmatprep.subr.bf16.mxu1 %v16241_v54  ;;  %v1627_v54 = vld [vmem:[#allocation10 + $0xce8] sm:$0xff]  ;;  %v16869_v28 = vcombine.high %v2349_v5, %v2361_v9  ;;  %v2325_v30 = vld [vmem:[#allocation10 + $0x22b8] sm:$0xff]  ;;  %v16868_v20 = vcombine.low %v2349_v5, %v2361_v9 }
 0x41a   :  { %9204 = vmatpush1.bf16.msra.mxu0 %v16580_v8  ;;  %v1639_v8 = vld [vmem:[#allocation10 + $0xd48] sm:$0xff] }
 0x41b   :  { %9205 = vmatprep.subr.bf16.mxu0 %v16557_v35  ;;  %v2337_v35 = vld [vmem:[#allocation10 + $0x2318] sm:$0xff]  ;;  %v1615_v39 = vld [vmem:[#allocation10 + $0xc88] sm:$0xff]  ;;  %v16144_v42 = vcombine.low %v1627_v54, %v1639_v8 }
 0x41c   :  { %8913 = vmatpush1.bf16.msra.mxu1 %v16240_v51  ;;  %v16145_v51 = vcombine.high %v1627_v54, %v1639_v8  ;;  %v16121_v50 = vcombine.high %v1603_v24, %v1615_v39  ;;  %v16120_v56 = vcombine.low %v1603_v24, %v1615_v39 }
 0x41d   :  { %8914 = vmatprep.subr.bf16.mxu1 %v16217_v41  ;;  %v16845_v41 = vcombine.high %v2325_v30, %v2337_v35 }
 0x41e   :  { %9206 = vmatpush1.bf16.msra.mxu0 %v16556_v44  ;;  %v2301_v44 = vld [vmem:[#allocation10 + $0x21f8] sm:$0xff] }
 0x41f   :  { %9207 = vmatprep.subr.bf16.mxu0 %v16533_v52  ;;  %v16844_v52 = vcombine.low %v2325_v30, %v2337_v35  ;;  %v16821_v55 = vcombine.high %v2301_v44, %v2313_v49  ;;  %v16820_v22 = vcombine.low %v2301_v44, %v2313_v49 }
 0x420   :  { %8915 = vmatpush1.bf16.msra.mxu1 %v16216_v14  ;;  %v1975_v14 = vld [vmem:[#allocation10 + $0x17c8] sm:$0xff] }
 0x421   :  { %8916 = vmatprep.subr.bf16.mxu1 %v16193_v59  ;;  %v2277_v59 = vld [vmem:[#allocation10 + $0x2138] sm:$0xff]  ;;  %v16481_v38 = vcombine.high %v1963_v53, %v1975_v14  ;;  %v16480_v9 = vcombine.low %v1963_v53, %v1975_v14 }
 0x422   :  { %9208 = vmatpush1.bf16.msra.mxu0 %v16532_v63  ;;  %v2289_v63 = vld [vmem:[#allocation10 + $0x2198] sm:$0xff] }
 0x423   :  { %9209 = vmatprep.subr.bf16.mxu0 %v16509_v2  ;;  %v1939_v2 = vld [vmem:[#allocation10 + $0x16a8] sm:$0xff]  ;;  %v16797_v5 = vcombine.high %v2277_v59, %v2289_v63  ;;  %v16796_v8 = vcombine.low %v2277_v59, %v2289_v63 }
 0x424   :  { %8917 = vmatpush1.bf16.msra.mxu1 %v16192_v4  ;;  %v1951_v4 = vld [vmem:[#allocation10 + $0x1708] sm:$0xff] }
 0x425   :  { %8918 = vmatprep.subr.bf16.mxu1 %v16169_v10  ;;  %v2253_v10 = vld [vmem:[#allocation10 + $0x2078] sm:$0xff]  ;;  %v16457_v54 = vcombine.high %v1939_v2, %v1951_v4  ;;  %v16456_v35 = vcombine.low %v1939_v2, %v1951_v4 }
 0x426   :  { %9210 = vmatpush1.bf16.msra.mxu0 %v16508_v13  ;;  %v2265_v13 = vld [vmem:[#allocation10 + $0x20d8] sm:$0xff] }
 0x427   :  { %9211 = vmatprep.subr.bf16.mxu0 %v16869_v28  ;;  %v1915_v28 = vld [vmem:[#allocation10 + $0x15e8] sm:$0xff]  ;;  %v16773_v30 = vcombine.high %v2253_v10, %v2265_v13  ;;  %v16772_v39 = vcombine.low %v2253_v10, %v2265_v13 }
 0x428   :  { %8919 = vmatpush1.bf16.msra.mxu1 %v16168_v33  ;;  %v1927_v33 = vld [vmem:[#allocation10 + $0x1648] sm:$0xff] }
 0x429   :  { %8920 = vmatprep.subr.bf16.mxu1 %v16145_v51  ;;  %v2229_v51 = vld [vmem:[#allocation10 + $0x1fb8] sm:$0xff]  ;;  %v16433_v24 = vcombine.high %v1915_v28, %v1927_v33  ;;  %v16432_v49 = vcombine.low %v1915_v28, %v1927_v33 }
 0x42a   :  { %9212 = vmatpush2.bf16.msra.mxu0 %v16868_v20  ;;  %v2241_v20 = vld [vmem:[#allocation10 + $0x2018] sm:$0xff] }
 0x42b   :  { %9213 = vmatprep.subr.bf16.mxu0 %v16845_v41  ;;  %v1891_v41 = vld [vmem:[#allocation10 + $0x1528] sm:$0xff]  ;;  %v16749_v44 = vcombine.high %v2229_v51, %v2241_v20  ;;  %v16748_v14 = vcombine.low %v2229_v51, %v2241_v20 }
 0x42c   :  { %8921 = vmatpush1.bf16.msra.mxu1 %v16144_v42  ;;  %v1903_v42 = vld [vmem:[#allocation10 + $0x1588] sm:$0xff] }
 0x42d   :  { %8922 = vmatprep.subr.bf16.mxu1 %v16121_v50  ;;  %v2205_v50 = vld [vmem:[#allocation10 + $0x1ef8] sm:$0xff]  ;;  %v16409_v53 = vcombine.high %v1891_v41, %v1903_v42  ;;  %v16408_v63 = vcombine.low %v1891_v41, %v1903_v42 }
 0x42e   :  { %9214 = vmatpush2.bf16.msra.mxu0 %v16844_v52  ;;  %v2217_v52 = vld [vmem:[#allocation10 + $0x1f58] sm:$0xff] }
 0x42f   :  { %9215 = vmatprep.subr.bf16.mxu0 %v16821_v55  ;;  %v1867_v55 = vld [vmem:[#allocation10 + $0x1468] sm:$0xff]  ;;  %v16725_v59 = vcombine.high %v2205_v50, %v2217_v52  ;;  %v16724_v4 = vcombine.low %v2205_v50, %v2217_v52 }
 0x430   :  { %8923 = vmatpush1.bf16.msra.mxu1 %v16120_v56  ;;  %v1879_v56 = vld [vmem:[#allocation10 + $0x14c8] sm:$0xff] }
 0x431   :  { %8924 = vmatprep.subr.bf16.mxu1 %v16481_v38  ;;  %v2181_v38 = vld [vmem:[#allocation10 + $0x1e38] sm:$0xff]  ;;  %v16385_v2 = vcombine.high %v1867_v55, %v1879_v56  ;;  %v16384_v13 = vcombine.low %v1867_v55, %v1879_v56  ;;  %v1738_v55 = vld [vmem:[#allocation10 + $0x1060] sm:$0xff] }
 0x432   :  { %9216 = vmatpush2.bf16.msra.mxu0 %v16820_v22  ;;  %v2193_v22 = vld [vmem:[#allocation10 + $0x1e98] sm:$0xff] }
 0x433   :  { %9217 = vmatprep.subr.bf16.mxu0 %v16797_v5  ;;  %v1843_v5 = vld [vmem:[#allocation10 + $0x13a8] sm:$0xff]  ;;  %v16701_v10 = vcombine.high %v2181_v38, %v2193_v22  ;;  %v16700_v33 = vcombine.low %v2181_v38, %v2193_v22  ;;  %v1388_v38 = vld [vmem:[#allocation10 + $0x570] sm:$0xff] }
 0x434   :  { %8925 = vmatpush2.bf16.msra.mxu1 %v16480_v9  ;;  %v1855_v9 = vld [vmem:[#allocation10 + $0x1408] sm:$0xff]  ;;  %v1400_v22 = vld [vmem:[#allocation10 + $0x5d0] sm:$0xff] }
 0x435   :  { %8926 = vmatprep.subr.bf16.mxu1 %v16457_v54  ;;  %v1774_v54 = vld [vmem:[#allocation10 + $0x1180] sm:$0xff]  ;;  %v16361_v28 = vcombine.high %v1843_v5, %v1855_v9  ;;  %v16360_v20 = vcombine.low %v1843_v5, %v1855_v9 }
 0x436   :  { %9218 = vmatpush2.bf16.msra.mxu0 %v16796_v8  ;;  %v1786_v8 = vld [vmem:[#allocation10 + $0x11e0] sm:$0xff] }
 0x437   :  { %9219 = vmatprep.subr.bf16.mxu0 %v16773_v30  ;;  %v1819_v30 = vld [vmem:[#allocation10 + $0x12e8] sm:$0xff]  ;;  %v16295_v51 = vcombine.high %v1774_v54, %v1786_v8  ;;  %v16294_v42 = vcombine.low %v1774_v54, %v1786_v8  ;;  %v1702_v9 = vld [vmem:[#allocation10 + $0xf40] sm:$0xff]  ;;  %v1364_v8 = vld [vmem:[#allocation10 + $0x4b0] sm:$0xff] }
 0x438   :  { %8927 = vmatpush2.bf16.msra.mxu1 %v16456_v35  ;;  %v1831_v35 = vld [vmem:[#allocation10 + $0x1348] sm:$0xff] }
 0x439   :  { %8928 = vmatprep.subr.bf16.mxu1 %v16433_v24  ;;  %v1750_v24 = vld [vmem:[#allocation10 + $0x10c0] sm:$0xff]  ;;  %v16337_v41 = vcombine.high %v1819_v30, %v1831_v35  ;;  %v16336_v52 = vcombine.low %v1819_v30, %v1831_v35  ;;  %v15906_v35 = vcombine.low %v1388_v38, %v1400_v22 }
 0x43a   :  { %9220 = vmatpush2.bf16.msra.mxu0 %v16772_v39  ;;  %v1762_v39 = vld [vmem:[#allocation10 + $0x1120] sm:$0xff] }
 0x43b   :  { %9221 = vmatprep.subr.bf16.mxu0 %v16749_v44  ;;  %v1795_v44 = vld [vmem:[#allocation10 + $0x1228] sm:$0xff]  ;;  %v16271_v50 = vcombine.high %v1750_v24, %v1762_v39 }
 0x43c   :  { %8929 = vmatpush2.bf16.msra.mxu1 %v16432_v49  ;;  %v1807_v49 = vld [vmem:[#allocation10 + $0x1288] sm:$0xff] }
 0x43d   :  { %8930 = vmatprep.subr.bf16.mxu1 %v16409_v53  ;;  %v19542_v53 = vsub.s32 6, %v19257_v40  ;;  %v16313_v56 = vcombine.high %v1795_v44, %v1807_v49  ;;  %v16312_v5 = vcombine.low %v1795_v44, %v1807_v49 }
 0x43e   :  { %9222 = vmatpush2.bf16.msra.mxu0 %v16748_v14  ;;  %v1726_v14 = vld [vmem:[#allocation10 + $0x1000] sm:$0xff] }
 0x43f   :  { %9223 = vmatprep.subr.bf16.mxu0 %v16725_v59  ;;  %v16270_v59 = vcombine.low %v1750_v24, %v1762_v39 }
 0x440   :  { %8931 = vmatpush2.bf16.msra.mxu1 %v16408_v63  ;;  %v19546_v63 = vsub.s32 7, %v19257_v40  ;;  %v16246_v40 = vcombine.low %v1726_v14, %v1738_v55 }
 0x441   :  { %8932 = vmatprep.subr.bf16.mxu1 %v16385_v2  ;;  %v16247_v2 = vcombine.high %v1726_v14, %v1738_v55  ;;  %v1666_v14 = vld [vmem:[#allocation10 + $0xe20] sm:$0xff] }
 0x442   :  { %9224 = vmatpush2.bf16.msra.mxu0 %v16724_v4  ;;  %v2399_v4 = vrot.slane %v19520_v12, %v19542_v53  ;;  %v2403_v54 = vrot.slane %v19520_v12, %v19546_v63  ;;  %v1352_v12 = vld [vmem:[#allocation10 + $0x450] sm:$0xff] }
 0x443   :  { %9225 = vmatprep.subr.bf16.mxu0 %v16701_v10  ;;  %v1714_v10 = vld [vmem:[#allocation10 + $0xfa0] sm:$0xff] }
 0x444   :  { %8933 = vmatpush2.bf16.msra.mxu1 %v16384_v13  ;;  %v15907_v13 = vcombine.high %v1388_v38, %v1400_v22  ;;  %v8656_v30 = vadd.f32 %v19505_v7, %v2399_v4  ;;  %v8658_v39 = vadd.f32 %v19507_v19, %v2403_v54  ;;  %v1316_v38 = vld [vmem:[#allocation10 + $0x330] sm:$0xff] }
 0x445   :  { %8934 = vmatprep.subr.bf16.mxu1 %v16361_v28  ;;  %v1376_v28 = vld [vmem:[#allocation10 + $0x510] sm:$0xff] }
 0x446   :  { %9226 = vmatpush2.bf16.msra.mxu0 %v16700_v33  ;;  %v16223_v33 = vcombine.high %v1702_v9, %v1714_v10  ;;  %v15883_v24 = vcombine.high %v1364_v8, %v1376_v28  ;;  %v15882_v7 = vcombine.low %v1364_v8, %v1376_v28  ;;  %v1328_v22 = vld [vmem:[#allocation10 + $0x390] sm:$0xff] }
 0x447   :  { %9277 = vmatprep.subr.bf16.mxu0 %v16295_v51  ;;  %v1678_v51 = vld [vmem:[#allocation10 + $0xe80] sm:$0xff]  ;;  %v15835_v54 = vcombine.high %v1316_v38, %v1328_v22  ;;  %v1292_v8 = vld [vmem:[#allocation10 + $0x270] sm:$0xff] }
 0x448   :  { %8935 = vmatpush2.bf16.msra.mxu1 %v16360_v20  ;;  %v1690_v20 = vld [vmem:[#allocation10 + $0xee0] sm:$0xff]  ;;  %v1304_v28 = vld [vmem:[#allocation10 + $0x2d0] sm:$0xff] }
 0x449   :  { %8936 = vmatprep.subr.bf16.mxu1 %v16337_v41  ;;  %9228 = vmatmul.mubr.bf16.vlgmr.msra.gmra.mxu0 %v19348_v15  ;;  %v16222_v41 = vcombine.low %v1702_v9, %v1714_v10  ;;  %v16199_v49 = vcombine.high %v1678_v51, %v1690_v20  ;;  %v1630_v9 = vld [vmem:[#allocation10 + $0xd00] sm:$0xff] }
 0x44a   :  { %9278 = vmatpush1.bf16.msra.mxu0 %v16294_v42  ;;  %9309 = vmatprep.mubr.bf16.mxu0 %v19287_v0  ;;  %v1340_v42 = vld [vmem:[#allocation10 + $0x3f0] sm:$0xff]  ;;  %v1642_v10 = vld [vmem:[#allocation10 + $0xd60] sm:$0xff] }
 0x44b   :  { %9279 = vmatprep.subr.bf16.mxu0 %v16271_v50  ;;  %v15859_v19 = vcombine.high %v1340_v42, %v1352_v12 }
 0x44c   :  { %8937 = vmatpush2.bf16.msra.mxu1 %v16336_v52  ;;  %v1654_v52 = vld [vmem:[#allocation10 + $0xdc0] sm:$0xff] }
 0x44d   :  { %8938 = vmatprep.subr.bf16.mxu1 %v16313_v56  ;;  %v16175_v4 = vcombine.high %v1654_v52, %v1666_v14 }
 0x44e   :  { %9280 = vmatpush1.bf16.msra.mxu0 %v16270_v59  ;;  %v16198_v59 = vcombine.low %v1678_v51, %v1690_v20  ;;  %v1618_v51 = vld [vmem:[#allocation10 + $0xca0] sm:$0xff]  ;;  %v15811_v20 = vcombine.high %v1292_v8, %v1304_v28 }
 0x44f   :  { %9281 = vmatprep.subr.bf16.mxu0 %v16247_v2 }
 0x450   :  { %8939 = vmatpush2.bf16.msra.mxu1 %v16312_v5  ;;  %v15858_v5 = vcombine.low %v1340_v42, %v1352_v12  ;;  %v15810_v12 = vcombine.low %v1292_v8, %v1304_v28 }
 0x451   :  { %8990 = vmatprep.subr.bf16.mxu1 %v15907_v13 }
 0x452   :  { %9282 = vmatpush1.bf16.msra.mxu0 %v16246_v40  ;;  %v16174_v40 = vcombine.low %v1654_v52, %v1666_v14  ;;  %v1244_v14 = vld [vmem:[#allocation10 + $0xf0] sm:$0xff] }
 0x453   :  { %v8696_v44 = vpop.f32.mrf.mxu1  ;;  %8941 = vmatmul.mubr.bf16.vlgmr.msra.gmra.mxu1 %v19322_v26  ;;  %9283 = vmatprep.subr.bf16.mxu0 %v16223_v33  ;;  %v16151_v33 = vcombine.high %v1630_v9, %v1642_v10 }
 0x454   :  { %v19556_v50 = vadd.f32 %v8696_v44, %v8656_v30  ;;  %8991 = vmatpush1.bf16.msra.mxu1 %v15906_v35  ;;  %9022 = vmatprep.mubr.bf16.mxu1 %v19283_v62  ;;  %v15834_v30 = vcombine.low %v1316_v38, %v1328_v22  ;;  %v1606_v35 = vld [vmem:[#allocation10 + $0xc40] sm:$0xff] }
 0x455   :  { %v8698_v55 = vpop.f32.mrf.mxu1  ;;  %8992 = vmatprep.subr.bf16.mxu1 %v15883_v24  ;;  %v16150_v24 = vcombine.low %v1630_v9, %v1642_v10  ;;  %v16127_v42 = vcombine.high %v1606_v35, %v1618_v51  ;;  %v1966_v44 = vld [vmem:[#allocation10 + $0x1780] sm:$0xff]  ;;  %v16126_v52 = vcombine.low %v1606_v35, %v1618_v51  ;;  %v1232_v9 = vld [vmem:[#allocation10 + $0x90] sm:$0xff] }
 0x456   :  { %v19559_v56 = vadd.f32 %v8698_v55, %v8658_v39  ;;  %9284 = vmatpush1.bf16.msra.mxu0 %v16222_v41  ;;  %v1268_v39 = vld [vmem:[#allocation10 + $0x1b0] sm:$0xff]  ;;  %v1942_v38 = vld [vmem:[#allocation10 + $0x16c0] sm:$0xff] }
 0x457   :  { %v8700_v2 = vpop.f32.mrf.mxu1  ;;  %9285 = vmatprep.subr.bf16.mxu0 %v16199_v49  ;;  %v1280_v41 = vld [vmem:[#allocation10 + $0x210] sm:$0xff]  ;;  %v1978_v49 = vld [vmem:[#allocation10 + $0x17e0] sm:$0xff] }
 0x458   :  { %8993 = vmatpush1.bf16.msra.mxu1 %v15882_v7  ;;  %v15787_v7 = vcombine.high %v1268_v39, %v1280_v41  ;;  %v1256_v55 = vld [vmem:[#allocation10 + $0x150] sm:$0xff]  ;;  %v1954_v22 = vld [vmem:[#allocation10 + $0x1720] sm:$0xff] }
 0x459   :  { %v8701_v13 = vpop.f32.mrf.mxu1  ;;  %8994 = vmatprep.subr.bf16.mxu1 %v15859_v19  ;;  %v16487_v19 = vcombine.high %v1966_v44, %v1978_v49  ;;  %v15763_v2 = vcombine.high %v1244_v14, %v1256_v55  ;;  %v16463_v10 = vcombine.high %v1942_v38, %v1954_v22  ;;  %v16462_v28 = vcombine.low %v1942_v38, %v1954_v22 }
 0x45a   :  { %9286 = vmatpush1.bf16.msra.mxu0 %v16198_v59  ;;  %v15786_v59 = vcombine.low %v1268_v39, %v1280_v41  ;;  %v15762_v13 = vcombine.low %v1244_v14, %v1256_v55 }
 0x45b   :  { %9287 = vmatprep.subr.bf16.mxu0 %v16175_v4  ;;  %v16486_v4 = vcombine.low %v1966_v44, %v1978_v49 }
 0x45c   :  { %8995 = vmatpush1.bf16.msra.mxu1 %v15858_v5  ;;  %v1220_v5 = vld [vmem:[#allocation10 + $0x30] sm:$0xff] }
 0x45d   :  { %8996 = vmatprep.subr.bf16.mxu1 %v15835_v54  ;;  %v1918_v54 = vld [vmem:[#allocation10 + $0x1600] sm:$0xff]  ;;  %v15739_v8 = vcombine.high %v1220_v5, %v1232_v9  ;;  %v15738_v51 = vcombine.low %v1220_v5, %v1232_v9 }
 0x45e   :  { %9288 = vmatpush1.bf16.msra.mxu0 %v16174_v40  ;;  %v1930_v40 = vld [vmem:[#allocation10 + $0x1660] sm:$0xff] }
 0x45f   :  { %9289 = vmatprep.subr.bf16.mxu0 %v16151_v33  ;;  %v1580_v33 = vld [vmem:[#allocation10 + $0xb70] sm:$0xff]  ;;  %v16439_v35 = vcombine.high %v1918_v54, %v1930_v40  ;;  %v16438_v41 = vcombine.low %v1918_v54, %v1930_v40 }
 0x460   :  { %8997 = vmatpush1.bf16.msra.mxu1 %v15834_v30  ;;  %v1592_v30 = vld [vmem:[#allocation10 + $0xbd0] sm:$0xff] }
 0x461   :  { %8998 = vmatprep.subr.bf16.mxu1 %v15811_v20  ;;  %v1894_v20 = vld [vmem:[#allocation10 + $0x1540] sm:$0xff]  ;;  %v16099_v39 = vcombine.high %v1580_v33, %v1592_v30  ;;  %v16098_v49 = vcombine.low %v1580_v33, %v1592_v30 }
 0x462   :  { %9290 = vmatpush1.bf16.msra.mxu0 %v16150_v24  ;;  %v1906_v24 = vld [vmem:[#allocation10 + $0x15a0] sm:$0xff] }
 0x463   :  { %9291 = vmatprep.subr.bf16.mxu0 %v16127_v42  ;;  %v1556_v42 = vld [vmem:[#allocation10 + $0xab0] sm:$0xff]  ;;  %v16415_v44 = vcombine.high %v1894_v20, %v1906_v24  ;;  %v16414_v55 = vcombine.low %v1894_v20, %v1906_v24 }
 0x464   :  { %8999 = vmatpush1.bf16.msra.mxu1 %v15810_v12  ;;  %v1568_v12 = vld [vmem:[#allocation10 + $0xb10] sm:$0xff] }
 0x465   :  { %9000 = vmatprep.subr.bf16.mxu1 %v15787_v7  ;;  %v1870_v7 = vld [vmem:[#allocation10 + $0x1480] sm:$0xff]  ;;  %v16075_v14 = vcombine.high %v1556_v42, %v1568_v12  ;;  %v16074_v22 = vcombine.low %v1556_v42, %v1568_v12 }
 0x466   :  { %9292 = vmatpush1.bf16.msra.mxu0 %v16126_v52  ;;  %v1882_v52 = vld [vmem:[#allocation10 + $0x14e0] sm:$0xff] }
 0x467   :  { %9293 = vmatprep.subr.bf16.mxu0 %v16487_v19  ;;  %v1532_v19 = vld [vmem:[#allocation10 + $0x9f0] sm:$0xff]  ;;  %v16391_v38 = vcombine.high %v1870_v7, %v1882_v52  ;;  %v16390_v9 = vcombine.low %v1870_v7, %v1882_v52 }
 0x468   :  { %9001 = vmatpush1.bf16.msra.mxu1 %v15786_v59  ;;  %v1544_v59 = vld [vmem:[#allocation10 + $0xa50] sm:$0xff] }
 0x469   :  { %9002 = vmatprep.subr.bf16.mxu1 %v15763_v2  ;;  %v1846_v2 = vld [vmem:[#allocation10 + $0x13c0] sm:$0xff]  ;;  %v16051_v5 = vcombine.high %v1532_v19, %v1544_v59  ;;  %v16050_v40 = vcombine.low %v1532_v19, %v1544_v59 }
 0x46a   :  { %9294 = vmatpush2.bf16.msra.mxu0 %v16486_v4  ;;  %v1858_v4 = vld [vmem:[#allocation10 + $0x1420] sm:$0xff] }
 0x46b   :  { %9295 = vmatprep.subr.bf16.mxu0 %v16463_v10  ;;  %v1508_v10 = vld [vmem:[#allocation10 + $0x930] sm:$0xff]  ;;  %v16367_v54 = vcombine.high %v1846_v2, %v1858_v4  ;;  %v16366_v30 = vcombine.low %v1846_v2, %v1858_v4 }
 0x46c   :  { %9003 = vmatpush1.bf16.msra.mxu1 %v15762_v13  ;;  %v1520_v13 = vld [vmem:[#allocation10 + $0x990] sm:$0xff] }
 0x46d   :  { %9004 = vmatprep.subr.bf16.mxu1 %v15739_v8  ;;  %v1822_v8 = vld [vmem:[#allocation10 + $0x1300] sm:$0xff]  ;;  %v16027_v33 = vcombine.high %v1508_v10, %v1520_v13  ;;  %v16026_v24 = vcombine.low %v1508_v10, %v1520_v13 }
 0x46e   :  { %9296 = vmatpush2.bf16.msra.mxu0 %v16462_v28  ;;  %v1834_v28 = vld [vmem:[#allocation10 + $0x1360] sm:$0xff] }
 0x46f   :  { %9297 = vmatprep.subr.bf16.mxu0 %v16439_v35  ;;  %v1484_v35 = vld [vmem:[#allocation10 + $0x870] sm:$0xff]  ;;  %v16343_v20 = vcombine.high %v1822_v8, %v1834_v28  ;;  %v16342_v12 = vcombine.low %v1822_v8, %v1834_v28 }
 0x470   :  { %9005 = vmatpush1.bf16.msra.mxu1 %v15738_v51  ;;  %v1496_v51 = vld [vmem:[#allocation10 + $0x8d0] sm:$0xff] }
 0x471   :  { %9006 = vmatprep.subr.bf16.mxu1 %v16099_v39  ;;  %v1798_v39 = vld [vmem:[#allocation10 + $0x1240] sm:$0xff]  ;;  %v16003_v42 = vcombine.high %v1484_v35, %v1496_v51  ;;  %v16002_v52 = vcombine.low %v1484_v35, %v1496_v51 }
 0x472   :  { %9298 = vmatpush2.bf16.msra.mxu0 %v16438_v41  ;;  %v1810_v41 = vld [vmem:[#allocation10 + $0x12a0] sm:$0xff] }
 0x473   :  { %9299 = vmatprep.subr.bf16.mxu0 %v16415_v44  ;;  %v1460_v44 = vld [vmem:[#allocation10 + $0x7b0] sm:$0xff]  ;;  %v16319_v7 = vcombine.high %v1798_v39, %v1810_v41  ;;  %v16318_v59 = vcombine.low %v1798_v39, %v1810_v41 }
 0x474   :  { %9007 = vmatpush2.bf16.msra.mxu1 %v16098_v49  ;;  %v1472_v49 = vld [vmem:[#allocation10 + $0x810] sm:$0xff] }
 0x475   :  { %9008 = vmatprep.subr.bf16.mxu1 %v16075_v14  ;;  %v1391_v14 = vld [vmem:[#allocation10 + $0x588] sm:$0xff]  ;;  %v15979_v19 = vcombine.high %v1460_v44, %v1472_v49  ;;  %v15978_v4 = vcombine.low %v1460_v44, %v1472_v49  ;;  %v19563_v44 = vpop.f32.mrf.mxu0 }
 0x476   :  { %9300 = vmatpush2.bf16.msra.mxu0 %v16414_v55  ;;  %v1403_v55 = vld [vmem:[#allocation10 + $0x5e8] sm:$0xff] }
 0x477   :  { %9301 = vmatprep.subr.bf16.mxu0 %v16391_v38  ;;  %v1436_v38 = vld [vmem:[#allocation10 + $0x6f0] sm:$0xff]  ;;  %v15913_v2 = vcombine.high %v1391_v14, %v1403_v55  ;;  %v15912_v13 = vcombine.low %v1391_v14, %v1403_v55  ;;  %v19565_v55 = vpop.f32.mrf.mxu0 }
 0x478   :  { %9009 = vmatpush2.bf16.msra.mxu1 %v16074_v22  ;;  %v1448_v22 = vld [vmem:[#allocation10 + $0x750] sm:$0xff] }
 0x479   :  { %9010 = vmatprep.subr.bf16.mxu1 %v16051_v5  ;;  %v1367_v5 = vld [vmem:[#allocation10 + $0x4c8] sm:$0xff]  ;;  %v15955_v10 = vcombine.high %v1436_v38, %v1448_v22  ;;  %v15954_v28 = vcombine.low %v1436_v38, %v1448_v22  ;;  %v2144_v14 = vld [vmem:[#allocation10 + $0x1d10] sm:$0xff] }
 0x47a   :  { %9302 = vmatpush2.bf16.msra.mxu0 %v16390_v9  ;;  %v1379_v9 = vld [vmem:[#allocation10 + $0x528] sm:$0xff] }
 0x47b   :  { %9303 = vmatprep.subr.bf16.mxu0 %v16367_v54  ;;  %v1412_v54 = vld [vmem:[#allocation10 + $0x630] sm:$0xff]  ;;  %v15889_v8 = vcombine.high %v1367_v5, %v1379_v9  ;;  %v15888_v51 = vcombine.low %v1367_v5, %v1379_v9  ;;  %v1295_v38 = vld [vmem:[#allocation10 + $0x288] sm:$0xff] }
 0x47c   :  { %9011 = vmatpush2.bf16.msra.mxu1 %v16050_v40  ;;  %v1424_v40 = vld [vmem:[#allocation10 + $0x690] sm:$0xff]  ;;  %v1307_v22 = vld [vmem:[#allocation10 + $0x2e8] sm:$0xff] }
 0x47d   :  { %9012 = vmatprep.subr.bf16.mxu1 %v16027_v33  ;;  %v1343_v33 = vld [vmem:[#allocation10 + $0x408] sm:$0xff]  ;;  %v15931_v35 = vcombine.high %v1412_v54, %v1424_v40  ;;  %v15930_v41 = vcombine.low %v1412_v54, %v1424_v40  ;;  %v2108_v9 = vld [vmem:[#allocation10 + $0x1bf0] sm:$0xff]  ;;  %v15817_v40 = vcombine.high %v1295_v38, %v1307_v22 }
 0x47e   :  { %9304 = vmatpush2.bf16.msra.mxu0 %v16366_v30  ;;  %v1355_v30 = vld [vmem:[#allocation10 + $0x468] sm:$0xff] }
 0x47f   :  { %9305 = vmatprep.subr.bf16.mxu0 %v16343_v20  ;;  %v2156_v20 = vld [vmem:[#allocation10 + $0x1d70] sm:$0xff]  ;;  %v15865_v39 = vcombine.high %v1343_v33, %v1355_v30 }
 0x480   :  { %9013 = vmatpush2.bf16.msra.mxu1 %v16026_v24  ;;  %v2168_v24 = vld [vmem:[#allocation10 + $0x1dd0] sm:$0xff] }
 0x481   :  { %9014 = vmatprep.subr.bf16.mxu1 %v16003_v42  ;;  %v1319_v42 = vld [vmem:[#allocation10 + $0x348] sm:$0xff]  ;;  %v16675_v49 = vcombine.high %v2156_v20, %v2168_v24 }
 0x482   :  { %9306 = vmatpush2.bf16.msra.mxu0 %v16342_v12  ;;  %v1331_v12 = vld [vmem:[#allocation10 + $0x3a8] sm:$0xff] }
 0x483   :  { %9307 = vmatprep.subr.bf16.mxu0 %v16319_v7  ;;  %v15864_v7 = vcombine.low %v1343_v33, %v1355_v30  ;;  %v15840_v5 = vcombine.low %v1319_v42, %v1331_v12  ;;  %v1283_v33 = vld [vmem:[#allocation10 + $0x228] sm:$0xff] }
 0x484   :  { %9015 = vmatpush2.bf16.msra.mxu1 %v16002_v52  ;;  %v2132_v52 = vld [vmem:[#allocation10 + $0x1cb0] sm:$0xff] }
 0x485   :  { %9016 = vmatprep.subr.bf16.mxu1 %v15979_v19  ;;  %v15841_v19 = vcombine.high %v1319_v42, %v1331_v12 }
 0x486   :  { %9308 = vmatpush2.bf16.msra.mxu0 %v16318_v59  ;;  %v16674_v59 = vcombine.low %v2156_v20, %v2168_v24  ;;  %v15816_v20 = vcombine.low %v1295_v38, %v1307_v22  ;;  %v2084_v24 = vld [vmem:[#allocation10 + $0x1b30] sm:$0xff] }
 0x487   :  { %9359 = vmatprep.subr.bf16.mxu0 %v15913_v2  ;;  %v8905_v2 = vpop.f32.mrf.mxu0 }
 0x488   :  { %9017 = vmatpush2.bf16.msra.mxu1 %v15978_v4  ;;  %v16651_v4 = vcombine.high %v2132_v52, %v2144_v14 }
 0x489   :  { %9018 = vmatprep.subr.bf16.mxu1 %v15955_v10  ;;  %9310 = vmatmul.mubr.bf16.vlgmr.msra.gmra.mxu0 %v19322_v26  ;;  %v2120_v10 = vld [vmem:[#allocation10 + $0x1c50] sm:$0xff] }
 0x48a   :  { %9360 = vmatpush1.bf16.msra.mxu0 %v15912_v13  ;;  %9391 = vmatprep.mubr.bf16.mxu0 %v19283_v62  ;;  %v8906_v13 = vpop.f32.mrf.mxu0 }
 0x48b   :  { %9361 = vmatprep.subr.bf16.mxu0 %v15889_v8  ;;  %v16650_v8 = vcombine.low %v2132_v52, %v2144_v14  ;;  %v1259_v52 = vld [vmem:[#allocation10 + $0x168] sm:$0xff] }
 0x48c   :  { %9019 = vmatpush2.bf16.msra.mxu1 %v15954_v28  ;;  %v1271_v28 = vld [vmem:[#allocation10 + $0x1c8] sm:$0xff] }
 0x48d   :  { %9020 = vmatprep.subr.bf16.mxu1 %v15931_v35  ;;  %v16627_v35 = vcombine.high %v2108_v9, %v2120_v10  ;;  %v15793_v42 = vcombine.high %v1271_v28, %v1283_v33  ;;  %v15792_v2 = vcombine.low %v1271_v28, %v1283_v33  ;;  %v1583_v28 = vld [vmem:[#allocation10 + $0xb88] sm:$0xff] }
 0x48e   :  { %9362 = vmatpush1.bf16.msra.mxu0 %v15888_v51  ;;  %v19573_v51 = vpop.f32.mrf.mxu0  ;;  %v1595_v33 = vld [vmem:[#allocation10 + $0xbe8] sm:$0xff] }
 0x48f   :  { %9363 = vmatprep.subr.bf16.mxu0 %v15865_v39  ;;  %v2096_v39 = vld [vmem:[#allocation10 + $0x1b90] sm:$0xff] }
 0x490   :  { %9021 = vmatpush2.bf16.msra.mxu1 %v15930_v41  ;;  %v19575_v12 = vpop.f32.mrf.mxu0  ;;  %v16602_v13 = vcombine.low %v2084_v24, %v2096_v39 }
 0x491   :  { %9072 = vmatprep.subr.bf16.mxu1 %v16675_v49  ;;  %20213 = vst [vmem:[#allocation47_spill] sm:$0xff] %v19575_v12  ;;  %v16626_v49 = vcombine.low %v2108_v9, %v2120_v10  ;;  %v2036_v10 = vld [vmem:[#allocation10 + $0x19b0] sm:$0xff]  ;;  %v1679_v12 = vld [vmem:[#allocation10 + $0xe88] sm:$0xff] }
 0x492   :  { %9364 = vmatpush1.bf16.msra.mxu0 %v15864_v7  ;;  %v1247_v7 = vld [vmem:[#allocation10 + $0x108] sm:$0xff] }
 0x493   :  { %v19567_v54 = vpop.f32.mrf.mxu1  ;;  %9023 = vmatmul.mubr.bf16.vlgmr.msra.gmra.mxu1 %v19316_v23  ;;  %9365 = vmatprep.subr.bf16.mxu0 %v15841_v19  ;;  %v16603_v19 = vcombine.high %v2084_v24, %v2096_v39  ;;  %v15769_v38 = vcombine.high %v1247_v7, %v1259_v52  ;;  %v15768_v9 = vcombine.low %v1247_v7, %v1259_v52  ;;  %v2024_v24 = vld [vmem:[#allocation10 + $0x1950] sm:$0xff]  ;;  %v1571_v7 = vld [vmem:[#allocation10 + $0xb28] sm:$0xff] }
 0x494   :  { %9073 = vmatpush1.bf16.msra.mxu1 %v16674_v59  ;;  %9104 = vmatprep.mubr.bf16.mxu1 %v19333_v32  ;;  %v8987_v59 = vpop.f32.mrf.mxu0  ;;  %v16105_v39 = vcombine.high %v1583_v28, %v1595_v33 }
 0x495   :  { %v19571_v30 = vpop.f32.mrf.mxu1  ;;  %9074 = vmatprep.subr.bf16.mxu1 %v16651_v4  ;;  %v2060_v4 = vld [vmem:[#allocation10 + $0x1a70] sm:$0xff] }
 0x496   :  { %9366 = vmatpush1.bf16.msra.mxu0 %v15840_v5  ;;  %v2072_v5 = vld [vmem:[#allocation10 + $0x1ad0] sm:$0xff]  ;;  %v8988_v22 = vpop.f32.mrf.mxu0 }
 0x497   :  { %v8782_v41 = vpop.f32.mrf.mxu1  ;;  %9367 = vmatprep.subr.bf16.mxu0 %v15817_v40  ;;  %v1223_v40 = vld [vmem:[#allocation10 + $0x48] sm:$0xff]  ;;  %v1988_v22 = vld [vmem:[#allocation10 + $0x1830] sm:$0xff] }
 0x498   :  { %9075 = vmatpush1.bf16.msra.mxu1 %v16650_v8  ;;  %v1235_v41 = vld [vmem:[#allocation10 + $0xa8] sm:$0xff]  ;;  %v16579_v8 = vcombine.high %v2060_v4, %v2072_v5 }
 0x499   :  { %v8783_v14 = vpop.f32.mrf.mxu1  ;;  %9076 = vmatprep.subr.bf16.mxu1 %v16627_v35  ;;  %v15745_v35 = vcombine.high %v1223_v40, %v1235_v41  ;;  %v15744_v59 = vcombine.low %v1223_v40, %v1235_v41  ;;  %v1547_v40 = vld [vmem:[#allocation10 + $0xa68] sm:$0xff] }
 0x49a   :  { %9368 = vmatpush1.bf16.msra.mxu0 %v15816_v20  ;;  %v2048_v14 = vld [vmem:[#allocation10 + $0x1a10] sm:$0xff]  ;;  %v16578_v20 = vcombine.low %v2060_v4, %v2072_v5 }
 0x49b   :  { %9369 = vmatprep.subr.bf16.mxu0 %v15793_v42  ;;  %v16555_v42 = vcombine.high %v2036_v10, %v2048_v14  ;;  %v2000_v4 = vld [vmem:[#allocation10 + $0x1890] sm:$0xff] }
 0x49c   :  { %9077 = vmatpush1.bf16.msra.mxu1 %v16626_v49  ;;  %v2012_v49 = vld [vmem:[#allocation10 + $0x18f0] sm:$0xff]  ;;  %v16507_v41 = vcombine.high %v1988_v22, %v2000_v4 }
 0x49d   :  { %9078 = vmatprep.subr.bf16.mxu1 %v16603_v19  ;;  %v16554_v19 = vcombine.low %v2036_v10, %v2048_v14  ;;  %v16531_v52 = vcombine.high %v2012_v49, %v2024_v24  ;;  %v2360_v10 = vld [vmem:[#allocation10 + $0x23d0] sm:$0xff] }
 0x49e   :  { %9370 = vmatpush1.bf16.msra.mxu0 %v15792_v2  ;;  %v1559_v2 = vld [vmem:[#allocation10 + $0xac8] sm:$0xff] }
 0x49f   :  { %9371 = vmatprep.subr.bf16.mxu0 %v15769_v38  ;;  %v16104_v38 = vcombine.low %v1583_v28, %v1595_v33  ;;  %v16081_v5 = vcombine.high %v1559_v2, %v1571_v7  ;;  %v1523_v28 = vld [vmem:[#allocation10 + $0x9a8] sm:$0xff] }
 0x4a0   :  { %9079 = vmatpush1.bf16.msra.mxu1 %v16602_v13  ;;  %v16530_v13 = vcombine.low %v2012_v49, %v2024_v24  ;;  %v2336_v49 = vld [vmem:[#allocation10 + $0x2310] sm:$0xff] }
 0x4a1   :  { %9080 = vmatprep.subr.bf16.mxu1 %v16579_v8  ;;  %v1535_v8 = vld [vmem:[#allocation10 + $0xa08] sm:$0xff] }
 0x4a2   :  { %9372 = vmatpush1.bf16.msra.mxu0 %v15768_v9  ;;  %v16080_v9 = vcombine.low %v1559_v2, %v1571_v7  ;;  %v16057_v14 = vcombine.high %v1535_v8, %v1547_v40  ;;  %v1499_v2 = vld [vmem:[#allocation10 + $0x8e8] sm:$0xff] }
 0x4a3   :  { %9373 = vmatprep.subr.bf16.mxu0 %v15745_v35  ;;  %v2348_v35 = vld [vmem:[#allocation10 + $0x2370] sm:$0xff] }
 0x4a4   :  { %9081 = vmatpush1.bf16.msra.mxu1 %v16578_v20  ;;  %v16506_v20 = vcombine.low %v1988_v22, %v2000_v4  ;;  %v16867_v33 = vcombine.high %v2348_v35, %v2360_v10  ;;  %v2312_v22 = vld [vmem:[#allocation10 + $0x2250] sm:$0xff] }
 0x4a5   :  { %9082 = vmatprep.subr.bf16.mxu1 %v16555_v42  ;;  %v1511_v42 = vld [vmem:[#allocation10 + $0x948] sm:$0xff] }
 0x4a6   :  { %9374 = vmatpush1.bf16.msra.mxu0 %v15744_v59  ;;  %v16056_v59 = vcombine.low %v1535_v8, %v1547_v40  ;;  %v16033_v24 = vcombine.high %v1511_v42, %v1523_v28  ;;  %v1475_v8 = vld [vmem:[#allocation10 + $0x828] sm:$0xff] }
 0x4a7   :  { %9375 = vmatprep.subr.bf16.mxu0 %v16105_v39  ;;  %v2324_v39 = vld [vmem:[#allocation10 + $0x22b0] sm:$0xff] }
 0x4a8   :  { %9083 = vmatpush1.bf16.msra.mxu1 %v16554_v19  ;;  %v16866_v19 = vcombine.low %v2348_v35, %v2360_v10  ;;  %v16843_v7 = vcombine.high %v2324_v39, %v2336_v49  ;;  %v2288_v35 = vld [vmem:[#allocation10 + $0x2190] sm:$0xff] }
 0x4a9   :  { %9084 = vmatprep.subr.bf16.mxu1 %v16531_v52  ;;  %v1487_v52 = vld [vmem:[#allocation10 + $0x888] sm:$0xff] }
 0x4aa   :  { %9376 = vmatpush2.bf16.msra.mxu0 %v16104_v38  ;;  %v16032_v38 = vcombine.low %v1511_v42, %v1523_v28  ;;  %v16009_v4 = vcombine.high %v1487_v52, %v1499_v2  ;;  %v1451_v42 = vld [vmem:[#allocation10 + $0x768] sm:$0xff] }
 0x4ab   :  { %9377 = vmatprep.subr.bf16.mxu0 %v16081_v5  ;;  %v2300_v5 = vld [vmem:[#allocation10 + $0x21f0] sm:$0xff] }
 0x4ac   :  { %9085 = vmatpush1.bf16.msra.mxu1 %v16530_v13  ;;  %v16842_v13 = vcombine.low %v2324_v39, %v2336_v49  ;;  %v16819_v40 = vcombine.high %v2300_v5, %v2312_v22  ;;  %v2264_v39 = vld [vmem:[#allocation10 + $0x20d0] sm:$0xff] }
 0x4ad   :  { %9086 = vmatprep.subr.bf16.mxu1 %v16507_v41  ;;  %v1463_v41 = vld [vmem:[#allocation10 + $0x7c8] sm:$0xff] }
 0x4ae   :  { %9378 = vmatpush2.bf16.msra.mxu0 %v16080_v9  ;;  %v16008_v9 = vcombine.low %v1487_v52, %v1499_v2  ;;  %v15985_v10 = vcombine.high %v1463_v41, %v1475_v8  ;;  %v1427_v52 = vld [vmem:[#allocation10 + $0x6a8] sm:$0xff] }
 0x4af   :  { %9379 = vmatprep.subr.bf16.mxu0 %v16057_v14  ;;  %v2276_v14 = vld [vmem:[#allocation10 + $0x2130] sm:$0xff] }
 0x4b0   :  { %9087 = vmatpush1.bf16.msra.mxu1 %v16506_v20  ;;  %v16818_v20 = vcombine.low %v2300_v5, %v2312_v22  ;;  %v16795_v28 = vcombine.high %v2276_v14, %v2288_v35  ;;  %v2240_v5 = vld [vmem:[#allocation10 + $0x2010] sm:$0xff] }
 0x4b1   :  { %9088 = vmatprep.subr.bf16.mxu1 %v16867_v33  ;;  %v1439_v33 = vld [vmem:[#allocation10 + $0x708] sm:$0xff] }
 0x4b2   :  { %9380 = vmatpush2.bf16.msra.mxu0 %v16056_v59  ;;  %v15984_v59 = vcombine.low %v1463_v41, %v1475_v8  ;;  %v15961_v49 = vcombine.high %v1439_v33, %v1451_v42  ;;  %v2171_v41 = vld [vmem:[#allocation10 + $0x1de8] sm:$0xff] }
 0x4b3   :  { %9381 = vmatprep.subr.bf16.mxu0 %v16033_v24  ;;  %v2252_v24 = vld [vmem:[#allocation10 + $0x2070] sm:$0xff] }
 0x4b4   :  { %9089 = vmatpush2.bf16.msra.mxu1 %v16866_v19  ;;  %v16794_v19 = vcombine.low %v2276_v14, %v2288_v35  ;;  %v16771_v2 = vcombine.high %v2252_v24, %v2264_v39  ;;  %v2216_v14 = vld [vmem:[#allocation10 + $0x1f50] sm:$0xff] }
 0x4b5   :  { %9090 = vmatprep.subr.bf16.mxu1 %v16843_v7  ;;  %v1415_v7 = vld [vmem:[#allocation10 + $0x648] sm:$0xff] }
 0x4b6   :  { %9382 = vmatpush2.bf16.msra.mxu0 %v16032_v38  ;;  %v15960_v38 = vcombine.low %v1439_v33, %v1451_v42  ;;  %v15937_v22 = vcombine.high %v1415_v7, %v1427_v52  ;;  %v2147_v33 = vld [vmem:[#allocation10 + $0x1d28] sm:$0xff] }
 0x4b7   :  { %9383 = vmatprep.subr.bf16.mxu0 %v16009_v4  ;;  %v2228_v4 = vld [vmem:[#allocation10 + $0x1fb0] sm:$0xff] }
 0x4b8   :  { %9091 = vmatpush2.bf16.msra.mxu1 %v16842_v13  ;;  %v16770_v13 = vcombine.low %v2252_v24, %v2264_v39  ;;  %v16747_v8 = vcombine.high %v2228_v4, %v2240_v5  ;;  %v2192_v24 = vld [vmem:[#allocation10 + $0x1e90] sm:$0xff]  ;;  %v19577_v39 = vld [vmem:[#allocation11 + $0x8] sm:$0xff] }
 0x4b9   :  { %9092 = vmatprep.subr.bf16.mxu1 %v16819_v40  ;;  %v2159_v40 = vld [vmem:[#allocation10 + $0x1d88] sm:$0xff] }
 0x4ba   :  { %9384 = vmatpush2.bf16.msra.mxu0 %v16008_v9  ;;  %v15936_v9 = vcombine.low %v1415_v7, %v1427_v52  ;;  %v16681_v35 = vcombine.high %v2159_v40, %v2171_v41  ;;  %v2111_v52 = vld [vmem:[#allocation10 + $0x1c08] sm:$0xff] }
 0x4bb   :  { %9385 = vmatprep.subr.bf16.mxu0 %v15985_v10  ;;  %v2204_v10 = vld [vmem:[#allocation10 + $0x1ef0] sm:$0xff] }
 0x4bc   :  { %9093 = vmatpush2.bf16.msra.mxu1 %v16818_v20  ;;  %v16746_v20 = vcombine.low %v2228_v4, %v2240_v5  ;;  %v16723_v42 = vcombine.high %v2204_v10, %v2216_v14  ;;  %v16722_v7 = vcombine.low %v2204_v10, %v2216_v14  ;;  %v2407_v4 = vrot.slane %v19577_v39, %v19291_v3  ;;  %v2099_v10 = vld [vmem:[#allocation10 + $0x1ba8] sm:$0xff] }
 0x4bd   :  { %9094 = vmatprep.subr.bf16.mxu1 %v16795_v28  ;;  %v2135_v28 = vld [vmem:[#allocation10 + $0x1cc8] sm:$0xff] }
 0x4be   :  { %9386 = vmatpush2.bf16.msra.mxu0 %v15984_v59  ;;  %v16680_v59 = vcombine.low %v2159_v40, %v2171_v41  ;;  %v16656_v5 = vcombine.low %v2135_v28, %v2147_v33  ;;  %v2411_v41 = vrot.slane %v19577_v39, %v19260_v45 }
 0x4bf   :  { %9387 = vmatprep.subr.bf16.mxu0 %v15961_v49  ;;  %v2180_v49 = vld [vmem:[#allocation10 + $0x1e30] sm:$0xff] }
 0x4c0   :  { %9095 = vmatpush2.bf16.msra.mxu1 %v16794_v19  ;;  %v16657_v19 = vcombine.high %v2135_v28, %v2147_v33  ;;  %v1749_v28 = vld [vmem:[#allocation10 + $0x10b8] sm:$0xff] }
 0x4c1   :  { %9096 = vmatprep.subr.bf16.mxu1 %v16771_v2  ;;  %v2123_v2 = vld [vmem:[#allocation10 + $0x1c68] sm:$0xff]  ;;  %v1761_v33 = vld [vmem:[#allocation10 + $0x1118] sm:$0xff] }
 0x4c2   :  { %9388 = vmatpush2.bf16.msra.mxu0 %v15960_v38  ;;  %v16699_v38 = vcombine.high %v2180_v49, %v2192_v24  ;;  %v16633_v40 = vcombine.high %v2111_v52, %v2123_v2 }
 0x4c3   :  { %9389 = vmatprep.subr.bf16.mxu0 %v15937_v22  ;;  %v1773_v22 = vld [vmem:[#allocation10 + $0x1178] sm:$0xff] }
 0x4c4   :  { %9097 = vmatpush2.bf16.msra.mxu1 %v16770_v13  ;;  %v1785_v13 = vld [vmem:[#allocation10 + $0x11d8] sm:$0xff] }
 0x4c5   :  { %9098 = vmatprep.subr.bf16.mxu1 %v16747_v8  ;;  %v16698_v8 = vcombine.low %v2180_v49, %v2192_v24  ;;  %v16293_v14 = vcombine.high %v1773_v22, %v1785_v13  ;;  %v16269_v49 = vcombine.high %v1749_v28, %v1761_v33 }
 0x4c6   :  { %9390 = vmatpush2.bf16.msra.mxu0 %v15936_v9  ;;  %v2087_v9 = vld [vmem:[#allocation10 + $0x1b48] sm:$0xff] }
 0x4c7   :  { %9441 = vmatprep.subr.bf16.mxu0 %v16681_v35  ;;  %v8779_v35 = vadd.f32 %v19567_v54, %v2407_v4  ;;  %v1737_v54 = vld [vmem:[#allocation10 + $0x1058] sm:$0xff] }
 0x4c8   :  { %9099 = vmatpush2.bf16.msra.mxu1 %v16746_v20  ;;  %v16632_v20 = vcombine.low %v2111_v52, %v2123_v2  ;;  %v16585_v52 = vcombine.high %v2063_v29, %v2075_v11 }
 0x4c9   :  { %9100 = vmatprep.subr.bf16.mxu1 %v16723_v42  ;;  %9392 = vmatmul.mubr.bf16.vlgmr.msra.gmra.mxu0 %v19316_v23  ;;  %v16609_v42 = vcombine.high %v2087_v9, %v2099_v10  ;;  %v8820_v24 = vadd.f32 %v19535_v25, %v8779_v35 }
 0x4ca   :  { %9442 = vmatpush1.bf16.msra.mxu0 %v16680_v59  ;;  %9473 = vmatprep.mubr.bf16.mxu0 %v19333_v32  ;;  %v8781_v59 = vadd.f32 %v19571_v30, %v2411_v41  ;;  %v19593_v41 = vpop.f32.mrf.mxu0 }
 0x4cb   :  { %9443 = vmatprep.subr.bf16.mxu0 %v16657_v19  ;;  %v16292_v19 = vcombine.low %v1773_v22, %v1785_v13  ;;  %v2039_v22 = vld [vmem:[#allocation10 + $0x19c8] sm:$0xff] }
 0x4cc   :  { %9101 = vmatpush2.bf16.msra.mxu1 %v16722_v7  ;;  %v16608_v7 = vcombine.low %v2087_v9, %v2099_v10  ;;  %v8822_v2 = vadd.f32 %v19539_v36, %v8781_v59  ;;  %v2051_v13 = vld [vmem:[#allocation10 + $0x1a28] sm:$0xff]  ;;  %v16584_v9 = vcombine.low %v2063_v29, %v2075_v11  ;;  %v1701_v10 = vld [vmem:[#allocation10 + $0xf38] sm:$0xff] }
 0x4cd   :  { %9102 = vmatprep.subr.bf16.mxu1 %v16699_v38  ;;  %v1725_v38 = vld [vmem:[#allocation10 + $0xff8] sm:$0xff]  ;;  %v16561_v35 = vcombine.high %v2039_v22, %v2051_v13 }
 0x4ce   :  { %9444 = vmatpush1.bf16.msra.mxu0 %v16656_v5  ;;  %v16268_v5 = vcombine.low %v1749_v28, %v1761_v33  ;;  %v16244_v28 = vcombine.low %v1725_v38, %v1737_v54  ;;  %v2015_v33 = vld [vmem:[#allocation10 + $0x1908] sm:$0xff] }
 0x4cf   :  { %9445 = vmatprep.subr.bf16.mxu0 %v16633_v40  ;;  %v16245_v40 = vcombine.high %v1725_v38, %v1737_v54  ;;  %v1653_v54 = vld [vmem:[#allocation10 + $0xdb8] sm:$0xff] }
 0x4d0   :  { %9103 = vmatpush2.bf16.msra.mxu1 %v16698_v8 }
 0x4d1   :  { %9154 = vmatprep.subr.bf16.mxu1 %v16293_v14  ;;  %v1713_v14 = vld [vmem:[#allocation10 + $0xf98] sm:$0xff] }
 0x4d2   :  { %9446 = vmatpush1.bf16.msra.mxu0 %v16632_v20  ;;  %v19597_v20 = vpop.f32.mrf.mxu0 }
 0x4d3   :  { %v8860_v4 = vpop.f32.mrf.mxu1  ;;  %9105 = vmatmul.mubr.bf16.vlgmr.msra.gmra.mxu1 %v19348_v15  ;;  %9447 = vmatprep.subr.bf16.mxu0 %v16609_v42  ;;  %v2027_v42 = vld [vmem:[#allocation10 + $0x1968] sm:$0xff] }
 0x4d4   :  { %v19590_v30 = vadd.f32 %v8860_v4, %v8820_v24  ;;  %9155 = vmatpush1.bf16.msra.mxu1 %v16292_v19  ;;  %9186 = vmatprep.mubr.bf16.mxu1 %v19287_v0  ;;  %v16221_v19 = vcombine.high %v1701_v10, %v1713_v14  ;;  %v16560_v24 = vcombine.low %v2039_v22, %v2051_v13  ;;  %v1677_v4 = vld [vmem:[#allocation10 + $0xe78] sm:$0xff]  ;;  %v2351_v22 = vld [vmem:[#allocation10 + $0x2388] sm:$0xff] }
 0x4d5   :  { %v8862_v25 = vpop.f32.mrf.mxu1  ;;  %9156 = vmatprep.subr.bf16.mxu1 %v16269_v49  ;;  %v9069_v49 = vpop.f32.mrf.mxu0  ;;  %v16537_v29 = vcombine.high %v2015_v33, %v2027_v42  ;;  %v16536_v38 = vcombine.low %v2015_v33, %v2027_v42  ;;  %v2363_v13 = vld [vmem:[#allocation10 + $0x23e8] sm:$0xff] }
 0x4d6   :  { %v19595_v8 = vadd.f32 %v8862_v25, %v8822_v2  ;;  %9448 = vmatpush1.bf16.msra.mxu0 %v16608_v7  ;;  %v1689_v7 = vld [vmem:[#allocation10 + $0xed8] sm:$0xff]  ;;  %v1991_v2 = vld [vmem:[#allocation10 + $0x1848] sm:$0xff] }
 0x4d7   :  { %v8864_v36 = vpop.f32.mrf.mxu1  ;;  %9449 = vmatprep.subr.bf16.mxu0 %v16585_v52  ;;  %v9070_v11 = vpop.f32.mrf.mxu0  ;;  %v16220_v52 = vcombine.low %v1701_v10, %v1713_v14  ;;  %v2003_v25 = vld [vmem:[#allocation10 + $0x18a8] sm:$0xff]  ;;  %v1641_v10 = vld [vmem:[#allocation10 + $0xd58] sm:$0xff]  ;;  %v16873_v14 = vcombine.high %v2351_v22, %v2363_v13 }
 0x4d8   :  { %9157 = vmatpush1.bf16.msra.mxu1 %v16268_v5  ;;  %v16197_v5 = vcombine.high %v1677_v4, %v1689_v7  ;;  %v1665_v36 = vld [vmem:[#allocation10 + $0xe18] sm:$0xff]  ;;  %v2327_v49 = vld [vmem:[#allocation10 + $0x22c8] sm:$0xff] }
 0x4d9   :  { %v8865_v59 = vpop.f32.mrf.mxu1  ;;  %9158 = vmatprep.subr.bf16.mxu1 %v16245_v40  ;;  %v16513_v40 = vcombine.high %v1991_v2, %v2003_v25  ;;  %v2339_v33 = vld [vmem:[#allocation10 + $0x2328] sm:$0xff] }
 0x4da   :  { %9450 = vmatpush1.bf16.msra.mxu0 %v16584_v9  ;;  %v16196_v9 = vcombine.low %v1677_v4, %v1689_v7  ;;  %v16512_v59 = vcombine.low %v1991_v2, %v2003_v25  ;;  %v1617_v4 = vld [vmem:[#allocation10 + $0xc98] sm:$0xff]  ;;  %v16849_v7 = vcombine.high %v2327_v49, %v2339_v33  ;;  %v2315_v2 = vld [vmem:[#allocation10 + $0x2268] sm:$0xff] }
 0x4db   :  { %9451 = vmatprep.subr.bf16.mxu0 %v16561_v35  ;;  %v16173_v35 = vcombine.high %v1653_v54, %v1665_v36 }
 0x4dc   :  { %9159 = vmatpush1.bf16.msra.mxu1 %v16244_v28  ;;  %v1629_v28 = vld [vmem:[#allocation10 + $0xcf8] sm:$0xff] }
 0x4dd   :  { %9160 = vmatprep.subr.bf16.mxu1 %v16221_v19  ;;  %v16172_v19 = vcombine.low %v1653_v54, %v1665_v36  ;;  %v16149_v42 = vcombine.high %v1629_v28, %v1641_v10  ;;  %v16148_v11 = vcombine.low %v1629_v28, %v1641_v10  ;;  %v1977_v54 = vld [vmem:[#allocation10 + $0x17d8] sm:$0xff] }
 0x4de   :  { %9452 = vmatpush1.bf16.msra.mxu0 %v16560_v24  ;;  %v16872_v24 = vcombine.low %v2351_v22, %v2363_v13  ;;  %v2291_v22 = vld [vmem:[#allocation10 + $0x21a8] sm:$0xff]  ;;  %v1953_v28 = vld [vmem:[#allocation10 + $0x1718] sm:$0xff] }
 0x4df   :  { %9453 = vmatprep.subr.bf16.mxu0 %v16537_v29  ;;  %v1605_v29 = vld [vmem:[#allocation10 + $0xc38] sm:$0xff] }
 0x4e0   :  { %9161 = vmatpush1.bf16.msra.mxu1 %v16220_v52  ;;  %v2303_v52 = vld [vmem:[#allocation10 + $0x2208] sm:$0xff]  ;;  %v16125_v25 = vcombine.high %v1605_v29, %v1617_v4 }
 0x4e1   :  { %9162 = vmatprep.subr.bf16.mxu1 %v16197_v5  ;;  %v16848_v5 = vcombine.low %v2327_v49, %v2339_v33  ;;  %v16825_v36 = vcombine.high %v2303_v52, %v2315_v2  ;;  %v2267_v49 = vld [vmem:[#allocation10 + $0x20e8] sm:$0xff] }
 0x4e2   :  { %9454 = vmatpush1.bf16.msra.mxu0 %v16536_v38  ;;  %v1965_v38 = vld [vmem:[#allocation10 + $0x1778] sm:$0xff] }
 0x4e3   :  { %9455 = vmatprep.subr.bf16.mxu0 %v16513_v40  ;;  %v16124_v40 = vcombine.low %v1605_v29, %v1617_v4  ;;  %v16485_v13 = vcombine.high %v1965_v38, %v1977_v54  ;;  %v1929_v29 = vld [vmem:[#allocation10 + $0x1658] sm:$0xff] }
 0x4e4   :  { %9163 = vmatpush1.bf16.msra.mxu1 %v16196_v9  ;;  %v2279_v9 = vld [vmem:[#allocation10 + $0x2148] sm:$0xff] }
 0x4e5   :  { %9164 = vmatprep.subr.bf16.mxu1 %v16173_v35  ;;  %v16824_v35 = vcombine.low %v2303_v52, %v2315_v2  ;;  %v16801_v10 = vcombine.high %v2279_v9, %v2291_v22  ;;  %v2243_v52 = vld [vmem:[#allocation10 + $0x2028] sm:$0xff] }
 0x4e6   :  { %9456 = vmatpush1.bf16.msra.mxu0 %v16512_v59  ;;  %v1941_v59 = vld [vmem:[#allocation10 + $0x16b8] sm:$0xff] }
 0x4e7   :  { %9457 = vmatprep.subr.bf16.mxu0 %v16873_v14  ;;  %v16484_v14 = vcombine.low %v1965_v38, %v1977_v54  ;;  %v16461_v33 = vcombine.high %v1941_v59, %v1953_v28  ;;  %v1905_v38 = vld [vmem:[#allocation10 + $0x1598] sm:$0xff] }
 0x4e8   :  { %9165 = vmatpush1.bf16.msra.mxu1 %v16172_v19  ;;  %v2255_v19 = vld [vmem:[#allocation10 + $0x2088] sm:$0xff] }
 0x4e9   :  { %9166 = vmatprep.subr.bf16.mxu1 %v16149_v42  ;;  %v16800_v42 = vcombine.low %v2279_v9, %v2291_v22  ;;  %v16777_v4 = vcombine.high %v2255_v19, %v2267_v49  ;;  %v2219_v9 = vld [vmem:[#allocation10 + $0x1f68] sm:$0xff] }
 0x4ea   :  { %9458 = vmatpush2.bf16.msra.mxu0 %v16872_v24  ;;  %v1917_v24 = vld [vmem:[#allocation10 + $0x15f8] sm:$0xff] }
 0x4eb   :  { %9459 = vmatprep.subr.bf16.mxu0 %v16849_v7  ;;  %v16460_v7 = vcombine.low %v1941_v59, %v1953_v28  ;;  %v16437_v2 = vcombine.high %v1917_v24, %v1929_v29  ;;  %v1881_v59 = vld [vmem:[#allocation10 + $0x14d8] sm:$0xff] }
 0x4ec   :  { %9167 = vmatpush1.bf16.msra.mxu1 %v16148_v11  ;;  %v2231_v11 = vld [vmem:[#allocation10 + $0x1fc8] sm:$0xff] }
 0x4ed   :  { %9168 = vmatprep.subr.bf16.mxu1 %v16125_v25  ;;  %v16776_v25 = vcombine.low %v2255_v19, %v2267_v49  ;;  %v16753_v54 = vcombine.high %v2231_v11, %v2243_v52  ;;  %v2195_v19 = vld [vmem:[#allocation10 + $0x1ea8] sm:$0xff] }
 0x4ee   :  { %9460 = vmatpush2.bf16.msra.mxu0 %v16848_v5  ;;  %v1893_v5 = vld [vmem:[#allocation10 + $0x1538] sm:$0xff] }
 0x4ef   :  { %9461 = vmatprep.subr.bf16.mxu0 %v16825_v36  ;;  %v16436_v36 = vcombine.low %v1917_v24, %v1929_v29  ;;  %v16413_v22 = vcombine.high %v1893_v5, %v1905_v38  ;;  %v1857_v24 = vld [vmem:[#allocation10 + $0x1418] sm:$0xff] }
 0x4f0   :  { %9169 = vmatpush1.bf16.msra.mxu1 %v16124_v40  ;;  %v2207_v40 = vld [vmem:[#allocation10 + $0x1f08] sm:$0xff] }
 0x4f1   :  { %9170 = vmatprep.subr.bf16.mxu1 %v16485_v13  ;;  %v16752_v13 = vcombine.low %v2231_v11, %v2243_v52  ;;  %v16729_v28 = vcombine.high %v2207_v40, %v2219_v9  ;;  %v1788_v11 = vld [vmem:[#allocation10 + $0x11f0] sm:$0xff] }
 0x4f2   :  { %9462 = vmatpush2.bf16.msra.mxu0 %v16824_v35  ;;  %v1869_v35 = vld [vmem:[#allocation10 + $0x1478] sm:$0xff] }
 0x4f3   :  { %9463 = vmatprep.subr.bf16.mxu0 %v16801_v10  ;;  %v16412_v10 = vcombine.low %v1893_v5, %v1905_v38  ;;  %v16389_v49 = vcombine.high %v1869_v35, %v1881_v59  ;;  %v1833_v5 = vld [vmem:[#allocation10 + $0x1358] sm:$0xff] }
 0x4f4   :  { %9171 = vmatpush2.bf16.msra.mxu1 %v16484_v14  ;;  %v2183_v14 = vld [vmem:[#allocation10 + $0x1e48] sm:$0xff] }
 0x4f5   :  { %9172 = vmatprep.subr.bf16.mxu1 %v16461_v33  ;;  %v16728_v33 = vcombine.low %v2207_v40, %v2219_v9  ;;  %v16705_v29 = vcombine.high %v2183_v14, %v2195_v19  ;;  %v1764_v40 = vld [vmem:[#allocation10 + $0x1130] sm:$0xff] }
 0x4f6   :  { %9464 = vmatpush2.bf16.msra.mxu0 %v16800_v42  ;;  %v1845_v42 = vld [vmem:[#allocation10 + $0x13b8] sm:$0xff] }
 0x4f7   :  { %9465 = vmatprep.subr.bf16.mxu0 %v16777_v4  ;;  %v16388_v4 = vcombine.low %v1869_v35, %v1881_v59  ;;  %v16365_v52 = vcombine.high %v1845_v42, %v1857_v24  ;;  %v1809_v35 = vld [vmem:[#allocation10 + $0x1298] sm:$0xff] }
 0x4f8   :  { %9173 = vmatpush2.bf16.msra.mxu1 %v16460_v7  ;;  %v1776_v7 = vld [vmem:[#allocation10 + $0x1190] sm:$0xff] }
 0x4f9   :  { %9174 = vmatprep.subr.bf16.mxu1 %v16437_v2  ;;  %v16704_v2 = vcombine.low %v2183_v14, %v2195_v19  ;;  %v16299_v38 = vcombine.high %v1776_v7, %v1788_v11  ;;  %v1740_v14 = vld [vmem:[#allocation10 + $0x1070] sm:$0xff] }
 0x4fa   :  { %9466 = vmatpush2.bf16.msra.mxu0 %v16776_v25  ;;  %v1821_v25 = vld [vmem:[#allocation10 + $0x12f8] sm:$0xff] }
 0x4fb   :  { %9467 = vmatprep.subr.bf16.mxu0 %v16753_v54  ;;  %v16364_v54 = vcombine.low %v1845_v42, %v1857_v24  ;;  %v16341_v9 = vcombine.high %v1821_v25, %v1833_v5  ;;  %v1402_v42 = vld [vmem:[#allocation10 + $0x5e0] sm:$0xff] }
 0x4fc   :  { %9175 = vmatpush2.bf16.msra.mxu1 %v16436_v36  ;;  %v1752_v36 = vld [vmem:[#allocation10 + $0x10d0] sm:$0xff] }
 0x4fd   :  { %9176 = vmatprep.subr.bf16.mxu1 %v16413_v22  ;;  %v16298_v22 = vcombine.low %v1776_v7, %v1788_v11  ;;  %v16275_v59 = vcombine.high %v1752_v36, %v1764_v40  ;;  %v1704_v7 = vld [vmem:[#allocation10 + $0xf50] sm:$0xff] }
 0x4fe   :  { %9468 = vmatpush2.bf16.msra.mxu0 %v16752_v13  ;;  %v1797_v13 = vld [vmem:[#allocation10 + $0x1238] sm:$0xff]  ;;  %v1716_v11 = vld [vmem:[#allocation10 + $0xfb0] sm:$0xff] }
 0x4ff   :  { %9469 = vmatprep.subr.bf16.mxu0 %v16729_v28  ;;  %v16340_v28 = vcombine.low %v1821_v25, %v1833_v5  ;;  %v16317_v19 = vcombine.high %v1797_v13, %v1809_v35  ;;  %v1366_v5 = vld [vmem:[#allocation10 + $0x4c0] sm:$0xff] }
 0x500   :  { %9177 = vmatpush2.bf16.msra.mxu1 %v16412_v10  ;;  %v1728_v10 = vld [vmem:[#allocation10 + $0x1010] sm:$0xff] }
 0x501   :  { %9178 = vmatprep.subr.bf16.mxu1 %v16389_v49  ;;  %v16274_v49 = vcombine.low %v1752_v36, %v1764_v40  ;;  %v16251_v24 = vcombine.high %v1728_v10, %v1740_v14  ;;  %v16250_v25 = vcombine.low %v1728_v10, %v1740_v14 }
 0x502   :  { %9470 = vmatpush2.bf16.msra.mxu0 %v16728_v33  ;;  %v1390_v33 = vld [vmem:[#allocation10 + $0x580] sm:$0xff] }
 0x503   :  { %9471 = vmatprep.subr.bf16.mxu0 %v16705_v29  ;;  %v2415_v29 = vrot.slane %v19577_v39, %v19295_v6  ;;  %v15910_v40 = vcombine.low %v1390_v33, %v1402_v42 }
 0x504   :  { %9179 = vmatpush2.bf16.msra.mxu1 %v16388_v4  ;;  %v16316_v4 = vcombine.low %v1797_v13, %v1809_v35 }
 0x505   :  { %9180 = vmatprep.subr.bf16.mxu1 %v16365_v52  ;;  %v15911_v52 = vcombine.high %v1390_v33, %v1402_v42  ;;  %v8902_v36 = vadd.f32 %v19563_v44, %v2415_v29  ;;  %v1668_v33 = vld [vmem:[#allocation10 + $0xe30] sm:$0xff] }
 0x506   :  { %9472 = vmatpush2.bf16.msra.mxu0 %v16704_v2  ;;  %v2419_v2 = vrot.slane %v19577_v39, %v19263_v46  ;;  %v1354_v39 = vld [vmem:[#allocation10 + $0x460] sm:$0xff] }
 0x507   :  { %9523 = vmatprep.subr.bf16.mxu0 %v16299_v38  ;;  %v1378_v38 = vld [vmem:[#allocation10 + $0x520] sm:$0xff] }
 0x508   :  { %9181 = vmatpush2.bf16.msra.mxu1 %v16364_v54  ;;  %v16227_v54 = vcombine.high %v1704_v7, %v1716_v11  ;;  %v15887_v13 = vcombine.high %v1366_v5, %v1378_v38  ;;  %v8904_v35 = vadd.f32 %v19565_v55, %v2419_v2  ;;  %v15886_v44 = vcombine.low %v1366_v5, %v1378_v38  ;;  %v1644_v5 = vld [vmem:[#allocation10 + $0xd70] sm:$0xff] }
 0x509   :  { %9182 = vmatprep.subr.bf16.mxu1 %v16341_v9  ;;  %9474 = vmatmul.mubr.bf16.vlgmr.msra.gmra.mxu0 %v19348_v15  ;;  %v1680_v9 = vld [vmem:[#allocation10 + $0xe90] sm:$0xff] }
 0x50a   :  { %9524 = vmatpush1.bf16.msra.mxu0 %v16298_v22  ;;  %9555 = vmatprep.mubr.bf16.mxu0 %v19287_v0  ;;  %v1692_v22 = vld [vmem:[#allocation10 + $0xef0] sm:$0xff] }
 0x50b   :  { %9525 = vmatprep.subr.bf16.mxu0 %v16275_v59  ;;  %v16226_v59 = vcombine.low %v1704_v7, %v1716_v11  ;;  %v16203_v10 = vcombine.high %v1680_v9, %v1692_v22  ;;  %v16202_v29 = vcombine.low %v1680_v9, %v1692_v22  ;;  %v1330_v7 = vld [vmem:[#allocation10 + $0x3a0] sm:$0xff]  ;;  %v1608_v22 = vld [vmem:[#allocation10 + $0xc50] sm:$0xff] }
 0x50c   :  { %9183 = vmatpush2.bf16.msra.mxu1 %v16340_v28  ;;  %v1342_v28 = vld [vmem:[#allocation10 + $0x400] sm:$0xff] }
 0x50d   :  { %9184 = vmatprep.subr.bf16.mxu1 %v16317_v19  ;;  %v15863_v55 = vcombine.high %v1342_v28, %v1354_v39  ;;  %v15862_v2 = vcombine.low %v1342_v28, %v1354_v39  ;;  %v1270_v28 = vld [vmem:[#allocation10 + $0x1c0] sm:$0xff] }
 0x50e   :  { %9526 = vmatpush1.bf16.msra.mxu0 %v16274_v49  ;;  %v1656_v49 = vld [vmem:[#allocation10 + $0xdd0] sm:$0xff]  ;;  %v1282_v39 = vld [vmem:[#allocation10 + $0x220] sm:$0xff] }
 0x50f   :  { %9527 = vmatprep.subr.bf16.mxu0 %v16251_v24 }
 0x510   :  { %9185 = vmatpush2.bf16.msra.mxu1 %v16316_v4  ;;  %v1318_v4 = vld [vmem:[#allocation10 + $0x340] sm:$0xff] }
 0x511   :  { %9236 = vmatprep.subr.bf16.mxu1 %v15911_v52  ;;  %v16179_v52 = vcombine.high %v1656_v49, %v1668_v33  ;;  %v15838_v9 = vcombine.low %v1318_v4, %v1330_v7 }
 0x512   :  { %9528 = vmatpush1.bf16.msra.mxu0 %v16250_v25  ;;  %v1632_v25 = vld [vmem:[#allocation10 + $0xd10] sm:$0xff] }
 0x513   :  { %v8942_v19 = vpop.f32.mrf.mxu1  ;;  %9187 = vmatmul.mubr.bf16.vlgmr.msra.gmra.mxu1 %v19322_v26  ;;  %9529 = vmatprep.subr.bf16.mxu0 %v16227_v54  ;;  %v15839_v54 = vcombine.high %v1318_v4, %v1330_v7  ;;  %v1258_v4 = vld [vmem:[#allocation10 + $0x160] sm:$0xff] }
 0x514   :  { %v19608_v14 = vadd.f32 %v8942_v19, %v8902_v36  ;;  %9237 = vmatpush1.bf16.msra.mxu1 %v15910_v40  ;;  %9268 = vmatprep.mubr.bf16.mxu1 %v19283_v62  ;;  %v16178_v36 = vcombine.low %v1656_v49, %v1668_v33  ;;  %v1294_v40 = vld [vmem:[#allocation10 + $0x280] sm:$0xff]  ;;  %v1980_v49 = vld [vmem:[#allocation10 + $0x17f0] sm:$0xff]  ;;  %v15791_v33 = vcombine.high %v1270_v28, %v1282_v39 }
 0x515   :  { %v8944_v42 = vpop.f32.mrf.mxu1  ;;  %9238 = vmatprep.subr.bf16.mxu1 %v15887_v13  ;;  %v1306_v13 = vld [vmem:[#allocation10 + $0x2e0] sm:$0xff] }
 0x516   :  { %v19611_v24 = vadd.f32 %v8944_v42, %v8904_v35  ;;  %9530 = vmatpush1.bf16.msra.mxu0 %v16226_v59  ;;  %v16155_v35 = vcombine.high %v1632_v25, %v1644_v5  ;;  %v1620_v59 = vld [vmem:[#allocation10 + $0xcb0] sm:$0xff]  ;;  %v15815_v19 = vcombine.high %v1294_v40, %v1306_v13  ;;  %v15814_v42 = vcombine.low %v1294_v40, %v1306_v13 }
 0x517   :  { %v8946_v11 = vpop.f32.mrf.mxu1  ;;  %9531 = vmatprep.subr.bf16.mxu0 %v16203_v10  ;;  %v16154_v10 = vcombine.low %v1632_v25, %v1644_v5  ;;  %v1956_v25 = vld [vmem:[#allocation10 + $0x1730] sm:$0xff] }
 0x518   :  { %20214 = vst [vmem:[#allocation48_spill] sm:$0xff] %v19611_v24  ;;  %9239 = vmatpush1.bf16.msra.mxu1 %v15886_v44  ;;  %v16131_v44 = vcombine.high %v1608_v22, %v1620_v59  ;;  %v1246_v11 = vld [vmem:[#allocation10 + $0x100] sm:$0xff]  ;;  %v2005_v24 = vld [vmem:[#allocation10 + $0x18b8] sm:$0xff] }
 0x519   :  { %v8947_v38 = vpop.f32.mrf.mxu1  ;;  %9240 = vmatprep.subr.bf16.mxu1 %v15863_v55  ;;  %v1968_v55 = vld [vmem:[#allocation10 + $0x1790] sm:$0xff]  ;;  %v15767_v5 = vcombine.high %v1246_v11, %v1258_v4  ;;  %v15766_v13 = vcombine.low %v1246_v11, %v1258_v4 }
 0x51a   :  { %9532 = vmatpush1.bf16.msra.mxu0 %v16202_v29  ;;  %v16130_v29 = vcombine.low %v1608_v22, %v1620_v59  ;;  %v16491_v7 = vcombine.high %v1968_v55, %v1980_v49  ;;  %v16490_v38 = vcombine.low %v1968_v55, %v1980_v49 }
 0x51b   :  { %9533 = vmatprep.subr.bf16.mxu0 %v16179_v52  ;;  %v15790_v52 = vcombine.low %v1270_v28, %v1282_v39 }
 0x51c   :  { %9241 = vmatpush1.bf16.msra.mxu1 %v15862_v2  ;;  %v1944_v2 = vld [vmem:[#allocation10 + $0x16d0] sm:$0xff] }
 0x51d   :  { %9242 = vmatprep.subr.bf16.mxu1 %v15839_v54  ;;  %v1222_v54 = vld [vmem:[#allocation10 + $0x40] sm:$0xff]  ;;  %v16467_v40 = vcombine.high %v1944_v2, %v1956_v25  ;;  %v16466_v59 = vcombine.low %v1944_v2, %v1956_v25 }
 0x51e   :  { %9534 = vmatpush1.bf16.msra.mxu0 %v16178_v36  ;;  %v1234_v36 = vld [vmem:[#allocation10 + $0xa0] sm:$0xff] }
 0x51f   :  { %9535 = vmatprep.subr.bf16.mxu0 %v16155_v35  ;;  %v1920_v35 = vld [vmem:[#allocation10 + $0x1610] sm:$0xff]  ;;  %v15743_v22 = vcombine.high %v1222_v54, %v1234_v36  ;;  %v15742_v39 = vcombine.low %v1222_v54, %v1234_v36 }
 0x520   :  { %9243 = vmatpush1.bf16.msra.mxu1 %v15838_v9  ;;  %v1932_v9 = vld [vmem:[#allocation10 + $0x1670] sm:$0xff] }
 0x521   :  { %9244 = vmatprep.subr.bf16.mxu1 %v15815_v19  ;;  %v1582_v19 = vld [vmem:[#allocation10 + $0xb80] sm:$0xff]  ;;  %v16443_v28 = vcombine.high %v1920_v35, %v1932_v9  ;;  %v16442_v49 = vcombine.low %v1920_v35, %v1932_v9 }
 0x522   :  { %9536 = vmatpush1.bf16.msra.mxu0 %v16154_v10  ;;  %v1594_v10 = vld [vmem:[#allocation10 + $0xbe0] sm:$0xff] }
 0x523   :  { %9537 = vmatprep.subr.bf16.mxu0 %v16131_v44  ;;  %v1896_v44 = vld [vmem:[#allocation10 + $0x1550] sm:$0xff]  ;;  %v16103_v55 = vcombine.high %v1582_v19, %v1594_v10  ;;  %v16102_v4 = vcombine.low %v1582_v19, %v1594_v10 }
 0x524   :  { %9245 = vmatpush1.bf16.msra.mxu1 %v15814_v42  ;;  %v1908_v42 = vld [vmem:[#allocation10 + $0x15b0] sm:$0xff] }
 0x525   :  { %9246 = vmatprep.subr.bf16.mxu1 %v15791_v33  ;;  %v1558_v33 = vld [vmem:[#allocation10 + $0xac0] sm:$0xff]  ;;  %v16419_v11 = vcombine.high %v1896_v44, %v1908_v42  ;;  %v16418_v25 = vcombine.low %v1896_v44, %v1908_v42 }
 0x526   :  { %9538 = vmatpush1.bf16.msra.mxu0 %v16130_v29  ;;  %v1570_v29 = vld [vmem:[#allocation10 + $0xb20] sm:$0xff] }
 0x527   :  { %9539 = vmatprep.subr.bf16.mxu0 %v16491_v7  ;;  %v1872_v7 = vld [vmem:[#allocation10 + $0x1490] sm:$0xff]  ;;  %v16079_v2 = vcombine.high %v1558_v33, %v1570_v29  ;;  %v16078_v36 = vcombine.low %v1558_v33, %v1570_v29 }
 0x528   :  { %9247 = vmatpush1.bf16.msra.mxu1 %v15790_v52  ;;  %v1884_v52 = vld [vmem:[#allocation10 + $0x14f0] sm:$0xff] }
 0x529   :  { %9248 = vmatprep.subr.bf16.mxu1 %v15767_v5  ;;  %v1534_v5 = vld [vmem:[#allocation10 + $0xa00] sm:$0xff]  ;;  %v16395_v54 = vcombine.high %v1872_v7, %v1884_v52  ;;  %v16394_v9 = vcombine.low %v1872_v7, %v1884_v52 }
 0x52a   :  { %9540 = vmatpush2.bf16.msra.mxu0 %v16490_v38  ;;  %v1546_v38 = vld [vmem:[#allocation10 + $0xa60] sm:$0xff] }
 0x52b   :  { %9541 = vmatprep.subr.bf16.mxu0 %v16467_v40  ;;  %v1848_v40 = vld [vmem:[#allocation10 + $0x13d0] sm:$0xff]  ;;  %v16055_v35 = vcombine.high %v1534_v5, %v1546_v38  ;;  %v16054_v10 = vcombine.low %v1534_v5, %v1546_v38 }
 0x52c   :  { %9249 = vmatpush1.bf16.msra.mxu1 %v15766_v13  ;;  %v1860_v13 = vld [vmem:[#allocation10 + $0x1430] sm:$0xff] }
 0x52d   :  { %9250 = vmatprep.subr.bf16.mxu1 %v15743_v22  ;;  %v1510_v22 = vld [vmem:[#allocation10 + $0x940] sm:$0xff]  ;;  %v16371_v19 = vcombine.high %v1848_v40, %v1860_v13  ;;  %v16370_v42 = vcombine.low %v1848_v40, %v1860_v13 }
 0x52e   :  { %9542 = vmatpush2.bf16.msra.mxu0 %v16466_v59  ;;  %v1522_v59 = vld [vmem:[#allocation10 + $0x9a0] sm:$0xff] }
 0x52f   :  { %9543 = vmatprep.subr.bf16.mxu0 %v16443_v28  ;;  %v1824_v28 = vld [vmem:[#allocation10 + $0x1310] sm:$0xff]  ;;  %v16031_v44 = vcombine.high %v1510_v22, %v1522_v59  ;;  %v16030_v29 = vcombine.low %v1510_v22, %v1522_v59 }
 0x530   :  { %9251 = vmatpush1.bf16.msra.mxu1 %v15742_v39  ;;  %v1836_v39 = vld [vmem:[#allocation10 + $0x1370] sm:$0xff] }
 0x531   :  { %9252 = vmatprep.subr.bf16.mxu1 %v16103_v55  ;;  %v1486_v55 = vld [vmem:[#allocation10 + $0x880] sm:$0xff]  ;;  %v16347_v33 = vcombine.high %v1824_v28, %v1836_v39  ;;  %v16346_v52 = vcombine.low %v1824_v28, %v1836_v39 }
 0x532   :  { %9544 = vmatpush2.bf16.msra.mxu0 %v16442_v49  ;;  %v1498_v49 = vld [vmem:[#allocation10 + $0x8e0] sm:$0xff] }
 0x533   :  { %9545 = vmatprep.subr.bf16.mxu0 %v16419_v11  ;;  %v1800_v11 = vld [vmem:[#allocation10 + $0x1250] sm:$0xff]  ;;  %v16007_v7 = vcombine.high %v1486_v55, %v1498_v49  ;;  %v16006_v38 = vcombine.low %v1486_v55, %v1498_v49 }
 0x534   :  { %9253 = vmatpush2.bf16.msra.mxu1 %v16102_v4  ;;  %v1812_v4 = vld [vmem:[#allocation10 + $0x12b0] sm:$0xff] }
 0x535   :  { %9254 = vmatprep.subr.bf16.mxu1 %v16079_v2  ;;  %v1462_v2 = vld [vmem:[#allocation10 + $0x7c0] sm:$0xff]  ;;  %v16323_v5 = vcombine.high %v1800_v11, %v1812_v4  ;;  %v16322_v13 = vcombine.low %v1800_v11, %v1812_v4 }
 0x536   :  { %9546 = vmatpush2.bf16.msra.mxu0 %v16418_v25  ;;  %v1474_v25 = vld [vmem:[#allocation10 + $0x820] sm:$0xff] }
 0x537   :  { %9547 = vmatprep.subr.bf16.mxu0 %v16395_v54  ;;  %v1393_v54 = vld [vmem:[#allocation10 + $0x598] sm:$0xff]  ;;  %v15983_v40 = vcombine.high %v1462_v2, %v1474_v25  ;;  %v15982_v59 = vcombine.low %v1462_v2, %v1474_v25 }
 0x538   :  { %9255 = vmatpush2.bf16.msra.mxu1 %v16078_v36  ;;  %v1405_v36 = vld [vmem:[#allocation10 + $0x5f8] sm:$0xff] }
 0x539   :  { %9256 = vmatprep.subr.bf16.mxu1 %v16055_v35  ;;  %v1438_v35 = vld [vmem:[#allocation10 + $0x700] sm:$0xff]  ;;  %v15917_v22 = vcombine.high %v1393_v54, %v1405_v36  ;;  %v15916_v39 = vcombine.low %v1393_v54, %v1405_v36  ;;  %v19615_v54 = vpop.f32.mrf.mxu0 }
 0x53a   :  { %9548 = vmatpush2.bf16.msra.mxu0 %v16394_v9  ;;  %v1450_v9 = vld [vmem:[#allocation10 + $0x760] sm:$0xff] }
 0x53b   :  { %9549 = vmatprep.subr.bf16.mxu0 %v16371_v19  ;;  %v1369_v19 = vld [vmem:[#allocation10 + $0x4d8] sm:$0xff]  ;;  %v15959_v28 = vcombine.high %v1438_v35, %v1450_v9  ;;  %v15958_v49 = vcombine.low %v1438_v35, %v1450_v9  ;;  %v2146_v35 = vld [vmem:[#allocation10 + $0x1d20] sm:$0xff]  ;;  %v19617_v9 = vpop.f32.mrf.mxu0 }
 0x53c   :  { %9257 = vmatpush2.bf16.msra.mxu1 %v16054_v10  ;;  %v1381_v10 = vld [vmem:[#allocation10 + $0x538] sm:$0xff] }
 0x53d   :  { %9258 = vmatprep.subr.bf16.mxu1 %v16031_v44  ;;  %v1414_v44 = vld [vmem:[#allocation10 + $0x640] sm:$0xff]  ;;  %v15893_v55 = vcombine.high %v1369_v19, %v1381_v10  ;;  %v15892_v4 = vcombine.low %v1369_v19, %v1381_v10  ;;  %v1297_v19 = vld [vmem:[#allocation10 + $0x298] sm:$0xff] }
 0x53e   :  { %9550 = vmatpush2.bf16.msra.mxu0 %v16370_v42  ;;  %v1426_v42 = vld [vmem:[#allocation10 + $0x6a0] sm:$0xff]  ;;  %v1309_v10 = vld [vmem:[#allocation10 + $0x2f8] sm:$0xff] }
 0x53f   :  { %9551 = vmatprep.subr.bf16.mxu0 %v16347_v33  ;;  %v1345_v33 = vld [vmem:[#allocation10 + $0x418] sm:$0xff]  ;;  %v15935_v11 = vcombine.high %v1414_v44, %v1426_v42  ;;  %v15934_v25 = vcombine.low %v1414_v44, %v1426_v42  ;;  %v2110_v42 = vld [vmem:[#allocation10 + $0x1c00] sm:$0xff] }
 0x540   :  { %9259 = vmatpush2.bf16.msra.mxu1 %v16030_v29  ;;  %v1357_v29 = vld [vmem:[#allocation10 + $0x478] sm:$0xff] }
 0x541   :  { %9260 = vmatprep.subr.bf16.mxu1 %v16007_v7  ;;  %v2158_v7 = vld [vmem:[#allocation10 + $0x1d80] sm:$0xff]  ;;  %v15869_v2 = vcombine.high %v1345_v33, %v1357_v29 }
 0x542   :  { %9552 = vmatpush2.bf16.msra.mxu0 %v16346_v52  ;;  %v2170_v52 = vld [vmem:[#allocation10 + $0x1de0] sm:$0xff] }
 0x543   :  { %9553 = vmatprep.subr.bf16.mxu0 %v16323_v5  ;;  %v1321_v5 = vld [vmem:[#allocation10 + $0x358] sm:$0xff]  ;;  %v16679_v36 = vcombine.high %v2158_v7, %v2170_v52 }
 0x544   :  { %9261 = vmatpush2.bf16.msra.mxu1 %v16006_v38  ;;  %v1333_v38 = vld [vmem:[#allocation10 + $0x3b8] sm:$0xff] }
 0x545   :  { %9262 = vmatprep.subr.bf16.mxu1 %v15983_v40  ;;  %v15868_v40 = vcombine.low %v1345_v33, %v1357_v29  ;;  %v15844_v44 = vcombine.low %v1321_v5, %v1333_v38  ;;  %v15821_v33 = vcombine.high %v1297_v19, %v1309_v10 }
 0x546   :  { %9554 = vmatpush2.bf16.msra.mxu0 %v16322_v13  ;;  %v2134_v13 = vld [vmem:[#allocation10 + $0x1cc0] sm:$0xff] }
 0x547   :  { %9605 = vmatprep.subr.bf16.mxu0 %v15917_v22  ;;  %v15845_v22 = vcombine.high %v1321_v5, %v1333_v38  ;;  %v16654_v29 = vcombine.low %v2134_v13, %v2146_v35  ;;  %v15820_v5 = vcombine.low %v1297_v19, %v1309_v10  ;;  %v2086_v38 = vld [vmem:[#allocation10 + $0x1b40] sm:$0xff] }
 0x548   :  { %9263 = vmatpush2.bf16.msra.mxu1 %v15982_v59  ;;  %v16678_v59 = vcombine.low %v2158_v7, %v2170_v52  ;;  %v1285_v7 = vld [vmem:[#allocation10 + $0x238] sm:$0xff] }
 0x549   :  { %9264 = vmatprep.subr.bf16.mxu1 %v15959_v28  ;;  %9556 = vmatmul.mubr.bf16.vlgmr.msra.gmra.mxu0 %v19322_v26  ;;  %v9151_v28 = vpop.f32.mrf.mxu0 }
 0x54a   :  { %9606 = vmatpush1.bf16.msra.mxu0 %v15916_v39  ;;  %9637 = vmatprep.mubr.bf16.mxu0 %v19283_v62  ;;  %v16655_v39 = vcombine.high %v2134_v13, %v2146_v35  ;;  %v1249_v35 = vld [vmem:[#allocation10 + $0x118] sm:$0xff] }
 0x54b   :  { %9607 = vmatprep.subr.bf16.mxu0 %v15893_v55  ;;  %v2122_v55 = vld [vmem:[#allocation10 + $0x1c60] sm:$0xff] }
 0x54c   :  { %9265 = vmatpush2.bf16.msra.mxu1 %v15958_v49  ;;  %v9152_v49 = vpop.f32.mrf.mxu0  ;;  %v16630_v13 = vcombine.low %v2110_v42, %v2122_v55 }
 0x54d   :  { %9266 = vmatprep.subr.bf16.mxu1 %v15935_v11 }
 0x54e   :  { %9608 = vmatpush1.bf16.msra.mxu0 %v15892_v4  ;;  %v1273_v4 = vld [vmem:[#allocation10 + $0x1d8] sm:$0xff] }
 0x54f   :  { %9609 = vmatprep.subr.bf16.mxu0 %v15869_v2  ;;  %v16631_v2 = vcombine.high %v2110_v42, %v2122_v55  ;;  %v15796_v21 = vcombine.low %v1273_v4, %v1285_v7  ;;  %v2038_v55 = vld [vmem:[#allocation10 + $0x19c0] sm:$0xff] }
 0x550   :  { %9267 = vmatpush2.bf16.msra.mxu1 %v15934_v25  ;;  %v19625_v25 = vpop.f32.mrf.mxu0 }
 0x551   :  { %9318 = vmatprep.subr.bf16.mxu1 %v16679_v36  ;;  %v2098_v36 = vld [vmem:[#allocation10 + $0x1ba0] sm:$0xff] }
 0x552   :  { %9610 = vmatpush1.bf16.msra.mxu0 %v15868_v40  ;;  %v19627_v28 = vpop.f32.mrf.mxu0  ;;  %v16607_v60 = vcombine.high %v2086_v38, %v2098_v36 }
 0x553   :  { %v19619_v11 = vpop.f32.mrf.mxu1  ;;  %9269 = vmatmul.mubr.bf16.vlgmr.msra.gmra.mxu1 %v19316_v23  ;;  %9611 = vmatprep.subr.bf16.mxu0 %v15845_v22  ;;  %v15797_v22 = vcombine.high %v1273_v4, %v1285_v7  ;;  %v1585_v4 = vld [vmem:[#allocation10 + $0xb98] sm:$0xff] }
 0x554   :  { %9319 = vmatpush1.bf16.msra.mxu1 %v16678_v59  ;;  %9350 = vmatprep.mubr.bf16.mxu1 %v19333_v32  ;;  %v1261_v59 = vld [vmem:[#allocation10 + $0x178] sm:$0xff] }
 0x555   :  { %v19623_v52 = vpop.f32.mrf.mxu1  ;;  %9320 = vmatprep.subr.bf16.mxu1 %v16655_v39  ;;  %v9233_v39 = vpop.f32.mrf.mxu0  ;;  %v15773_v19 = vcombine.high %v1249_v35, %v1261_v59  ;;  %v15772_v42 = vcombine.low %v1249_v35, %v1261_v59  ;;  %v1597_v7 = vld [vmem:[#allocation10 + $0xbf8] sm:$0xff] }
 0x556   :  { %9612 = vmatpush1.bf16.msra.mxu0 %v15844_v44  ;;  %v2074_v44 = vld [vmem:[#allocation10 + $0x1ae0] sm:$0xff]  ;;  %v1573_v35 = vld [vmem:[#allocation10 + $0xb38] sm:$0xff] }
 0x557   :  { %v9028_v40 = vpop.f32.mrf.mxu1  ;;  %9613 = vmatprep.subr.bf16.mxu0 %v15821_v33  ;;  %v9234_v10 = vpop.f32.mrf.mxu0  ;;  %v16606_v33 = vcombine.low %v2086_v38, %v2098_v36  ;;  %v2026_v38 = vld [vmem:[#allocation10 + $0x1960] sm:$0xff]  ;;  %v16109_v36 = vcombine.high %v1585_v4, %v1597_v7 }
 0x558   :  { %9321 = vmatpush1.bf16.msra.mxu1 %v16654_v29  ;;  %v1225_v40 = vld [vmem:[#allocation10 + $0x58] sm:$0xff]  ;;  %v16583_v29 = vcombine.high %v2062_v17, %v2074_v44  ;;  %v1990_v10 = vld [vmem:[#allocation10 + $0x1840] sm:$0xff] }
 0x559   :  { %v9029_v49 = vpop.f32.mrf.mxu1  ;;  %9322 = vmatprep.subr.bf16.mxu1 %v16631_v2  ;;  %v15749_v2 = vcombine.high %v1225_v40, %v1237_v57  ;;  %v15748_v39 = vcombine.low %v1225_v40, %v1237_v57  ;;  %v1549_v57 = vld [vmem:[#allocation10 + $0xa78] sm:$0xff] }
 0x55a   :  { %9614 = vmatpush1.bf16.msra.mxu0 %v15820_v5  ;;  %v2050_v49 = vld [vmem:[#allocation10 + $0x1a20] sm:$0xff]  ;;  %v16582_v5 = vcombine.low %v2062_v17, %v2074_v44 }
 0x55b   :  { %9615 = vmatprep.subr.bf16.mxu0 %v15797_v22  ;;  %v16559_v22 = vcombine.high %v2038_v55, %v2050_v49  ;;  %v2002_v17 = vld [vmem:[#allocation10 + $0x18a0] sm:$0xff] }
 0x55c   :  { %9323 = vmatpush1.bf16.msra.mxu1 %v16630_v13  ;;  %v2014_v13 = vld [vmem:[#allocation10 + $0x1900] sm:$0xff]  ;;  %v16511_v40 = vcombine.high %v1990_v10, %v2002_v17 }
 0x55d   :  { %9324 = vmatprep.subr.bf16.mxu1 %v16607_v60  ;;  %v16558_v60 = vcombine.low %v2038_v55, %v2050_v49  ;;  %v16535_v59 = vcombine.high %v2014_v13, %v2026_v38  ;;  %v2362_v55 = vld [vmem:[#allocation10 + $0x23e0] sm:$0xff] }
 0x55e   :  { %9616 = vmatpush1.bf16.msra.mxu0 %v15796_v21  ;;  %v1561_v21 = vld [vmem:[#allocation10 + $0xad8] sm:$0xff] }
 0x55f   :  { %9617 = vmatprep.subr.bf16.mxu0 %v15773_v19  ;;  %v16108_v19 = vcombine.low %v1585_v4, %v1597_v7  ;;  %v16085_v44 = vcombine.high %v1561_v21, %v1573_v35  ;;  %v1525_v4 = vld [vmem:[#allocation10 + $0x9b8] sm:$0xff] }
 0x560   :  { %9325 = vmatpush1.bf16.msra.mxu1 %v16606_v33  ;;  %v16534_v33 = vcombine.low %v2014_v13, %v2026_v38  ;;  %v2338_v13 = vld [vmem:[#allocation10 + $0x2320] sm:$0xff] }
 0x561   :  { %9326 = vmatprep.subr.bf16.mxu1 %v16583_v29  ;;  %v1537_v29 = vld [vmem:[#allocation10 + $0xa18] sm:$0xff] }
 0x562   :  { %9618 = vmatpush1.bf16.msra.mxu0 %v15772_v42  ;;  %v16084_v42 = vcombine.low %v1561_v21, %v1573_v35  ;;  %v16061_v49 = vcombine.high %v1537_v29, %v1549_v57  ;;  %v1501_v21 = vld [vmem:[#allocation10 + $0x8f8] sm:$0xff] }
 0x563   :  { %9619 = vmatprep.subr.bf16.mxu0 %v15749_v2  ;;  %v2350_v2 = vld [vmem:[#allocation10 + $0x2380] sm:$0xff] }
 0x564   :  { %9327 = vmatpush1.bf16.msra.mxu1 %v16582_v5  ;;  %v16510_v5 = vcombine.low %v1990_v10, %v2002_v17  ;;  %v16871_v7 = vcombine.high %v2350_v2, %v2362_v55  ;;  %v2314_v10 = vld [vmem:[#allocation10 + $0x2260] sm:$0xff] }
 0x565   :  { %9328 = vmatprep.subr.bf16.mxu1 %v16559_v22  ;;  %v1513_v22 = vld [vmem:[#allocation10 + $0x958] sm:$0xff] }
 0x566   :  { %9620 = vmatpush1.bf16.msra.mxu0 %v15748_v39  ;;  %v16060_v39 = vcombine.low %v1537_v29, %v1549_v57  ;;  %v16037_v38 = vcombine.high %v1513_v22, %v1525_v4  ;;  %v1477_v29 = vld [vmem:[#allocation10 + $0x838] sm:$0xff] }
 0x567   :  { %9621 = vmatprep.subr.bf16.mxu0 %v16109_v36  ;;  %v2326_v36 = vld [vmem:[#allocation10 + $0x22c0] sm:$0xff] }
 0x568   :  { %9329 = vmatpush1.bf16.msra.mxu1 %v16558_v60  ;;  %v16870_v60 = vcombine.low %v2350_v2, %v2362_v55  ;;  %v16847_v35 = vcombine.high %v2326_v36, %v2338_v13  ;;  %v2290_v2 = vld [vmem:[#allocation10 + $0x21a0] sm:$0xff] }
 0x569   :  { %9330 = vmatprep.subr.bf16.mxu1 %v16535_v59  ;;  %v1489_v59 = vld [vmem:[#allocation10 + $0x898] sm:$0xff] }
 0x56a   :  { %9622 = vmatpush2.bf16.msra.mxu0 %v16108_v19  ;;  %v16036_v19 = vcombine.low %v1513_v22, %v1525_v4  ;;  %v16013_v17 = vcombine.high %v1489_v59, %v1501_v21  ;;  %v1453_v22 = vld [vmem:[#allocation10 + $0x778] sm:$0xff] }
 0x56b   :  { %9623 = vmatprep.subr.bf16.mxu0 %v16085_v44  ;;  %v2302_v44 = vld [vmem:[#allocation10 + $0x2200] sm:$0xff] }
 0x56c   :  { %9331 = vmatpush1.bf16.msra.mxu1 %v16534_v33  ;;  %v16846_v33 = vcombine.low %v2326_v36, %v2338_v13  ;;  %v16823_v57 = vcombine.high %v2302_v44, %v2314_v10  ;;  %v2266_v36 = vld [vmem:[#allocation10 + $0x20e0] sm:$0xff] }
 0x56d   :  { %9332 = vmatprep.subr.bf16.mxu1 %v16511_v40  ;;  %v1465_v40 = vld [vmem:[#allocation10 + $0x7d8] sm:$0xff] }
 0x56e   :  { %9624 = vmatpush2.bf16.msra.mxu0 %v16084_v42  ;;  %v16012_v42 = vcombine.low %v1489_v59, %v1501_v21  ;;  %v15989_v55 = vcombine.high %v1465_v40, %v1477_v29  ;;  %v1429_v59 = vld [vmem:[#allocation10 + $0x6b8] sm:$0xff] }
 0x56f   :  { %9625 = vmatprep.subr.bf16.mxu0 %v16061_v49  ;;  %v2278_v49 = vld [vmem:[#allocation10 + $0x2140] sm:$0xff] }
 0x570   :  { %9333 = vmatpush1.bf16.msra.mxu1 %v16510_v5  ;;  %v16822_v5 = vcombine.low %v2302_v44, %v2314_v10  ;;  %v16799_v4 = vcombine.high %v2278_v49, %v2290_v2  ;;  %v2242_v44 = vld [vmem:[#allocation10 + $0x2020] sm:$0xff] }
 0x571   :  { %9334 = vmatprep.subr.bf16.mxu1 %v16871_v7  ;;  %v1441_v7 = vld [vmem:[#allocation10 + $0x718] sm:$0xff] }
 0x572   :  { %9626 = vmatpush2.bf16.msra.mxu0 %v16060_v39  ;;  %v15988_v39 = vcombine.low %v1465_v40, %v1477_v29  ;;  %v15965_v13 = vcombine.high %v1441_v7, %v1453_v22  ;;  %v2173_v40 = vld [vmem:[#allocation10 + $0x1df8] sm:$0xff] }
 0x573   :  { %9627 = vmatprep.subr.bf16.mxu0 %v16037_v38  ;;  %v2254_v38 = vld [vmem:[#allocation10 + $0x2080] sm:$0xff] }
 0x574   :  { %9335 = vmatpush2.bf16.msra.mxu1 %v16870_v60  ;;  %v16798_v60 = vcombine.low %v2278_v49, %v2290_v2  ;;  %v16775_v21 = vcombine.high %v2254_v38, %v2266_v36  ;;  %v2218_v49 = vld [vmem:[#allocation10 + $0x1f60] sm:$0xff] }
 0x575   :  { %9336 = vmatprep.subr.bf16.mxu1 %v16847_v35  ;;  %v1417_v35 = vld [vmem:[#allocation10 + $0x658] sm:$0xff] }
 0x576   :  { %9628 = vmatpush2.bf16.msra.mxu0 %v16036_v19  ;;  %v15964_v19 = vcombine.low %v1441_v7, %v1453_v22  ;;  %v15941_v10 = vcombine.high %v1417_v35, %v1429_v59  ;;  %v2149_v7 = vld [vmem:[#allocation10 + $0x1d38] sm:$0xff] }
 0x577   :  { %9629 = vmatprep.subr.bf16.mxu0 %v16013_v17  ;;  %v2230_v17 = vld [vmem:[#allocation10 + $0x1fc0] sm:$0xff] }
 0x578   :  { %9337 = vmatpush2.bf16.msra.mxu1 %v16846_v33  ;;  %v16774_v33 = vcombine.low %v2254_v38, %v2266_v36  ;;  %v16751_v29 = vcombine.high %v2230_v17, %v2242_v44  ;;  %v2194_v38 = vld [vmem:[#allocation10 + $0x1ea0] sm:$0xff] }
 0x579   :  { %9338 = vmatprep.subr.bf16.mxu1 %v16823_v57  ;;  %v2161_v57 = vld [vmem:[#allocation10 + $0x1d98] sm:$0xff] }
 0x57a   :  { %9630 = vmatpush2.bf16.msra.mxu0 %v16012_v42  ;;  %v15940_v42 = vcombine.low %v1417_v35, %v1429_v59  ;;  %v16685_v2 = vcombine.high %v2161_v57, %v2173_v40  ;;  %v2125_v35 = vld [vmem:[#allocation10 + $0x1c78] sm:$0xff] }
 0x57b   :  { %9631 = vmatprep.subr.bf16.mxu0 %v15989_v55  ;;  %v2206_v55 = vld [vmem:[#allocation10 + $0x1f00] sm:$0xff] }
 0x57c   :  { %9339 = vmatpush2.bf16.msra.mxu1 %v16822_v5  ;;  %v16750_v5 = vcombine.low %v2230_v17, %v2242_v44  ;;  %v16727_v22 = vcombine.high %v2206_v55, %v2218_v49  ;;  %v1775_v17 = vld [vmem:[#allocation10 + $0x1188] sm:$0xff] }
 0x57d   :  { %9340 = vmatprep.subr.bf16.mxu1 %v16799_v4  ;;  %v2137_v4 = vld [vmem:[#allocation10 + $0x1cd8] sm:$0xff]  ;;  %v1787_v44 = vld [vmem:[#allocation10 + $0x11e8] sm:$0xff] }
 0x57e   :  { %9632 = vmatpush2.bf16.msra.mxu0 %v15988_v39  ;;  %v16684_v39 = vcombine.low %v2161_v57, %v2173_v40  ;;  %v16661_v36 = vcombine.high %v2137_v4, %v2149_v7  ;;  %v2089_v57 = vld [vmem:[#allocation10 + $0x1b58] sm:$0xff] }
 0x57f   :  { %9633 = vmatprep.subr.bf16.mxu0 %v15965_v13  ;;  %v2182_v13 = vld [vmem:[#allocation10 + $0x1e40] sm:$0xff]  ;;  %v2101_v40 = vld [vmem:[#allocation10 + $0x1bb8] sm:$0xff] }
 0x580   :  { %9341 = vmatpush2.bf16.msra.mxu1 %v16798_v60  ;;  %v16726_v60 = vcombine.low %v2206_v55, %v2218_v49  ;;  %v16703_v59 = vcombine.high %v2182_v13, %v2194_v38  ;;  %v1751_v55 = vld [vmem:[#allocation10 + $0x10c8] sm:$0xff] }
 0x581   :  { %9342 = vmatprep.subr.bf16.mxu1 %v16775_v21  ;;  %v2113_v21 = vld [vmem:[#allocation10 + $0x1c18] sm:$0xff]  ;;  %v1763_v49 = vld [vmem:[#allocation10 + $0x1128] sm:$0xff] }
 0x582   :  { %9634 = vmatpush2.bf16.msra.mxu0 %v15964_v19  ;;  %v16660_v19 = vcombine.low %v2137_v4, %v2149_v7  ;;  %v2065_v4 = vld [vmem:[#allocation10 + $0x1a98] sm:$0xff] }
 0x583   :  { %9635 = vmatprep.subr.bf16.mxu0 %v15941_v10  ;;  %v16637_v10 = vcombine.high %v2113_v21, %v2125_v35  ;;  %v2077_v7 = vld [vmem:[#allocation10 + $0x1af8] sm:$0xff] }
 0x584   :  { %9343 = vmatpush2.bf16.msra.mxu1 %v16774_v33  ;;  %v16702_v33 = vcombine.low %v2182_v13, %v2194_v38  ;;  %v1739_v13 = vld [vmem:[#allocation10 + $0x1068] sm:$0xff] }
 0x585   :  { %9344 = vmatprep.subr.bf16.mxu1 %v16751_v29  ;;  %v16297_v29 = vcombine.high %v1775_v17, %v1787_v44 }
 0x586   :  { %9636 = vmatpush2.bf16.msra.mxu0 %v15940_v42  ;;  %v16636_v42 = vcombine.low %v2113_v21, %v2125_v35  ;;  %v16272_v21 = vcombine.low %v1751_v55, %v1763_v49  ;;  %v2041_v35 = vld [vmem:[#allocation10 + $0x19d8] sm:$0xff] }
 0x587   :  { %9687 = vmatprep.subr.bf16.mxu0 %v16685_v2  ;;  %v16613_v2 = vcombine.high %v2089_v57, %v2101_v40 }
 0x588   :  { %9345 = vmatpush2.bf16.msra.mxu1 %v16750_v5  ;;  %v16296_v5 = vcombine.low %v1775_v17, %v1787_v44  ;;  %v19637_v44 = vpop.f32.mrf.mxu0 }
 0x589   :  { %9346 = vmatprep.subr.bf16.mxu1 %v16727_v22  ;;  %9638 = vmatmul.mubr.bf16.vlgmr.msra.gmra.mxu0 %v19316_v23  ;;  %v16273_v22 = vcombine.high %v1751_v55, %v1763_v49  ;;  %v2017_v49 = vld [vmem:[#allocation10 + $0x1918] sm:$0xff] }
 0x58a   :  { %9688 = vmatpush1.bf16.msra.mxu0 %v16684_v39  ;;  %9719 = vmatprep.mubr.bf16.mxu0 %v19333_v32  ;;  %v16612_v39 = vcombine.low %v2089_v57, %v2101_v40  ;;  %v1715_v57 = vld [vmem:[#allocation10 + $0xfa8] sm:$0xff] }
 0x58b   :  { %9689 = vmatprep.subr.bf16.mxu0 %v16661_v36  ;;  %v1727_v36 = vld [vmem:[#allocation10 + $0x1008] sm:$0xff] }
 0x58c   :  { %9347 = vmatpush2.bf16.msra.mxu1 %v16726_v60  ;;  %v16589_v60 = vcombine.high %v2065_v4, %v2077_v7  ;;  %v16249_v17 = vcombine.high %v1727_v36, %v1739_v13  ;;  %v16248_v55 = vcombine.low %v1727_v36, %v1739_v13  ;;  %v1655_v13 = vld [vmem:[#allocation10 + $0xdc8] sm:$0xff] }
 0x58d   :  { %9348 = vmatprep.subr.bf16.mxu1 %v16703_v59  ;;  %v2053_v59 = vld [vmem:[#allocation10 + $0x1a38] sm:$0xff] }
 0x58e   :  { %9690 = vmatpush1.bf16.msra.mxu0 %v16660_v19  ;;  %v16564_v1 = vcombine.low %v2041_v35, %v2053_v59 }
 0x58f   :  { %9691 = vmatprep.subr.bf16.mxu0 %v16637_v10  ;;  %v16588_v10 = vcombine.low %v2065_v4, %v2077_v7 }
 0x590   :  { %9349 = vmatpush2.bf16.msra.mxu1 %v16702_v33  ;;  %v1703_v33 = vld [vmem:[#allocation10 + $0xf48] sm:$0xff] }
 0x591   :  { %9400 = vmatprep.subr.bf16.mxu1 %v16297_v29  ;;  %v16565_v29 = vcombine.high %v2041_v35, %v2053_v59  ;;  %v16225_v37 = vcombine.high %v1703_v33, %v1715_v57  ;;  %v2353_v35 = vld [vmem:[#allocation10 + $0x2398] sm:$0xff] }
 0x592   :  { %9692 = vmatpush1.bf16.msra.mxu0 %v16636_v42  ;;  %v19639_v42 = vpop.f32.mrf.mxu0  ;;  %v2365_v59 = vld [vmem:[#allocation10 + $0x23f8] sm:$0xff] }
 0x593   :  { %v19631_v38 = vpop.f32.mrf.mxu1  ;;  %9351 = vmatmul.mubr.bf16.vlgmr.msra.gmra.mxu1 %v19348_v15  ;;  %9693 = vmatprep.subr.bf16.mxu0 %v16613_v2  ;;  %v2029_v2 = vld [vmem:[#allocation10 + $0x1978] sm:$0xff] }
 0x594   :  { %9401 = vmatpush1.bf16.msra.mxu1 %v16296_v5  ;;  %9432 = vmatprep.mubr.bf16.mxu1 %v19287_v0  ;;  %v16541_v4 = vcombine.high %v2017_v49, %v2029_v2  ;;  %v16540_v36 = vcombine.low %v2017_v49, %v2029_v2  ;;  %v2341_v49 = vld [vmem:[#allocation10 + $0x2338] sm:$0xff] }
 0x595   :  { %v19635_v19 = vpop.f32.mrf.mxu1  ;;  %9402 = vmatprep.subr.bf16.mxu1 %v16273_v22  ;;  %v9315_v22 = vpop.f32.mrf.mxu0 }
 0x596   :  { %9694 = vmatpush1.bf16.msra.mxu0 %v16612_v39  ;;  %v1691_v39 = vld [vmem:[#allocation10 + $0xee8] sm:$0xff] }
 0x597   :  { %v9110_v40 = vpop.f32.mrf.mxu1  ;;  %9695 = vmatprep.subr.bf16.mxu0 %v16589_v60  ;;  %v9316_v7 = vpop.f32.mrf.mxu0  ;;  %v16224_v60 = vcombine.low %v1703_v33, %v1715_v57  ;;  %v1643_v33 = vld [vmem:[#allocation10 + $0xd68] sm:$0xff]  ;;  %v16877_v57 = vcombine.high %v2353_v35, %v2365_v59 }
 0x598   :  { %9403 = vmatpush1.bf16.msra.mxu1 %v16272_v21  ;;  %v1993_v40 = vld [vmem:[#allocation10 + $0x1858] sm:$0xff]  ;;  %v16201_v21 = vcombine.high %v1679_v12, %v1691_v39  ;;  %v1607_v7 = vld [vmem:[#allocation10 + $0xc48] sm:$0xff] }
 0x599   :  { %v9111_v5 = vpop.f32.mrf.mxu1  ;;  %9404 = vmatprep.subr.bf16.mxu1 %v16249_v17  ;;  %v16517_v17 = vcombine.high %v1993_v40, %v2005_v24  ;;  %v16516_v22 = vcombine.low %v1993_v40, %v2005_v24  ;;  %v2317_v24 = vld [vmem:[#allocation10 + $0x2278] sm:$0xff] }
 0x59a   :  { %9696 = vmatpush1.bf16.msra.mxu0 %v16588_v10  ;;  %v1667_v5 = vld [vmem:[#allocation10 + $0xe28] sm:$0xff]  ;;  %v16200_v10 = vcombine.low %v1679_v12, %v1691_v39 }
 0x59b   :  { %9697 = vmatprep.subr.bf16.mxu0 %v16565_v29  ;;  %v16177_v29 = vcombine.high %v1655_v13, %v1667_v5  ;;  %v1619_v12 = vld [vmem:[#allocation10 + $0xca8] sm:$0xff] }
 0x59c   :  { %9405 = vmatpush1.bf16.msra.mxu1 %v16248_v55  ;;  %v1631_v55 = vld [vmem:[#allocation10 + $0xd08] sm:$0xff]  ;;  %v16129_v40 = vcombine.high %v1607_v7, %v1619_v12 }
 0x59d   :  { %9406 = vmatprep.subr.bf16.mxu1 %v16225_v37  ;;  %v16176_v37 = vcombine.low %v1655_v13, %v1667_v5  ;;  %v16153_v2 = vcombine.high %v1631_v55, %v1643_v33  ;;  %v1979_v13 = vld [vmem:[#allocation10 + $0x17e8] sm:$0xff] }
 0x59e   :  { %9698 = vmatpush1.bf16.msra.mxu0 %v16564_v1  ;;  %v2329_v1 = vld [vmem:[#allocation10 + $0x22d8] sm:$0xff] }
 0x59f   :  { %9699 = vmatprep.subr.bf16.mxu0 %v16541_v4  ;;  %v16876_v4 = vcombine.low %v2353_v35, %v2365_v59  ;;  %v16853_v39 = vcombine.high %v2329_v1, %v2341_v49  ;;  %v2293_v35 = vld [vmem:[#allocation10 + $0x21b8] sm:$0xff] }
 0x5a0   :  { %9407 = vmatpush1.bf16.msra.mxu1 %v16224_v60  ;;  %v16152_v60 = vcombine.low %v1631_v55, %v1643_v33  ;;  %v1955_v55 = vld [vmem:[#allocation10 + $0x1728] sm:$0xff] }
 0x5a1   :  { %9408 = vmatprep.subr.bf16.mxu1 %v16201_v21  ;;  %v2305_v21 = vld [vmem:[#allocation10 + $0x2218] sm:$0xff] }
 0x5a2   :  { %9700 = vmatpush1.bf16.msra.mxu0 %v16540_v36  ;;  %v16852_v36 = vcombine.low %v2329_v1, %v2341_v49  ;;  %v16829_v5 = vcombine.high %v2305_v21, %v2317_v24  ;;  %v2269_v1 = vld [vmem:[#allocation10 + $0x20f8] sm:$0xff] }
 0x5a3   :  { %9701 = vmatprep.subr.bf16.mxu0 %v16517_v17  ;;  %v1967_v17 = vld [vmem:[#allocation10 + $0x1788] sm:$0xff] }
 0x5a4   :  { %9409 = vmatpush1.bf16.msra.mxu1 %v16200_v10  ;;  %v16128_v10 = vcombine.low %v1607_v7, %v1619_v12  ;;  %v16489_v59 = vcombine.high %v1967_v17, %v1979_v13  ;;  %v1931_v7 = vld [vmem:[#allocation10 + $0x1668] sm:$0xff] }
 0x5a5   :  { %9410 = vmatprep.subr.bf16.mxu1 %v16177_v29  ;;  %v2281_v29 = vld [vmem:[#allocation10 + $0x2158] sm:$0xff] }
 0x5a6   :  { %9702 = vmatpush1.bf16.msra.mxu0 %v16516_v22  ;;  %v16828_v22 = vcombine.low %v2305_v21, %v2317_v24  ;;  %v16805_v33 = vcombine.high %v2281_v29, %v2293_v35  ;;  %v2245_v21 = vld [vmem:[#allocation10 + $0x2038] sm:$0xff] }
 0x5a7   :  { %9703 = vmatprep.subr.bf16.mxu0 %v16877_v57  ;;  %v1943_v57 = vld [vmem:[#allocation10 + $0x16c8] sm:$0xff] }
 0x5a8   :  { %9411 = vmatpush1.bf16.msra.mxu1 %v16176_v37  ;;  %v16488_v37 = vcombine.low %v1967_v17, %v1979_v13  ;;  %v16465_v49 = vcombine.high %v1943_v57, %v1955_v55  ;;  %v1907_v17 = vld [vmem:[#allocation10 + $0x15a8] sm:$0xff] }
 0x5a9   :  { %9412 = vmatprep.subr.bf16.mxu1 %v16153_v2  ;;  %v2257_v2 = vld [vmem:[#allocation10 + $0x2098] sm:$0xff] }
 0x5aa   :  { %9704 = vmatpush2.bf16.msra.mxu0 %v16876_v4  ;;  %v16804_v4 = vcombine.low %v2281_v29, %v2293_v35  ;;  %v16781_v12 = vcombine.high %v2257_v2, %v2269_v1  ;;  %v2221_v29 = vld [vmem:[#allocation10 + $0x1f78] sm:$0xff] }
 0x5ab   :  { %9705 = vmatprep.subr.bf16.mxu0 %v16853_v39  ;;  %v1919_v39 = vld [vmem:[#allocation10 + $0x1608] sm:$0xff] }
 0x5ac   :  { %9413 = vmatpush1.bf16.msra.mxu1 %v16152_v60  ;;  %v16464_v60 = vcombine.low %v1943_v57, %v1955_v55  ;;  %v16441_v24 = vcombine.high %v1919_v39, %v1931_v7  ;;  %v1883_v57 = vld [vmem:[#allocation10 + $0x14e8] sm:$0xff] }
 0x5ad   :  { %9414 = vmatprep.subr.bf16.mxu1 %v16129_v40  ;;  %v2233_v40 = vld [vmem:[#allocation10 + $0x1fd8] sm:$0xff] }
 0x5ae   :  { %9706 = vmatpush2.bf16.msra.mxu0 %v16852_v36  ;;  %v16780_v36 = vcombine.low %v2257_v2, %v2269_v1  ;;  %v16757_v13 = vcombine.high %v2233_v40, %v2245_v21  ;;  %v2197_v2 = vld [vmem:[#allocation10 + $0x1eb8] sm:$0xff] }
 0x5af   :  { %9707 = vmatprep.subr.bf16.mxu0 %v16829_v5  ;;  %v1895_v5 = vld [vmem:[#allocation10 + $0x1548] sm:$0xff] }
 0x5b0   :  { %9415 = vmatpush1.bf16.msra.mxu1 %v16128_v10  ;;  %v16440_v10 = vcombine.low %v1919_v39, %v1931_v7  ;;  %v16417_v35 = vcombine.high %v1895_v5, %v1907_v17  ;;  %v1847_v7 = vld [vmem:[#allocation10 + $0x13c8] sm:$0xff] }
 0x5b1   :  { %9416 = vmatprep.subr.bf16.mxu1 %v16489_v59  ;;  %v2209_v59 = vld [vmem:[#allocation10 + $0x1f18] sm:$0xff] }
 0x5b2   :  { %9708 = vmatpush2.bf16.msra.mxu0 %v16828_v22  ;;  %v16756_v22 = vcombine.low %v2233_v40, %v2245_v21  ;;  %v16733_v55 = vcombine.high %v2209_v59, %v2221_v29  ;;  %v16732_v39 = vcombine.low %v2209_v59, %v2221_v29 }
 0x5b3   :  { %9709 = vmatprep.subr.bf16.mxu0 %v16805_v33  ;;  %v1871_v33 = vld [vmem:[#allocation10 + $0x1488] sm:$0xff] }
 0x5b4   :  { %9417 = vmatpush2.bf16.msra.mxu1 %v16488_v37  ;;  %v16416_v37 = vcombine.low %v1895_v5, %v1907_v17  ;;  %v16393_v1 = vcombine.high %v1871_v33, %v1883_v57  ;;  %v16392_v40 = vcombine.low %v1871_v33, %v1883_v57  ;;  %v1823_v17 = vld [vmem:[#allocation10 + $0x1308] sm:$0xff]  ;;  %v19089_v57 = vmov 0.0  }
 0x5b5   :  { %9418 = vmatprep.subr.bf16.mxu1 %v16465_v49  ;;  %v2185_v49 = vld [vmem:[#allocation10 + $0x1e58] sm:$0xff]  ;;  %v1811_v33 = vld [vmem:[#allocation10 + $0x12a8] sm:$0xff] }
 0x5b6   :  { %9710 = vmatpush2.bf16.msra.mxu0 %v16804_v4  ;;  %v18706_v4 = vld [vmem:[#allocation11 + $0x8] sm:$0xff]  ;;  %v16708_v5 = vcombine.low %v2185_v49, %v2197_v2 }
 0x5b7   :  { %9711 = vmatprep.subr.bf16.mxu0 %v16781_v12  ;;  %v2423_v12 = vrot.slane %v18706_v4, %v19337_v61  ;;  %v2427_v59 = vrot.slane %v18706_v4, %v19310_v18 }
 0x5b8   :  { %9419 = vmatpush2.bf16.msra.mxu1 %v16464_v60  ;;  %v1859_v60 = vld [vmem:[#allocation10 + $0x1428] sm:$0xff] }
 0x5b9   :  { %9420 = vmatprep.subr.bf16.mxu1 %v16441_v24  ;;  %v16709_v24 = vcombine.high %v2185_v49, %v2197_v2  ;;  %v16369_v21 = vcombine.high %v1847_v7, %v1859_v60  ;;  %v9027_v49 = vadd.f32 %v19623_v52, %v2427_v59  ;;  %v1404_v2 = vld [vmem:[#allocation10 + $0x5f0] sm:$0xff] }
 0x5ba   :  { %9712 = vmatpush2.bf16.msra.mxu0 %v16780_v36  ;;  %v9025_v36 = vadd.f32 %v19619_v11, %v2423_v12  ;;  %v1368_v52 = vld [vmem:[#allocation10 + $0x4d0] sm:$0xff] }
 0x5bb   :  { %9713 = vmatprep.subr.bf16.mxu0 %v16757_v13  ;;  %v1835_v13 = vld [vmem:[#allocation10 + $0x1368] sm:$0xff]  ;;  %v1332_v59 = vld [vmem:[#allocation10 + $0x3b0] sm:$0xff] }
 0x5bc   :  { %9421 = vmatpush2.bf16.msra.mxu1 %v16440_v10  ;;  %v16368_v10 = vcombine.low %v1847_v7, %v1859_v60  ;;  %v9066_v29 = vadd.f32 %v19593_v41, %v9025_v36  ;;  %v1392_v41 = vld [vmem:[#allocation10 + $0x590] sm:$0xff]  ;;  %v2435_v7 = vrot.slane %v18706_v4, %v19546_v63 }
 0x5bd   :  { %9422 = vmatprep.subr.bf16.mxu1 %v16417_v35  ;;  %v16345_v35 = vcombine.high %v1823_v17, %v1835_v13  ;;  %v15915_v12 = vcombine.high %v1392_v41, %v1404_v2  ;;  %v1380_v60 = vld [vmem:[#allocation10 + $0x530] sm:$0xff] }
 0x5be   :  { %9714 = vmatpush2.bf16.msra.mxu0 %v16756_v22  ;;  %v1799_v22 = vld [vmem:[#allocation10 + $0x1248] sm:$0xff]  ;;  %v9107_v11 = vadd.f32 %v19631_v38, %v9066_v29  ;;  %v2431_v38 = vrot.slane %v18706_v4, %v19542_v53  ;;  %v15891_v36 = vcombine.high %v1368_v52, %v1380_v60  ;;  %v1356_v4 = vld [vmem:[#allocation10 + $0x470] sm:$0xff] }
 0x5bf   :  { %9715 = vmatprep.subr.bf16.mxu0 %v16733_v55  ;;  %v16344_v55 = vcombine.low %v1823_v17, %v1835_v13 }
 0x5c0   :  { %9423 = vmatpush2.bf16.msra.mxu1 %v16416_v37  ;;  %v16321_v37 = vcombine.high %v1799_v22, %v1811_v33 }
 0x5c1   :  { %9424 = vmatprep.subr.bf16.mxu1 %v16393_v1  ;;  %v16320_v1 = vcombine.low %v1799_v22, %v1811_v33 }
 0x5c2   :  { %9716 = vmatpush2.bf16.msra.mxu0 %v16732_v39  ;;  %v9068_v39 = vadd.f32 %v19597_v20, %v9027_v49  ;;  %v1344_v20 = vld [vmem:[#allocation10 + $0x410] sm:$0xff]  ;;  %v8740_v49 = vadd.f32 %v19517_v48, %v19559_v56 }
 0x5c3   :  { %9717 = vmatprep.subr.bf16.mxu0 %v16709_v24  ;;  %v15866_v22 = vcombine.low %v1344_v20, %v1356_v4  ;;  %v1236_v48 = vld [vmem:[#allocation10 + $0xb0] sm:$0xff] }
 0x5c4   :  { %9425 = vmatpush2.bf16.msra.mxu1 %v16392_v40  ;;  %v9109_v24 = vadd.f32 %v19635_v19, %v9068_v39  ;;  %v9148_v40 = vadd.f32 %v19615_v54, %v2431_v38  ;;  %v15890_v19 = vcombine.low %v1368_v52, %v1380_v60  ;;  %v1248_v38 = vld [vmem:[#allocation10 + $0x110] sm:$0xff]  ;;  %v19676_v52 = vpop.f32.mrf.mxu0 }
 0x5c5   :  { %9426 = vmatprep.subr.bf16.mxu1 %v16369_v21  ;;  %v15914_v21 = vcombine.low %v1392_v41, %v1404_v2  ;;  %v1284_v41 = vld [vmem:[#allocation10 + $0x230] sm:$0xff] }
 0x5c6   :  { %9718 = vmatpush2.bf16.msra.mxu0 %v16708_v5  ;;  %v9150_v5 = vadd.f32 %v19617_v9, %v2435_v7  ;;  %v15867_v9 = vcombine.high %v1344_v20, %v1356_v4  ;;  %v1224_v7 = vld [vmem:[#allocation10 + $0x50] sm:$0xff] }
 0x5c7   :  { %17556 = vmatprep.subr.mxu0 %v19089_v57  ;;  %v15747_v60 = vcombine.high %v1224_v7, %v1236_v48  ;;  %v1560_v4 = vld [vmem:[#allocation10 + $0xad0] sm:$0xff] }
 0x5c8   :  { %9427 = vmatpush2.bf16.msra.mxu1 %v16368_v10 }
 0x5c9   :  { %9720 = vmatmul.mubr.bf16.vlgmr.msra.gmra.mxu0 %v19348_v15  ;;  %9428 = vmatprep.subr.bf16.mxu1 %v16345_v35  ;;  %v1320_v35 = vld [vmem:[#allocation10 + $0x350] sm:$0xff] }
 0x5ca   :  { %17557 = vmatpush3.xpose.msra.mxu0 %v9107_v11  ;;  %17558 = vmatprep.mubr.msk.f32.mxu0 %vm19090_vm1, %v19089_v57 }
 0x5cb   :  { %17566 = vmatprep.subr.mxu0 %v19089_v57 }
 0x5cc   :  { %9429 = vmatpush2.bf16.msra.mxu1 %v16344_v55  ;;  %v1308_v55 = vld [vmem:[#allocation10 + $0x2f0] sm:$0xff] }
 0x5cd   :  { %9430 = vmatprep.subr.bf16.mxu1 %v16321_v37  ;;  %v15842_v37 = vcombine.low %v1320_v35, %v1332_v59 }
 0x5d0   :  { %9431 = vmatpush2.bf16.msra.mxu1 %v16320_v1  ;;  %v1260_v1 = vld [vmem:[#allocation10 + $0x170] sm:$0xff] }
 0x5d1   :  { %17559 = vmatmul.mubr.f32.vlgmr.msra.gmra.mxu0 %v19532_v43  ;;  %9482 = vmatprep.subr.bf16.mxu1 %v15915_v12  ;;  %v15771_v39 = vcombine.high %v1248_v38, %v1260_v1  ;;  %v15770_v56 = vcombine.low %v1248_v38, %v1260_v1  ;;  %v1440_v38 = vld [vmem:[#allocation10 + $0x710] sm:$0xff] }
 0x5d2   :  { %17567 = vmatpush3.xpose.msra.mxu0 %v9109_v24  ;;  %17568 = vmatprep.mubr.msk.f32.mxu0 %vm19090_vm1, %v19089_v57  ;;  %v1584_v24 = vld [vmem:[#allocation10 + $0xb90] sm:$0xff] }
 0x5d3   :  { %v9188_v17 = vpop.f32.mrf.mxu1  ;;  %9433 = vmatmul.mubr.bf16.vlgmr.msra.gmra.mxu1 %v19322_v26  ;;  %17576 = vmatprep.subr.mxu0 %v19089_v57  ;;  %v1452_v1 = vld [vmem:[#allocation10 + $0x770] sm:$0xff] }
 0x5d4   :  { %v9189_v54 = vadd.f32 %v9188_v17, %v9148_v40  ;;  %9483 = vmatpush1.bf16.msra.mxu1 %v15914_v21  ;;  %9514 = vmatprep.mubr.bf16.mxu1 %v19283_v62  ;;  %v8738_v62 = vadd.f32 %v19515_v47, %v19556_v50  ;;  %v1272_v50 = vld [vmem:[#allocation10 + $0x1d0] sm:$0xff]  ;;  %v19678_v21 = vpop.f32.mrf.mxu0 }
 0x5d5   :  { %v9190_v43 = vpop.f32.mrf.mxu1  ;;  %17569 = vmatmul.mubr.f32.vlgmr.msra.gmra.mxu0 %v19537_v27  ;;  %9484 = vmatprep.subr.bf16.mxu1 %v15891_v36  ;;  %v15843_v27 = vcombine.high %v1320_v35, %v1332_v59  ;;  %v15794_v12 = vcombine.low %v1272_v50, %v1284_v41  ;;  %v1596_v40 = vld [vmem:[#allocation10 + $0xbf0] sm:$0xff]  ;;  %v15746_v36 = vcombine.low %v1224_v7, %v1236_v48 }
 0x5d6   :  { %v9191_v13 = vadd.f32 %v9190_v43, %v9150_v5  ;;  %v9230_v10 = vadd.f32 %v19625_v25, %v9189_v54  ;;  %17578 = vmatprep.mubr.msk.f32.mxu0 %vm19090_vm1, %v19089_v57  ;;  %v1296_v25 = vld [vmem:[#allocation10 + $0x290] sm:$0xff]  ;;  %v9397_v5 = vpop.f32.mrf.mxu0  ;;  %v16107_v20 = vcombine.high %v1584_v24, %v1596_v40 }
 0x5d7   :  { %v9192_v29 = vpop.f32.mrf.mxu1  ;;  %v15819_v47 = vcombine.high %v1296_v25, %v1308_v55  ;;  %v15818_v2 = vcombine.low %v1296_v25, %v1308_v55  ;;  %v1572_v17 = vld [vmem:[#allocation10 + $0xb30] sm:$0xff] }
 0x5d8   :  { %9485 = vmatpush1.bf16.msra.mxu1 %v15890_v19  ;;  %17577 = vmatpush3.xpose.msra.mxu0 %v9230_v10  ;;  %v9232_v11 = vadd.f32 %v19627_v28, %v9191_v13  ;;  %v15795_v28 = vcombine.high %v1272_v50, %v1284_v41  ;;  %v9398_v54 = vpop.f32.mrf.mxu0  ;;  %v16106_v19 = vcombine.low %v1584_v24, %v1596_v40  ;;  %v1536_v13 = vld [vmem:[#allocation10 + $0xa10] sm:$0xff] }
 0x5d9   :  { %v9193_v33 = vpop.f32.mrf.mxu1  ;;  %9486 = vmatprep.subr.bf16.mxu1 %v15867_v9  ;;  %17586 = vmatprep.subr.mxu0 %v19089_v57  ;;  %v16083_v9 = vcombine.high %v1560_v4, %v1572_v17  ;;  %v1548_v10 = vld [vmem:[#allocation10 + $0xa70] sm:$0xff]  ;;  %v16082_v59 = vcombine.low %v1560_v4, %v1572_v17 }
 0x5da   :  { %v19680_v43 = vpop.f32.mrf.mxu0  ;;  %v1524_v33 = vld [vmem:[#allocation10 + $0x9b0] sm:$0xff] }
 0x5db   :  { %17579 = vmatmul.mubr.f32.vlgmr.msra.gmra.mxu0 %v8738_v62  ;;  %v1512_v62 = vld [vmem:[#allocation10 + $0x950] sm:$0xff] }
 0x5dc   :  { %9487 = vmatpush1.bf16.msra.mxu1 %v15866_v22  ;;  %17587 = vmatpush3.xpose.msra.mxu0 %v9232_v11  ;;  %v19682_v35 = vpop.f32.mrf.mxu0  ;;  %v16059_v22 = vcombine.high %v1536_v13, %v1548_v10  ;;  %v16058_v11 = vcombine.low %v1536_v13, %v1548_v10  ;;  %v16035_v25 = vcombine.high %v1512_v62, %v1524_v33  ;;  %v1488_v55 = vld [vmem:[#allocation10 + $0x890] sm:$0xff] }
 0x5dd   :  { %17588 = vmatprep.mubr.msk.f32.mxu0 %vm19090_vm1, %v19089_v57  ;;  %9488 = vmatprep.subr.bf16.mxu1 %v15843_v27  ;;  %v1464_v50 = vld [vmem:[#allocation10 + $0x7d0] sm:$0xff] }
 0x5de   :  { %v9479_v29 = vpop.f32.mrf.mxu0  ;;  %v1476_v41 = vld [vmem:[#allocation10 + $0x830] sm:$0xff] }
 0x5df   :  { %17589 = vmatmul.mubr.f32.vlgmr.msra.gmra.mxu0 %v8740_v49  ;;  %v16034_v49 = vcombine.low %v1512_v62, %v1524_v33  ;;  %v1416_v7 = vld [vmem:[#allocation10 + $0x650] sm:$0xff] }
 0x5e0   :  { %9489 = vmatpush1.bf16.msra.mxu1 %v15842_v37  ;;  %v9480_v27 = vpop.f32.mrf.mxu0  ;;  %v1500_v37 = vld [vmem:[#allocation10 + $0x8f0] sm:$0xff] }
 0x5e1   :  { %9490 = vmatprep.subr.bf16.mxu1 %v15819_v47  ;;  %v16011_v47 = vcombine.high %v1488_v55, %v1500_v37  ;;  %v1428_v48 = vld [vmem:[#allocation10 + $0x6b0] sm:$0xff] }
 0x5e2   :  { %v2160_v40 = vld [vmem:[#allocation10 + $0x1d90] sm:$0xff] }
 0x5e3   :  { %v2136_v54 = vld [vmem:[#allocation10 + $0x1cd0] sm:$0xff] }
 0x5e4   :  { %9491 = vmatpush1.bf16.msra.mxu1 %v15818_v2  ;;  %v16010_v2 = vcombine.low %v1488_v55, %v1500_v37  ;;  %v2124_v29 = vld [vmem:[#allocation10 + $0x1c70] sm:$0xff] }
 0x5e5   :  { %9492 = vmatprep.subr.bf16.mxu1 %v15795_v28  ;;  %v15987_v28 = vcombine.high %v1464_v50, %v1476_v41 }
 0x5e8   :  { %9493 = vmatpush1.bf16.msra.mxu1 %v15794_v12  ;;  %v15986_v12 = vcombine.low %v1464_v50, %v1476_v41  ;;  %v2064_v50 = vld [vmem:[#allocation10 + $0x1a90] sm:$0xff] }
 0x5e9   :  { %9494 = vmatprep.subr.bf16.mxu1 %v15771_v39  ;;  %v15963_v39 = vcombine.high %v1440_v38, %v1452_v1  ;;  %v2076_v41 = vld [vmem:[#allocation10 + $0x1af0] sm:$0xff] }
 0x5ec   :  { %9495 = vmatpush1.bf16.msra.mxu1 %v15770_v56  ;;  %v15962_v56 = vcombine.low %v1440_v38, %v1452_v1  ;;  %v16586_v38 = vcombine.low %v2064_v50, %v2076_v41 }
 0x5ed   :  { %9496 = vmatprep.subr.bf16.mxu1 %v15747_v60  ;;  %v15939_v60 = vcombine.high %v1416_v7, %v1428_v48 }
 0x5f0   :  { %9497 = vmatpush1.bf16.msra.mxu1 %v15746_v36  ;;  %v2172_v36 = vld [vmem:[#allocation10 + $0x1df0] sm:$0xff] }
 0x5f1   :  { %9498 = vmatprep.subr.bf16.mxu1 %v16107_v20  ;;  %v15938_v20 = vcombine.low %v1416_v7, %v1428_v48  ;;  %v16683_v4 = vcombine.high %v2160_v40, %v2172_v36  ;;  %v16682_v13 = vcombine.low %v2160_v40, %v2172_v36 }
 0x5f4   :  { %9499 = vmatpush2.bf16.msra.mxu1 %v16106_v19  ;;  %v2148_v19 = vld [vmem:[#allocation10 + $0x1d30] sm:$0xff] }
 0x5f5   :  { %9500 = vmatprep.subr.bf16.mxu1 %v16083_v9  ;;  %v16659_v10 = vcombine.high %v2136_v54, %v2148_v19  ;;  %v16658_v62 = vcombine.low %v2136_v54, %v2148_v19  ;;  %v2328_v19 = vld [vmem:[#allocation10 + $0x22d0] sm:$0xff] }
 0x5f8   :  { %9501 = vmatpush2.bf16.msra.mxu1 %v16082_v59  ;;  %v2112_v59 = vld [vmem:[#allocation10 + $0x1c10] sm:$0xff] }
 0x5f9   :  { %9502 = vmatprep.subr.bf16.mxu1 %v16059_v22  ;;  %v16635_v27 = vcombine.high %v2112_v59, %v2124_v29  ;;  %v16634_v37 = vcombine.low %v2112_v59, %v2124_v29  ;;  %v2304_v59 = vld [vmem:[#allocation10 + $0x2210] sm:$0xff] }
 0x5fa   :  { %v2316_v29 = vld [vmem:[#allocation10 + $0x2270] sm:$0xff] }
 0x5fc   :  { %9503 = vmatpush2.bf16.msra.mxu1 %v16058_v11  ;;  %v2088_v11 = vld [vmem:[#allocation10 + $0x1b50] sm:$0xff] }
 0x5fd   :  { %9504 = vmatprep.subr.bf16.mxu1 %v16035_v25  ;;  %v2100_v25 = vld [vmem:[#allocation10 + $0x1bb0] sm:$0xff] }
 0x600   :  { %9505 = vmatpush2.bf16.msra.mxu1 %v16034_v49 }
 0x601   :  { %9506 = vmatprep.subr.bf16.mxu1 %v16011_v47  ;;  %v16611_v47 = vcombine.high %v2088_v11, %v2100_v25 }
 0x604   :  { %9507 = vmatpush2.bf16.msra.mxu1 %v16010_v2  ;;  %v16587_v2 = vcombine.high %v2064_v50, %v2076_v41 }
 0x605   :  { %9508 = vmatprep.subr.bf16.mxu1 %v15987_v28  ;;  %v2040_v28 = vld [vmem:[#allocation10 + $0x19d0] sm:$0xff] }
 0x608   :  { %9509 = vmatpush2.bf16.msra.mxu1 %v15986_v12  ;;  %v2016_v12 = vld [vmem:[#allocation10 + $0x1910] sm:$0xff] }
 0x609   :  { %9510 = vmatprep.subr.bf16.mxu1 %v15963_v39  ;;  %v19684_v24 = vpop.f32.mrf.mxu0  ;;  %v2028_v39 = vld [vmem:[#allocation10 + $0x1970] sm:$0xff] }
 0x60a   :  { %v16539_v48 = vcombine.high %v2016_v12, %v2028_v39  ;;  %v16538_v40 = vcombine.low %v2016_v12, %v2028_v39 }
 0x60b   :  { %v19686_v5 = vpop.f32.mrf.mxu0 }
 0x60c   :  { %9511 = vmatpush2.bf16.msra.mxu1 %v15962_v56  ;;  %v1992_v56 = vld [vmem:[#allocation10 + $0x1850] sm:$0xff] }
 0x60d   :  { %9512 = vmatprep.subr.bf16.mxu1 %v15939_v60  ;;  %v9561_v17 = vpop.f32.mrf.mxu0  ;;  %v2004_v60 = vld [vmem:[#allocation10 + $0x18b0] sm:$0xff] }
 0x60e   :  { %v16515_v36 = vcombine.high %v1992_v56, %v2004_v60  ;;  %v16514_v17 = vcombine.low %v1992_v56, %v2004_v60  ;;  %v19694_v56 = vld [vmem:[#allocation11 + $0x10] sm:$0xff] }
 0x60f   :  { %v9562_v9 = vpop.f32.mrf.mxu0 }
 0x610   :  { %9513 = vmatpush2.bf16.msra.mxu1 %v15938_v20  ;;  %v2352_v20 = vld [vmem:[#allocation10 + $0x2390] sm:$0xff] }
 0x611   :  { %9564 = vmatprep.subr.bf16.mxu1 %v16683_v4  ;;  %v2364_v4 = vld [vmem:[#allocation10 + $0x23f0] sm:$0xff] }
 0x612   :  { %v16875_v54 = vcombine.high %v2352_v20, %v2364_v4  ;;  %v2340_v9 = vld [vmem:[#allocation10 + $0x2330] sm:$0xff] }
 0x613   :  { %v19688_v22 = vpop.f32.mrf.mxu1  ;;  %9515 = vmatmul.mubr.bf16.vlgmr.msra.gmra.mxu1 %v19316_v23  ;;  %v16610_v23 = vcombine.low %v2088_v11, %v2100_v25  ;;  %v2280_v11 = vld [vmem:[#allocation10 + $0x2150] sm:$0xff] }
 0x614   :  { %9565 = vmatpush1.bf16.msra.mxu1 %v16682_v13  ;;  %9596 = vmatprep.mubr.bf16.mxu1 %v19333_v32  ;;  %v2052_v32 = vld [vmem:[#allocation10 + $0x1a30] sm:$0xff]  ;;  %v16874_v13 = vcombine.low %v2352_v20, %v2364_v4  ;;  %v2439_v20 = vrot.slane %v19694_v56, %v19291_v3  ;;  %v1777_v4 = vld [vmem:[#allocation10 + $0x1198] sm:$0xff] }
 0x615   :  { %v19692_v33 = vpop.f32.mrf.mxu1  ;;  %9566 = vmatprep.subr.bf16.mxu1 %v16659_v10  ;;  %v16563_v1 = vcombine.high %v2040_v28, %v2052_v32  ;;  %v16562_v7 = vcombine.low %v2040_v28, %v2052_v32  ;;  %v16851_v10 = vcombine.high %v2328_v19, %v2340_v9  ;;  %v2292_v25 = vld [vmem:[#allocation10 + $0x21b0] sm:$0xff] }
 0x616   :  { %v16802_v50 = vcombine.low %v2280_v11, %v2292_v25 }
 0x617   :  { %v9274_v55 = vpop.f32.mrf.mxu1 }
 0x618   :  { %9567 = vmatpush1.bf16.msra.mxu1 %v16658_v62  ;;  %v16850_v62 = vcombine.low %v2328_v19, %v2340_v9  ;;  %v16826_v55 = vcombine.low %v2304_v59, %v2316_v29  ;;  %v2443_v19 = vrot.slane %v19694_v56, %v19260_v45 }
 0x619   :  { %v9275_v49 = vpop.f32.mrf.mxu1  ;;  %9568 = vmatprep.subr.bf16.mxu1 %v16635_v27  ;;  %v16827_v27 = vcombine.high %v2304_v59, %v2316_v29  ;;  %v9271_v59 = vadd.f32 %v19688_v22, %v2439_v20  ;;  %v1753_v29 = vld [vmem:[#allocation10 + $0x10d8] sm:$0xff] }
 0x61a   :  { %v2256_v49 = vld [vmem:[#allocation10 + $0x2090] sm:$0xff] }
 0x61c   :  { %9569 = vmatpush1.bf16.msra.mxu1 %v16634_v37  ;;  %v16803_v37 = vcombine.high %v2280_v11, %v2292_v25  ;;  %v9273_v11 = vadd.f32 %v19692_v33, %v2443_v19 }
 0x61d   :  { %9570 = vmatprep.subr.bf16.mxu1 %v16611_v47  ;;  %v2268_v47 = vld [vmem:[#allocation10 + $0x20f0] sm:$0xff] }
 0x61e   :  { %v16779_v41 = vcombine.high %v2256_v49, %v2268_v47  ;;  %v16778_v28 = vcombine.low %v2256_v49, %v2268_v47  ;;  %v1729_v49 = vld [vmem:[#allocation10 + $0x1018] sm:$0xff] }
 0x61f   :  { %v1741_v47 = vld [vmem:[#allocation10 + $0x1078] sm:$0xff] }
 0x620   :  { %9571 = vmatpush1.bf16.msra.mxu1 %v16610_v23  ;;  %v2232_v23 = vld [vmem:[#allocation10 + $0x1fd0] sm:$0xff] }
 0x621   :  { %9572 = vmatprep.subr.bf16.mxu1 %v16587_v2  ;;  %v2244_v2 = vld [vmem:[#allocation10 + $0x2030] sm:$0xff] }
 0x622   :  { %v16755_v32 = vcombine.high %v2232_v23, %v2244_v2  ;;  %v16754_v12 = vcombine.low %v2232_v23, %v2244_v2  ;;  %v16253_v2 = vcombine.high %v1729_v49, %v1741_v47 }
 0x624   :  { %9573 = vmatpush1.bf16.msra.mxu1 %v16586_v38  ;;  %v2208_v38 = vld [vmem:[#allocation10 + $0x1f10] sm:$0xff] }
 0x625   :  { %9574 = vmatprep.subr.bf16.mxu1 %v16563_v1  ;;  %v2220_v1 = vld [vmem:[#allocation10 + $0x1f70] sm:$0xff] }
 0x626   :  { %v16731_v39 = vcombine.high %v2208_v38, %v2220_v1  ;;  %v16730_v60 = vcombine.low %v2208_v38, %v2220_v1  ;;  %v16252_v1 = vcombine.low %v1729_v49, %v1741_v47 }
 0x628   :  { %9575 = vmatpush1.bf16.msra.mxu1 %v16562_v7  ;;  %v2184_v7 = vld [vmem:[#allocation10 + $0x1e50] sm:$0xff] }
 0x629   :  { %9576 = vmatprep.subr.bf16.mxu1 %v16539_v48  ;;  %v2196_v48 = vld [vmem:[#allocation10 + $0x1eb0] sm:$0xff] }
 0x62a   :  { %v16706_v9 = vcombine.low %v2184_v7, %v2196_v48 }
 0x62c   :  { %9577 = vmatpush1.bf16.msra.mxu1 %v16538_v40  ;;  %v16707_v40 = vcombine.high %v2184_v7, %v2196_v48 }
 0x62d   :  { %9578 = vmatprep.subr.bf16.mxu1 %v16515_v36 }
 0x630   :  { %9579 = vmatpush1.bf16.msra.mxu1 %v16514_v17  ;;  %v1789_v17 = vld [vmem:[#allocation10 + $0x11f8] sm:$0xff] }
 0x631   :  { %9580 = vmatprep.subr.bf16.mxu1 %v16875_v54  ;;  %v16300_v25 = vcombine.low %v1777_v4, %v1789_v17 }
 0x634   :  { %9581 = vmatpush2.bf16.msra.mxu1 %v16874_v13  ;;  %v16301_v13 = vcombine.high %v1777_v4, %v1789_v17  ;;  %v1633_v4 = vld [vmem:[#allocation10 + $0xd18] sm:$0xff] }
 0x635   :  { %9582 = vmatprep.subr.bf16.mxu1 %v16851_v10  ;;  %v1645_v17 = vld [vmem:[#allocation10 + $0xd78] sm:$0xff] }
 0x638   :  { %9583 = vmatpush2.bf16.msra.mxu1 %v16850_v62  ;;  %v1765_v62 = vld [vmem:[#allocation10 + $0x1138] sm:$0xff] }
 0x639   :  { %9584 = vmatprep.subr.bf16.mxu1 %v16827_v27  ;;  %v16276_v22 = vcombine.low %v1753_v29, %v1765_v62 }
 0x63c   :  { %9585 = vmatpush2.bf16.msra.mxu1 %v16826_v55  ;;  %v16277_v55 = vcombine.high %v1753_v29, %v1765_v62  ;;  %v1969_v62 = vld [vmem:[#allocation10 + $0x1798] sm:$0xff] }
 0x63d   :  { %9586 = vmatprep.subr.bf16.mxu1 %v16803_v37  ;;  %v9312_v37 = vadd.f32 %v19637_v44, %v9271_v59  ;;  %v1717_v44 = vld [vmem:[#allocation10 + $0xfb8] sm:$0xff]  ;;  %v16156_v59 = vcombine.low %v1633_v4, %v1645_v17 }
 0x640   :  { %9587 = vmatpush2.bf16.msra.mxu1 %v16802_v50 }
 0x641   :  { %9588 = vmatprep.subr.bf16.mxu1 %v16779_v41  ;;  %v9314_v41 = vadd.f32 %v19639_v42, %v9273_v11  ;;  %v1681_v42 = vld [vmem:[#allocation10 + $0xe98] sm:$0xff] }
 0x644   :  { %9589 = vmatpush2.bf16.msra.mxu1 %v16778_v28 }
 0x645   :  { %9590 = vmatprep.subr.bf16.mxu1 %v16755_v32  ;;  %v1705_v32 = vld [vmem:[#allocation10 + $0xf58] sm:$0xff] }
 0x646   :  { %v16228_v7 = vcombine.low %v1705_v32, %v1717_v44 }
 0x648   :  { %9591 = vmatpush2.bf16.msra.mxu1 %v16754_v12 }
 0x649   :  { %9592 = vmatprep.subr.bf16.mxu1 %v16731_v39  ;;  %v19696_v36 = vpop.f32.mrf.mxu0  ;;  %v1693_v39 = vld [vmem:[#allocation10 + $0xef8] sm:$0xff] }
 0x64a   :  { %v16205_v48 = vcombine.high %v1681_v42, %v1693_v39 }
 0x64b   :  { %v19700_v54 = vpop.f32.mrf.mxu0 }
 0x64c   :  { %9593 = vmatpush2.bf16.msra.mxu1 %v16730_v60  ;;  %v1669_v60 = vld [vmem:[#allocation10 + $0xe38] sm:$0xff] }
 0x64d   :  { %9594 = vmatprep.subr.bf16.mxu1 %v16707_v40  ;;  %v9643_v10 = vpop.f32.mrf.mxu0  ;;  %v16204_v40 = vcombine.low %v1681_v42, %v1693_v39  ;;  %v1849_v39 = vld [vmem:[#allocation10 + $0x13d8] sm:$0xff] }
 0x64e   :  { %v1621_v10 = vld [vmem:[#allocation10 + $0xcb8] sm:$0xff] }
 0x64f   :  { %v9644_v27 = vpop.f32.mrf.mxu0 }
 0x650   :  { %9595 = vmatpush2.bf16.msra.mxu1 %v16706_v9  ;;  %v16157_v9 = vcombine.high %v1633_v4, %v1645_v17  ;;  %v1981_v27 = vld [vmem:[#allocation10 + $0x17f8] sm:$0xff] }
 0x651   :  { %9646 = vmatprep.subr.bf16.mxu1 %v16301_v13  ;;  %v1609_v13 = vld [vmem:[#allocation10 + $0xc58] sm:$0xff]  ;;  %v16492_v49 = vcombine.low %v1969_v62, %v1981_v27 }
 0x652   :  { %v16133_v29 = vcombine.high %v1609_v13, %v1621_v10  ;;  %v16132_v11 = vcombine.low %v1609_v13, %v1621_v10  ;;  %v1801_v17 = vld [vmem:[#allocation10 + $0x1258] sm:$0xff] }
 0x653   :  { %v9352_v50 = vpop.f32.mrf.mxu1  ;;  %9597 = vmatmul.mubr.bf16.vlgmr.msra.gmra.mxu1 %v19348_v15  ;;  %v16229_v15 = vcombine.high %v1705_v32, %v1717_v44  ;;  %v1909_v32 = vld [vmem:[#allocation10 + $0x15b8] sm:$0xff] }
 0x654   :  { %v19709_v23 = vadd.f32 %v9352_v50, %v9312_v37  ;;  %9647 = vmatpush1.bf16.msra.mxu1 %v16300_v25  ;;  %9678 = vmatprep.mubr.bf16.mxu1 %v19287_v0  ;;  %v1657_v0 = vld [vmem:[#allocation10 + $0xdd8] sm:$0xff]  ;;  %v16493_v25 = vcombine.high %v1969_v62, %v1981_v27 }
 0x655   :  { %v9354_v33 = vpop.f32.mrf.mxu1  ;;  %9648 = vmatprep.subr.bf16.mxu1 %v16277_v55  ;;  %v16181_v20 = vcombine.high %v1657_v0, %v1669_v60  ;;  %v16180_v19 = vcombine.low %v1657_v0, %v1669_v60  ;;  %v1945_v55 = vld [vmem:[#allocation10 + $0x16d8] sm:$0xff] }
 0x656   :  { %v19712_v28 = vadd.f32 %v9354_v33, %v9314_v41  ;;  %v1957_v37 = vld [vmem:[#allocation10 + $0x1738] sm:$0xff] }
 0x657   :  { %v9356_v38 = vpop.f32.mrf.mxu1  ;;  %v16469_v47 = vcombine.high %v1945_v55, %v1957_v37  ;;  %v1921_v50 = vld [vmem:[#allocation10 + $0x1618] sm:$0xff] }
 0x658   :  { %9649 = vmatpush1.bf16.msra.mxu1 %v16276_v22  ;;  %v1933_v41 = vld [vmem:[#allocation10 + $0x1678] sm:$0xff]  ;;  %v16468_v22 = vcombine.low %v1945_v55, %v1957_v37 }
 0x659   :  { %v9357_v12 = vpop.f32.mrf.mxu1  ;;  %9650 = vmatprep.subr.bf16.mxu1 %v16253_v2  ;;  %v16445_v33 = vcombine.high %v1921_v50, %v1933_v41  ;;  %v1897_v2 = vld [vmem:[#allocation10 + $0x1558] sm:$0xff]  ;;  %v16444_v44 = vcombine.low %v1921_v50, %v1933_v41 }
 0x65a   :  { %v16421_v38 = vcombine.high %v1897_v2, %v1909_v32  ;;  %v1885_v12 = vld [vmem:[#allocation10 + $0x14f8] sm:$0xff] }
 0x65b   :  { %v1825_v60 = vld [vmem:[#allocation10 + $0x1318] sm:$0xff] }
 0x65c   :  { %9651 = vmatpush1.bf16.msra.mxu1 %v16252_v1  ;;  %v1873_v1 = vld [vmem:[#allocation10 + $0x1498] sm:$0xff] }
 0x65d   :  { %9652 = vmatprep.subr.bf16.mxu1 %v16229_v15  ;;  %v16420_v15 = vcombine.low %v1897_v2, %v1909_v32  ;;  %v16397_v42 = vcombine.high %v1873_v1, %v1885_v12 }
 0x660   :  { %9653 = vmatpush1.bf16.msra.mxu1 %v16228_v7  ;;  %v1861_v7 = vld [vmem:[#allocation10 + $0x1438] sm:$0xff] }
 0x661   :  { %9654 = vmatprep.subr.bf16.mxu1 %v16205_v48  ;;  %v16396_v48 = vcombine.low %v1873_v1, %v1885_v12  ;;  %v16373_v0 = vcombine.high %v1849_v39, %v1861_v7 }
 0x664   :  { %9655 = vmatpush1.bf16.msra.mxu1 %v16204_v40  ;;  %v1837_v40 = vld [vmem:[#allocation10 + $0x1378] sm:$0xff] }
 0x665   :  { %9656 = vmatprep.subr.bf16.mxu1 %v16181_v20  ;;  %v16372_v20 = vcombine.low %v1849_v39, %v1861_v7  ;;  %v16349_v4 = vcombine.high %v1825_v60, %v1837_v40  ;;  %v2459_v39 = vrot.slane %v19694_v56, %v19310_v18 }
 0x668   :  { %9657 = vmatpush1.bf16.msra.mxu1 %v16180_v19  ;;  %v1813_v19 = vld [vmem:[#allocation10 + $0x12b8] sm:$0xff] }
 0x669   :  { %9658 = vmatprep.subr.bf16.mxu1 %v16157_v9  ;;  %v16348_v9 = vcombine.low %v1825_v60, %v1837_v40  ;;  %v16325_v10 = vcombine.high %v1801_v17, %v1813_v19  ;;  %v16324_v62 = vcombine.low %v1801_v17, %v1813_v19 }
 0x66c   :  { %9659 = vmatpush1.bf16.msra.mxu1 %v16156_v59 }
 0x66d   :  { %9660 = vmatprep.subr.bf16.mxu1 %v16133_v29  ;;  %v2447_v29 = vrot.slane %v19694_v56, %v19295_v6 }
 0x66f   :  { %v9394_v55 = vadd.f32 %v19676_v52, %v2447_v29 }
 0x670   :  { %9661 = vmatpush1.bf16.msra.mxu1 %v16132_v11  ;;  %v2451_v11 = vrot.slane %v19694_v56, %v19263_v46 }
 0x671   :  { %9662 = vmatprep.subr.bf16.mxu1 %v16493_v25 }
 0x674   :  { %9663 = vmatpush2.bf16.msra.mxu1 %v16492_v49  ;;  %v9396_v49 = vadd.f32 %v19678_v21, %v2451_v11 }
 0x675   :  { %9664 = vmatprep.subr.bf16.mxu1 %v16469_v47 }
 0x678   :  { %9665 = vmatpush2.bf16.msra.mxu1 %v16468_v22 }
 0x679   :  { %9666 = vmatprep.subr.bf16.mxu1 %v16445_v33 }
 0x67c   :  { %9667 = vmatpush2.bf16.msra.mxu1 %v16444_v44 }
 0x67d   :  { %9668 = vmatprep.subr.bf16.mxu1 %v16421_v38 }
 0x680   :  { %9669 = vmatpush2.bf16.msra.mxu1 %v16420_v15 }
 0x681   :  { %9670 = vmatprep.subr.bf16.mxu1 %v16397_v42 }
 0x684   :  { %9671 = vmatpush2.bf16.msra.mxu1 %v16396_v48 }
 0x685   :  { %9672 = vmatprep.subr.bf16.mxu1 %v16373_v0 }
 0x688   :  { %9673 = vmatpush2.bf16.msra.mxu1 %v16372_v20 }
 0x689   :  { %v19714_v13 = vpop.f32.mrf.mxu0  ;;  %9674 = vmatprep.subr.bf16.mxu1 %v16349_v4 }
 0x68b   :  { %v19716_v59 = vpop.f32.mrf.mxu0 }
 0x68c   :  { %9675 = vmatpush2.bf16.msra.mxu1 %v16348_v9  ;;  %v2463_v9 = vrot.slane %v19694_v56, %v19542_v53 }
 0x68d   :  { %v9725_v27 = vpop.f32.mrf.mxu0  ;;  %9676 = vmatprep.subr.bf16.mxu1 %v16325_v10  ;;  %v2467_v10 = vrot.slane %v19694_v56, %v19546_v63 }
 0x68e   :  { %v9640_v29 = vadd.f32 %v19696_v36, %v2463_v9  ;;  %v17795_v9 = vld [vmem:[#allocation13 + $0x94] ss:$24 sps:$4 sm:$0xff]  }
 0x68f   :  { %v9726_v25 = vpop.f32.mrf.mxu0 }
 0x690   :  { %9677 = vmatpush2.bf16.msra.mxu1 %v16324_v62 }
 0x691   :  { %v19723_v37 = vpop.f32.mrf.mxu0  ;;  %17516 = vmatprep.subr.mxu1 %v19089_v57 }
 0x693   :  { %v9434_v47 = vpop.f32.mrf.mxu1  ;;  %9679 = vmatmul.mubr.bf16.vlgmr.msra.gmra.mxu1 %v19322_v26  ;;  %v17560_v50 = vpop.f32.mrf.mxu0 }
 0x694   :  { %v19728_v41 = vadd.f32 %v9434_v47, %v9394_v55  ;;  %17517 = vmatpush3.xpose.msra.mxu1 %v19590_v30  ;;  %17518 = vmatprep.mubr.msk.f32.mxu1 %vm19090_vm1, %v19089_v57 }
 0x695   :  { %v9436_v22 = vpop.f32.mrf.mxu1  ;;  %v19733_v52 = vpop.f32.mrf.mxu0  ;;  %17521 = vmatprep.subr.mxu1 %v19089_v57 }
 0x696   :  { %v19736_v33 = vadd.f32 %v9436_v22, %v9396_v49 }
 0x697   :  { %v9438_v2 = vpop.f32.mrf.mxu1  ;;  %v17570_v21 = vpop.f32.mrf.mxu0 }
 0x699   :  { %v9439_v32 = vpop.f32.mrf.mxu1 }
 0x69b   :  { %17519 = vmatmul.mubr.f32.vlgmr.msra.gmra.mxu1 %v19480_v31  ;;  %v19739_v26 = vpop.f32.mrf.mxu0  ;;  %v2455_v31 = vrot.slane %v19694_v56, %v19337_v61 }
 0x69c   :  { %17522 = vmatpush3.msra.mxu1 %v19709_v23  ;;  %17523 = vmatprep.mubr.msk.f32.mxu1 %vm19090_vm1, %v19089_v57 }
 0x69d   :  { %v17580_v30 = vpop.f32.mrf.mxu0  ;;  %17526 = vmatprep.subr.mxu1 %v19089_v57 }
 0x69f   :  { %v19745_v44 = vpop.f32.mrf.mxu0 }
 0x6a1   :  { %v17590_v38 = vpop.f32.mrf.mxu0 }
 0x6d3   :  { %v9516_v1 = vpop.f32.mrf.mxu1 }
 0x6d4   :  { %v9517_v23 = vadd.f32 %v9516_v1, %v2455_v31 }
 0x6d5   :  { %v9518_v12 = vpop.f32.mrf.mxu1 }
 0x6d6   :  { %v9519_v7 = vadd.f32 %v9518_v12, %v2459_v39  ;;  %v9558_v48 = vadd.f32 %v19684_v24, %v9517_v23  ;;  %v9642_v24 = vadd.f32 %v19700_v54, %v2467_v10  ;;  %v17781_v23 = vld [vmem:[#allocation13 + $0x150] ss:$24 sps:$4 sm:$0xff]  }
 0x6d7   :  { %v9520_v15 = vpop.f32.mrf.mxu1  ;;  %v17793_v10 = vld [vmem:[#allocation13 + $0x90] ss:$24 sps:$4 sm:$0xff]  }
 0x6d8   :  { %v9560_v40 = vadd.f32 %v19686_v5, %v9519_v7  ;;  %v17783_v7 = vld [vmem:[#allocation13 + $0x154] ss:$24 sps:$4 sm:$0xff]  }
 0x6d9   :  { %v9521_v42 = vpop.f32.mrf.mxu1  ;;  %13313 = vmatprep.subr.bf16.mxu0 %v17783_v7 }
 0x6da   :  { %13314 = vmatpush1.bf16.msra.mxu0 %v17781_v23 }
 0x713   :  { %v9598_v0 = vpop.f32.mrf.mxu1 }
 0x714   :  { %v19752_v60 = vadd.f32 %v9598_v0, %v9558_v48  ;;  %v17786_v48 = vld [vmem:[#allocation13 + $0x124] ss:$24 sps:$4 sm:$0xff]   ;;  %v17784_v0 = vld [vmem:[#allocation13 + $0x120] ss:$24 sps:$4 sm:$0xff]  }
 0x715   :  { %v9600_v20 = vpop.f32.mrf.mxu1  ;;  %13315 = vmatprep.subr.bf16.mxu0 %v17786_v48 }
 0x716   :  { %v19755_v4 = vadd.f32 %v9600_v20, %v9560_v40  ;;  %v17789_v40 = vld [vmem:[#allocation13 + $0xf4] ss:$24 sps:$4 sm:$0xff]   ;;  %13316 = vmatpush1.bf16.msra.mxu0 %v17784_v0  ;;  %v17787_v20 = vld [vmem:[#allocation13 + $0xf0] ss:$24 sps:$4 sm:$0xff]  }
 0x717   :  { %v9602_v17 = vpop.f32.mrf.mxu1  ;;  %13317 = vmatprep.subr.bf16.mxu0 %v17789_v40 }
 0x718   :  { %v17792_v17 = vld [vmem:[#allocation13 + $0xc4] ss:$24 sps:$4 sm:$0xff]  }
 0x719   :  { %v9603_v19 = vpop.f32.mrf.mxu1 }
 0x71a   :  { %13318 = vmatpush1.bf16.msra.mxu0 %v17787_v20  ;;  %v17790_v19 = vld [vmem:[#allocation13 + $0xc0] ss:$24 sps:$4 sm:$0xff]  }
 0x71b   :  { %13319 = vmatprep.subr.bf16.mxu0 %v17792_v17  ;;  %v10419_v17 = vmul.f32 0.10206208, %v19723_v37 }
 0x71e   :  { %13320 = vmatpush1.bf16.msra.mxu0 %v17790_v19  ;;  %v10729_v19 = vmul.f32 0.10206208, %v19739_v26  ;;  %v20217_v26 = vld [vmem:[#allocation46_spill] sm:$0xff] }
 0x71f   :  { %13321 = vmatprep.subr.bf16.mxu0 %v17795_v9  ;;  %v10420_v9 = vsel %vm9799_vm2, %v10419_v17, -inf }
 0x722   :  { %13322 = vmatpush1.bf16.msra.mxu0 %v17793_v10  ;;  %v10730_v10 = vsel %vm9799_vm2, %v10729_v19, -inf }
 0x753   :  { %v9680_v62 = vpop.f32.mrf.mxu1 }
 0x754   :  { %v19763_v27 = vadd.f32 %v9680_v62, %v9640_v29  ;;  %v17798_v29 = vld [vmem:[#allocation13 + $0x64] ss:$24 sps:$4 sm:$0xff]   ;;  %v17801_v62 = vld [vmem:[#allocation13 + $0x34] ss:$24 sps:$4 sm:$0xff]  }
 0x755   :  { %v9682_v11 = vpop.f32.mrf.mxu1  ;;  %13323 = vmatprep.subr.bf16.mxu0 %v17798_v29 }
 0x756   :  { %v19765_v5 = vadd.f32 %v9682_v11, %v9642_v24  ;;  %v17796_v24 = vld [vmem:[#allocation13 + $0x60] ss:$24 sps:$4 sm:$0xff]   ;;  %v17799_v11 = vld [vmem:[#allocation13 + $0x30] ss:$24 sps:$4 sm:$0xff]  }
 0x757   :  { %v9684_v25 = vpop.f32.mrf.mxu1  ;;  %13324 = vmatpush1.bf16.msra.mxu0 %v17796_v24 }
 0x758   :  { %13325 = vmatprep.subr.bf16.mxu0 %v17801_v62  ;;  %v17804_v25 = vld [vmem:[#allocation13 + $0x4] ss:$24 sps:$4 sm:$0xff]  }
 0x759   :  { %v9685_v55 = vpop.f32.mrf.mxu1 }
 0x75a   :  { %v17802_v55 = vld [vmem:[#allocation13] ss:$24 sps:$4 sm:$0xff]  }
 0x75b   :  { %v9794_v49 = vpop.f32.mrf.mxu1  ;;  %13326 = vmatpush1.bf16.msra.mxu0 %v17799_v11 }
 0x75c   :  { %v9798_v47 = vmul.f32 0.10206208, %v9794_v49  ;;  %13327 = vmatprep.subr.bf16.mxu0 %v17804_v25  ;;  %v17807_v49 = vld [vmem:[#allocation13 + $0x2d4] ss:$24 sps:$4 sm:$0xff]  }
 0x75d   :  { %v17520_v50 = vpop.f32.mrf.mxu1 }
 0x75e   :  { %v9800_v53 = vsel %vm9799_vm2, %v9798_v47, -inf  ;;  %v17810_v50 = vld [vmem:[#allocation13 + $0x2a4] ss:$24 sps:$4 sm:$0xff]  }
 0x75f   :  { %9801 = vmax.xlane.f32.xlu0 %v9800_v53  ;;  %13328 = vmatpush1.bf16.msra.mxu0 %v17802_v55  ;;  %v17808_v53 = vld [vmem:[#allocation13 + $0x2a0] ss:$24 sps:$4 sm:$0xff]  }
 0x760   :  { %13329 = vmatprep.subr.bf16.mxu0 %v17807_v49  ;;  %v20215_v49 = vld [vmem:[#allocation48_spill] sm:$0xff] }
 0x7e8   :  { %v9802_v63 = vpop.xlane.xlu0 %9801 }
 0x7e9   :  { %v9803_v56 = vsub.f32 %v9798_v47, %v9802_v63  ;;  %v17805_v47 = vld [vmem:[#allocation13 + $0x2d0] ss:$24 sps:$4 sm:$0xff]   ;;  %v17813_v63 = vld [vmem:[#allocation13 + $0x274] ss:$24 sps:$4 sm:$0xff]  }
 0x7ea   :  { %13330 = vmatpush2.bf16.msra.mxu0 %v17805_v47  ;;  %v20216_v47 = vld [vmem:[#allocation47_spill] sm:$0xff] }
 0x7eb   :  { %v9804_v36 = vmul.f32 1.442695, %v9803_v56  ;;  %13331 = vmatprep.subr.bf16.mxu0 %v17810_v50  ;;  %v17811_v56 = vld [vmem:[#allocation13 + $0x270] ss:$24 sps:$4 sm:$0xff]   ;;  %v8986_v50 = vadd.f32 %v20216_v47, %v20215_v49  ;;  %v17852_v49 = vld [vmem:[#allocation13 + $0x6f4] ss:$24 sps:$4 sm:$0xff]  }
 0x7ec   :  { %v17856_v47 = vld [vmem:[#allocation13 + $0x6c0] ss:$24 sps:$4 sm:$0xff]  }
 0x7ed   :  { %18649 = vpow2.f32 %v9804_v36  ;;  %v17816_v36 = vld [vmem:[#allocation13 + $0x244] ss:$24 sps:$4 sm:$0xff]  }
 0x7ee   :  { %13332 = vmatpush2.bf16.msra.mxu0 %v17808_v53  ;;  %v20218_v53 = vld [vmem:[#allocation45_spill] sm:$0xff] }
 0x7ef   :  { %13333 = vmatprep.subr.bf16.mxu0 %v17813_v63  ;;  %v8494_v63 = vadd.f32 %v20218_v53, %v20217_v26  ;;  %v17862_v26 = vld [vmem:[#allocation13 + $0x690] ss:$24 sps:$4 sm:$0xff]   ;;  %v17864_v53 = vld [vmem:[#allocation13 + $0x694] ss:$24 sps:$4 sm:$0xff]  }
 0x7f2   :  { %13334 = vmatpush2.bf16.msra.mxu0 %v17811_v56  ;;  %v9478_v56 = vadd.f32 %v19682_v35, %v19736_v33  ;;  %v10574_v33 = vmul.f32 0.10206208, %v19733_v52 }
 0x7f3   :  { %13335 = vmatprep.subr.bf16.mxu0 %v17816_v36 }
 0x7fa   :  { %v18650_v54 = vpop.eup %18649 }
 0x7fb   :  { %v9806_v22 = vsel %vm9799_vm2, %v18650_v54, 0.0 }
 0x7fc   :  { %9807 = vadd.xlane.f32.xlu0 %v9806_v22  ;;  %v17819_v22 = vld [vmem:[#allocation13 + $0x214] ss:$24 sps:$4 sm:$0xff]  }
 0x885   :  { %v9808_v2 = vpop.xlane.xlu0 %9807 }
 0x886   :  { %18651 = vrcp.f32 %v9808_v2  ;;  %v17817_v2 = vld [vmem:[#allocation13 + $0x210] ss:$24 sps:$4 sm:$0xff]  }
 0x893   :  { %v18652_v21 = vpop.eup %18651 }
 0x894   :  { %v9810_v32 = vmul.f32 %v18652_v21, %v18650_v54  ;;  %v17814_v54 = vld [vmem:[#allocation13 + $0x240] ss:$24 sps:$4 sm:$0xff]   ;;  %v17822_v21 = vld [vmem:[#allocation13 + $0x1e4] ss:$24 sps:$4 sm:$0xff]  }
 0x895   :  { %13336 = vmatpush2.bf16.msra.mxu0 %v17814_v54 }
 0x896   :  { %17524 = vmatmul.mubr.msk.f32.vlgmr.msra.gmra.mxu1 %vm9799_vm2, %v9810_v32  ;;  %13337 = vmatprep.subr.bf16.mxu0 %v17819_v22  ;;  %v17820_v32 = vld [vmem:[#allocation13 + $0x1e0] ss:$24 sps:$4 sm:$0xff]  }
 0x897   :  { %17527 = vmatpush3.xpose.msra.mxu1 %v19595_v8  ;;  %17528 = vmatprep.mubr.msk.f32.mxu1 %vm19090_vm1, %v19089_v57 }
 0x898   :  { %17531 = vmatprep.subr.mxu1 %v19089_v57 }
 0x899   :  { %13338 = vmatpush2.bf16.msra.mxu0 %v17817_v2 }
 0x89a   :  { %17529 = vmatmul.mubr.f32.vlgmr.msra.gmra.mxu1 %v19485_v16  ;;  %13339 = vmatprep.subr.bf16.mxu0 %v17822_v21 }
 0x89b   :  { %17532 = vmatpush3.msra.mxu1 %v19712_v28  ;;  %17533 = vmatprep.mubr.msk.f32.mxu1 %vm19090_vm1, %v19089_v57 }
 0x89c   :  { %17536 = vmatprep.subr.mxu1 %v19089_v57 }
 0x89d   :  { %13340 = vmatpush2.bf16.msra.mxu0 %v17820_v32 }
 0x956   :  { %v19779_v30 = vpop.f32.mrf.mxu1 }
 0x958   :  { %v17525_v38 = vpop.f32.mrf.mxu1 }
 0x959   :  { %v17825_v38 = vld [vmem:[#allocation13 + $0x1b4] ss:$24 sps:$4 sm:$0xff]  }
 0x95a   :  { %v9950_v1 = vpop.f32.mrf.mxu1  ;;  %13341 = vmatprep.subr.bf16.mxu0 %v17825_v38 }
 0x95b   :  { %v9954_v12 = vmul.f32 0.10206208, %v9950_v1  ;;  %v17823_v1 = vld [vmem:[#allocation13 + $0x1b0] ss:$24 sps:$4 sm:$0xff]  }
 0x95c   :  { %v17530_v8 = vpop.f32.mrf.mxu1  ;;  %13342 = vmatpush2.bf16.msra.mxu0 %v17823_v1 }
 0x95d   :  { %v9955_v15 = vsel %vm9799_vm2, %v9954_v12, -inf }
 0x95e   :  { %9956 = vmax.xlane.f32.xlu1 %v9955_v15 }
 0x9e7   :  { %v9957_v42 = vpop.xlane.xlu1 %9956 }
 0x9e8   :  { %v9958_v31 = vsub.f32 %v9954_v12, %v9957_v42  ;;  %v8984_v42 = vadd.f32 %v19573_v51, %v19608_v14  ;;  %v17828_v51 = vld [vmem:[#allocation13 + $0x184] ss:$24 sps:$4 sm:$0xff]   ;;  %v17826_v14 = vld [vmem:[#allocation13 + $0x180] ss:$24 sps:$4 sm:$0xff]  }
 0x9e9   :  { %13343 = vmatprep.subr.bf16.mxu0 %v17828_v51 }
 0x9ea   :  { %v9959_v39 = vmul.f32 1.442695, %v9958_v31  ;;  %v8492_v31 = vadd.f32 %v19463_v34, %v19498_v58  ;;  %13344 = vmatpush2.bf16.msra.mxu0 %v17826_v14  ;;  %v19804_v34 = vpack.c.bf16 %v19779_v30, %v19779_v30 }
 0x9ec   :  { %18653 = vpow2.f32 %v9959_v39  ;;  %v9476_v39 = vadd.f32 %v19680_v43, %v19728_v41 }
 0x9f9   :  { %v19782_v16 = vpop.eup %18653 }
 0x9fa   :  { %v9961_v28 = vsel %vm9799_vm2, %v19782_v16, 0.0 }
 0x9fb   :  { %9962 = vadd.xlane.f32.xlu1 %v9961_v28 }
 0xa84   :  { %v9963_v12 = vpop.xlane.xlu1 %9962 }
 0xa85   :  { %18655 = vrcp.f32 %v9963_v12 }
 0xa92   :  { %v18656_v8 = vpop.eup %18655 }
 0xa93   :  { %v9965_v15 = vmul.f32 %v18656_v8, %v19782_v16 }
 0xa95   :  { %17534 = vmatmul.mubr.msk.f32.vlgmr.msra.gmra.mxu1 %vm9799_vm2, %v9965_v15 }
 0xa96   :  { %17537 = vmatpush3.xpose.msra.mxu1 %v8984_v42  ;;  %17538 = vmatprep.mubr.msk.f32.mxu1 %vm19090_vm1, %v19089_v57  ;;  %v10884_v42 = vmul.f32 0.10206208, %v19745_v44 }
 0xa97   :  { %17541 = vmatprep.subr.mxu1 %v19089_v57 }
 0xa99   :  { %17539 = vmatmul.mubr.f32.vlgmr.msra.gmra.mxu1 %v8492_v31  ;;  %v10575_v31 = vsel %vm9799_vm2, %v10574_v33, -inf }
 0xa9a   :  { %17542 = vmatpush3.msra.mxu1 %v9476_v39  ;;  %17543 = vmatprep.mubr.msk.f32.mxu1 %vm19090_vm1, %v19089_v57  ;;  %v10885_v39 = vsel %vm9799_vm2, %v10884_v42, -inf }
 0xa9b   :  { %17546 = vmatprep.subr.mxu1 %v19089_v57 }
 0xb55   :  { %v10035_v16 = vpop.f32.mrf.mxu1 }
 0xb56   :  { %v19800_v28 = vpack.c.bf16 %v10035_v16, %v10035_v16 }
 0xb57   :  { %v17535_v58 = vpop.f32.mrf.mxu1 }
 0xb58   :  { %13345 = vmatprep.mubr.bf16.mxu0 %v19800_v28 }
 0xb59   :  { %v10105_v43 = vpop.f32.mrf.mxu1  ;;  %13346 = vmatmul.mubr.bf16.vlgmr.msra.gmra.mxu0 %v19804_v34 }
 0xb5a   :  { %v10109_v41 = vmul.f32 0.10206208, %v10105_v43 }
 0xb5b   :  { %v17540_v23 = vpop.f32.mrf.mxu1 }
 0xb5c   :  { %v10110_v7 = vsel %vm9799_vm2, %v10109_v41, -inf }
 0xb5d   :  { %10111 = vmax.xlane.f32.xlu0 %v10110_v7 }
 0xbe6   :  { %v10112_v48 = vpop.xlane.xlu0 %10111 }
 0xbe7   :  { %v10113_v0 = vsub.f32 %v10109_v41, %v10112_v48 }
 0xbe9   :  { %v10114_v40 = vmul.f32 1.442695, %v10113_v0 }
 0xbeb   :  { %18657 = vpow2.f32 %v10114_v40 }
 0xbf8   :  { %v18658_v20 = vpop.eup %18657 }
 0xbf9   :  { %v10116_v30 = vsel %vm9799_vm2, %v18658_v20, 0.0 }
 0xbfa   :  { %10117 = vadd.xlane.f32.xlu1 %v10116_v30 }
 0xbfe   :  { %10421 = vmax.xlane.f32.xlu1 %v10420_v9 }
 0xc02   :  { %10731 = vmax.xlane.f32.xlu1 %v10730_v10 }
 0xc19   :  { %v19814_v29 = vpop.f32.mrf.mxu0 }
 0xc1b   :  { %v19816_v24 = vpop.f32.mrf.mxu0 }
 0xc1d   :  { %v13351_v62 = vpop.f32.mrf.mxu0 }
 0xc1e   :  { %v17838_v62 = vld [vmem:[#allocation13 + $0x750] ss:$24 sps:$4 sm:$0xff]  }
 0xc1f   :  { %v13352_v11 = vpop.f32.mrf.mxu0 }
 0xc20   :  { %v17840_v11 = vld [vmem:[#allocation13 + $0x754] ss:$24 sps:$4 sm:$0xff]  }
 0xc21   :  { %13395 = vmatprep.subr.bf16.mxu0 %v17840_v11  ;;  %v17835_v11 = vld [vmem:[#allocation13 + $0x3f0] ss:$24 sps:$4 sm:$0xff]  }
 0xc22   :  { %13396 = vmatpush1.bf16.msra.mxu0 %v17838_v62  ;;  %v17837_v62 = vld [vmem:[#allocation13 + $0x3f4] ss:$24 sps:$4 sm:$0xff]  }
 0xc83   :  { %v10118_v25 = vpop.xlane.xlu1 %10117 }
 0xc84   :  { %18659 = vrcp.f32 %v10118_v25  ;;  %v17844_v25 = vld [vmem:[#allocation13 + $0x720] ss:$24 sps:$4 sm:$0xff]  }
 0xc87   :  { %v10422_v36 = vpop.xlane.xlu1 %10421 }
 0xc88   :  { %v10423_v54 = vsub.f32 %v10419_v17, %v10422_v36  ;;  %v17874_v36 = vld [vmem:[#allocation13 + $0x630] ss:$24 sps:$4 sm:$0xff]  }
 0xc8a   :  { %v10424_v2 = vmul.f32 1.442695, %v10423_v54  ;;  %v17876_v54 = vld [vmem:[#allocation13 + $0x634] ss:$24 sps:$4 sm:$0xff]  }
 0xc8b   :  { %v10732_v22 = vpop.xlane.xlu1 %10731 }
 0xc8c   :  { %v10733_v21 = vsub.f32 %v10729_v19, %v10732_v22  ;;  %18661 = vpow2.f32 %v10424_v2  ;;  %v17880_v22 = vld [vmem:[#allocation13 + $0x600] ss:$24 sps:$4 sm:$0xff]   ;;  %v17882_v2 = vld [vmem:[#allocation13 + $0x604] ss:$24 sps:$4 sm:$0xff]  }
 0xc8e   :  { %v10734_v1 = vmul.f32 1.442695, %v10733_v21  ;;  %v17886_v21 = vld [vmem:[#allocation13 + $0x8d0] ss:$24 sps:$4 sm:$0xff]  }
 0xc90   :  { %18663 = vpow2.f32 %v10734_v1  ;;  %v17892_v1 = vld [vmem:[#allocation13 + $0x8a0] ss:$24 sps:$4 sm:$0xff]  }
 0xc91   :  { %v18660_v37 = vpop.eup %18659 }
 0xc92   :  { %v10120_v55 = vmul.f32 %v18660_v37, %v18658_v20  ;;  %v17846_v37 = vld [vmem:[#allocation13 + $0x724] ss:$24 sps:$4 sm:$0xff]  }
 0xc93   :  { %13397 = vmatprep.subr.bf16.mxu0 %v17846_v37  ;;  %v17853_v37 = vld [vmem:[#allocation13 + $0x360] ss:$24 sps:$4 sm:$0xff]  }
 0xc94   :  { %17544 = vmatmul.mubr.msk.f32.vlgmr.msra.gmra.mxu1 %vm9799_vm2, %v10120_v55  ;;  %13398 = vmatpush1.bf16.msra.mxu0 %v17844_v25  ;;  %v17850_v55 = vld [vmem:[#allocation13 + $0x6f0] ss:$24 sps:$4 sm:$0xff]   ;;  %v17849_v25 = vld [vmem:[#allocation13 + $0x394] ss:$24 sps:$4 sm:$0xff]  }
 0xc95   :  { %17547 = vmatpush3.xpose.msra.mxu1 %v8986_v50  ;;  %17548 = vmatprep.mubr.msk.f32.mxu1 %vm19090_vm1, %v19089_v57  ;;  %v17858_v50 = vld [vmem:[#allocation13 + $0x6c4] ss:$24 sps:$4 sm:$0xff]  }
 0xc96   :  { %17551 = vmatprep.subr.mxu1 %v19089_v57  ;;  %13399 = vmatprep.subr.bf16.mxu0 %v17852_v49  ;;  %v17859_v49 = vld [vmem:[#allocation13 + $0x330] ss:$24 sps:$4 sm:$0xff]  }
 0xc98   :  { %17549 = vmatmul.mubr.f32.vlgmr.msra.gmra.mxu1 %v8494_v63  ;;  %13400 = vmatpush1.bf16.msra.mxu0 %v17850_v55  ;;  %v17868_v63 = vld [vmem:[#allocation13 + $0x660] ss:$24 sps:$4 sm:$0xff]   ;;  %v17861_v55 = vld [vmem:[#allocation13 + $0x334] ss:$24 sps:$4 sm:$0xff]  }
 0xc99   :  { %17552 = vmatpush3.msra.mxu1 %v9478_v56  ;;  %17553 = vmatprep.mubr.msk.f32.mxu1 %vm19090_vm1, %v19089_v57  ;;  %v19838_v51 = vpop.eup %18661  ;;  %v17870_v56 = vld [vmem:[#allocation13 + $0x664] ss:$24 sps:$4 sm:$0xff]  }
 0xc9a   :  { %17561 = vmatprep.subr.mxu1 %v19089_v57  ;;  %v10426_v14 = vsel %vm9799_vm2, %v19838_v51, 0.0  ;;  %13401 = vmatprep.subr.bf16.mxu0 %v17858_v50  ;;  %v17865_v50 = vld [vmem:[#allocation13 + $0x300] ss:$24 sps:$4 sm:$0xff]  }
 0xc9c   :  { %13402 = vmatpush1.bf16.msra.mxu0 %v17856_v47  ;;  %v17867_v47 = vld [vmem:[#allocation13 + $0x304] ss:$24 sps:$4 sm:$0xff]  }
 0xc9d   :  { %v19842_v16 = vpop.eup %18663  ;;  %13403 = vmatprep.subr.bf16.mxu0 %v17864_v53  ;;  %v17871_v53 = vld [vmem:[#allocation13 + $0x5d0] ss:$24 sps:$4 sm:$0xff]  }
 0xc9e   :  { %v10736_v52 = vsel %vm9799_vm2, %v19842_v16, 0.0 }
 0xca0   :  { %13404 = vmatpush1.bf16.msra.mxu0 %v17862_v26  ;;  %v17873_v26 = vld [vmem:[#allocation13 + $0x5d4] ss:$24 sps:$4 sm:$0xff]  }
 0xca1   :  { %13405 = vmatprep.subr.bf16.mxu0 %v17870_v56  ;;  %v17877_v56 = vld [vmem:[#allocation13 + $0x5a0] ss:$24 sps:$4 sm:$0xff]  }
 0xca4   :  { %13406 = vmatpush1.bf16.msra.mxu0 %v17868_v63  ;;  %v17879_v63 = vld [vmem:[#allocation13 + $0x5a4] ss:$24 sps:$4 sm:$0xff]  }
 0xca5   :  { %13407 = vmatprep.subr.bf16.mxu0 %v17876_v54  ;;  %v17883_v54 = vld [vmem:[#allocation13 + $0x570] ss:$24 sps:$4 sm:$0xff]  }
 0xca8   :  { %13408 = vmatpush1.bf16.msra.mxu0 %v17874_v36  ;;  %v17885_v36 = vld [vmem:[#allocation13 + $0x574] ss:$24 sps:$4 sm:$0xff]  }
 0xca9   :  { %13409 = vmatprep.subr.bf16.mxu0 %v17882_v2  ;;  %v17889_v2 = vld [vmem:[#allocation13 + $0x540] ss:$24 sps:$4 sm:$0xff]  }
 0xcac   :  { %13410 = vmatpush1.bf16.msra.mxu0 %v17880_v22  ;;  %v17891_v22 = vld [vmem:[#allocation13 + $0x544] ss:$24 sps:$4 sm:$0xff]  }
 0xd54   :  { %v19831_v32 = vpop.f32.mrf.mxu1 }
 0xd56   :  { %v17545_v38 = vpop.f32.mrf.mxu1 }
 0xd57   :  { %v17888_v38 = vld [vmem:[#allocation13 + $0x8d4] ss:$24 sps:$4 sm:$0xff]  }
 0xd58   :  { %v10260_v12 = vpop.f32.mrf.mxu1  ;;  %13411 = vmatprep.subr.bf16.mxu0 %v17888_v38  ;;  %v17895_v38 = vld [vmem:[#allocation13 + $0x510] ss:$24 sps:$4 sm:$0xff]  }
 0xd59   :  { %v10264_v8 = vmul.f32 0.10206208, %v10260_v12  ;;  %13412 = vmatpush2.bf16.msra.mxu0 %v17886_v21  ;;  %v17894_v12 = vld [vmem:[#allocation13 + $0x8a4] ss:$24 sps:$4 sm:$0xff]   ;;  %v17897_v21 = vld [vmem:[#allocation13 + $0x514] ss:$24 sps:$4 sm:$0xff]  }
 0xd5a   :  { %v17550_v35 = vpop.f32.mrf.mxu1  ;;  %13413 = vmatprep.subr.bf16.mxu0 %v17894_v12  ;;  %v17901_v12 = vld [vmem:[#allocation13 + $0x4e0] ss:$24 sps:$4 sm:$0xff]  }
 0xd5b   :  { %v10265_v15 = vsel %vm9799_vm2, %v10264_v8, -inf  ;;  %v17900_v35 = vld [vmem:[#allocation13 + $0x874] ss:$24 sps:$4 sm:$0xff]  }
 0xd5c   :  { %10266 = vmax.xlane.f32.xlu0 %v10265_v15  ;;  %v17906_v15 = vld [vmem:[#allocation13 + $0x844] ss:$24 sps:$4 sm:$0xff]  }
 0xd5d   :  { %13414 = vmatpush2.bf16.msra.mxu0 %v17892_v1  ;;  %v17903_v1 = vld [vmem:[#allocation13 + $0x4e4] ss:$24 sps:$4 sm:$0xff]  }
 0xd5e   :  { %13415 = vmatprep.subr.bf16.mxu0 %v17900_v35  ;;  %v17921_v35 = vld [vmem:[#allocation13 + $0x7b4] ss:$24 sps:$4 sm:$0xff]  }
 0xd60   :  { %10576 = vmax.xlane.f32.xlu0 %v10575_v31  ;;  %v17912_v31 = vld [vmem:[#allocation13 + $0x814] ss:$24 sps:$4 sm:$0xff]  }
 0xd64   :  { %10886 = vmax.xlane.f32.xlu0 %v10885_v39  ;;  %v17916_v39 = vld [vmem:[#allocation13 + $0x7e0] ss:$24 sps:$4 sm:$0xff]  }
 0xd68   :  { %10427 = vadd.xlane.f32.xlu0 %v10426_v14  ;;  %v17918_v14 = vld [vmem:[#allocation13 + $0x7e4] ss:$24 sps:$4 sm:$0xff]  }
 0xd6c   :  { %10737 = vadd.xlane.f32.xlu0 %v10736_v52 }
 0xde5   :  { %v10267_v58 = vpop.xlane.xlu0 %10266 }
 0xde6   :  { %v10268_v44 = vsub.f32 %v10264_v8, %v10267_v58  ;;  %v17898_v8 = vld [vmem:[#allocation13 + $0x870] ss:$24 sps:$4 sm:$0xff]  }
 0xde7   :  { %13416 = vmatpush2.bf16.msra.mxu0 %v17898_v8  ;;  %v17909_v8 = vld [vmem:[#allocation13 + $0x4b4] ss:$24 sps:$4 sm:$0xff]  }
 0xde8   :  { %v10269_v43 = vmul.f32 1.442695, %v10268_v44  ;;  %13417 = vmatprep.subr.bf16.mxu0 %v17906_v15  ;;  %v17907_v15 = vld [vmem:[#allocation13 + $0x4b0] ss:$24 sps:$4 sm:$0xff]  }
 0xde9   :  { %v10577_v41 = vpop.xlane.xlu0 %10576 }
 0xdea   :  { %18665 = vpow2.f32 %v10269_v43  ;;  %v10578_v23 = vsub.f32 %v10574_v33, %v10577_v41  ;;  %v17904_v33 = vld [vmem:[#allocation13 + $0x840] ss:$24 sps:$4 sm:$0xff]  }
 0xdeb   :  { %13418 = vmatpush2.bf16.msra.mxu0 %v17904_v33  ;;  %v17919_v33 = vld [vmem:[#allocation13 + $0x7b0] ss:$24 sps:$4 sm:$0xff]  }
 0xdec   :  { %v10579_v7 = vmul.f32 1.442695, %v10578_v23  ;;  %13419 = vmatprep.subr.bf16.mxu0 %v17912_v31  ;;  %v17925_v31 = vld [vmem:[#allocation13 + $0x780] ss:$24 sps:$4 sm:$0xff]  }
 0xded   :  { %v10887_v48 = vpop.xlane.xlu0 %10886 }
 0xdee   :  { %18667 = vpow2.f32 %v10579_v7  ;;  %v10888_v0 = vsub.f32 %v10884_v42, %v10887_v48  ;;  %v17910_v42 = vld [vmem:[#allocation13 + $0x810] ss:$24 sps:$4 sm:$0xff]  }
 0xdef   :  { %13420 = vmatpush2.bf16.msra.mxu0 %v17910_v42  ;;  %v17915_v42 = vld [vmem:[#allocation13 + $0x484] ss:$24 sps:$4 sm:$0xff]  }
 0xdf0   :  { %v10889_v40 = vmul.f32 1.442695, %v10888_v0  ;;  %13421 = vmatprep.subr.bf16.mxu0 %v17918_v14  ;;  %v17913_v14 = vld [vmem:[#allocation13 + $0x480] ss:$24 sps:$4 sm:$0xff]  }
 0xdf1   :  { %v10428_v52 = vpop.xlane.xlu0 %10427 }
 0xdf2   :  { %18669 = vpow2.f32 %v10889_v40 }
 0xdf3   :  { %13422 = vmatpush2.bf16.msra.mxu0 %v17916_v39  ;;  %v17927_v39 = vld [vmem:[#allocation13 + $0x784] ss:$24 sps:$4 sm:$0xff]  }
 0xdf4   :  { %13423 = vmatprep.subr.bf16.mxu0 %v17921_v35  ;;  %v17975_v35 = vld [vmem:[#allocation13 + $0xba4] ss:$24 sps:$4 sm:$0xff]  }
 0xdf5   :  { %v10738_v43 = vpop.xlane.xlu0 %10737 }
 0xdf7   :  { %v19846_v20 = vpop.eup %18665  ;;  %13424 = vmatpush2.bf16.msra.mxu0 %v17919_v33  ;;  %v17978_v33 = vld [vmem:[#allocation13 + $0xc] ss:$24 sps:$4 sm:$0xff]  }
 0xdf8   :  { %v10271_v17 = vsel %vm9799_vm2, %v19846_v20, 0.0  ;;  %13425 = vmatprep.subr.bf16.mxu0 %v17927_v39  ;;  %v17984_v39 = vld [vmem:[#allocation13 + $0x2dc] ss:$24 sps:$4 sm:$0xff]  }
 0xdf9   :  { %10272 = vadd.xlane.f32.xlu1 %v10271_v17  ;;  %v9722_v17 = vadd.f32 %v19714_v13, %v19763_v27  ;;  %v17829_v13 = vld [vmem:[#allocation13 + $0x450] ss:$24 sps:$4 sm:$0xff]  }
 0xdfb   :  { %v19850_v30 = vpop.eup %18667  ;;  %13426 = vmatpush2.bf16.msra.mxu0 %v17925_v31  ;;  %v17981_v31 = vld [vmem:[#allocation13 + $0xb74] ss:$24 sps:$4 sm:$0xff]  }
 0xdfc   :  { %v10581_v19 = vsel %vm9799_vm2, %v19850_v30, 0.0 }
 0xdfd   :  { %10582 = vadd.xlane.f32.xlu1 %v10581_v19 }
 0xdff   :  { %v19854_v9 = vpop.eup %18669 }
 0xe00   :  { %v10891_v10 = vsel %vm9799_vm2, %v19854_v9, 0.0 }
 0xe01   :  { %10892 = vadd.xlane.f32.xlu1 %v10891_v10  ;;  %v9724_v10 = vadd.f32 %v19716_v59, %v19765_v5  ;;  %v17843_v59 = vld [vmem:[#allocation13 + $0x3c4] ss:$24 sps:$4 sm:$0xff]   ;;  %v17841_v5 = vld [vmem:[#allocation13 + $0x3c0] ss:$24 sps:$4 sm:$0xff]  }
 0xe82   :  { %v10273_v58 = vpop.xlane.xlu1 %10272 }
 0xe83   :  { %18671 = vrcp.f32 %v10273_v58  ;;  %v17936_v58 = vld [vmem:[#allocation13 + $0x15c] ss:$24 sps:$4 sm:$0xff]  }
 0xe84   :  { %18673 = vrcp.f32 %v10428_v52  ;;  %v17924_v52 = vld [vmem:[#allocation13 + $0xa54] ss:$24 sps:$4 sm:$0xff]   ;;  %13477 = vmatprep.subr.bf16.mxu0 %v17936_v58  ;;  %v17987_v58 = vld [vmem:[#allocation13 + $0xb44] ss:$24 sps:$4 sm:$0xff]  }
 0xe86   :  { %v10583_v44 = vpop.xlane.xlu1 %10582 }
 0xe87   :  { %18675 = vrcp.f32 %v10583_v44 }
 0xe88   :  { %18677 = vrcp.f32 %v10738_v43 }
 0xe8a   :  { %v10893_v41 = vpop.xlane.xlu1 %10892 }
 0xe8b   :  { %18679 = vrcp.f32 %v10893_v41  ;;  %v17922_v41 = vld [vmem:[#allocation13 + $0xa50] ss:$24 sps:$4 sm:$0xff]  }
 0xe90   :  { %v18672_v23 = vpop.eup %18671 }
 0xe91   :  { %v10275_v7 = vmul.f32 %v18672_v23, %v19846_v20  ;;  %v18674_v48 = vpop.eup %18673  ;;  %v19889_v23 = vpack.c.bf16 %v19831_v32, %v19831_v32 }
 0xe92   :  { %v10430_v0 = vmul.f32 %v18674_v48, %v19838_v51  ;;  %v17831_v51 = vld [vmem:[#allocation13 + $0x454] ss:$24 sps:$4 sm:$0xff]   ;;  %v17930_v48 = vld [vmem:[#allocation13 + $0xa24] ss:$24 sps:$4 sm:$0xff]  }
 0xe93   :  { %17554 = vmatmul.mubr.msk.f32.vlgmr.msra.gmra.mxu1 %vm9799_vm2, %v10275_v7 }
 0xe94   :  { %17562 = vmatpush3.msra.mxu1 %v19752_v60  ;;  %17563 = vmatprep.mubr.msk.f32.mxu1 %vm19090_vm1, %v19089_v57  ;;  %v18676_v40 = vpop.eup %18675 }
 0xe95   :  { %17571 = vmatprep.subr.mxu1 %v19089_v57  ;;  %v10585_v20 = vmul.f32 %v18676_v40, %v19850_v30  ;;  %v18678_v60 = vpop.eup %18677  ;;  %v17834_v30 = vld [vmem:[#allocation13 + $0x424] ss:$24 sps:$4 sm:$0xff]   ;;  %v17928_v40 = vld [vmem:[#allocation13 + $0xa20] ss:$24 sps:$4 sm:$0xff]  }
 0xe97   :  { %17564 = vmatmul.mubr.msk.f32.vlgmr.msra.gmra.mxu1 %vm9799_vm2, %v10430_v0 }
 0xe98   :  { %17572 = vmatpush3.msra.mxu1 %v19755_v4  ;;  %17573 = vmatprep.mubr.msk.f32.mxu1 %vm19090_vm1, %v19089_v57  ;;  %v10740_v4 = vmul.f32 %v18678_v60, %v19842_v16  ;;  %v18680_v19 = vpop.eup %18679  ;;  %v17832_v16 = vld [vmem:[#allocation13 + $0x420] ss:$24 sps:$4 sm:$0xff]   ;;  %v17933_v60 = vld [vmem:[#allocation13 + $0x9f4] ss:$24 sps:$4 sm:$0xff]  }
 0xe99   :  { %17581 = vmatprep.subr.mxu1 %v19089_v57  ;;  %v10895_v27 = vmul.f32 %v18680_v19, %v19854_v9  ;;  %v17855_v9 = vld [vmem:[#allocation13 + $0x364] ss:$24 sps:$4 sm:$0xff]   ;;  %v17934_v19 = vld [vmem:[#allocation13 + $0x158] ss:$24 sps:$4 sm:$0xff]  }
 0xe9b   :  { %17574 = vmatmul.mubr.msk.f32.vlgmr.msra.gmra.mxu1 %vm9799_vm2, %v10585_v20 }
 0xe9c   :  { %17582 = vmatpush3.msra.mxu1 %v9722_v17  ;;  %17583 = vmatprep.mubr.msk.f32.mxu1 %vm19090_vm1, %v19089_v57 }
 0xe9d   :  { %17591 = vmatprep.subr.mxu1 %v19089_v57 }
 0xe9f   :  { %17584 = vmatmul.mubr.msk.f32.vlgmr.msra.gmra.mxu1 %vm9799_vm2, %v10740_v4 }
 0xea0   :  { %17592 = vmatpush3.msra.mxu1 %v9724_v10  ;;  %17593 = vmatprep.mubr.msk.f32.mxu1 %vm19090_vm1, %v19089_v57  ;;  %v17847_v57 = vld [vmem:[#allocation13 + $0x390] ss:$24 sps:$4 sm:$0xff]  }
 0xea1   :  { %13354 = vmatprep.subr.bf16.mxu1 %v17831_v51  ;;  %v17931_v51 = vld [vmem:[#allocation13 + $0x9f0] ss:$24 sps:$4 sm:$0xff]  }
 0xea3   :  { %17594 = vmatmul.mubr.msk.f32.vlgmr.msra.gmra.mxu1 %vm9799_vm2, %v10895_v27  ;;  %v17942_v27 = vld [vmem:[#allocation13 + $0x12c] ss:$24 sps:$4 sm:$0xff]  }
 0xea4   :  { %13355 = vmatpush1.bf16.msra.mxu1 %v17829_v13  ;;  %v17939_v13 = vld [vmem:[#allocation13 + $0x9c4] ss:$24 sps:$4 sm:$0xff]  }
 0xea5   :  { %13356 = vmatprep.subr.bf16.mxu1 %v17834_v30 }
 0xea8   :  { %13357 = vmatpush1.bf16.msra.mxu1 %v17832_v16  ;;  %v17937_v16 = vld [vmem:[#allocation13 + $0x9c0] ss:$24 sps:$4 sm:$0xff]  }
 0xea9   :  { %13358 = vmatprep.subr.bf16.mxu1 %v17837_v62  ;;  %v17940_v62 = vld [vmem:[#allocation13 + $0x128] ss:$24 sps:$4 sm:$0xff]  }
 0xeac   :  { %13359 = vmatpush1.bf16.msra.mxu1 %v17835_v11 }
 0xead   :  { %13360 = vmatprep.subr.bf16.mxu1 %v17843_v59  ;;  %v17945_v59 = vld [vmem:[#allocation13 + $0x994] ss:$24 sps:$4 sm:$0xff]  }
 0xeb0   :  { %13361 = vmatpush1.bf16.msra.mxu1 %v17841_v5  ;;  %v17948_v5 = vld [vmem:[#allocation13 + $0xfc] ss:$24 sps:$4 sm:$0xff]  }
 0xeb1   :  { %13362 = vmatprep.subr.bf16.mxu1 %v17849_v25 }
 0xeb4   :  { %13363 = vmatpush1.bf16.msra.mxu1 %v17847_v57 }
 0xeb5   :  { %13364 = vmatprep.subr.bf16.mxu1 %v17855_v9  ;;  %v17943_v9 = vld [vmem:[#allocation13 + $0x990] ss:$24 sps:$4 sm:$0xff]  }
 0xeb8   :  { %13365 = vmatpush1.bf16.msra.mxu1 %v17853_v37  ;;  %v17946_v37 = vld [vmem:[#allocation13 + $0xf8] ss:$24 sps:$4 sm:$0xff]  }
 0xeb9   :  { %13366 = vmatprep.subr.bf16.mxu1 %v17861_v55 }
 0xebc   :  { %13367 = vmatpush1.bf16.msra.mxu1 %v17859_v49  ;;  %v17951_v49 = vld [vmem:[#allocation13 + $0x964] ss:$24 sps:$4 sm:$0xff]  }
 0xebd   :  { %13368 = vmatprep.subr.bf16.mxu1 %v17867_v47  ;;  %v17954_v47 = vld [vmem:[#allocation13 + $0xcc] ss:$24 sps:$4 sm:$0xff]  }
 0xec0   :  { %13369 = vmatpush1.bf16.msra.mxu1 %v17865_v50  ;;  %v17949_v50 = vld [vmem:[#allocation13 + $0x960] ss:$24 sps:$4 sm:$0xff]  }
 0xec1   :  { %13370 = vmatprep.subr.bf16.mxu1 %v17873_v26  ;;  %v17952_v26 = vld [vmem:[#allocation13 + $0xc8] ss:$24 sps:$4 sm:$0xff]  }
 0xec4   :  { %13371 = vmatpush2.bf16.msra.mxu1 %v17871_v53  ;;  %v17957_v53 = vld [vmem:[#allocation13 + $0x934] ss:$24 sps:$4 sm:$0xff]  }
 0xec5   :  { %13372 = vmatprep.subr.bf16.mxu1 %v17879_v63  ;;  %v17960_v63 = vld [vmem:[#allocation13 + $0x9c] ss:$24 sps:$4 sm:$0xff]  }
 0xec8   :  { %13373 = vmatpush2.bf16.msra.mxu1 %v17877_v56  ;;  %v17955_v56 = vld [vmem:[#allocation13 + $0x930] ss:$24 sps:$4 sm:$0xff]  }
 0xec9   :  { %13374 = vmatprep.subr.bf16.mxu1 %v17885_v36  ;;  %v17958_v36 = vld [vmem:[#allocation13 + $0x98] ss:$24 sps:$4 sm:$0xff]  }
 0xecc   :  { %13375 = vmatpush2.bf16.msra.mxu1 %v17883_v54  ;;  %v17963_v54 = vld [vmem:[#allocation13 + $0x904] ss:$24 sps:$4 sm:$0xff]  }
 0xecd   :  { %13376 = vmatprep.subr.bf16.mxu1 %v17891_v22  ;;  %v17966_v22 = vld [vmem:[#allocation13 + $0x6c] ss:$24 sps:$4 sm:$0xff]  }
 0xed0   :  { %13377 = vmatpush2.bf16.msra.mxu1 %v17889_v2  ;;  %v17961_v2 = vld [vmem:[#allocation13 + $0x900] ss:$24 sps:$4 sm:$0xff]  }
 0xed1   :  { %13378 = vmatprep.subr.bf16.mxu1 %v17897_v21  ;;  %v17964_v21 = vld [vmem:[#allocation13 + $0x68] ss:$24 sps:$4 sm:$0xff]  }
 0xed4   :  { %13379 = vmatpush2.bf16.msra.mxu1 %v17895_v38  ;;  %v17969_v38 = vld [vmem:[#allocation13 + $0xbd4] ss:$24 sps:$4 sm:$0xff]  }
 0xed5   :  { %13380 = vmatprep.subr.bf16.mxu1 %v17903_v1  ;;  %v17972_v1 = vld [vmem:[#allocation13 + $0x3c] ss:$24 sps:$4 sm:$0xff]  }
 0xed8   :  { %13381 = vmatpush2.bf16.msra.mxu1 %v17901_v12  ;;  %v17967_v12 = vld [vmem:[#allocation13 + $0xbd0] ss:$24 sps:$4 sm:$0xff]  }
 0xed9   :  { %13382 = vmatprep.subr.bf16.mxu1 %v17909_v8  ;;  %v17970_v8 = vld [vmem:[#allocation13 + $0x38] ss:$24 sps:$4 sm:$0xff]  }
 0xedc   :  { %13383 = vmatpush2.bf16.msra.mxu1 %v17907_v15  ;;  %v17973_v15 = vld [vmem:[#allocation13 + $0xba0] ss:$24 sps:$4 sm:$0xff]  }
 0xedd   :  { %13384 = vmatprep.subr.bf16.mxu1 %v17915_v42  ;;  %v17976_v42 = vld [vmem:[#allocation13 + $0x8] ss:$24 sps:$4 sm:$0xff]  }
 0xee0   :  { %13385 = vmatpush2.bf16.msra.mxu1 %v17913_v14  ;;  %v17979_v14 = vld [vmem:[#allocation13 + $0xb70] ss:$24 sps:$4 sm:$0xff]  }
 0xee1   :  { %13436 = vmatprep.subr.bf16.mxu1 %v17924_v52  ;;  %v17982_v52 = vld [vmem:[#allocation13 + $0x2d8] ss:$24 sps:$4 sm:$0xff]  }
 0xf53   :  { %v10345_v44 = vpop.f32.mrf.mxu1 }
 0xf54   :  { %v19885_v43 = vpack.c.bf16 %v10345_v44, %v10345_v44  ;;  %v17990_v44 = vld [vmem:[#allocation13 + $0x2ac] ss:$24 sps:$4 sm:$0xff]  }
 0xf55   :  { %v17555_v7 = vpop.f32.mrf.mxu1 }
 0xf56   :  { %13386 = vmatprep.mubr.bf16.mxu1 %v19885_v43  ;;  %v17988_v7 = vld [vmem:[#allocation13 + $0x2a8] ss:$24 sps:$4 sm:$0xff]  }
 0xf57   :  { %v10500_v0 = vpop.f32.mrf.mxu1  ;;  %13387 = vmatmul.mubr.bf16.vlgmr.msra.gmra.mxu1 %v19889_v23 }
 0xf58   :  { %13437 = vmatpush1.bf16.msra.mxu1 %v17922_v41  ;;  %v19895_v32 = vpack.c.bf16 %v10500_v0, %v10500_v0  ;;  %v17985_v41 = vld [vmem:[#allocation13 + $0xb40] ss:$24 sps:$4 sm:$0xff]   ;;  %v17996_v0 = vld [vmem:[#allocation13 + $0x27c] ss:$24 sps:$4 sm:$0xff]  }
 0xf59   :  { %v17565_v20 = vpop.f32.mrf.mxu1  ;;  %13438 = vmatprep.subr.bf16.mxu1 %v17930_v48  ;;  %v17993_v48 = vld [vmem:[#allocation13 + $0xb14] ss:$24 sps:$4 sm:$0xff]  }
 0xf5a   :  { %v17994_v20 = vld [vmem:[#allocation13 + $0x278] ss:$24 sps:$4 sm:$0xff]  }
 0xf5b   :  { %v10655_v17 = vpop.f32.mrf.mxu1 }
 0xf5c   :  { %v19893_v4 = vpack.c.bf16 %v10655_v17, %v10655_v17  ;;  %13439 = vmatpush1.bf16.msra.mxu1 %v17928_v40  ;;  %v17991_v40 = vld [vmem:[#allocation13 + $0xb10] ss:$24 sps:$4 sm:$0xff]   ;;  %v18002_v17 = vld [vmem:[#allocation13 + $0x24c] ss:$24 sps:$4 sm:$0xff]  }
 0xf5d   :  { %v17575_v10 = vpop.f32.mrf.mxu1  ;;  %13440 = vmatprep.subr.bf16.mxu1 %v17933_v60  ;;  %v17999_v60 = vld [vmem:[#allocation13 + $0xae4] ss:$24 sps:$4 sm:$0xff]  }
 0xf5e   :  { %13427 = vmatprep.mubr.bf16.mxu0 %v19893_v4  ;;  %v18005_v10 = vld [vmem:[#allocation13 + $0xab4] ss:$24 sps:$4 sm:$0xff]  }
 0xf5f   :  { %v19898_v30 = vpop.f32.mrf.mxu1  ;;  %13428 = vmatmul.mubr.bf16.vlgmr.msra.gmra.mxu0 %v19895_v32 }
 0xf60   :  { %13441 = vmatpush1.bf16.msra.mxu1 %v17931_v51  ;;  %13478 = vmatpush1.bf16.msra.mxu0 %v17934_v19  ;;  %v17997_v51 = vld [vmem:[#allocation13 + $0xae0] ss:$24 sps:$4 sm:$0xff]  }
 0xf61   :  { %13509 = vmatprep.mubr.bf16.mxu0 %v19800_v28  ;;  %v17585_v11 = vpop.f32.mrf.mxu1  ;;  %13442 = vmatprep.subr.bf16.mxu1 %v17939_v13  ;;  %v18000_v19 = vld [vmem:[#allocation13 + $0x248] ss:$24 sps:$4 sm:$0xff]   ;;  %v18008_v13 = vld [vmem:[#allocation13 + $0x21c] ss:$24 sps:$4 sm:$0xff]  }
 0xf62   :  { %13479 = vmatprep.subr.bf16.mxu0 %v17942_v27  ;;  %v18003_v27 = vld [vmem:[#allocation13 + $0xab0] ss:$24 sps:$4 sm:$0xff]   ;;  %v18014_v11 = vld [vmem:[#allocation13 + $0x1ec] ss:$24 sps:$4 sm:$0xff]  }
 0xf63   :  { %v10965_v25 = vpop.f32.mrf.mxu1 }
 0xf64   :  { %v19902_v57 = vpack.c.bf16 %v10965_v25, %v10965_v25  ;;  %13443 = vmatpush1.bf16.msra.mxu1 %v17937_v16  ;;  %13480 = vmatpush1.bf16.msra.mxu0 %v17940_v62  ;;  %v18006_v16 = vld [vmem:[#allocation13 + $0x218] ss:$24 sps:$4 sm:$0xff]   ;;  %v18011_v62 = vld [vmem:[#allocation13 + $0xa84] ss:$24 sps:$4 sm:$0xff]  }
 0xf65   :  { %v17595_v55 = vpop.f32.mrf.mxu1  ;;  %13444 = vmatprep.subr.bf16.mxu1 %v17945_v59  ;;  %13481 = vmatprep.subr.bf16.mxu0 %v17948_v5  ;;  %v18009_v59 = vld [vmem:[#allocation13 + $0xa80] ss:$24 sps:$4 sm:$0xff]   ;;  %v18017_v25 = vld [vmem:[#allocation13 + $0x1bc] ss:$24 sps:$4 sm:$0xff]  }
 0xf66   :  { %13468 = vmatprep.mubr.bf16.mxu1 %v19902_v57  ;;  %v18012_v5 = vld [vmem:[#allocation13 + $0x1e8] ss:$24 sps:$4 sm:$0xff]   ;;  %v18018_v55 = vld [vmem:[#allocation13 + $0x458] ss:$24 sps:$4 sm:$0xff]  }
 0xf68   :  { %13445 = vmatpush1.bf16.msra.mxu1 %v17943_v9  ;;  %13482 = vmatpush1.bf16.msra.mxu0 %v17946_v37  ;;  %v18020_v9 = vld [vmem:[#allocation13 + $0x45c] ss:$24 sps:$4 sm:$0xff]   ;;  %v18015_v37 = vld [vmem:[#allocation13 + $0x1b8] ss:$24 sps:$4 sm:$0xff]  }
 0xf69   :  { %13446 = vmatprep.subr.bf16.mxu1 %v17951_v49  ;;  %13483 = vmatprep.subr.bf16.mxu0 %v17954_v47  ;;  %v19907_v49 = vpack.c.bf16 %v19898_v30, %v19898_v30  ;;  %v18023_v47 = vld [vmem:[#allocation13 + $0x18c] ss:$24 sps:$4 sm:$0xff]   ;;  %v18027_v30 = vld [vmem:[#allocation13 + $0x3f8] ss:$24 sps:$4 sm:$0xff]  }
 0xf6c   :  { %13447 = vmatpush1.bf16.msra.mxu1 %v17949_v50  ;;  %13484 = vmatpush1.bf16.msra.mxu0 %v17952_v26  ;;  %v18026_v50 = vld [vmem:[#allocation13 + $0x42c] ss:$24 sps:$4 sm:$0xff]   ;;  %v18021_v26 = vld [vmem:[#allocation13 + $0x188] ss:$24 sps:$4 sm:$0xff]  }
 0xf6d   :  { %13448 = vmatprep.subr.bf16.mxu1 %v17957_v53  ;;  %13485 = vmatprep.subr.bf16.mxu0 %v17960_v63  ;;  %v18024_v53 = vld [vmem:[#allocation13 + $0x428] ss:$24 sps:$4 sm:$0xff]   ;;  %v18029_v63 = vld [vmem:[#allocation13 + $0x3fc] ss:$24 sps:$4 sm:$0xff]  }
 0xf70   :  { %13449 = vmatpush1.bf16.msra.mxu1 %v17955_v56  ;;  %13486 = vmatpush1.bf16.msra.mxu0 %v17958_v36  ;;  %v18032_v56 = vld [vmem:[#allocation13 + $0x75c] ss:$24 sps:$4 sm:$0xff]   ;;  %v18030_v36 = vld [vmem:[#allocation13 + $0x758] ss:$24 sps:$4 sm:$0xff]  }
 0xf71   :  { %13450 = vmatprep.subr.bf16.mxu1 %v17963_v54  ;;  %13487 = vmatprep.subr.bf16.mxu0 %v17966_v22  ;;  %v18035_v54 = vld [vmem:[#allocation13 + $0x3cc] ss:$24 sps:$4 sm:$0xff]  }
 0xf72   :  { %v18038_v22 = vld [vmem:[#allocation13 + $0x72c] ss:$24 sps:$4 sm:$0xff]  }
 0xf74   :  { %13451 = vmatpush1.bf16.msra.mxu1 %v17961_v2  ;;  %13488 = vmatpush1.bf16.msra.mxu0 %v17964_v21  ;;  %v18033_v2 = vld [vmem:[#allocation13 + $0x3c8] ss:$24 sps:$4 sm:$0xff]  }
 0xf75   :  { %13452 = vmatprep.subr.bf16.mxu1 %v17969_v38  ;;  %13489 = vmatprep.subr.bf16.mxu0 %v17972_v1  ;;  %v18036_v21 = vld [vmem:[#allocation13 + $0x728] ss:$24 sps:$4 sm:$0xff]   ;;  %v18041_v38 = vld [vmem:[#allocation13 + $0x39c] ss:$24 sps:$4 sm:$0xff]  }
 0xf76   :  { %v18044_v1 = vld [vmem:[#allocation13 + $0x6fc] ss:$24 sps:$4 sm:$0xff]  }
 0xf78   :  { %13453 = vmatpush2.bf16.msra.mxu1 %v17967_v12  ;;  %13490 = vmatpush1.bf16.msra.mxu0 %v17970_v8  ;;  %v18039_v12 = vld [vmem:[#allocation13 + $0x398] ss:$24 sps:$4 sm:$0xff]  }
 0xf79   :  { %13454 = vmatprep.subr.bf16.mxu1 %v17975_v35  ;;  %13491 = vmatprep.subr.bf16.mxu0 %v17978_v33  ;;  %v18042_v8 = vld [vmem:[#allocation13 + $0x6f8] ss:$24 sps:$4 sm:$0xff]   ;;  %v18047_v35 = vld [vmem:[#allocation13 + $0x36c] ss:$24 sps:$4 sm:$0xff]  }
 0xf7a   :  { %v18050_v33 = vld [vmem:[#allocation13 + $0x6cc] ss:$24 sps:$4 sm:$0xff]  }
 0xf7c   :  { %13455 = vmatpush2.bf16.msra.mxu1 %v17973_v15  ;;  %13492 = vmatpush1.bf16.msra.mxu0 %v17976_v42  ;;  %v18045_v15 = vld [vmem:[#allocation13 + $0x368] ss:$24 sps:$4 sm:$0xff]  }
 0xf7d   :  { %13456 = vmatprep.subr.bf16.mxu1 %v17981_v31  ;;  %13493 = vmatprep.subr.bf16.mxu0 %v17984_v39  ;;  %v18048_v42 = vld [vmem:[#allocation13 + $0x6c8] ss:$24 sps:$4 sm:$0xff]   ;;  %v18053_v31 = vld [vmem:[#allocation13 + $0x33c] ss:$24 sps:$4 sm:$0xff]  }
 0xf7e   :  { %v18056_v39 = vld [vmem:[#allocation13 + $0x69c] ss:$24 sps:$4 sm:$0xff]  }
 0xf80   :  { %13457 = vmatpush2.bf16.msra.mxu1 %v17979_v14  ;;  %13494 = vmatpush2.bf16.msra.mxu0 %v17982_v52  ;;  %v18051_v14 = vld [vmem:[#allocation13 + $0x338] ss:$24 sps:$4 sm:$0xff]  }
 0xf81   :  { %13458 = vmatprep.subr.bf16.mxu1 %v17987_v58  ;;  %13495 = vmatprep.subr.bf16.mxu0 %v17990_v44  ;;  %v18054_v52 = vld [vmem:[#allocation13 + $0x698] ss:$24 sps:$4 sm:$0xff]   ;;  %v18059_v58 = vld [vmem:[#allocation13 + $0x30c] ss:$24 sps:$4 sm:$0xff]  }
 0xf82   :  { %v18062_v44 = vld [vmem:[#allocation13 + $0x66c] ss:$24 sps:$4 sm:$0xff]  }
 0xf84   :  { %13459 = vmatpush2.bf16.msra.mxu1 %v17985_v41  ;;  %13496 = vmatpush2.bf16.msra.mxu0 %v17988_v7  ;;  %v18057_v41 = vld [vmem:[#allocation13 + $0x308] ss:$24 sps:$4 sm:$0xff]  }
 0xf85   :  { %13460 = vmatprep.subr.bf16.mxu1 %v17993_v48  ;;  %13497 = vmatprep.subr.bf16.mxu0 %v17996_v0  ;;  %v18060_v7 = vld [vmem:[#allocation13 + $0x668] ss:$24 sps:$4 sm:$0xff]   ;;  %v18065_v48 = vld [vmem:[#allocation13 + $0x5dc] ss:$24 sps:$4 sm:$0xff]  }
 0xf86   :  { %v18068_v0 = vld [vmem:[#allocation13 + $0x63c] ss:$24 sps:$4 sm:$0xff]  }
 0xf88   :  { %13461 = vmatpush2.bf16.msra.mxu1 %v17991_v40  ;;  %13498 = vmatpush2.bf16.msra.mxu0 %v17994_v20  ;;  %v18063_v40 = vld [vmem:[#allocation13 + $0x5d8] ss:$24 sps:$4 sm:$0xff]  }
 0xf89   :  { %13462 = vmatprep.subr.bf16.mxu1 %v17999_v60  ;;  %13499 = vmatprep.subr.bf16.mxu0 %v18002_v17  ;;  %v18066_v20 = vld [vmem:[#allocation13 + $0x638] ss:$24 sps:$4 sm:$0xff]   ;;  %v18071_v60 = vld [vmem:[#allocation13 + $0x5ac] ss:$24 sps:$4 sm:$0xff]  }
 0xf8a   :  { %v18074_v17 = vld [vmem:[#allocation13 + $0x60c] ss:$24 sps:$4 sm:$0xff]  }
 0xf8c   :  { %13463 = vmatpush2.bf16.msra.mxu1 %v17997_v51  ;;  %13500 = vmatpush2.bf16.msra.mxu0 %v18000_v19  ;;  %v18069_v51 = vld [vmem:[#allocation13 + $0x5a8] ss:$24 sps:$4 sm:$0xff]  }
 0xf8d   :  { %13464 = vmatprep.subr.bf16.mxu1 %v18005_v10  ;;  %13501 = vmatprep.subr.bf16.mxu0 %v18008_v13  ;;  %v18072_v19 = vld [vmem:[#allocation13 + $0x608] ss:$24 sps:$4 sm:$0xff]   ;;  %v18077_v10 = vld [vmem:[#allocation13 + $0x57c] ss:$24 sps:$4 sm:$0xff]  }
 0xf8e   :  { %v18080_v13 = vld [vmem:[#allocation13 + $0x8dc] ss:$24 sps:$4 sm:$0xff]  }
 0xf90   :  { %13465 = vmatpush2.bf16.msra.mxu1 %v18003_v27  ;;  %13502 = vmatpush2.bf16.msra.mxu0 %v18006_v16  ;;  %v18075_v27 = vld [vmem:[#allocation13 + $0x578] ss:$24 sps:$4 sm:$0xff]  }
 0xf91   :  { %13466 = vmatprep.subr.bf16.mxu1 %v18011_v62  ;;  %13503 = vmatprep.subr.bf16.mxu0 %v18014_v11  ;;  %v18078_v16 = vld [vmem:[#allocation13 + $0x8d8] ss:$24 sps:$4 sm:$0xff]   ;;  %v18083_v62 = vld [vmem:[#allocation13 + $0x54c] ss:$24 sps:$4 sm:$0xff]  }
 0xf92   :  { %v18086_v11 = vld [vmem:[#allocation13 + $0x8ac] ss:$24 sps:$4 sm:$0xff]  }
 0xf94   :  { %13467 = vmatpush2.bf16.msra.mxu1 %v18009_v59  ;;  %13504 = vmatpush2.bf16.msra.mxu0 %v18012_v5  ;;  %v18081_v59 = vld [vmem:[#allocation13 + $0x548] ss:$24 sps:$4 sm:$0xff]  }
 0xf95   :  { %13505 = vmatprep.subr.bf16.mxu0 %v18017_v25  ;;  %13518 = vmatprep.subr.bf16.mxu1 %v18020_v9  ;;  %v18084_v5 = vld [vmem:[#allocation13 + $0x8a8] ss:$24 sps:$4 sm:$0xff]   ;;  %v18089_v25 = vld [vmem:[#allocation13 + $0x51c] ss:$24 sps:$4 sm:$0xff]  }
 0xf96   :  { %v18092_v9 = vld [vmem:[#allocation13 + $0x87c] ss:$24 sps:$4 sm:$0xff]  }
 0xf97   :  { %13469 = vmatmul.mubr.bf16.vlgmr.msra.gmra.mxu1 %v19907_v49 }
 0xf98   :  { %13506 = vmatpush2.bf16.msra.mxu0 %v18015_v37  ;;  %13519 = vmatpush1.bf16.msra.mxu1 %v18018_v55  ;;  %v18087_v37 = vld [vmem:[#allocation13 + $0x518] ss:$24 sps:$4 sm:$0xff]  }
 0xf99   :  { %13550 = vmatprep.mubr.bf16.mxu1 %v19885_v43  ;;  %13507 = vmatprep.subr.bf16.mxu0 %v18023_v47  ;;  %v18090_v55 = vld [vmem:[#allocation13 + $0x878] ss:$24 sps:$4 sm:$0xff]   ;;  %v18095_v47 = vld [vmem:[#allocation13 + $0x4ec] ss:$24 sps:$4 sm:$0xff]  }
 0xf9a   :  { %13520 = vmatprep.subr.bf16.mxu1 %v18026_v50  ;;  %v18098_v50 = vld [vmem:[#allocation13 + $0x84c] ss:$24 sps:$4 sm:$0xff]  }
 0xf9c   :  { %13508 = vmatpush2.bf16.msra.mxu0 %v18021_v26  ;;  %13521 = vmatpush1.bf16.msra.mxu1 %v18024_v53  ;;  %v18093_v26 = vld [vmem:[#allocation13 + $0x4e8] ss:$24 sps:$4 sm:$0xff]  }
 0xf9d   :  { %13522 = vmatprep.subr.bf16.mxu1 %v18029_v63  ;;  %13559 = vmatprep.subr.bf16.mxu0 %v18032_v56  ;;  %v18096_v53 = vld [vmem:[#allocation13 + $0x848] ss:$24 sps:$4 sm:$0xff]   ;;  %v18101_v63 = vld [vmem:[#allocation13 + $0x4bc] ss:$24 sps:$4 sm:$0xff]  }
 0xf9e   :  { %v18104_v56 = vld [vmem:[#allocation13 + $0x81c] ss:$24 sps:$4 sm:$0xff]  }
 0xf9f   :  { %13510 = vmatmul.mubr.bf16.vlgmr.msra.gmra.mxu0 %v19804_v34 }
 0xfa0   :  { %13523 = vmatpush1.bf16.msra.mxu1 %v18027_v30  ;;  %13560 = vmatpush1.bf16.msra.mxu0 %v18030_v36  ;;  %v18099_v30 = vld [vmem:[#allocation13 + $0x4b8] ss:$24 sps:$4 sm:$0xff]  }
 0xfa1   :  { %13591 = vmatprep.mubr.bf16.mxu0 %v19893_v4  ;;  %13524 = vmatprep.subr.bf16.mxu1 %v18035_v54  ;;  %v18102_v36 = vld [vmem:[#allocation13 + $0x818] ss:$24 sps:$4 sm:$0xff]   ;;  %v18107_v54 = vld [vmem:[#allocation13 + $0x48c] ss:$24 sps:$4 sm:$0xff]  }
 0xfa2   :  { %13561 = vmatprep.subr.bf16.mxu0 %v18038_v22  ;;  %v18110_v22 = vld [vmem:[#allocation13 + $0x7ec] ss:$24 sps:$4 sm:$0xff]  }
 0xfa4   :  { %13525 = vmatpush1.bf16.msra.mxu1 %v18033_v2  ;;  %13562 = vmatpush1.bf16.msra.mxu0 %v18036_v21  ;;  %v18105_v2 = vld [vmem:[#allocation13 + $0x488] ss:$24 sps:$4 sm:$0xff]  }
 0xfa5   :  { %13526 = vmatprep.subr.bf16.mxu1 %v18041_v38  ;;  %13563 = vmatprep.subr.bf16.mxu0 %v18044_v1  ;;  %v18108_v21 = vld [vmem:[#allocation13 + $0x7e8] ss:$24 sps:$4 sm:$0xff]   ;;  %v18113_v38 = vld [vmem:[#allocation13 + $0x7bc] ss:$24 sps:$4 sm:$0xff]  }
 0xfa6   :  { %v18116_v1 = vld [vmem:[#allocation13 + $0xa5c] ss:$24 sps:$4 sm:$0xff]  }
 0xfa8   :  { %13527 = vmatpush1.bf16.msra.mxu1 %v18039_v12  ;;  %13564 = vmatpush1.bf16.msra.mxu0 %v18042_v8  ;;  %v18111_v12 = vld [vmem:[#allocation13 + $0x7b8] ss:$24 sps:$4 sm:$0xff]  }
 0xfa9   :  { %13528 = vmatprep.subr.bf16.mxu1 %v18047_v35  ;;  %13565 = vmatprep.subr.bf16.mxu0 %v18050_v33  ;;  %v18114_v8 = vld [vmem:[#allocation13 + $0xa58] ss:$24 sps:$4 sm:$0xff]   ;;  %v18119_v35 = vld [vmem:[#allocation13 + $0x78c] ss:$24 sps:$4 sm:$0xff]  }
 0xfaa   :  { %v18122_v33 = vld [vmem:[#allocation13 + $0xa2c] ss:$24 sps:$4 sm:$0xff]  }
 0xfac   :  { %13529 = vmatpush1.bf16.msra.mxu1 %v18045_v15  ;;  %13566 = vmatpush1.bf16.msra.mxu0 %v18048_v42  ;;  %v18117_v15 = vld [vmem:[#allocation13 + $0x788] ss:$24 sps:$4 sm:$0xff]  }
 0xfad   :  { %13530 = vmatprep.subr.bf16.mxu1 %v18053_v31  ;;  %13567 = vmatprep.subr.bf16.mxu0 %v18056_v39  ;;  %v18120_v42 = vld [vmem:[#allocation13 + $0xa28] ss:$24 sps:$4 sm:$0xff]   ;;  %v18125_v31 = vld [vmem:[#allocation13 + $0x9fc] ss:$24 sps:$4 sm:$0xff]  }
 0xfae   :  { %v18128_v39 = vld [vmem:[#allocation13 + $0x164] ss:$24 sps:$4 sm:$0xff]  }
 0xfb0   :  { %13531 = vmatpush1.bf16.msra.mxu1 %v18051_v14  ;;  %13568 = vmatpush1.bf16.msra.mxu0 %v18054_v52  ;;  %v18123_v14 = vld [vmem:[#allocation13 + $0x9f8] ss:$24 sps:$4 sm:$0xff]  }
 0xfb1   :  { %13532 = vmatprep.subr.bf16.mxu1 %v18059_v58  ;;  %13569 = vmatprep.subr.bf16.mxu0 %v18062_v44  ;;  %v18126_v52 = vld [vmem:[#allocation13 + $0x160] ss:$24 sps:$4 sm:$0xff]   ;;  %v18131_v58 = vld [vmem:[#allocation13 + $0x9cc] ss:$24 sps:$4 sm:$0xff]  }
 0xfb2   :  { %v18134_v44 = vld [vmem:[#allocation13 + $0x134] ss:$24 sps:$4 sm:$0xff]  }
 0xfb4   :  { %13533 = vmatpush1.bf16.msra.mxu1 %v18057_v41  ;;  %13570 = vmatpush1.bf16.msra.mxu0 %v18060_v7  ;;  %v18129_v41 = vld [vmem:[#allocation13 + $0x9c8] ss:$24 sps:$4 sm:$0xff]  }
 0xfb5   :  { %13534 = vmatprep.subr.bf16.mxu1 %v18065_v48  ;;  %13571 = vmatprep.subr.bf16.mxu0 %v18068_v0  ;;  %v18132_v7 = vld [vmem:[#allocation13 + $0x130] ss:$24 sps:$4 sm:$0xff]   ;;  %v18137_v48 = vld [vmem:[#allocation13 + $0x99c] ss:$24 sps:$4 sm:$0xff]  }
 0xfb6   :  { %v18140_v0 = vld [vmem:[#allocation13 + $0x104] ss:$24 sps:$4 sm:$0xff]  }
 0xfb8   :  { %13535 = vmatpush2.bf16.msra.mxu1 %v18063_v40  ;;  %13572 = vmatpush1.bf16.msra.mxu0 %v18066_v20  ;;  %v18135_v40 = vld [vmem:[#allocation13 + $0x998] ss:$24 sps:$4 sm:$0xff]  }
 0xfb9   :  { %13536 = vmatprep.subr.bf16.mxu1 %v18071_v60  ;;  %13573 = vmatprep.subr.bf16.mxu0 %v18074_v17  ;;  %v18138_v20 = vld [vmem:[#allocation13 + $0x100] ss:$24 sps:$4 sm:$0xff]   ;;  %v18143_v60 = vld [vmem:[#allocation13 + $0x96c] ss:$24 sps:$4 sm:$0xff]  }
 0xfba   :  { %v18146_v17 = vld [vmem:[#allocation13 + $0xd4] ss:$24 sps:$4 sm:$0xff]  }
 0xfbc   :  { %13537 = vmatpush2.bf16.msra.mxu1 %v18069_v51  ;;  %13574 = vmatpush1.bf16.msra.mxu0 %v18072_v19  ;;  %v18141_v51 = vld [vmem:[#allocation13 + $0x968] ss:$24 sps:$4 sm:$0xff]  }
 0xfbd   :  { %13538 = vmatprep.subr.bf16.mxu1 %v18077_v10  ;;  %13575 = vmatprep.subr.bf16.mxu0 %v18080_v13  ;;  %v18144_v19 = vld [vmem:[#allocation13 + $0xd0] ss:$24 sps:$4 sm:$0xff]   ;;  %v18149_v10 = vld [vmem:[#allocation13 + $0x93c] ss:$24 sps:$4 sm:$0xff]  }
 0xfbe   :  { %v18147_v13 = vld [vmem:[#allocation13 + $0x938] ss:$24 sps:$4 sm:$0xff]  }
 0xfc0   :  { %13539 = vmatpush2.bf16.msra.mxu1 %v18075_v27  ;;  %13576 = vmatpush2.bf16.msra.mxu0 %v18078_v16  ;;  %v18150_v27 = vld [vmem:[#allocation13 + $0xa0] ss:$24 sps:$4 sm:$0xff]   ;;  %v18155_v16 = vld [vmem:[#allocation13 + $0x90c] ss:$24 sps:$4 sm:$0xff]  }
 0xfc1   :  { %13540 = vmatprep.subr.bf16.mxu1 %v18083_v62  ;;  %13577 = vmatprep.subr.bf16.mxu0 %v18086_v11  ;;  %v18158_v62 = vld [vmem:[#allocation13 + $0x74] ss:$24 sps:$4 sm:$0xff]   ;;  %v18153_v11 = vld [vmem:[#allocation13 + $0x908] ss:$24 sps:$4 sm:$0xff]  }
 0xfc4   :  { %13541 = vmatpush2.bf16.msra.mxu1 %v18081_v59  ;;  %13578 = vmatpush2.bf16.msra.mxu0 %v18084_v5  ;;  %v18156_v59 = vld [vmem:[#allocation13 + $0x70] ss:$24 sps:$4 sm:$0xff]   ;;  %v18161_v5 = vld [vmem:[#allocation13 + $0xbdc] ss:$24 sps:$4 sm:$0xff]  }
 0xfc5   :  { %13542 = vmatprep.subr.bf16.mxu1 %v18089_v25  ;;  %13579 = vmatprep.subr.bf16.mxu0 %v18092_v9  ;;  %v18164_v25 = vld [vmem:[#allocation13 + $0x44] ss:$24 sps:$4 sm:$0xff]   ;;  %v18159_v9 = vld [vmem:[#allocation13 + $0xbd8] ss:$24 sps:$4 sm:$0xff]  }
 0xfc8   :  { %13543 = vmatpush2.bf16.msra.mxu1 %v18087_v37  ;;  %13580 = vmatpush2.bf16.msra.mxu0 %v18090_v55  ;;  %v18162_v37 = vld [vmem:[#allocation13 + $0x40] ss:$24 sps:$4 sm:$0xff]   ;;  %v18167_v55 = vld [vmem:[#allocation13 + $0xbac] ss:$24 sps:$4 sm:$0xff]  }
 0xfc9   :  { %13544 = vmatprep.subr.bf16.mxu1 %v18095_v47  ;;  %13581 = vmatprep.subr.bf16.mxu0 %v18098_v50  ;;  %v18170_v47 = vld [vmem:[#allocation13 + $0x14] ss:$24 sps:$4 sm:$0xff]   ;;  %v18165_v50 = vld [vmem:[#allocation13 + $0xba8] ss:$24 sps:$4 sm:$0xff]  }
 0xfcc   :  { %13545 = vmatpush2.bf16.msra.mxu1 %v18093_v26  ;;  %13582 = vmatpush2.bf16.msra.mxu0 %v18096_v53  ;;  %v18168_v26 = vld [vmem:[#allocation13 + $0x10] ss:$24 sps:$4 sm:$0xff]   ;;  %v18173_v53 = vld [vmem:[#allocation13 + $0xb7c] ss:$24 sps:$4 sm:$0xff]  }
 0xfcd   :  { %13546 = vmatprep.subr.bf16.mxu1 %v18101_v63  ;;  %13583 = vmatprep.subr.bf16.mxu0 %v18104_v56  ;;  %v18176_v63 = vld [vmem:[#allocation13 + $0x2e4] ss:$24 sps:$4 sm:$0xff]   ;;  %v18171_v56 = vld [vmem:[#allocation13 + $0xb78] ss:$24 sps:$4 sm:$0xff]  }
 0xfd0   :  { %13547 = vmatpush2.bf16.msra.mxu1 %v18099_v30  ;;  %13584 = vmatpush2.bf16.msra.mxu0 %v18102_v36  ;;  %v18174_v30 = vld [vmem:[#allocation13 + $0x2e0] ss:$24 sps:$4 sm:$0xff]   ;;  %v18179_v36 = vld [vmem:[#allocation13 + $0xb4c] ss:$24 sps:$4 sm:$0xff]  }
 0xfd1   :  { %13548 = vmatprep.subr.bf16.mxu1 %v18107_v54  ;;  %13585 = vmatprep.subr.bf16.mxu0 %v18110_v22  ;;  %v18182_v54 = vld [vmem:[#allocation13 + $0x2b4] ss:$24 sps:$4 sm:$0xff]   ;;  %v18177_v22 = vld [vmem:[#allocation13 + $0xb48] ss:$24 sps:$4 sm:$0xff]  }
 0xfd4   :  { %13549 = vmatpush2.bf16.msra.mxu1 %v18105_v2  ;;  %13586 = vmatpush2.bf16.msra.mxu0 %v18108_v21  ;;  %v18180_v2 = vld [vmem:[#allocation13 + $0x2b0] ss:$24 sps:$4 sm:$0xff]   ;;  %v18185_v21 = vld [vmem:[#allocation13 + $0xb1c] ss:$24 sps:$4 sm:$0xff]  }
 0xfd5   :  { %13587 = vmatprep.subr.bf16.mxu0 %v18113_v38  ;;  %13600 = vmatprep.subr.bf16.mxu1 %v18116_v1  ;;  %v18188_v38 = vld [vmem:[#allocation13 + $0x284] ss:$24 sps:$4 sm:$0xff]   ;;  %v18183_v1 = vld [vmem:[#allocation13 + $0xb18] ss:$24 sps:$4 sm:$0xff]  }
 0xfd7   :  { %13551 = vmatmul.mubr.bf16.vlgmr.msra.gmra.mxu1 %v19889_v23 }
 0xfd8   :  { %13588 = vmatpush2.bf16.msra.mxu0 %v18111_v12  ;;  %13601 = vmatpush1.bf16.msra.mxu1 %v18114_v8  ;;  %v18186_v12 = vld [vmem:[#allocation13 + $0x280] ss:$24 sps:$4 sm:$0xff]   ;;  %v18191_v8 = vld [vmem:[#allocation13 + $0xaec] ss:$24 sps:$4 sm:$0xff]  }
 0xfd9   :  { %13632 = vmatprep.mubr.bf16.mxu1 %v19902_v57  ;;  %13589 = vmatprep.subr.bf16.mxu0 %v18119_v35  ;;  %v18194_v35 = vld [vmem:[#allocation13 + $0x254] ss:$24 sps:$4 sm:$0xff]  }
 0xfda   :  { %13602 = vmatprep.subr.bf16.mxu1 %v18122_v33  ;;  %v18189_v33 = vld [vmem:[#allocation13 + $0xae8] ss:$24 sps:$4 sm:$0xff]  }
 0xfdc   :  { %13590 = vmatpush2.bf16.msra.mxu0 %v18117_v15  ;;  %13603 = vmatpush1.bf16.msra.mxu1 %v18120_v42  ;;  %v18192_v15 = vld [vmem:[#allocation13 + $0x250] ss:$24 sps:$4 sm:$0xff]   ;;  %v18197_v42 = vld [vmem:[#allocation13 + $0xabc] ss:$24 sps:$4 sm:$0xff]  }
 0xfdd   :  { %13604 = vmatprep.subr.bf16.mxu1 %v18125_v31  ;;  %13641 = vmatprep.subr.bf16.mxu0 %v18128_v39  ;;  %v18200_v31 = vld [vmem:[#allocation13 + $0x224] ss:$24 sps:$4 sm:$0xff]   ;;  %v18195_v39 = vld [vmem:[#allocation13 + $0xab8] ss:$24 sps:$4 sm:$0xff]  }
 0xfdf   :  { %13592 = vmatmul.mubr.bf16.vlgmr.msra.gmra.mxu0 %v19895_v32 }
 0xfe0   :  { %13605 = vmatpush1.bf16.msra.mxu1 %v18123_v14  ;;  %13642 = vmatpush1.bf16.msra.mxu0 %v18126_v52  ;;  %v18198_v14 = vld [vmem:[#allocation13 + $0x220] ss:$24 sps:$4 sm:$0xff]   ;;  %v18203_v52 = vld [vmem:[#allocation13 + $0xa8c] ss:$24 sps:$4 sm:$0xff]  }
 0xfe1   :  { %13673 = vmatprep.mubr.bf16.mxu0 %v19800_v28  ;;  %13606 = vmatprep.subr.bf16.mxu1 %v18131_v58  ;;  %v18152_v28 = vld [vmem:[#allocation13 + $0xa4] ss:$24 sps:$4 sm:$0xff]   ;;  %v18206_v58 = vld [vmem:[#allocation13 + $0x1f4] ss:$24 sps:$4 sm:$0xff]  }
 0xfe2   :  { %13643 = vmatprep.subr.bf16.mxu0 %v18134_v44  ;;  %v19917_v44 = vld [vmem:[#allocation14] sm:$0x3f] }
 0xfe4   :  { %13607 = vmatpush1.bf16.msra.mxu1 %v18129_v41  ;;  %13644 = vmatpush1.bf16.msra.mxu0 %v18132_v7  ;;  %v18201_v41 = vld [vmem:[#allocation13 + $0xa88] ss:$24 sps:$4 sm:$0xff]  }
 0xfe5   :  { %13608 = vmatprep.subr.bf16.mxu1 %v18137_v48  ;;  %13645 = vmatprep.subr.bf16.mxu0 %v18140_v0  ;;  %v18204_v7 = vld [vmem:[#allocation13 + $0x1f0] ss:$24 sps:$4 sm:$0xff]   ;;  %v18209_v48 = vld [vmem:[#allocation13 + $0x1c4] ss:$24 sps:$4 sm:$0xff]  }
 0xfe6   :  { %v18212_v0 = vld [vmem:[#allocation13 + $0x464] ss:$24 sps:$4 sm:$0xff]  }
 0xfe8   :  { %13609 = vmatpush1.bf16.msra.mxu1 %v18135_v40  ;;  %13646 = vmatpush1.bf16.msra.mxu0 %v18138_v20  ;;  %v11366_v40 = vrot.slane %v19917_v44, %v19291_v3  ;;  %v11370_v20 = vrot.slane %v19917_v44, %v19260_v45 }
 0xfe9   :  { %13610 = vmatprep.subr.bf16.mxu1 %v18143_v60  ;;  %13647 = vmatprep.subr.bf16.mxu0 %v18146_v17  ;;  %v18207_v60 = vld [vmem:[#allocation13 + $0x1c0] ss:$24 sps:$4 sm:$0xff]  }
 0xfea   :  { %v18210_v17 = vld [vmem:[#allocation13 + $0x460] ss:$24 sps:$4 sm:$0xff]  }
 0xfec   :  { %13611 = vmatpush1.bf16.msra.mxu1 %v18141_v51  ;;  %13648 = vmatpush1.bf16.msra.mxu0 %v18144_v19  ;;  %v18215_v51 = vld [vmem:[#allocation13 + $0x194] ss:$24 sps:$4 sm:$0xff]   ;;  %v13348_v19 = vadd.f32 %v19814_v29, %v11366_v40  ;;  %v18264_v40 = vld [vmem:[#allocation13 + $0x610] ss:$24 sps:$4 sm:$0xff]  }
 0xfed   :  { %13612 = vmatprep.subr.bf16.mxu1 %v18149_v10  ;;  %13649 = vmatprep.subr.bf16.mxu0 %v18152_v28  ;;  %v18218_v10 = vld [vmem:[#allocation13 + $0x434] ss:$24 sps:$4 sm:$0xff]  }
 0xff0   :  { %13613 = vmatpush1.bf16.msra.mxu1 %v18147_v13  ;;  %13650 = vmatpush1.bf16.msra.mxu0 %v18150_v27  ;;  %v13350_v13 = vadd.f32 %v19816_v24, %v11370_v20  ;;  %v18227_v24 = vld [vmem:[#allocation13 + $0x3d4] ss:$24 sps:$4 sm:$0xff]   ;;  %v18269_v20 = vld [vmem:[#allocation13 + $0x584] ss:$24 sps:$4 sm:$0xff]  }
 0xff1   :  { %13614 = vmatprep.subr.bf16.mxu1 %v18155_v16  ;;  %13651 = vmatprep.subr.bf16.mxu0 %v18158_v62  ;;  %v18213_v16 = vld [vmem:[#allocation13 + $0x190] ss:$24 sps:$4 sm:$0xff]  }
 0xff2   :  { %v18216_v62 = vld [vmem:[#allocation13 + $0x430] ss:$24 sps:$4 sm:$0xff]  }
 0xff4   :  { %13615 = vmatpush1.bf16.msra.mxu1 %v18153_v11  ;;  %13652 = vmatpush1.bf16.msra.mxu0 %v18156_v59  ;;  %v18221_v59 = vld [vmem:[#allocation13 + $0x404] ss:$24 sps:$4 sm:$0xff]  }
 0xff5   :  { %13616 = vmatprep.subr.bf16.mxu1 %v18161_v5  ;;  %13653 = vmatprep.subr.bf16.mxu0 %v18164_v25  ;;  %v18224_v5 = vld [vmem:[#allocation13 + $0x764] ss:$24 sps:$4 sm:$0xff]  }
 0xff8   :  { %13617 = vmatpush2.bf16.msra.mxu1 %v18159_v9  ;;  %13654 = vmatpush1.bf16.msra.mxu0 %v18162_v37  ;;  %v18219_v9 = vld [vmem:[#allocation13 + $0x400] ss:$24 sps:$4 sm:$0xff]  }
 0xff9   :  { %13618 = vmatprep.subr.bf16.mxu1 %v18167_v55  ;;  %13655 = vmatprep.subr.bf16.mxu0 %v18170_v47  ;;  %v18222_v37 = vld [vmem:[#allocation13 + $0x760] ss:$24 sps:$4 sm:$0xff]   ;;  %v18230_v47 = vld [vmem:[#allocation13 + $0x734] ss:$24 sps:$4 sm:$0xff]  }
 0xffc   :  { %13619 = vmatpush2.bf16.msra.mxu1 %v18165_v50  ;;  %13656 = vmatpush1.bf16.msra.mxu0 %v18168_v26  ;;  %v18225_v26 = vld [vmem:[#allocation13 + $0x3d0] ss:$24 sps:$4 sm:$0xff]  }
 0xffd   :  { %13620 = vmatprep.subr.bf16.mxu1 %v18173_v53  ;;  %13657 = vmatprep.subr.bf16.mxu0 %v18176_v63  ;;  %v18228_v53 = vld [vmem:[#allocation13 + $0x730] ss:$24 sps:$4 sm:$0xff]  }
0x1000   :  { %13621 = vmatpush2.bf16.msra.mxu1 %v18171_v56  ;;  %13658 = vmatpush2.bf16.msra.mxu0 %v18174_v30  ;;  %v18233_v56 = vld [vmem:[#allocation13 + $0x3a4] ss:$24 sps:$4 sm:$0xff]  }
0x1001   :  { %13622 = vmatprep.subr.bf16.mxu1 %v18179_v36  ;;  %13659 = vmatprep.subr.bf16.mxu0 %v18182_v54  ;;  %v18236_v30 = vld [vmem:[#allocation13 + $0x704] ss:$24 sps:$4 sm:$0xff]  }
0x1004   :  { %13623 = vmatpush2.bf16.msra.mxu1 %v18177_v22  ;;  %13660 = vmatpush2.bf16.msra.mxu0 %v18180_v2  ;;  %v18234_v22 = vld [vmem:[#allocation13 + $0x700] ss:$24 sps:$4 sm:$0xff]  }
0x1005   :  { %13624 = vmatprep.subr.bf16.mxu1 %v18185_v21  ;;  %13661 = vmatprep.subr.bf16.mxu0 %v18188_v38  ;;  %v18239_v21 = vld [vmem:[#allocation13 + $0x374] ss:$24 sps:$4 sm:$0xff]  }
0x1006   :  { %v18242_v38 = vld [vmem:[#allocation13 + $0x6d4] ss:$24 sps:$4 sm:$0xff]  }
0x1008   :  { %13625 = vmatpush2.bf16.msra.mxu1 %v18183_v1  ;;  %13662 = vmatpush2.bf16.msra.mxu0 %v18186_v12  ;;  %v18240_v1 = vld [vmem:[#allocation13 + $0x6d0] ss:$24 sps:$4 sm:$0xff]   ;;  %v18245_v12 = vld [vmem:[#allocation13 + $0x344] ss:$24 sps:$4 sm:$0xff]  }
0x1009   :  { %13626 = vmatprep.subr.bf16.mxu1 %v18191_v8  ;;  %13663 = vmatprep.subr.bf16.mxu0 %v18194_v35  ;;  %v18248_v8 = vld [vmem:[#allocation13 + $0x6a4] ss:$24 sps:$4 sm:$0xff]   ;;  %v18243_v35 = vld [vmem:[#allocation13 + $0x340] ss:$24 sps:$4 sm:$0xff]  }
0x100c   :  { %13627 = vmatpush2.bf16.msra.mxu1 %v18189_v33  ;;  %13664 = vmatpush2.bf16.msra.mxu0 %v18192_v15  ;;  %v18246_v33 = vld [vmem:[#allocation13 + $0x6a0] ss:$24 sps:$4 sm:$0xff]   ;;  %v18251_v15 = vld [vmem:[#allocation13 + $0x314] ss:$24 sps:$4 sm:$0xff]  }
0x100d   :  { %13628 = vmatprep.subr.bf16.mxu1 %v18197_v42  ;;  %13665 = vmatprep.subr.bf16.mxu0 %v18200_v31  ;;  %v18254_v42 = vld [vmem:[#allocation13 + $0x674] ss:$24 sps:$4 sm:$0xff]   ;;  %v18249_v31 = vld [vmem:[#allocation13 + $0x310] ss:$24 sps:$4 sm:$0xff]  }
0x1010   :  { %13629 = vmatpush2.bf16.msra.mxu1 %v18195_v39  ;;  %13666 = vmatpush2.bf16.msra.mxu0 %v18198_v14  ;;  %v18252_v39 = vld [vmem:[#allocation13 + $0x670] ss:$24 sps:$4 sm:$0xff]   ;;  %v18257_v14 = vld [vmem:[#allocation13 + $0x5e4] ss:$24 sps:$4 sm:$0xff]  }
0x1011   :  { %13630 = vmatprep.subr.bf16.mxu1 %v18203_v52  ;;  %13667 = vmatprep.subr.bf16.mxu0 %v18206_v58  ;;  %v18260_v52 = vld [vmem:[#allocation13 + $0x644] ss:$24 sps:$4 sm:$0xff]   ;;  %v18255_v58 = vld [vmem:[#allocation13 + $0x5e0] ss:$24 sps:$4 sm:$0xff]  }
0x1014   :  { %13631 = vmatpush2.bf16.msra.mxu1 %v18201_v41  ;;  %13668 = vmatpush2.bf16.msra.mxu0 %v18204_v7  ;;  %v18258_v41 = vld [vmem:[#allocation13 + $0x640] ss:$24 sps:$4 sm:$0xff]   ;;  %v18263_v7 = vld [vmem:[#allocation13 + $0x5b4] ss:$24 sps:$4 sm:$0xff]  }
0x1015   :  { %13669 = vmatprep.subr.bf16.mxu0 %v18209_v48  ;;  %13682 = vmatprep.subr.bf16.mxu1 %v18212_v0  ;;  %v18266_v48 = vld [vmem:[#allocation13 + $0x614] ss:$24 sps:$4 sm:$0xff]   ;;  %v18261_v0 = vld [vmem:[#allocation13 + $0x5b0] ss:$24 sps:$4 sm:$0xff]  }
0x1017   :  { %13633 = vmatmul.mubr.bf16.vlgmr.msra.gmra.mxu1 %v19907_v49  ;;  %v13388_v28 = vpop.f32.mrf.mxu1 }
0x1018   :  { %v13389_v27 = vadd.f32 %v13388_v28, %v13348_v19  ;;  %13670 = vmatpush2.bf16.msra.mxu0 %v18207_v60  ;;  %13683 = vmatpush1.bf16.msra.mxu1 %v18210_v17  ;;  %v18272_v60 = vld [vmem:[#allocation13 + $0x8e4] ss:$24 sps:$4 sm:$0xff]   ;;  %v18267_v17 = vld [vmem:[#allocation13 + $0x580] ss:$24 sps:$4 sm:$0xff]   ;;  %v18275_v19 = vld [vmem:[#allocation13 + $0x554] ss:$24 sps:$4 sm:$0xff]  }
0x1019   :  { %13714 = vmatprep.mubr.bf16.mxu1 %v19885_v43  ;;  %v13390_v11 = vpop.f32.mrf.mxu1  ;;  %13671 = vmatprep.subr.bf16.mxu0 %v18215_v51  ;;  %v18270_v51 = vld [vmem:[#allocation13 + $0x8e0] ss:$24 sps:$4 sm:$0xff]   ;;  %v18273_v28 = vld [vmem:[#allocation13 + $0x550] ss:$24 sps:$4 sm:$0xff]  }
0x101a   :  { %v13391_v25 = vadd.f32 %v13390_v11, %v13350_v13  ;;  %13684 = vmatprep.subr.bf16.mxu1 %v18218_v10  ;;  %v18278_v10 = vld [vmem:[#allocation13 + $0x8b4] ss:$24 sps:$4 sm:$0xff]   ;;  %v18276_v13 = vld [vmem:[#allocation13 + $0x8b0] ss:$24 sps:$4 sm:$0xff]   ;;  %v18282_v11 = vld [vmem:[#allocation13 + $0x880] ss:$24 sps:$4 sm:$0xff]  }
0x101b   :  { %v13392_v29 = vpop.f32.mrf.mxu1 }
0x101c   :  { %13672 = vmatpush2.bf16.msra.mxu0 %v18213_v16  ;;  %13685 = vmatpush1.bf16.msra.mxu1 %v18216_v62  ;;  %v18284_v16 = vld [vmem:[#allocation13 + $0x884] ss:$24 sps:$4 sm:$0xff]   ;;  %v18279_v62 = vld [vmem:[#allocation13 + $0x520] ss:$24 sps:$4 sm:$0xff]   ;;  %v18288_v29 = vld [vmem:[#allocation13 + $0x850] ss:$24 sps:$4 sm:$0xff]  }
0x101d   :  { %v13393_v55 = vpop.f32.mrf.mxu1  ;;  %13686 = vmatprep.subr.bf16.mxu1 %v18221_v59  ;;  %13723 = vmatprep.subr.bf16.mxu0 %v18224_v5  ;;  %v18287_v59 = vld [vmem:[#allocation13 + $0x4f4] ss:$24 sps:$4 sm:$0xff]  }
0x101e   :  { %v18290_v5 = vld [vmem:[#allocation13 + $0x854] ss:$24 sps:$4 sm:$0xff]   ;;  %v18291_v55 = vld [vmem:[#allocation13 + $0x4c0] ss:$24 sps:$4 sm:$0xff]  }
0x101f   :  { %13674 = vmatmul.mubr.bf16.vlgmr.msra.gmra.mxu0 %v19804_v34  ;;  %v13429_v50 = vpop.f32.mrf.mxu0  ;;  %v18231_v34 = vld [vmem:[#allocation13 + $0x3a0] ss:$24 sps:$4 sm:$0xff]  }
0x1020   :  { %v19928_v43 = vadd.f32 %v13429_v50, %v13389_v27  ;;  %13687 = vmatpush1.bf16.msra.mxu1 %v18219_v9  ;;  %13724 = vmatpush1.bf16.msra.mxu0 %v18222_v37  ;;  %v18281_v27 = vld [vmem:[#allocation13 + $0x524] ss:$24 sps:$4 sm:$0xff]   ;;  %v18302_v50 = vld [vmem:[#allocation13 + $0x7f4] ss:$24 sps:$4 sm:$0xff]  }
0x1021   :  { %13755 = vmatprep.mubr.bf16.mxu0 %v19893_v4  ;;  %v13431_v63 = vpop.f32.mrf.mxu0  ;;  %13688 = vmatprep.subr.bf16.mxu1 %v18227_v24  ;;  %v18237_v4 = vld [vmem:[#allocation13 + $0x370] ss:$24 sps:$4 sm:$0xff]   ;;  %v18293_v9 = vld [vmem:[#allocation13 + $0x4c4] ss:$24 sps:$4 sm:$0xff]   ;;  %v18294_v24 = vld [vmem:[#allocation13 + $0x820] ss:$24 sps:$4 sm:$0xff]  }
0x1022   :  { %v19931_v36 = vadd.f32 %v13431_v63, %v13391_v25  ;;  %13725 = vmatprep.subr.bf16.mxu0 %v18230_v47  ;;  %v18285_v25 = vld [vmem:[#allocation13 + $0x4f0] ss:$24 sps:$4 sm:$0xff]   ;;  %v18296_v37 = vld [vmem:[#allocation13 + $0x824] ss:$24 sps:$4 sm:$0xff]   ;;  %v18299_v47 = vld [vmem:[#allocation13 + $0x494] ss:$24 sps:$4 sm:$0xff]  }
0x1023   :  { %v13433_v54 = vpop.f32.mrf.mxu0  ;;  %v18305_v63 = vld [vmem:[#allocation13 + $0x7c4] ss:$24 sps:$4 sm:$0xff]  }
0x1024   :  { %13689 = vmatpush1.bf16.msra.mxu1 %v18225_v26  ;;  %13726 = vmatpush1.bf16.msra.mxu0 %v18228_v53  ;;  %v18297_v26 = vld [vmem:[#allocation13 + $0x490] ss:$24 sps:$4 sm:$0xff]   ;;  %v18306_v54 = vld [vmem:[#allocation13 + $0xa60] ss:$24 sps:$4 sm:$0xff]  }
0x1025   :  { %v13434_v2 = vpop.f32.mrf.mxu0  ;;  %13690 = vmatprep.subr.bf16.mxu1 %v18233_v56  ;;  %13727 = vmatprep.subr.bf16.mxu0 %v18236_v30  ;;  %v18300_v53 = vld [vmem:[#allocation13 + $0x7f0] ss:$24 sps:$4 sm:$0xff]   ;;  %v18308_v56 = vld [vmem:[#allocation13 + $0xa64] ss:$24 sps:$4 sm:$0xff]   ;;  %v18303_v30 = vld [vmem:[#allocation13 + $0x7c0] ss:$24 sps:$4 sm:$0xff]  }
0x1028   :  { %13691 = vmatpush1.bf16.msra.mxu1 %v18231_v34  ;;  %13728 = vmatpush1.bf16.msra.mxu0 %v18234_v22  ;;  %v18311_v34 = vld [vmem:[#allocation13 + $0x794] ss:$24 sps:$4 sm:$0xff]  }
0x1029   :  { %13692 = vmatprep.subr.bf16.mxu1 %v18239_v21  ;;  %13729 = vmatprep.subr.bf16.mxu0 %v18242_v38  ;;  %v18314_v22 = vld [vmem:[#allocation13 + $0xa34] ss:$24 sps:$4 sm:$0xff]   ;;  %v18309_v38 = vld [vmem:[#allocation13 + $0x790] ss:$24 sps:$4 sm:$0xff]  }
0x102c   :  { %13693 = vmatpush1.bf16.msra.mxu1 %v18237_v4  ;;  %13730 = vmatpush1.bf16.msra.mxu0 %v18240_v1  ;;  %v18312_v4 = vld [vmem:[#allocation13 + $0xa30] ss:$24 sps:$4 sm:$0xff]  }
0x102d   :  { %13694 = vmatprep.subr.bf16.mxu1 %v18245_v12  ;;  %13731 = vmatprep.subr.bf16.mxu0 %v18248_v8  ;;  %v18317_v12 = vld [vmem:[#allocation13 + $0xa04] ss:$24 sps:$4 sm:$0xff]  }
0x1030   :  { %13695 = vmatpush1.bf16.msra.mxu1 %v18243_v35  ;;  %13732 = vmatpush1.bf16.msra.mxu0 %v18246_v33 }
0x1031   :  { %13696 = vmatprep.subr.bf16.mxu1 %v18251_v15  ;;  %13733 = vmatprep.subr.bf16.mxu0 %v18254_v42  ;;  %v18318_v42 = vld [vmem:[#allocation13 + $0x9d0] ss:$24 sps:$4 sm:$0xff]  }
0x1034   :  { %13697 = vmatpush1.bf16.msra.mxu1 %v18249_v31  ;;  %13734 = vmatpush1.bf16.msra.mxu0 %v18252_v39  ;;  %v18323_v31 = vld [vmem:[#allocation13 + $0x9a4] ss:$24 sps:$4 sm:$0xff]  }
0x1035   :  { %13698 = vmatprep.subr.bf16.mxu1 %v18257_v14  ;;  %13735 = vmatprep.subr.bf16.mxu0 %v18260_v52  ;;  %v18326_v52 = vld [vmem:[#allocation13 + $0x974] ss:$24 sps:$4 sm:$0xff]  }
0x1038   :  { %13699 = vmatpush2.bf16.msra.mxu1 %v18255_v58  ;;  %13736 = vmatpush1.bf16.msra.mxu0 %v18258_v41  ;;  %v18324_v58 = vld [vmem:[#allocation13 + $0x970] ss:$24 sps:$4 sm:$0xff]   ;;  %v18329_v41 = vld [vmem:[#allocation13 + $0x944] ss:$24 sps:$4 sm:$0xff]  }
0x1039   :  { %13700 = vmatprep.subr.bf16.mxu1 %v18263_v7  ;;  %13737 = vmatprep.subr.bf16.mxu0 %v18266_v48  ;;  %v18327_v7 = vld [vmem:[#allocation13 + $0x940] ss:$24 sps:$4 sm:$0xff]   ;;  %v18332_v48 = vld [vmem:[#allocation13 + $0x914] ss:$24 sps:$4 sm:$0xff]  }
0x103c   :  { %13701 = vmatpush2.bf16.msra.mxu1 %v18261_v0  ;;  %13738 = vmatpush1.bf16.msra.mxu0 %v18264_v40  ;;  %v18335_v0 = vld [vmem:[#allocation13 + $0xbe4] ss:$24 sps:$4 sm:$0xff]   ;;  %v18333_v40 = vld [vmem:[#allocation13 + $0xbe0] ss:$24 sps:$4 sm:$0xff]  }
0x103d   :  { %13702 = vmatprep.subr.bf16.mxu1 %v18269_v20  ;;  %13739 = vmatprep.subr.bf16.mxu0 %v18272_v60  ;;  %v18338_v20 = vld [vmem:[#allocation13 + $0xbb4] ss:$24 sps:$4 sm:$0xff]   ;;  %v18336_v60 = vld [vmem:[#allocation13 + $0xbb0] ss:$24 sps:$4 sm:$0xff]  }
0x1040   :  { %13703 = vmatpush2.bf16.msra.mxu1 %v18267_v17  ;;  %13740 = vmatpush2.bf16.msra.mxu0 %v18270_v51  ;;  %v18341_v17 = vld [vmem:[#allocation13 + $0xb84] ss:$24 sps:$4 sm:$0xff]   ;;  %v18339_v51 = vld [vmem:[#allocation13 + $0xb80] ss:$24 sps:$4 sm:$0xff]  }
0x1041   :  { %13704 = vmatprep.subr.bf16.mxu1 %v18275_v19  ;;  %13741 = vmatprep.subr.bf16.mxu0 %v18278_v10  ;;  %v18344_v19 = vld [vmem:[#allocation13 + $0xb54] ss:$24 sps:$4 sm:$0xff]   ;;  %v18342_v10 = vld [vmem:[#allocation13 + $0xb50] ss:$24 sps:$4 sm:$0xff]  }
0x1044   :  { %13705 = vmatpush2.bf16.msra.mxu1 %v18273_v28  ;;  %13742 = vmatpush2.bf16.msra.mxu0 %v18276_v13  ;;  %v18347_v28 = vld [vmem:[#allocation13 + $0xb24] ss:$24 sps:$4 sm:$0xff]   ;;  %v18345_v13 = vld [vmem:[#allocation13 + $0xb20] ss:$24 sps:$4 sm:$0xff]  }
0x1045   :  { %13706 = vmatprep.subr.bf16.mxu1 %v18281_v27  ;;  %13743 = vmatprep.subr.bf16.mxu0 %v18284_v16  ;;  %v18350_v27 = vld [vmem:[#allocation13 + $0xaf4] ss:$24 sps:$4 sm:$0xff]   ;;  %v18348_v16 = vld [vmem:[#allocation13 + $0xaf0] ss:$24 sps:$4 sm:$0xff]  }
0x1048   :  { %13707 = vmatpush2.bf16.msra.mxu1 %v18279_v62  ;;  %13744 = vmatpush2.bf16.msra.mxu0 %v18282_v11  ;;  %v18353_v62 = vld [vmem:[#allocation13 + $0xac4] ss:$24 sps:$4 sm:$0xff]   ;;  %v18351_v11 = vld [vmem:[#allocation13 + $0xac0] ss:$24 sps:$4 sm:$0xff]  }
0x1049   :  { %13708 = vmatprep.subr.bf16.mxu1 %v18287_v59  ;;  %13745 = vmatprep.subr.bf16.mxu0 %v18290_v5  ;;  %v18356_v59 = vld [vmem:[#allocation13 + $0xa94] ss:$24 sps:$4 sm:$0xff]   ;;  %v18354_v5 = vld [vmem:[#allocation13 + $0xa90] ss:$24 sps:$4 sm:$0xff]  }
0x104c   :  { %13709 = vmatpush2.bf16.msra.mxu1 %v18285_v25  ;;  %13746 = vmatpush2.bf16.msra.mxu0 %v18288_v29  ;;  %v11374_v25 = vrot.slane %v19917_v44, %v19295_v6  ;;  %v11378_v29 = vrot.slane %v19917_v44, %v19263_v46 }
0x104d   :  { %13710 = vmatprep.subr.bf16.mxu1 %v18293_v9  ;;  %13747 = vmatprep.subr.bf16.mxu0 %v18296_v37 }
0x1050   :  { %13711 = vmatpush2.bf16.msra.mxu1 %v18291_v55  ;;  %13748 = vmatpush2.bf16.msra.mxu0 %v18294_v24 }
0x1051   :  { %13712 = vmatprep.subr.bf16.mxu1 %v18299_v47  ;;  %13749 = vmatprep.subr.bf16.mxu0 %v18302_v50 }
0x1054   :  { %13713 = vmatpush2.bf16.msra.mxu1 %v18297_v26  ;;  %13750 = vmatpush2.bf16.msra.mxu0 %v18300_v53 }
0x1055   :  { %13751 = vmatprep.subr.bf16.mxu0 %v18305_v63  ;;  %13764 = vmatprep.subr.bf16.mxu1 %v18308_v56 }
0x1057   :  { %v13470_v2 = vpop.f32.mrf.mxu1  ;;  %13715 = vmatmul.mubr.bf16.vlgmr.msra.gmra.mxu1 %v19889_v23  ;;  %v18315_v23 = vld [vmem:[#allocation13 + $0xa00] ss:$24 sps:$4 sm:$0xff]  }
0x1058   :  { %v19935_v21 = vadd.f32 %v13470_v2, %v19928_v43  ;;  %13752 = vmatpush2.bf16.msra.mxu0 %v18303_v30  ;;  %13765 = vmatpush1.bf16.msra.mxu1 %v18306_v54  ;;  %v18320_v43 = vld [vmem:[#allocation13 + $0x9d4] ss:$24 sps:$4 sm:$0xff]  }
0x1059   :  { %13796 = vmatprep.mubr.bf16.mxu1 %v19902_v57  ;;  %v13472_v1 = vpop.f32.mrf.mxu1  ;;  %13753 = vmatprep.subr.bf16.mxu0 %v18311_v34 }
0x105a   :  { %v19939_v8 = vadd.f32 %v13472_v1, %v19931_v36  ;;  %13766 = vmatprep.subr.bf16.mxu1 %v18314_v22  ;;  %v18321_v36 = vld [vmem:[#allocation13 + $0x9a0] ss:$24 sps:$4 sm:$0xff]  }
0x105b   :  { %v13474_v35 = vpop.f32.mrf.mxu1 }
0x105c   :  { %13754 = vmatpush2.bf16.msra.mxu0 %v18309_v38  ;;  %13767 = vmatpush1.bf16.msra.mxu1 %v18312_v4 }
0x105d   :  { %v13475_v33 = vpop.f32.mrf.mxu1  ;;  %13768 = vmatprep.subr.bf16.mxu1 %v18317_v12 }
0x105f   :  { %v13511_v15 = vpop.f32.mrf.mxu0  ;;  %13756 = vmatmul.mubr.bf16.vlgmr.msra.gmra.mxu0 %v19895_v32  ;;  %v18330_v32 = vld [vmem:[#allocation13 + $0x910] ss:$24 sps:$4 sm:$0xff]  }
0x1060   :  { %13769 = vmatpush1.bf16.msra.mxu1 %v18315_v23  ;;  %v13512_v9 = vadd.f32 %v13511_v15, %v11374_v25 }
0x1061   :  { %v13513_v57 = vpop.f32.mrf.mxu0  ;;  %13770 = vmatprep.subr.bf16.mxu1 %v18320_v43 }
0x1062   :  { %v13514_v55 = vadd.f32 %v13513_v57, %v11378_v29 }
0x1063   :  { %v13515_v39 = vpop.f32.mrf.mxu0 }
0x1064   :  { %13771 = vmatpush1.bf16.msra.mxu1 %v18318_v42 }
0x1065   :  { %v13516_v14 = vpop.f32.mrf.mxu0  ;;  %13772 = vmatprep.subr.bf16.mxu1 %v18323_v31 }
0x1068   :  { %13773 = vmatpush1.bf16.msra.mxu1 %v18321_v36 }
0x1069   :  { %13774 = vmatprep.subr.bf16.mxu1 %v18326_v52 }
0x106c   :  { %13775 = vmatpush1.bf16.msra.mxu1 %v18324_v58  ;;  %v11382_v58 = vrot.slane %v19917_v44, %v19337_v61 }
0x106d   :  { %13776 = vmatprep.subr.bf16.mxu1 %v18329_v41  ;;  %v20219_v41 = vld [vmem:[#allocation39_spill] sm:$0xff] }
0x1070   :  { %13777 = vmatpush1.bf16.msra.mxu1 %v18327_v7  ;;  %v19951_v7 = vadd.f32 %v19939_v8, %v20219_v41  ;;  %v20222_v8 = vld [vmem:[#allocation40_spill] sm:$0xff] }
0x1071   :  { %13778 = vmatprep.subr.bf16.mxu1 %v18332_v48  ;;  %v11386_v48 = vrot.slane %v19917_v44, %v19310_v18  ;;  %v18401_v41 = vld [vmem:[#allocation19 + $0x4] ss:$8 sps:$4 sm:$0xff]  }
0x1074   :  { %13779 = vmatpush1.bf16.msra.mxu1 %v18330_v32  ;;  %v20220_v32 = vld [vmem:[#allocation41_spill] sm:$0xff] }
0x1075   :  { %13780 = vmatprep.subr.bf16.mxu1 %v18335_v0  ;;  %v19957_v0 = vadd.f32 %v19935_v21, %v20220_v32  ;;  %v18399_v32 = vld [vmem:[#allocation19] ss:$8 sps:$4 sm:$0xff]  }
0x1078   :  { %13781 = vmatpush2.bf16.msra.mxu1 %v18333_v40  ;;  %v20221_v40 = vld [vmem:[#allocation42_spill] sm:$0xff] }
0x1079   :  { %13782 = vmatprep.subr.bf16.mxu1 %v18338_v20 }
0x107c   :  { %13783 = vmatpush2.bf16.msra.mxu1 %v18336_v60 }
0x107d   :  { %13784 = vmatprep.subr.bf16.mxu1 %v18341_v17  ;;  %v13813_v17 = vadd.f32 %v19951_v7, %v19957_v0 }
0x1080   :  { %13785 = vmatpush2.bf16.msra.mxu1 %v18339_v51 }
0x1081   :  { %13786 = vmatprep.subr.bf16.mxu1 %v18344_v19 }
0x1084   :  { %13787 = vmatpush2.bf16.msra.mxu1 %v18342_v10 }
0x1085   :  { %13788 = vmatprep.subr.bf16.mxu1 %v18347_v28 }
0x1088   :  { %13789 = vmatpush2.bf16.msra.mxu1 %v18345_v13 }
0x1089   :  { %13790 = vmatprep.subr.bf16.mxu1 %v18350_v27 }
0x108c   :  { %13791 = vmatpush2.bf16.msra.mxu1 %v18348_v16 }
0x108d   :  { %13792 = vmatprep.subr.bf16.mxu1 %v18353_v62 }
0x1090   :  { %13793 = vmatpush2.bf16.msra.mxu1 %v18351_v11 }
0x1091   :  { %13794 = vmatprep.subr.bf16.mxu1 %v18356_v59  ;;  %v20223_v59 = vld [vmem:[#allocation44_spill] sm:$0xff] }
0x1094   :  { %13795 = vmatpush2.bf16.msra.mxu1 %v18354_v5 }
0x1097   :  { %v13552_v37 = vpop.f32.mrf.mxu1  ;;  %13797 = vmatmul.mubr.bf16.vlgmr.msra.gmra.mxu1 %v19907_v49 }
0x1098   :  { %v13553_v24 = vadd.f32 %v13552_v37, %v13512_v9  ;;  %v20224_v9 = vld [vmem:[#allocation43_spill] sm:$0xff] }
0x1099   :  { %v13554_v47 = vpop.f32.mrf.mxu1 }
0x109a   :  { %v13555_v50 = vadd.f32 %v13554_v47, %v13514_v55 }
0x109b   :  { %v13556_v26 = vpop.f32.mrf.mxu1 }
0x109c   :  { %v18359_v26 = vld [vmem:[#allocation19 + $0x74] ss:$8 sps:$4 sm:$0xff]  }
0x109d   :  { %v13557_v53 = vpop.f32.mrf.mxu1  ;;  %14518 = vmatprep.subr.bf16.mxu0 %v18359_v26 }
0x109e   :  { %v18360_v53 = vld [vmem:[#allocation19 + $0x170] ss:$8 sps:$4 sm:$0xff]  }
0x109f   :  { %v13593_v63 = vpop.f32.mrf.mxu0 }
0x10a0   :  { %v13594_v56 = vadd.f32 %v13593_v63, %v13553_v24  ;;  %v18362_v63 = vld [vmem:[#allocation19 + $0x174] ss:$8 sps:$4 sm:$0xff]  }
0x10a1   :  { %v13595_v30 = vpop.f32.mrf.mxu0  ;;  %14559 = vmatprep.subr.bf16.mxu1 %v18362_v63  ;;  %v18417_v63 = vld [vmem:[#allocation19 + $0xd0] ss:$8 sps:$4 sm:$0xff]  }
0x10a2   :  { %v13596_v54 = vadd.f32 %v13595_v30, %v13555_v50  ;;  %v18357_v50 = vld [vmem:[#allocation19 + $0x70] ss:$8 sps:$4 sm:$0xff]   ;;  %v18368_v30 = vld [vmem:[#allocation19 + $0x164] ss:$8 sps:$4 sm:$0xff]   ;;  %14560 = vmatpush1.bf16.msra.mxu1 %v18360_v53  ;;  %v18419_v53 = vld [vmem:[#allocation19 + $0xd4] ss:$8 sps:$4 sm:$0xff]  }
0x10a3   :  { %v13597_v34 = vpop.f32.mrf.mxu0  ;;  %14519 = vmatpush1.bf16.msra.mxu0 %v18357_v50  ;;  %14561 = vmatprep.subr.bf16.mxu1 %v18368_v30  ;;  %v18423_v30 = vld [vmem:[#allocation19 + $0xc0] ss:$8 sps:$4 sm:$0xff]  }
0x10a4   :  { %v18366_v34 = vld [vmem:[#allocation19 + $0x160] ss:$8 sps:$4 sm:$0xff]  }
0x10a5   :  { %v13598_v22 = vpop.f32.mrf.mxu0 }
0x10a6   :  { %v18371_v22 = vld [vmem:[#allocation19 + $0x54] ss:$8 sps:$4 sm:$0xff]   ;;  %14562 = vmatpush1.bf16.msra.mxu1 %v18366_v34  ;;  %v18426_v34 = vld [vmem:[#allocation19 + $0x1c0] ss:$8 sps:$4 sm:$0xff]  }
0x10d7   :  { %v13634_v2 = vpop.f32.mrf.mxu1 }
0x10d8   :  { %v13635_v38 = vadd.f32 %v13634_v2, %v13594_v56  ;;  %v18365_v56 = vld [vmem:[#allocation19 + $0x64] ss:$8 sps:$4 sm:$0xff]   ;;  %v18374_v2 = vld [vmem:[#allocation19 + $0x154] ss:$8 sps:$4 sm:$0xff]  }
0x10d9   :  { %v13636_v4 = vpop.f32.mrf.mxu1  ;;  %14520 = vmatprep.subr.bf16.mxu0 %v18365_v56  ;;  %14563 = vmatprep.subr.bf16.mxu1 %v18374_v2  ;;  %v18422_v56 = vld [vmem:[#allocation19 + $0x1d4] ss:$8 sps:$4 sm:$0xff]  }
0x10da   :  { %v13637_v1 = vadd.f32 %v13636_v4, %v13596_v54  ;;  %v19960_v20 = vadd.f32 %v13635_v38, %v20221_v40  ;;  %v18363_v54 = vld [vmem:[#allocation19 + $0x60] ss:$8 sps:$4 sm:$0xff]   ;;  %v18369_v38 = vld [vmem:[#allocation19 + $0x50] ss:$8 sps:$4 sm:$0xff]   ;;  %v18431_v2 = vld [vmem:[#allocation19 + $0xb4] ss:$8 sps:$4 sm:$0xff]  }
0x10db   :  { %v13638_v12 = vpop.f32.mrf.mxu1  ;;  %14521 = vmatpush1.bf16.msra.mxu0 %v18363_v54  ;;  %v18372_v4 = vld [vmem:[#allocation19 + $0x150] ss:$8 sps:$4 sm:$0xff]   ;;  %v18402_v40 = vld [vmem:[#allocation19 + $0x100] ss:$8 sps:$4 sm:$0xff]   ;;  %v18425_v54 = vld [vmem:[#allocation19 + $0xc4] ss:$8 sps:$4 sm:$0xff]  }
0x10dc   :  { %v13814_v10 = vadd.f32 %v13813_v17, %v19960_v20  ;;  %v19966_v28 = vadd.f32 %v13637_v1, %v20222_v8  ;;  %14522 = vmatprep.subr.bf16.mxu0 %v18371_v22  ;;  %v18377_v1 = vld [vmem:[#allocation19 + $0x44] ss:$8 sps:$4 sm:$0xff]   ;;  %14564 = vmatpush1.bf16.msra.mxu1 %v18372_v4  ;;  %v18410_v17 = vld [vmem:[#allocation19 + $0x1f4] ss:$8 sps:$4 sm:$0xff]   ;;  %v18429_v4 = vld [vmem:[#allocation19 + $0xb0] ss:$8 sps:$4 sm:$0xff]  }
0x10dd   :  { %v13639_v35 = vpop.f32.mrf.mxu1  ;;  %v18380_v12 = vld [vmem:[#allocation19 + $0x144] ss:$8 sps:$4 sm:$0xff]  }
0x10de   :  { %v13815_v11 = vadd.f32 %v13814_v10, %v19966_v28  ;;  %v18375_v35 = vld [vmem:[#allocation19 + $0x40] ss:$8 sps:$4 sm:$0xff]   ;;  %14565 = vmatprep.subr.bf16.mxu1 %v18380_v12  ;;  %v18413_v10 = vld [vmem:[#allocation19 + $0xe4] ss:$8 sps:$4 sm:$0xff]  }
0x10df   :  { %v13675_v23 = vpop.f32.mrf.mxu0  ;;  %14523 = vmatpush1.bf16.msra.mxu0 %v18369_v38  ;;  %v18416_v8 = vld [vmem:[#allocation19 + $0x1e4] ss:$8 sps:$4 sm:$0xff]   ;;  %v18434_v38 = vld [vmem:[#allocation19 + $0x1b4] ss:$8 sps:$4 sm:$0xff]  }
0x10e0   :  { %v13676_v60 = vadd.f32 %v13675_v23, %v11382_v58  ;;  %14524 = vmatprep.subr.bf16.mxu0 %v18377_v1  ;;  %v18378_v23 = vld [vmem:[#allocation19 + $0x140] ss:$8 sps:$4 sm:$0xff]   ;;  %v18396_v58 = vld [vmem:[#allocation19 + $0x110] ss:$8 sps:$4 sm:$0xff]   ;;  %v18428_v22 = vld [vmem:[#allocation19 + $0x1c4] ss:$8 sps:$4 sm:$0xff]  }
0x10e1   :  { %v13677_v49 = vpop.f32.mrf.mxu0  ;;  %14566 = vmatpush1.bf16.msra.mxu1 %v18378_v23  ;;  %v18432_v1 = vld [vmem:[#allocation19 + $0x1b0] ss:$8 sps:$4 sm:$0xff]   ;;  %v18437_v12 = vld [vmem:[#allocation19 + $0xa4] ss:$8 sps:$4 sm:$0xff]   ;;  %v18435_v23 = vld [vmem:[#allocation19 + $0xa0] ss:$8 sps:$4 sm:$0xff]  }
0x10e2   :  { %v13678_v51 = vadd.f32 %v13677_v49, %v11386_v48  ;;  %v18383_v49 = vld [vmem:[#allocation19 + $0x34] ss:$8 sps:$4 sm:$0xff]   ;;  %v18404_v48 = vld [vmem:[#allocation19 + $0x104] ss:$8 sps:$4 sm:$0xff]  }
0x10e3   :  { %v13679_v33 = vpop.f32.mrf.mxu0  ;;  %14525 = vmatpush1.bf16.msra.mxu0 %v18375_v35  ;;  %v18440_v35 = vld [vmem:[#allocation19 + $0x1a4] ss:$8 sps:$4 sm:$0xff]  }
0x10e4   :  { %v18386_v33 = vld [vmem:[#allocation19 + $0x134] ss:$8 sps:$4 sm:$0xff]   ;;  %14526 = vmatprep.subr.bf16.mxu0 %v18383_v49  ;;  %v18438_v49 = vld [vmem:[#allocation19 + $0x1a0] ss:$8 sps:$4 sm:$0xff]  }
0x10e5   :  { %v13680_v43 = vpop.f32.mrf.mxu0  ;;  %14567 = vmatprep.subr.bf16.mxu1 %v18386_v33  ;;  %v18443_v33 = vld [vmem:[#allocation19 + $0x94] ss:$8 sps:$4 sm:$0xff]  }
0x10e6   :  { %v18381_v43 = vld [vmem:[#allocation19 + $0x30] ss:$8 sps:$4 sm:$0xff]  }
0x10e7   :  { %14527 = vmatpush1.bf16.msra.mxu0 %v18381_v43  ;;  %v18446_v43 = vld [vmem:[#allocation19 + $0x194] ss:$8 sps:$4 sm:$0xff]  }
0x1117   :  { %v13716_v15 = vpop.f32.mrf.mxu1 }
0x1118   :  { %v13717_v19 = vadd.f32 %v13716_v15, %v13676_v60  ;;  %v18384_v15 = vld [vmem:[#allocation19 + $0x130] ss:$8 sps:$4 sm:$0xff]   ;;  %v18407_v60 = vld [vmem:[#allocation19 + $0xf4] ss:$8 sps:$4 sm:$0xff]  }
0x1119   :  { %v13718_v42 = vpop.f32.mrf.mxu1  ;;  %14568 = vmatpush1.bf16.msra.mxu1 %v18384_v15  ;;  %v18441_v15 = vld [vmem:[#allocation19 + $0x90] ss:$8 sps:$4 sm:$0xff]  }
0x111a   :  { %v13719_v13 = vadd.f32 %v13718_v42, %v13678_v51  ;;  %v18389_v42 = vld [vmem:[#allocation19 + $0x24] ss:$8 sps:$4 sm:$0xff]   ;;  %v18405_v51 = vld [vmem:[#allocation19 + $0xf0] ss:$8 sps:$4 sm:$0xff]  }
0x111b   :  { %v13720_v57 = vpop.f32.mrf.mxu1  ;;  %14528 = vmatprep.subr.bf16.mxu0 %v18389_v42  ;;  %v18444_v42 = vld [vmem:[#allocation19 + $0x190] ss:$8 sps:$4 sm:$0xff]  }
0x111c   :  { %v18392_v57 = vld [vmem:[#allocation19 + $0x124] ss:$8 sps:$4 sm:$0xff]  }
0x111d   :  { %v13721_v31 = vpop.f32.mrf.mxu1  ;;  %14569 = vmatprep.subr.bf16.mxu1 %v18392_v57  ;;  %v18449_v57 = vld [vmem:[#allocation19 + $0x84] ss:$8 sps:$4 sm:$0xff]  }
0x111e   :  { %v18387_v31 = vld [vmem:[#allocation19 + $0x20] ss:$8 sps:$4 sm:$0xff]  }
0x111f   :  { %v13757_v39 = vpop.f32.mrf.mxu0  ;;  %14529 = vmatpush1.bf16.msra.mxu0 %v18387_v31  ;;  %v18452_v31 = vld [vmem:[#allocation19 + $0x184] ss:$8 sps:$4 sm:$0xff]  }
0x1120   :  { %v13758_v44 = vadd.f32 %v13757_v39, %v13717_v19  ;;  %v18390_v39 = vld [vmem:[#allocation19 + $0x120] ss:$8 sps:$4 sm:$0xff]   ;;  %v18408_v19 = vld [vmem:[#allocation19 + $0x1f0] ss:$8 sps:$4 sm:$0xff]  }
0x1121   :  { %v13759_v36 = vpop.f32.mrf.mxu0  ;;  %14570 = vmatpush1.bf16.msra.mxu1 %v18390_v39  ;;  %v18447_v39 = vld [vmem:[#allocation19 + $0x80] ss:$8 sps:$4 sm:$0xff]  }
0x1122   :  { %v13760_v16 = vadd.f32 %v13759_v36, %v13719_v13  ;;  %v18395_v36 = vld [vmem:[#allocation19 + $0x14] ss:$8 sps:$4 sm:$0xff]   ;;  %v18411_v13 = vld [vmem:[#allocation19 + $0xe0] ss:$8 sps:$4 sm:$0xff]  }
0x1123   :  { %v13761_v14 = vpop.f32.mrf.mxu0  ;;  %14530 = vmatprep.subr.bf16.mxu0 %v18395_v36  ;;  %v18450_v36 = vld [vmem:[#allocation19 + $0x180] ss:$8 sps:$4 sm:$0xff]  }
0x1124   :  { %v18398_v14 = vld [vmem:[#allocation19 + $0x114] ss:$8 sps:$4 sm:$0xff]  }
0x1125   :  { %v13762_v52 = vpop.f32.mrf.mxu0  ;;  %14571 = vmatprep.subr.bf16.mxu1 %v18398_v14  ;;  %v18455_v14 = vld [vmem:[#allocation19 + $0x274] ss:$8 sps:$4 sm:$0xff]  }
0x1126   :  { %v18393_v52 = vld [vmem:[#allocation19 + $0x10] ss:$8 sps:$4 sm:$0xff]   ;;  %14572 = vmatpush1.bf16.msra.mxu1 %v18396_v58 }
0x1127   :  { %14531 = vmatpush1.bf16.msra.mxu0 %v18393_v52  ;;  %14573 = vmatprep.subr.bf16.mxu1 %v18404_v48  ;;  %v13811_v48 = vld [vmem:[#allocation16] sm:$0x3f] }
0x1128   :  { %14532 = vmatprep.subr.bf16.mxu0 %v18401_v41 }
0x112a   :  { %14574 = vmatpush1.bf16.msra.mxu1 %v18402_v40  ;;  %v13858_v40 = vrot.slane %v13811_v48, %v19260_v45 }
0x112b   :  { %14533 = vmatpush1.bf16.msra.mxu0 %v18399_v32  ;;  %14575 = vmatprep.subr.bf16.mxu1 %v18410_v17  ;;  %v13812_v32 = vld [vmem:[#allocation17] sm:$0x3f] }
0x112c   :  { %14534 = vmatprep.subr.bf16.mxu0 %v18407_v60  ;;  %v13866_v60 = vrot.slane %v13811_v48, %v19263_v46  ;;  %v13895_v17 = vrot.slane %v13812_v32, %v19260_v45 }
0x112e   :  { %14576 = vmatpush2.bf16.msra.mxu1 %v18408_v19  ;;  %v13862_v19 = vrot.slane %v13811_v48, %v19295_v6 }
0x112f   :  { %14535 = vmatpush2.bf16.msra.mxu0 %v18405_v51  ;;  %14577 = vmatprep.subr.bf16.mxu1 %v18416_v8  ;;  %v13854_v51 = vrot.slane %v13811_v48, %v19291_v3 }
0x1130   :  { %14536 = vmatprep.subr.bf16.mxu0 %v18413_v10  ;;  %v13874_v10 = vrot.slane %v13811_v48, %v19310_v18 }
0x1133   :  { %14537 = vmatpush2.bf16.msra.mxu0 %v18411_v13  ;;  %v13903_v13 = vrot.slane %v13812_v32, %v19263_v46 }
0x1134   :  { %14538 = vmatprep.subr.bf16.mxu0 %v18419_v53 }
0x1137   :  { %14539 = vmatpush2.bf16.msra.mxu0 %v18417_v63 }
0x1138   :  { %14540 = vmatprep.subr.bf16.mxu0 %v18425_v54  ;;  %v18453_v54 = vld [vmem:[#allocation19 + $0x270] ss:$8 sps:$4 sm:$0xff]  }
0x113b   :  { %14541 = vmatpush2.bf16.msra.mxu0 %v18423_v30 }
0x113c   :  { %14542 = vmatprep.subr.bf16.mxu0 %v18431_v2  ;;  %v18458_v2 = vld [vmem:[#allocation19 + $0x264] ss:$8 sps:$4 sm:$0xff]  }
0x113f   :  { %14543 = vmatpush2.bf16.msra.mxu0 %v18429_v4  ;;  %v18456_v4 = vld [vmem:[#allocation19 + $0x260] ss:$8 sps:$4 sm:$0xff]  }
0x1140   :  { %14544 = vmatprep.subr.bf16.mxu0 %v18437_v12  ;;  %v18459_v12 = vld [vmem:[#allocation19 + $0x250] ss:$8 sps:$4 sm:$0xff]  }
0x1143   :  { %14545 = vmatpush2.bf16.msra.mxu0 %v18435_v23  ;;  %v18462_v23 = vld [vmem:[#allocation19 + $0x240] ss:$8 sps:$4 sm:$0xff]  }
0x1144   :  { %14546 = vmatprep.subr.bf16.mxu0 %v18443_v33  ;;  %v18465_v33 = vld [vmem:[#allocation19 + $0x230] ss:$8 sps:$4 sm:$0xff]  }
0x1147   :  { %14547 = vmatpush2.bf16.msra.mxu0 %v18441_v15  ;;  %v18468_v15 = vld [vmem:[#allocation19 + $0x220] ss:$8 sps:$4 sm:$0xff]  }
0x1148   :  { %14548 = vmatprep.subr.bf16.mxu0 %v18449_v57  ;;  %v18471_v57 = vld [vmem:[#allocation19 + $0x210] ss:$8 sps:$4 sm:$0xff]  }
0x114b   :  { %14549 = vmatpush2.bf16.msra.mxu0 %v18447_v39  ;;  %v18474_v39 = vld [vmem:[#allocation19 + $0x200] ss:$8 sps:$4 sm:$0xff]  }
0x114c   :  { %14600 = vmatprep.subr.bf16.mxu0 %v18455_v14  ;;  %v18477_v14 = vld [vmem:[#allocation19 + $0x2f0] ss:$8 sps:$4 sm:$0xff]  }
0x1157   :  { %v13798_v27 = vpop.f32.mrf.mxu1 }
0x1158   :  { %v13799_v21 = vadd.f32 %v13798_v27, %v13758_v44  ;;  %v18414_v44 = vld [vmem:[#allocation19 + $0x1e0] ss:$8 sps:$4 sm:$0xff]  }
0x1159   :  { %v13800_v62 = vpop.f32.mrf.mxu1  ;;  %14578 = vmatpush2.bf16.msra.mxu1 %v18414_v44  ;;  %v13891_v44 = vrot.slane %v13812_v32, %v19291_v3 }
0x115a   :  { %v19970_v5 = vadd.f32 %v13799_v21, %v20223_v59  ;;  %v13801_v25 = vadd.f32 %v13800_v62, %v13760_v16  ;;  %14579 = vmatprep.subr.bf16.mxu1 %v18422_v56 }
0x115b   :  { %v13802_v29 = vpop.f32.mrf.mxu1 }
0x115c   :  { %v19973_v37 = vadd.f32 %v13801_v25, %v20224_v9  ;;  %v13816_v55 = vadd.f32 %v13815_v11, %v19970_v5 }
0x115d   :  { %v13803_v24 = vpop.f32.mrf.mxu1 }
0x115e   :  { %v13817_v47 = vadd.f32 %v13816_v55, %v19973_v37 }
0x1160   :  { %13818 = vadd.xlane.f32.xlu0 %v13817_v47 }
0x11e9   :  { %v13819_v27 = vpop.xlane.xlu0 %13818 }
0x11ea   :  { %v13821_v16 = vmul.f32 0.0013020834, %v13819_v27  ;;  %v13899_v27 = vrot.slane %v13812_v32, %v19295_v6 }
0x11ec   :  { %v19978_v21 = vsub.f32 %v19957_v0, %v13821_v16  ;;  %v19981_v62 = vsub.f32 %v19951_v7, %v13821_v16  ;;  %v19984_v11 = vsub.f32 %v19960_v20, %v13821_v16  ;;  %v19987_v59 = vsub.f32 %v19966_v28, %v13821_v16 }
0x11ed   :  { %v19994_v9 = vsub.f32 %v19970_v5, %v13821_v16  ;;  %v19999_v55 = vsub.f32 %v19973_v37, %v13821_v16  ;;  %v18420_v37 = vld [vmem:[#allocation19 + $0x1d0] ss:$8 sps:$4 sm:$0xff]   ;;  %v13870_v16 = vrot.slane %v13811_v48, %v19337_v61 }
0x11ee   :  { %v13828_v25 = vmul.f32 %v19978_v21, %v19978_v21  ;;  %v13829_v29 = vmul.f32 %v19981_v62, %v19981_v62  ;;  %v13830_v0 = vmul.f32 %v19984_v11, %v19984_v11  ;;  %v13831_v20 = vmul.f32 %v19987_v59, %v19987_v59  ;;  %14580 = vmatpush2.bf16.msra.mxu1 %v18420_v37  ;;  %v18483_v48 = vld [vmem:[#allocation19 + $0x2d0] ss:$8 sps:$4 sm:$0xff]  }
0x11ef   :  { %v13832_v24 = vmul.f32 %v19994_v9, %v19994_v9  ;;  %v13833_v50 = vmul.f32 %v19999_v55, %v19999_v55  ;;  %14581 = vmatprep.subr.bf16.mxu1 %v18428_v22 }
0x11f0   :  { %v13834_v7 = vadd.f32 %v13829_v29, %v13828_v25 }
0x11f2   :  { %v13835_v28 = vadd.f32 %v13834_v7, %v13830_v0  ;;  %14582 = vmatpush2.bf16.msra.mxu1 %v18426_v34 }
0x11f3   :  { %14583 = vmatprep.subr.bf16.mxu1 %v18434_v38 }
0x11f4   :  { %v13836_v47 = vadd.f32 %v13835_v28, %v13831_v20  ;;  %v13911_v28 = vrot.slane %v13812_v32, %v19310_v18 }
0x11f6   :  { %v13837_v5 = vadd.f32 %v13836_v47, %v13832_v24  ;;  %14584 = vmatpush2.bf16.msra.mxu1 %v18432_v1  ;;  %v13907_v47 = vrot.slane %v13812_v32, %v19337_v61  ;;  %v18461_v1 = vld [vmem:[#allocation19 + $0x254] ss:$8 sps:$4 sm:$0xff]   ;;  %v18488_v32 = vld [vmem:[#allocation19 + $0x2c4] ss:$8 sps:$4 sm:$0xff]  }
0x11f7   :  { %14585 = vmatprep.subr.bf16.mxu1 %v18440_v35  ;;  %v18464_v35 = vld [vmem:[#allocation19 + $0x244] ss:$8 sps:$4 sm:$0xff]  }
0x11f8   :  { %v13838_v26 = vadd.f32 %v13837_v5, %v13833_v50 }
0x11fa   :  { %13839 = vadd.xlane.f32.xlu1 %v13838_v26  ;;  %14586 = vmatpush2.bf16.msra.mxu1 %v18438_v49  ;;  %v18467_v49 = vld [vmem:[#allocation19 + $0x234] ss:$8 sps:$4 sm:$0xff]  }
0x11fb   :  { %14587 = vmatprep.subr.bf16.mxu1 %v18446_v43  ;;  %v18470_v43 = vld [vmem:[#allocation19 + $0x224] ss:$8 sps:$4 sm:$0xff]  }
0x11fe   :  { %14588 = vmatpush2.bf16.msra.mxu1 %v18444_v42  ;;  %v18473_v42 = vld [vmem:[#allocation19 + $0x214] ss:$8 sps:$4 sm:$0xff]  }
0x11ff   :  { %14589 = vmatprep.subr.bf16.mxu1 %v18452_v31  ;;  %v18476_v31 = vld [vmem:[#allocation19 + $0x204] ss:$8 sps:$4 sm:$0xff]  }
0x1202   :  { %14590 = vmatpush2.bf16.msra.mxu1 %v18450_v36  ;;  %v18479_v36 = vld [vmem:[#allocation19 + $0x2f4] ss:$8 sps:$4 sm:$0xff]  }
0x1283   :  { %v13840_v52 = vpop.xlane.xlu1 %13839 }
0x1284   :  { %v13841_v58 = vmul.f32 0.0013020834, %v13840_v52  ;;  %v18482_v52 = vld [vmem:[#allocation19 + $0x2e4] ss:$8 sps:$4 sm:$0xff]  }
0x1286   :  { %v13842_v41 = vadd.f32 1e-05, %v13841_v58  ;;  %v18480_v58 = vld [vmem:[#allocation19 + $0x2e0] ss:$8 sps:$4 sm:$0xff]  }
0x1288   :  { %18681 = vrsqrt.f32 %v13842_v41  ;;  %v18485_v41 = vld [vmem:[#allocation19 + $0x2d4] ss:$8 sps:$4 sm:$0xff]  }
0x1295   :  { %v18682_v8 = vpop.eup %18681 }
0x1296   :  { %v13845_v25 = vmul.f32 %v18682_v8, %v19981_v62  ;;  %v13847_v29 = vmul.f32 %v18682_v8, %v19987_v59  ;;  %v13844_v0 = vmul.f32 %v18682_v8, %v19978_v21  ;;  %v13846_v7 = vmul.f32 %v18682_v8, %v19984_v11 }
0x1297   :  { %v13849_v20 = vmul.f32 %v18682_v8, %v19999_v55  ;;  %v13848_v24 = vmul.f32 %v18682_v8, %v19994_v9  ;;  %v18495_v8 = vld [vmem:[#allocation19 + $0x290] ss:$8 sps:$4 sm:$0xff]  }
0x1298   :  { %v13882_v50 = vmul.f32 %v13858_v40, %v13845_v25  ;;  %v13884_v5 = vmul.f32 %v13866_v60, %v13847_v29  ;;  %v13881_v26 = vmul.f32 %v13854_v51, %v13844_v0  ;;  %v13883_v53 = vmul.f32 %v13862_v19, %v13846_v7  ;;  %v18486_v40 = vld [vmem:[#allocation19 + $0x2c0] ss:$8 sps:$4 sm:$0xff]   ;;  %v18491_v60 = vld [vmem:[#allocation19 + $0x2b4] ss:$8 sps:$4 sm:$0xff]   ;;  %v18494_v51 = vld [vmem:[#allocation19 + $0x2a4] ss:$8 sps:$4 sm:$0xff]  }
0x1299   :  { %v13886_v63 = vmul.f32 %v13874_v10, %v13849_v20  ;;  %v13885_v62 = vmul.f32 %v13870_v16, %v13848_v24  ;;  %v18492_v19 = vld [vmem:[#allocation19 + $0x2a0] ss:$8 sps:$4 sm:$0xff]   ;;  %v18497_v10 = vld [vmem:[#allocation19 + $0x294] ss:$8 sps:$4 sm:$0xff]  }
0x129a   :  { %v20025_v56 = vadd.f32 %v13895_v17, %v13882_v50  ;;  %v20027_v59 = vadd.f32 %v13903_v13, %v13884_v5  ;;  %v20029_v21 = vadd.f32 %v13891_v44, %v13881_v26  ;;  %v20031_v11 = vadd.f32 %v13899_v27, %v13883_v53  ;;  %v18489_v17 = vld [vmem:[#allocation19 + $0x2b0] ss:$8 sps:$4 sm:$0xff]   ;;  %v18500_v13 = vld [vmem:[#allocation19 + $0x284] ss:$8 sps:$4 sm:$0xff]   ;;  %v18498_v44 = vld [vmem:[#allocation19 + $0x280] ss:$8 sps:$4 sm:$0xff]  }
0x129b   :  { %v20033_v55 = vadd.f32 %v13911_v28, %v13886_v63  ;;  %v20035_v37 = vadd.f32 %v13907_v47, %v13885_v62  ;;  %v18501_v16 = vld [vmem:[#allocation22 + $0x150] ss:$24 sps:$4 sm:$0xff]   ;;  %v18503_v25 = vld [vmem:[#allocation22 + $0x154] ss:$24 sps:$4 sm:$0xff]   ;;  %v18509_v7 = vld [vmem:[#allocation22 + $0x124] ss:$24 sps:$4 sm:$0xff]  }
0x129c   :  { %v13925_v9 = vpack.c.bf16 %v20025_v56, %v20025_v56  ;;  %v13927_v30 = vpack.c.bf16 %v20027_v59, %v20027_v59  ;;  %v13924_v34 = vpack.c.bf16 %v20029_v21, %v20029_v21  ;;  %v13926_v22 = vpack.c.bf16 %v20031_v11, %v20031_v11  ;;  %v18504_v29 = vld [vmem:[#allocation22 + $0x158] ss:$24 sps:$4 sm:$0xff]   ;;  %v18506_v0 = vld [vmem:[#allocation22 + $0x15c] ss:$24 sps:$4 sm:$0xff]   ;;  %15253 = vmatprep.subr.bf16.mxu1 %v18503_v25  ;;  %v18512_v20 = vld [vmem:[#allocation22 + $0x12c] ss:$24 sps:$4 sm:$0xff]  }
0x129d   :  { %v13929_v38 = vpack.c.bf16 %v20033_v55, %v20033_v55  ;;  %v13928_v27 = vpack.c.bf16 %v20035_v37, %v20035_v37  ;;  %v18507_v28 = vld [vmem:[#allocation22 + $0x120] ss:$24 sps:$4 sm:$0xff]   ;;  %v18515_v47 = vld [vmem:[#allocation22 + $0xf4] ss:$24 sps:$4 sm:$0xff]   ;;  %v18513_v5 = vld [vmem:[#allocation22 + $0xf0] ss:$24 sps:$4 sm:$0xff]  }
0x129e   :  { %14550 = vmatprep.mubr.bf16.mxu0 %v13925_v9  ;;  %14591 = vmatprep.mubr.bf16.mxu1 %v13927_v30  ;;  %v18510_v24 = vld [vmem:[#allocation22 + $0x128] ss:$24 sps:$4 sm:$0xff]   ;;  %v18518_v50 = vld [vmem:[#allocation22 + $0xfc] ss:$24 sps:$4 sm:$0xff]   ;;  %v18516_v26 = vld [vmem:[#allocation22 + $0xf8] ss:$24 sps:$4 sm:$0xff]  }
0x129f   :  { %14551 = vmatmul.mubr.bf16.vlgmr.msra.gmra.mxu0 %v13924_v34  ;;  %14592 = vmatmul.mubr.bf16.vlgmr.msra.gmra.mxu1 %v13926_v22  ;;  %v18521_v53 = vld [vmem:[#allocation22 + $0xc4] ss:$24 sps:$4 sm:$0xff]   ;;  %v18519_v62 = vld [vmem:[#allocation22 + $0xc0] ss:$24 sps:$4 sm:$0xff]   ;;  %v18527_v30 = vld [vmem:[#allocation22 + $0x94] ss:$24 sps:$4 sm:$0xff]  }
0x12a0   :  { %14601 = vmatpush1.bf16.msra.mxu0 %v18453_v54  ;;  %14632 = vmatprep.mubr.bf16.mxu0 %v13929_v38  ;;  %v18524_v63 = vld [vmem:[#allocation22 + $0xcc] ss:$24 sps:$4 sm:$0xff]   ;;  %v18522_v9 = vld [vmem:[#allocation22 + $0xc8] ss:$24 sps:$4 sm:$0xff]   ;;  %v18530_v54 = vld [vmem:[#allocation22 + $0x9c] ss:$24 sps:$4 sm:$0xff]  }
0x12a1   :  { %14602 = vmatprep.subr.bf16.mxu0 %v18458_v2  ;;  %15254 = vmatpush1.bf16.msra.mxu1 %v18501_v16  ;;  %v18525_v34 = vld [vmem:[#allocation22 + $0x90] ss:$24 sps:$4 sm:$0xff]   ;;  %v18533_v2 = vld [vmem:[#allocation22 + $0x64] ss:$24 sps:$4 sm:$0xff]  }
0x12a2   :  { %15255 = vmatprep.subr.bf16.mxu1 %v18509_v7  ;;  %v18528_v22 = vld [vmem:[#allocation22 + $0x98] ss:$24 sps:$4 sm:$0xff]   ;;  %v18536_v38 = vld [vmem:[#allocation22 + $0x6c] ss:$24 sps:$4 sm:$0xff]  }
0x12a3   :  { %v18581_v16 = vld [vmem:[#allocation22 + $0x1e4] ss:$24 sps:$4 sm:$0xff]   ;;  %v18587_v7 = vld [vmem:[#allocation22 + $0x1b4] ss:$24 sps:$4 sm:$0xff]  }
0x12a4   :  { %14603 = vmatpush1.bf16.msra.mxu0 %v18456_v4  ;;  %v18531_v4 = vld [vmem:[#allocation22 + $0x60] ss:$24 sps:$4 sm:$0xff]   ;;  %v18584_v25 = vld [vmem:[#allocation22 + $0x1ec] ss:$24 sps:$4 sm:$0xff]  }
0x12a5   :  { %14604 = vmatprep.subr.bf16.mxu0 %v18461_v1  ;;  %15256 = vmatpush1.bf16.msra.mxu1 %v18507_v28  ;;  %v18534_v1 = vld [vmem:[#allocation22 + $0x68] ss:$24 sps:$4 sm:$0xff]   ;;  %v18590_v28 = vld [vmem:[#allocation22 + $0x1bc] ss:$24 sps:$4 sm:$0xff]  }
0x12a6   :  { %15257 = vmatprep.subr.bf16.mxu1 %v18515_v47  ;;  %v18593_v47 = vld [vmem:[#allocation22 + $0x184] ss:$24 sps:$4 sm:$0xff]  }
0x12a8   :  { %14605 = vmatpush1.bf16.msra.mxu0 %v18459_v12  ;;  %v18539_v12 = vld [vmem:[#allocation22 + $0x34] ss:$24 sps:$4 sm:$0xff]  }
0x12a9   :  { %14606 = vmatprep.subr.bf16.mxu0 %v18464_v35  ;;  %15258 = vmatpush1.bf16.msra.mxu1 %v18513_v5  ;;  %v18542_v35 = vld [vmem:[#allocation22 + $0x3c] ss:$24 sps:$4 sm:$0xff]   ;;  %v18596_v5 = vld [vmem:[#allocation22 + $0x18c] ss:$24 sps:$4 sm:$0xff]  }
0x12aa   :  { %15259 = vmatprep.subr.bf16.mxu1 %v18521_v53  ;;  %v18599_v53 = vld [vmem:[#allocation22 + $0x164] ss:$24 sps:$4 sm:$0xff]  }
0x12ac   :  { %14607 = vmatpush1.bf16.msra.mxu0 %v18462_v23  ;;  %v18537_v23 = vld [vmem:[#allocation22 + $0x30] ss:$24 sps:$4 sm:$0xff]  }
0x12ad   :  { %14608 = vmatprep.subr.bf16.mxu0 %v18467_v49  ;;  %15260 = vmatpush1.bf16.msra.mxu1 %v18519_v62  ;;  %v18540_v49 = vld [vmem:[#allocation22 + $0x38] ss:$24 sps:$4 sm:$0xff]  }
0x12ae   :  { %15261 = vmatprep.subr.bf16.mxu1 %v18527_v30 }
0x12b0   :  { %14609 = vmatpush1.bf16.msra.mxu0 %v18465_v33  ;;  %v18545_v33 = vld [vmem:[#allocation22 + $0x4] ss:$24 sps:$4 sm:$0xff]  }
0x12b1   :  { %14610 = vmatprep.subr.bf16.mxu0 %v18470_v43  ;;  %15262 = vmatpush1.bf16.msra.mxu1 %v18525_v34  ;;  %v18548_v43 = vld [vmem:[#allocation22 + $0xc] ss:$24 sps:$4 sm:$0xff]  }
0x12b2   :  { %15263 = vmatprep.subr.bf16.mxu1 %v18533_v2 }
0x12b4   :  { %14611 = vmatpush1.bf16.msra.mxu0 %v18468_v15  ;;  %v18543_v15 = vld [vmem:[#allocation22] ss:$24 sps:$4 sm:$0xff]  }
0x12b5   :  { %14612 = vmatprep.subr.bf16.mxu0 %v18473_v42  ;;  %15264 = vmatpush1.bf16.msra.mxu1 %v18531_v4  ;;  %v18546_v42 = vld [vmem:[#allocation22 + $0x8] ss:$24 sps:$4 sm:$0xff]  }
0x12b6   :  { %15265 = vmatprep.subr.bf16.mxu1 %v18539_v12 }
0x12b8   :  { %14613 = vmatpush1.bf16.msra.mxu0 %v18471_v57  ;;  %v18551_v57 = vld [vmem:[#allocation22 + $0x2d4] ss:$24 sps:$4 sm:$0xff]  }
0x12b9   :  { %14614 = vmatprep.subr.bf16.mxu0 %v18476_v31  ;;  %15266 = vmatpush1.bf16.msra.mxu1 %v18537_v23  ;;  %v18554_v31 = vld [vmem:[#allocation22 + $0x2dc] ss:$24 sps:$4 sm:$0xff]  }
0x12ba   :  { %15267 = vmatprep.subr.bf16.mxu1 %v18545_v33 }
0x12bc   :  { %14615 = vmatpush1.bf16.msra.mxu0 %v18474_v39  ;;  %v18549_v39 = vld [vmem:[#allocation22 + $0x2d0] ss:$24 sps:$4 sm:$0xff]  }
0x12bd   :  { %14616 = vmatprep.subr.bf16.mxu0 %v18479_v36  ;;  %15268 = vmatpush1.bf16.msra.mxu1 %v18543_v15  ;;  %v18552_v36 = vld [vmem:[#allocation22 + $0x2d8] ss:$24 sps:$4 sm:$0xff]  }
0x12be   :  { %15269 = vmatprep.subr.bf16.mxu1 %v18551_v57 }
0x12c0   :  { %14617 = vmatpush2.bf16.msra.mxu0 %v18477_v14  ;;  %v18557_v14 = vld [vmem:[#allocation22 + $0x2a4] ss:$24 sps:$4 sm:$0xff]  }
0x12c1   :  { %14618 = vmatprep.subr.bf16.mxu0 %v18482_v52  ;;  %v18560_v52 = vld [vmem:[#allocation22 + $0x2ac] ss:$24 sps:$4 sm:$0xff]   ;;  %15270 = vmatpush2.bf16.msra.mxu1 %v18549_v39 }
0x12c2   :  { %15271 = vmatprep.subr.bf16.mxu1 %v18557_v14 }
0x12c4   :  { %14619 = vmatpush2.bf16.msra.mxu0 %v18480_v58  ;;  %v18555_v58 = vld [vmem:[#allocation22 + $0x2a0] ss:$24 sps:$4 sm:$0xff]  }
0x12c5   :  { %14620 = vmatprep.subr.bf16.mxu0 %v18485_v41  ;;  %v18558_v41 = vld [vmem:[#allocation22 + $0x2a8] ss:$24 sps:$4 sm:$0xff]   ;;  %15272 = vmatpush2.bf16.msra.mxu1 %v18555_v58 }
0x12c8   :  { %14621 = vmatpush2.bf16.msra.mxu0 %v18483_v48  ;;  %v18563_v48 = vld [vmem:[#allocation22 + $0x274] ss:$24 sps:$4 sm:$0xff]  }
0x12c9   :  { %14622 = vmatprep.subr.bf16.mxu0 %v18488_v32  ;;  %v18566_v32 = vld [vmem:[#allocation22 + $0x27c] ss:$24 sps:$4 sm:$0xff]   ;;  %15273 = vmatprep.subr.bf16.mxu1 %v18563_v48  ;;  %v18600_v48 = vld [vmem:[#allocation22 + $0x130] ss:$24 sps:$4 sm:$0xff]  }
0x12cc   :  { %14623 = vmatpush2.bf16.msra.mxu0 %v18486_v40  ;;  %v18561_v40 = vld [vmem:[#allocation22 + $0x270] ss:$24 sps:$4 sm:$0xff]  }
0x12cd   :  { %14624 = vmatprep.subr.bf16.mxu0 %v18491_v60  ;;  %v18564_v60 = vld [vmem:[#allocation22 + $0x278] ss:$24 sps:$4 sm:$0xff]   ;;  %15274 = vmatpush2.bf16.msra.mxu1 %v18561_v40 }
0x12ce   :  { %v18603_v40 = vld [vmem:[#allocation22 + $0x100] ss:$24 sps:$4 sm:$0xff]  }
0x12d0   :  { %14625 = vmatpush2.bf16.msra.mxu0 %v18489_v17  ;;  %v18569_v17 = vld [vmem:[#allocation22 + $0x244] ss:$24 sps:$4 sm:$0xff]  }
0x12d1   :  { %14626 = vmatprep.subr.bf16.mxu0 %v18494_v51  ;;  %v18572_v51 = vld [vmem:[#allocation22 + $0x24c] ss:$24 sps:$4 sm:$0xff]   ;;  %15275 = vmatprep.subr.bf16.mxu1 %v18569_v17  ;;  %v18606_v17 = vld [vmem:[#allocation22 + $0xd0] ss:$24 sps:$4 sm:$0xff]  }
0x12d4   :  { %14627 = vmatpush2.bf16.msra.mxu0 %v18492_v19  ;;  %v18567_v19 = vld [vmem:[#allocation22 + $0x240] ss:$24 sps:$4 sm:$0xff]  }
0x12d5   :  { %14628 = vmatprep.subr.bf16.mxu0 %v18497_v10  ;;  %v18570_v10 = vld [vmem:[#allocation22 + $0x248] ss:$24 sps:$4 sm:$0xff]   ;;  %15276 = vmatpush2.bf16.msra.mxu1 %v18567_v19 }
0x12d6   :  { %v18609_v19 = vld [vmem:[#allocation22 + $0xa0] ss:$24 sps:$4 sm:$0xff]  }
0x12d8   :  { %14629 = vmatpush2.bf16.msra.mxu0 %v18495_v8  ;;  %v18575_v8 = vld [vmem:[#allocation22 + $0x214] ss:$24 sps:$4 sm:$0xff]  }
0x12d9   :  { %14630 = vmatprep.subr.bf16.mxu0 %v18500_v13  ;;  %v18578_v13 = vld [vmem:[#allocation22 + $0x21c] ss:$24 sps:$4 sm:$0xff]   ;;  %15277 = vmatprep.subr.bf16.mxu1 %v18575_v8  ;;  %v18612_v8 = vld [vmem:[#allocation22 + $0x70] ss:$24 sps:$4 sm:$0xff]  }
0x12dc   :  { %14631 = vmatpush2.bf16.msra.mxu0 %v18498_v44  ;;  %v18573_v44 = vld [vmem:[#allocation22 + $0x210] ss:$24 sps:$4 sm:$0xff]  }
0x12dd   :  { %15294 = vmatprep.subr.bf16.mxu0 %v18506_v0  ;;  %15278 = vmatpush2.bf16.msra.mxu1 %v18573_v44  ;;  %v18582_v0 = vld [vmem:[#allocation22 + $0x1e8] ss:$24 sps:$4 sm:$0xff]  }
0x12de   :  { %15279 = vmatprep.subr.bf16.mxu1 %v18581_v16  ;;  %v18615_v44 = vld [vmem:[#allocation22 + $0x40] ss:$24 sps:$4 sm:$0xff]   ;;  %v18618_v16 = vld [vmem:[#allocation22 + $0x10] ss:$24 sps:$4 sm:$0xff]  }
0x12df   :  { %14633 = vmatmul.mubr.bf16.vlgmr.msra.gmra.mxu0 %v13928_v27  ;;  %v18576_v27 = vld [vmem:[#allocation22 + $0x218] ss:$24 sps:$4 sm:$0xff]  }
0x12e0   :  { %15295 = vmatpush1.bf16.msra.mxu0 %v18504_v29  ;;  %v18579_v29 = vld [vmem:[#allocation22 + $0x1e0] ss:$24 sps:$4 sm:$0xff]  }
0x12e1   :  { %15296 = vmatprep.subr.bf16.mxu0 %v18512_v20  ;;  %15280 = vmatpush2.bf16.msra.mxu1 %v18579_v29  ;;  %v18585_v20 = vld [vmem:[#allocation22 + $0x1b0] ss:$24 sps:$4 sm:$0xff]   ;;  %v18621_v29 = vld [vmem:[#allocation22 + $0x2e0] ss:$24 sps:$4 sm:$0xff]  }
0x12e2   :  { %15281 = vmatprep.subr.bf16.mxu1 %v18587_v7  ;;  %v18624_v7 = vld [vmem:[#allocation22 + $0x2b0] ss:$24 sps:$4 sm:$0xff]  }
0x12e4   :  { %15297 = vmatpush1.bf16.msra.mxu0 %v18510_v24  ;;  %v18588_v24 = vld [vmem:[#allocation22 + $0x1b8] ss:$24 sps:$4 sm:$0xff]  }
0x12e5   :  { %15298 = vmatprep.subr.bf16.mxu0 %v18518_v50  ;;  %15282 = vmatpush2.bf16.msra.mxu1 %v18585_v20  ;;  %v18591_v50 = vld [vmem:[#allocation22 + $0x180] ss:$24 sps:$4 sm:$0xff]   ;;  %v18629_v20 = vld [vmem:[#allocation22 + $0x284] ss:$24 sps:$4 sm:$0xff]  }
0x12e6   :  { %15283 = vmatprep.subr.bf16.mxu1 %v18593_v47  ;;  %v18630_v47 = vld [vmem:[#allocation22 + $0x250] ss:$24 sps:$4 sm:$0xff]  }
0x12e8   :  { %15299 = vmatpush1.bf16.msra.mxu0 %v18516_v26  ;;  %v18594_v26 = vld [vmem:[#allocation22 + $0x188] ss:$24 sps:$4 sm:$0xff]  }
0x12e9   :  { %15300 = vmatprep.subr.bf16.mxu0 %v18524_v63  ;;  %15284 = vmatpush2.bf16.msra.mxu1 %v18591_v50  ;;  %v18635_v50 = vld [vmem:[#allocation22 + $0x224] ss:$24 sps:$4 sm:$0xff]  }
0x12ea   :  { %15335 = vmatprep.subr.bf16.mxu1 %v18599_v53  ;;  %v18636_v53 = vld [vmem:[#allocation22 + $0x1f0] ss:$24 sps:$4 sm:$0xff]  }
0x12ec   :  { %15301 = vmatpush1.bf16.msra.mxu0 %v18522_v9 }
0x12ed   :  { %15302 = vmatprep.subr.bf16.mxu0 %v18530_v54 }
0x12f0   :  { %15303 = vmatpush1.bf16.msra.mxu0 %v18528_v22 }
0x12f1   :  { %15304 = vmatprep.subr.bf16.mxu0 %v18536_v38  ;;  %v14026_v38 = vld [vmem:[#allocation20] sm:$0x3] }
0x12f2   :  { %v14031_v4 = vrot.slane %v14026_v38, %v19291_v3 }
0x12f4   :  { %15305 = vmatpush1.bf16.msra.mxu0 %v18534_v1  ;;  %v14035_v1 = vrot.slane %v14026_v38, %v19260_v45 }
0x12f5   :  { %15306 = vmatprep.subr.bf16.mxu0 %v18542_v35 }
0x12f8   :  { %15307 = vmatpush1.bf16.msra.mxu0 %v18540_v49 }
0x12f9   :  { %15308 = vmatprep.subr.bf16.mxu0 %v18548_v43 }
0x12fc   :  { %15309 = vmatpush1.bf16.msra.mxu0 %v18546_v42 }
0x12fd   :  { %15310 = vmatprep.subr.bf16.mxu0 %v18554_v31 }
0x1300   :  { %15311 = vmatpush2.bf16.msra.mxu0 %v18552_v36 }
0x1301   :  { %15312 = vmatprep.subr.bf16.mxu0 %v18560_v52  ;;  %v18597_v52 = vld [vmem:[#allocation22 + $0x160] ss:$24 sps:$4 sm:$0xff]  }
0x1304   :  { %15313 = vmatpush2.bf16.msra.mxu0 %v18558_v41  ;;  %v18602_v41 = vld [vmem:[#allocation22 + $0x134] ss:$24 sps:$4 sm:$0xff]  }
0x1305   :  { %15314 = vmatprep.subr.bf16.mxu0 %v18566_v32  ;;  %v18605_v32 = vld [vmem:[#allocation22 + $0x104] ss:$24 sps:$4 sm:$0xff]  }
0x1308   :  { %15315 = vmatpush2.bf16.msra.mxu0 %v18564_v60  ;;  %v18608_v60 = vld [vmem:[#allocation22 + $0xd4] ss:$24 sps:$4 sm:$0xff]  }
0x1309   :  { %15316 = vmatprep.subr.bf16.mxu0 %v18572_v51  ;;  %v18611_v51 = vld [vmem:[#allocation22 + $0xa4] ss:$24 sps:$4 sm:$0xff]  }
0x130c   :  { %15317 = vmatpush2.bf16.msra.mxu0 %v18570_v10  ;;  %v18614_v10 = vld [vmem:[#allocation22 + $0x74] ss:$24 sps:$4 sm:$0xff]  }
0x130d   :  { %15318 = vmatprep.subr.bf16.mxu0 %v18578_v13  ;;  %v18617_v13 = vld [vmem:[#allocation22 + $0x44] ss:$24 sps:$4 sm:$0xff]  }
0x1310   :  { %15319 = vmatpush2.bf16.msra.mxu0 %v18576_v27  ;;  %v18620_v27 = vld [vmem:[#allocation22 + $0x14] ss:$24 sps:$4 sm:$0xff]  }
0x1311   :  { %15320 = vmatprep.subr.bf16.mxu0 %v18584_v25  ;;  %v18623_v25 = vld [vmem:[#allocation22 + $0x2e4] ss:$24 sps:$4 sm:$0xff]  }
0x1314   :  { %15321 = vmatpush2.bf16.msra.mxu0 %v18582_v0  ;;  %v18626_v0 = vld [vmem:[#allocation22 + $0x2b4] ss:$24 sps:$4 sm:$0xff]  }
0x1315   :  { %15322 = vmatprep.subr.bf16.mxu0 %v18590_v28  ;;  %v18627_v28 = vld [vmem:[#allocation22 + $0x280] ss:$24 sps:$4 sm:$0xff]  }
0x1318   :  { %15323 = vmatpush2.bf16.msra.mxu0 %v18588_v24  ;;  %v18632_v24 = vld [vmem:[#allocation22 + $0x254] ss:$24 sps:$4 sm:$0xff]  }
0x1319   :  { %15324 = vmatprep.subr.bf16.mxu0 %v18596_v5  ;;  %v18633_v5 = vld [vmem:[#allocation22 + $0x220] ss:$24 sps:$4 sm:$0xff]  }
0x131c   :  { %15325 = vmatpush2.bf16.msra.mxu0 %v18594_v26  ;;  %v18638_v26 = vld [vmem:[#allocation22 + $0x1f4] ss:$24 sps:$4 sm:$0xff]  }
0x135f   :  { %v14552_v63 = vpop.f32.mrf.mxu0  ;;  %v14593_v62 = vpop.f32.mrf.mxu1 }
0x1360   :  { %v14553_v12 = vadd.f32 %v14552_v63, %v14031_v4  ;;  %v18641_v63 = vld [vmem:[#allocation22 + $0x1c4] ss:$24 sps:$4 sm:$0xff]  }
0x1361   :  { %v14554_v9 = vpop.f32.mrf.mxu0  ;;  %v14595_v30 = vpop.f32.mrf.mxu1 }
0x1362   :  { %v14555_v35 = vadd.f32 %v14554_v9, %v14035_v1  ;;  %v14594_v23 = vadd.f32 %v14593_v62, %v14553_v12  ;;  %v18639_v62 = vld [vmem:[#allocation22 + $0x1c0] ss:$24 sps:$4 sm:$0xff]   ;;  %v18644_v9 = vld [vmem:[#allocation22 + $0x194] ss:$24 sps:$4 sm:$0xff]  }
0x1363   :  { %v14556_v54 = vpop.f32.mrf.mxu0  ;;  %v14597_v34 = vpop.f32.mrf.mxu1 }
0x1364   :  { %v14596_v33 = vadd.f32 %v14595_v30, %v14555_v35  ;;  %v18642_v30 = vld [vmem:[#allocation22 + $0x190] ss:$24 sps:$4 sm:$0xff]   ;;  %v14741_v35 = vld [vmem:[#allocation23] sm:$0x3f] }
0x1365   :  { %v14557_v22 = vpop.f32.mrf.mxu0  ;;  %v14598_v2 = vpop.f32.mrf.mxu1 }
0x139f   :  { %v14634_v49 = vpop.f32.mrf.mxu0 }
0x13a0   :  { %v14635_v43 = vadd.f32 %v14634_v49, %v14594_v23  ;;  %v14750_v23 = vrot.slane %v14741_v35, %v19260_v45  ;;  %v14746_v49 = vrot.slane %v14741_v35, %v19291_v3 }
0x13a1   :  { %v14636_v15 = vpop.f32.mrf.mxu0 }
0x13a2   :  { %v14637_v42 = vadd.f32 %v14636_v15, %v14596_v33  ;;  %v14641_v57 = vmax.f32 %v14635_v43, 0.0  ;;  %v14754_v15 = vrot.slane %v14741_v35, %v19295_v6 }
0x13a3   :  { %v14638_v31 = vpop.f32.mrf.mxu0 }
0x13a4   :  { %v14642_v39 = vmax.f32 %v14637_v42, 0.0  ;;  %v20051_v58 = vpack.c.bf16 %v14641_v57, %v14641_v57 }
0x13a5   :  { %v14639_v36 = vpop.f32.mrf.mxu0 }
0x13a6   :  { %v14644_v14 = vpack.c.bf16 %v14642_v39, %v14642_v39  ;;  %v14758_v39 = vrot.slane %v14741_v35, %v19263_v46 }
0x13a8   :  { %15285 = vmatprep.mubr.bf16.mxu1 %v14644_v14  ;;  %15326 = vmatprep.mubr.bf16.mxu0 %v14644_v14 }
0x13a9   :  { %15286 = vmatmul.mubr.bf16.vlgmr.msra.gmra.mxu1 %v20051_v58  ;;  %15327 = vmatmul.mubr.bf16.vlgmr.msra.gmra.mxu0 %v20051_v58 }
0x13aa   :  { %15336 = vmatpush1.bf16.msra.mxu1 %v18597_v52  ;;  %15367 = vmatprep.mubr.bf16.mxu1 %v14644_v14 }
0x13ab   :  { %15337 = vmatprep.subr.bf16.mxu1 %v18602_v41 }
0x13ae   :  { %15338 = vmatpush1.bf16.msra.mxu1 %v18600_v48  ;;  %v14766_v48 = vrot.slane %v14741_v35, %v19310_v18 }
0x13af   :  { %15339 = vmatprep.subr.bf16.mxu1 %v18605_v32 }
0x13b2   :  { %15340 = vmatpush1.bf16.msra.mxu1 %v18603_v40 }
0x13b3   :  { %15341 = vmatprep.subr.bf16.mxu1 %v18608_v60 }
0x13b6   :  { %15342 = vmatpush1.bf16.msra.mxu1 %v18606_v17 }
0x13b7   :  { %15343 = vmatprep.subr.bf16.mxu1 %v18611_v51 }
0x13ba   :  { %15344 = vmatpush1.bf16.msra.mxu1 %v18609_v19 }
0x13bb   :  { %15345 = vmatprep.subr.bf16.mxu1 %v18614_v10 }
0x13be   :  { %15346 = vmatpush1.bf16.msra.mxu1 %v18612_v8 }
0x13bf   :  { %15347 = vmatprep.subr.bf16.mxu1 %v18617_v13 }
0x13c2   :  { %15348 = vmatpush1.bf16.msra.mxu1 %v18615_v44 }
0x13c3   :  { %15349 = vmatprep.subr.bf16.mxu1 %v18620_v27 }
0x13c6   :  { %15350 = vmatpush1.bf16.msra.mxu1 %v18618_v16 }
0x13c7   :  { %15351 = vmatprep.subr.bf16.mxu1 %v18623_v25 }
0x13ca   :  { %15352 = vmatpush2.bf16.msra.mxu1 %v18621_v29 }
0x13cb   :  { %15353 = vmatprep.subr.bf16.mxu1 %v18626_v0 }
0x13ce   :  { %15354 = vmatpush2.bf16.msra.mxu1 %v18624_v7 }
0x13cf   :  { %15355 = vmatprep.subr.bf16.mxu1 %v18629_v20 }
0x13d2   :  { %15356 = vmatpush2.bf16.msra.mxu1 %v18627_v28 }
0x13d3   :  { %15357 = vmatprep.subr.bf16.mxu1 %v18632_v24 }
0x13d6   :  { %15358 = vmatpush2.bf16.msra.mxu1 %v18630_v47 }
0x13d7   :  { %15359 = vmatprep.subr.bf16.mxu1 %v18635_v50 }
0x13da   :  { %15360 = vmatpush2.bf16.msra.mxu1 %v18633_v5 }
0x13db   :  { %15361 = vmatprep.subr.bf16.mxu1 %v18638_v26 }
0x13de   :  { %15362 = vmatpush2.bf16.msra.mxu1 %v18636_v53 }
0x13df   :  { %15363 = vmatprep.subr.bf16.mxu1 %v18641_v63 }
0x13e2   :  { %15364 = vmatpush2.bf16.msra.mxu1 %v18639_v62  ;;  %v20071_v62 = vld [vmem:[%s20225_s30] sm:$0xff] }
0x13e3   :  { %15365 = vmatprep.subr.bf16.mxu1 %v18644_v9  ;;  %v20076_v9 = vld [vmem:[%s20225_s30 + $0x8] sm:$0xff] }
0x13e6   :  { %15366 = vmatpush2.bf16.msra.mxu1 %v18642_v30  ;;  %v20081_v30 = vld [vmem:[%s20225_s30 + $0x10] sm:$0xff] }
0x13e9   :  { %15368 = vmatmul.mubr.bf16.vlgmr.msra.gmra.mxu1 %v20051_v58  ;;  %v14762_v58 = vrot.slane %v14741_v35, %v19337_v61 }
0x1469   :  { %v15287_v54 = vpop.f32.mrf.mxu1  ;;  %v15328_v34 = vpop.f32.mrf.mxu0 }
0x146a   :  { %v15288_v43 = vadd.f32 %v15287_v54, %v14746_v49  ;;  %v15329_v31 = vadd.f32 %v15328_v34, %v14754_v15  ;;  %v20086_v54 = vld [vmem:[%s20225_s30 + $0x18] sm:$0xff]  ;;  %v15494_v34 = vmul.f32 %v20071_v62, %v20071_v62 }
0x146b   :  { %v15289_v22 = vpop.f32.mrf.mxu1  ;;  %v15330_v2 = vpop.f32.mrf.mxu0 }
0x146c   :  { %v15290_v33 = vadd.f32 %v15289_v22, %v14750_v23  ;;  %v15376_v57 = vadd.f32 %v15288_v43, %v20029_v21  ;;  %v15378_v14 = vadd.f32 %v15329_v31, %v20031_v11  ;;  %v15331_v52 = vadd.f32 %v15330_v2, %v14758_v39  ;;  %v15382_v39 = vld [vmem:[#allocation25] sm:$0x3f] }
0x146d   :  { %v15291_v38 = vpop.f32.mrf.mxu1  ;;  %v15332_v4 = vpop.f32.mrf.mxu0  ;;  %v15495_v22 = vmul.f32 %v20076_v9, %v20076_v9  ;;  %v15496_v2 = vmul.f32 %v20081_v30, %v20081_v30 }
0x146e   :  { %v15377_v42 = vadd.f32 %v15290_v33, %v20025_v56  ;;  %v15379_v40 = vadd.f32 %v15331_v52, %v20027_v59  ;;  %v20097_v38 = vld [vmem:[%s20225_s30 + $0x20] sm:$0xff]  ;;  %v15497_v4 = vmul.f32 %v20086_v54, %v20086_v54  ;;  %v15428_v52 = vrot.slane %v15382_v39, %v19260_v45 }
0x146f   :  { %v15292_v1 = vpop.f32.mrf.mxu1  ;;  %v15333_v12 = vpop.f32.mrf.mxu0  ;;  %v15498_v35 = vmul.f32 %v20097_v38, %v20097_v38 }
0x1470   :  { %v15384_v36 = vadd.f32 %v15377_v42, %v15376_v57  ;;  %v15500_v1 = vadd.f32 %v15495_v22, %v15494_v34  ;;  %v20104_v12 = vld [vmem:[%s20225_s30 + $0x28] sm:$0xff] }
0x1471   :  { %v15499_v49 = vmul.f32 %v20104_v12, %v20104_v12 }
0x1472   :  { %v15385_v41 = vadd.f32 %v15384_v36, %v15378_v14  ;;  %v15501_v23 = vadd.f32 %v15500_v1, %v15496_v2  ;;  %v15383_v36 = vld [vmem:[#allocation26] sm:$0x3f] }
0x1474   :  { %v15386_v56 = vadd.f32 %v15385_v41, %v15379_v40  ;;  %v15502_v33 = vadd.f32 %v15501_v23, %v15497_v4  ;;  %v15436_v41 = vrot.slane %v15382_v39, %v19263_v46 }
0x1476   :  { %v15503_v43 = vadd.f32 %v15502_v33, %v15498_v35 }
0x1478   :  { %v15504_v15 = vadd.f32 %v15503_v43, %v15499_v49 }
0x14a9   :  { %v15369_v32 = vpop.f32.mrf.mxu1 }
0x14aa   :  { %v15370_v60 = vadd.f32 %v15369_v32, %v14762_v58  ;;  %v15432_v58 = vrot.slane %v15382_v39, %v19295_v6  ;;  %v15440_v32 = vrot.slane %v15382_v39, %v19337_v61 }
0x14ab   :  { %v15371_v17 = vpop.f32.mrf.mxu1 }
0x14ac   :  { %v15380_v21 = vadd.f32 %v15370_v60, %v20035_v37  ;;  %v15372_v51 = vadd.f32 %v15371_v17, %v14766_v48  ;;  %v15465_v60 = vrot.slane %v15383_v36, %v19260_v45  ;;  %v15469_v17 = vrot.slane %v15383_v36, %v19295_v6 }
0x14ad   :  { %v15373_v19 = vpop.f32.mrf.mxu1 }
0x14ae   :  { %v15381_v10 = vadd.f32 %v15372_v51, %v20033_v55  ;;  %v15387_v8 = vadd.f32 %v15386_v56, %v15380_v21 }
0x14af   :  { %v15374_v11 = vpop.f32.mrf.mxu1 }
0x14b0   :  { %v15388_v13 = vadd.f32 %v15387_v8, %v15381_v10  ;;  %v15444_v11 = vrot.slane %v15382_v39, %v19310_v18 }
0x14b2   :  { %15389 = vadd.xlane.f32.xlu0 %v15388_v13  ;;  %v15473_v13 = vrot.slane %v15383_v36, %v19263_v46 }
0x14b6   :  { %15505 = vadd.xlane.f32.xlu0 %v15504_v15 }
0x153b   :  { %v15390_v44 = vpop.xlane.xlu0 %15389 }
0x153c   :  { %v15391_v27 = vmul.f32 0.0013020834, %v15390_v44 }
0x153e   :  { %v15392_v16 = vsub.f32 %v15376_v57, %v15391_v27  ;;  %v15393_v25 = vsub.f32 %v15377_v42, %v15391_v27  ;;  %v15394_v29 = vsub.f32 %v15378_v14, %v15391_v27  ;;  %v15395_v0 = vsub.f32 %v15379_v40, %v15391_v27 }
0x153f   :  { %v15396_v20 = vsub.f32 %v15380_v21, %v15391_v27  ;;  %v15397_v37 = vsub.f32 %v15381_v10, %v15391_v27  ;;  %v15424_v14 = vrot.slane %v15382_v39, %v19291_v3  ;;  %v15461_v40 = vrot.slane %v15383_v36, %v19291_v3  ;;  %v15506_v34 = vpop.xlane.xlu0 %15505 }
0x1540   :  { %v15398_v59 = vmul.f32 %v15392_v16, %v15392_v16  ;;  %v15399_v7 = vmul.f32 %v15393_v25, %v15393_v25  ;;  %v15400_v28 = vmul.f32 %v15394_v29, %v15394_v29  ;;  %v15401_v47 = vmul.f32 %v15395_v0, %v15395_v0 }
0x1541   :  { %v15402_v5 = vmul.f32 %v15396_v20, %v15396_v20  ;;  %v15403_v26 = vmul.f32 %v15397_v37, %v15397_v37  ;;  %v15477_v3 = vrot.slane %v15383_v36, %v19337_v61  ;;  %vm15509_vm3 = vcmp.eq.f32.partialorder %v15506_v34, inf }
0x1542   :  { %v15404_v24 = vadd.f32 %v15399_v7, %v15398_v59  ;;  %v15512_v1 = vand.u32 2147483648, %v15506_v34  ;;  %vm15511_vm4 = vcmp.eq.f32.partialorder %v15506_v34, 0.0 }
0x1544   :  { %v15405_v50 = vadd.f32 %v15404_v24, %v15400_v28 }
0x1546   :  { %v15406_v55 = vadd.f32 %v15405_v50, %v15401_v47 }
0x1548   :  { %v15407_v53 = vadd.f32 %v15406_v55, %v15402_v5 }
0x154a   :  { %v15408_v63 = vadd.f32 %v15407_v53, %v15403_v26 }
0x154c   :  { %15409 = vadd.xlane.f32.xlu1 %v15408_v63 }
0x15d5   :  { %v15410_v42 = vpop.xlane.xlu1 %15409 }
0x15d6   :  { %v15411_v57 = vmul.f32 0.0013020834, %v15410_v42 }
0x15d8   :  { %v15412_v31 = vadd.f32 1e-05, %v15411_v57 }
0x15da   :  { %18683 = vrsqrt.f32 %v15412_v31 }
0x15db   :  { %18685 = vrsqrt.f32 %v15506_v34 }
0x15e7   :  { %v18684_v48 = vpop.eup %18683 }
0x15e8   :  { %v15414_v56 = vmul.f32 %v18684_v48, %v15392_v16  ;;  %v15415_v21 = vmul.f32 %v18684_v48, %v15393_v25  ;;  %v15416_v51 = vmul.f32 %v18684_v48, %v15394_v29  ;;  %v15417_v19 = vmul.f32 %v18684_v48, %v15395_v0  ;;  %v18686_v2 = vpop.eup %18685 }
0x15e9   :  { %v15418_v10 = vmul.f32 %v18684_v48, %v15396_v20  ;;  %v15419_v8 = vmul.f32 %v18684_v48, %v15397_v37  ;;  %v15481_v25 = vrot.slane %v15383_v36, %v19310_v18  ;;  %v15508_v4 = vmul.f32 %v18686_v2, %v15506_v34 }
0x15ea   :  { %v15451_v44 = vmul.f32 %v15424_v14, %v15414_v56  ;;  %v15452_v27 = vmul.f32 %v15428_v52, %v15415_v21  ;;  %v15453_v59 = vmul.f32 %v15432_v58, %v15416_v51  ;;  %v15454_v7 = vmul.f32 %v15436_v41, %v15417_v19 }
0x15eb   :  { %v15455_v28 = vmul.f32 %v15440_v32, %v15418_v10  ;;  %v15456_v29 = vmul.f32 %v15444_v11, %v15419_v8  ;;  %v15510_v35 = vsel %vm15509_vm3, %v15506_v34, %v15508_v4 }
0x15ec   :  { %v20121_v45 = vadd.f32 %v15461_v40, %v15451_v44  ;;  %v20123_v6 = vadd.f32 %v15465_v60, %v15452_v27  ;;  %v20125_v16 = vadd.f32 %v15469_v17, %v15453_v59  ;;  %v20128_v0 = vadd.f32 %v15473_v13, %v15454_v7 }
0x15ed   :  { %v20134_v24 = vadd.f32 %v15477_v3, %v15455_v28  ;;  %v20138_v47 = vadd.f32 %v15481_v25, %v15456_v29  ;;  %v15513_v23 = vsel %vm15511_vm4, %v15512_v1, %v15510_v35 }
0x15ee   :  { %v15522_v46 = vmul.f32 %v20121_v45, %v20121_v45  ;;  %v15523_v20 = vmul.f32 %v20123_v6, %v20123_v6  ;;  %v15524_v61 = vmul.f32 %v20125_v16, %v20125_v16  ;;  %v15525_v18 = vmul.f32 %v20128_v0, %v20128_v0 }
0x15ef   :  { %v15526_v5 = vmul.f32 %v20134_v24, %v20134_v24  ;;  %v15527_v26 = vmul.f32 %v20138_v47, %v20138_v47  ;;  %v15514_v33 = vmax.f32 %v15513_v23, 1e-12 }
0x15f0   :  { %v15528_v37 = vadd.f32 %v15523_v20, %v15522_v46 }
0x15f2   :  { %v15529_v50 = vadd.f32 %v15528_v37, %v15524_v61 }
0x15f4   :  { %v15530_v55 = vadd.f32 %v15529_v50, %v15525_v18 }
0x15f6   :  { %v15531_v53 = vadd.f32 %v15530_v55, %v15526_v5 }
0x15f8   :  { %v15532_v63 = vadd.f32 %v15531_v53, %v15527_v26 }
0x15fa   :  { %15533 = vadd.xlane.f32.xlu1 %v15532_v63 }
0x1683   :  { %v15534_v22 = vpop.xlane.xlu1 %15533 }
0x1684   :  { %18687 = vrsqrt.f32 %v15534_v22  ;;  %vm15537_vm5 = vcmp.eq.f32.partialorder %v15534_v22, inf  ;;  %v15540_v15 = vand.u32 2147483648, %v15534_v22  ;;  %vm15539_vm6 = vcmp.eq.f32.partialorder %v15534_v22, 0.0 }
0x1685   :  { %18689 = vrcp.f32 %v15514_v33 }
0x1691   :  { %v18688_v49 = vpop.eup %18687 }
0x1692   :  { %v15536_v43 = vmul.f32 %v18688_v49, %v15534_v22  ;;  %v18690_v39 = vpop.eup %18689 }
0x1693   :  { %v15516_v14 = vmul.f32 %v18690_v39, %v20071_v62  ;;  %v15517_v52 = vmul.f32 %v18690_v39, %v20076_v9  ;;  %v15518_v58 = vmul.f32 %v18690_v39, %v20081_v30  ;;  %v15519_v41 = vmul.f32 %v18690_v39, %v20086_v54 }
0x1694   :  { %v15538_v42 = vsel %vm15537_vm5, %v15534_v22, %v15536_v43  ;;  %v15520_v17 = vmul.f32 %v18690_v39, %v20097_v38  ;;  %v15521_v56 = vmul.f32 %v18690_v39, %v20104_v12 }
0x1695   :  { %v15541_v57 = vsel %vm15539_vm6, %v15540_v15, %v15538_v42 }
0x1696   :  { %v15542_v31 = vmax.f32 %v15541_v57, 1e-12 }
0x1698   :  { %18691 = vrcp.f32 %v15542_v31 }
0x16a5   :  { %v18692_v36 = vpop.eup %18691 }
0x16a6   :  { %v15544_v48 = vmul.f32 %v18692_v36, %v20121_v45  ;;  %v15545_v32 = vmul.f32 %v18692_v36, %v20123_v6  ;;  %v15546_v40 = vmul.f32 %v18692_v36, %v20125_v16  ;;  %v15547_v60 = vmul.f32 %v18692_v36, %v20128_v0 }
0x16a7   :  { %v15548_v62 = vmul.f32 %v18692_v36, %v20134_v24  ;;  %v15549_v9 = vmul.f32 %v18692_v36, %v20138_v47 }
0x16a8   :  { %v15550_v21 = vmul.f32 %v15544_v48, %v15516_v14  ;;  %v15551_v30 = vmul.f32 %v15545_v32, %v15517_v52  ;;  %v15552_v51 = vmul.f32 %v15546_v40, %v15518_v58  ;;  %v15553_v54 = vmul.f32 %v15547_v60, %v15519_v41 }
0x16a9   :  { %v15554_v19 = vmul.f32 %v15548_v62, %v15520_v17  ;;  %v15555_v10 = vmul.f32 %v15549_v9, %v15521_v56 }
0x16aa   :  { %v15556_v8 = vmul.f32 -1.0, %v15550_v21  ;;  %v15557_v11 = vmul.f32 -1.0, %v15551_v30  ;;  %v15558_v13 = vmul.f32 -1.0, %v15552_v51  ;;  %v15559_v44 = vmul.f32 -1.0, %v15553_v54 }
0x16ab   :  { %v15560_v27 = vmul.f32 -1.0, %v15554_v19  ;;  %v15561_v59 = vmul.f32 -1.0, %v15555_v10 }
0x16ac   :  { %v15562_v7 = vmul.f32 1.442695, %v15556_v8  ;;  %v15564_v38 = vmul.f32 1.442695, %v15557_v11  ;;  %v15566_v3 = vmul.f32 1.442695, %v15558_v13 }
0x16ad   :  { %v15568_v12 = vmul.f32 1.442695, %v15559_v44  ;;  %v15570_v28 = vmul.f32 1.442695, %v15560_v27  ;;  %v15572_v25 = vmul.f32 1.442695, %v15561_v59 }
0x16ae   :  { %18693 = vpow2.f32 %v15562_v7 }
0x16af   :  { %18695 = vpow2.f32 %v15564_v38 }
0x16b0   :  { %18697 = vpow2.f32 %v15566_v3 }
0x16b1   :  { %18699 = vpow2.f32 %v15568_v12 }
0x16b2   :  { %18701 = vpow2.f32 %v15570_v28 }
0x16b3   :  { %18703 = vpow2.f32 %v15572_v25 }
0x16bb   :  { %v18694_v29 = vpop.eup %18693 }
0x16bc   :  { %v18696_v46 = vpop.eup %18695  ;;  %v15574_v20 = vmul.f32 %v18694_v29, %v20121_v45 }
0x16bd   :  { %v18698_v61 = vpop.eup %18697  ;;  %v15575_v37 = vmul.f32 %v18696_v46, %v20123_v6 }
0x16be   :  { %v18700_v18 = vpop.eup %18699  ;;  %v15576_v50 = vmul.f32 %v18698_v61, %v20125_v16  ;;  %15580 = vst [vmem:[#allocation28] sm:$0xff] %v15574_v20 }
0x16bf   :  { %v18702_v5 = vpop.eup %18701  ;;  %v15577_v55 = vmul.f32 %v18700_v18, %v20128_v0  ;;  %15581 = vst [vmem:[#allocation28 + $0x8] sm:$0xff] %v15575_v37 }
0x16c0   :  { %v18704_v26 = vpop.eup %18703  ;;  %v15578_v53 = vmul.f32 %v18702_v5, %v20134_v24  ;;  %15582 = vst [vmem:[#allocation28 + $0x10] sm:$0xff] %v15576_v50 }
0x16c1   :  { %v15579_v63 = vmul.f32 %v18704_v26, %v20138_v47  ;;  %15583 = vst [vmem:[#allocation28 + $0x18] sm:$0xff] %v15577_v55 }
0x16c2   :  { %15584 = vst [vmem:[#allocation28 + $0x20] sm:$0xff] %v15578_v53 }
0x16c3   :  { %15585 = vst [vmem:[#allocation28 + $0x28] sm:$0xff] %v15579_v63 }
0x16c4   :  { %19038 = shalt.err (!%p19035_p0)
}
0x16c5   :  { %15595 = dma.vmem_to_hbm [thread:$0]  %s15593_s7, 768, %s20186_s19, [#allocation4]  }
0x16c6   :  { %19065 = dma.done.wait [#allocation4], 768  }
0x16c7   :  { %19066 = vsyncadd [#allocation4], 4294966528 }
0x16c8   :  { %15603 = vsyncpa [#allocation3], 1 }
0x16c9   :  { %15604 = vsyncpa [#allocation6], 1 }
0x16ca   :  { %15605 = vsyncpa [#allocation9], 1 }
0x16cb   :  { %15606 = vsyncpa [#allocation12], 1 }
0x16cc   :  { %15607 = vsyncpa [#allocation15], 1 }
0x16cd   :  { %15608 = vsyncpa [#allocation18], 1 }
0x16ce   :  { %15609 = vsyncpa [#allocation21], 1 }
0x16cf   :  { %15610 = vsyncpa [#allocation24], 1 }
0x16d0   :  { %15611 = vsyncpa [#allocation27], 1 }
0x16d1   :  { %15612 = vsyncpa [#allocation4], 1 }

</bundles_post_ra>
